<compile_context>
chip_gen: v6e
topology: v6e:2x2x1
jax: 0.10.0
libtpu: 0.0.40
codegen_flags: <defaults>
</compile_context>

<pallas_src>
import functools
import math

import jax
import jax.numpy as jnp
from jax.experimental import pallas as pl
from jax.experimental.pallas import tpu as pltpu

LRELU_SLOPE = 0.2
BN_EPS = 1e-5


# ---------------------------------------------------------------------------
# Helpers
# ---------------------------------------------------------------------------
def _round_up(x, m):
    return (x + m - 1) // m * m


def _pick_tile(dim, unit, max_tile):
    """Pick (tile, padded_dim): tile is a multiple of `unit`, <= max_tile,
    and divides padded_dim = round_up(dim, unit) exactly."""
    padded = _round_up(dim, unit)
    tile = unit
    t = unit
    limit = min(max_tile, padded)
    while t <= limit:
        if padded % t == 0:
            tile = t
        t += unit
    return tile, padded


# ---------------------------------------------------------------------------
# Tiled matmul + bias (+ optional LeakyReLU) kernel
# ---------------------------------------------------------------------------
def _matmul_bias_act_kernel(x_ref, w_ref, b_ref, o_ref, acc_ref, *, slope):
    @pl.when(pl.program_id(2) == 0)
    def _():
        acc_ref[...] = jnp.zeros_like(acc_ref)

    acc_ref[...] += jnp.dot(x_ref[...], w_ref[...],
                            preferred_element_type=jnp.float32)

    @pl.when(pl.program_id(2) == pl.num_programs(2) - 1)
    def _():
        acc = acc_ref[...] + b_ref[...]
        if slope is not None:                       # static (fused LeakyReLU)
            acc = jnp.where(acc > 0, acc, slope * acc)
        o_ref[...] = acc.astype(o_ref.dtype)


def matmul_bias_act(x, w, b, *, slope=None, out_dtype=jnp.float32):
    """y = x @ w + b (optionally LeakyReLU).  x:(M,K)  w:(K,N)  b:(N,).

    Inputs are cast to bf16 (fp32 accumulation) and the matmul runs on a
    tiled (M, N, K) grid with a VMEM accumulator."""
    M, K = x.shape
    K2, N = w.shape
    assert K == K2
    tm, Mp = _pick_tile(M, 8, 256)
    tk, Kp = _pick_tile(K, 128, 512)
    tn, Np = _pick_tile(N, 128, 256)

    xb = x.astype(jnp.bfloat16)
    wb = w.astype(jnp.bfloat16)
    if (Mp, Kp) != (M, K):
        xb = jnp.pad(xb, ((0, Mp - M), (0, Kp - K)))
    if (Kp, Np) != (K, N):
        wb = jnp.pad(wb, ((0, Kp - K), (0, Np - N)))
    bb = jnp.pad(b.astype(jnp.float32), (0, Np - N)).reshape(1, Np)

    grid = (Mp // tm, Np // tn, Kp // tk)
    out = pl.pallas_call(
        functools.partial(_matmul_bias_act_kernel, slope=slope),
        out_shape=jax.ShapeDtypeStruct((Mp, Np), out_dtype),
        grid_spec=pltpu.PrefetchScalarGridSpec(
            num_scalar_prefetch=0,
            grid=grid,
            in_specs=[
                pl.BlockSpec((tm, tk), lambda i, j, k: (i, k)),
                pl.BlockSpec((tk, tn), lambda i, j, k: (k, j)),
                pl.BlockSpec((1, tn), lambda i, j, k: (0, j)),
            ],
            out_specs=pl.BlockSpec((tm, tn), lambda i, j, k: (i, j)),
            scratch_shapes=[pltpu.VMEM((tm, tn), jnp.float32)],
        ),
        compiler_params=pltpu.CompilerParams(
            dimension_semantics=("parallel", "parallel", "arbitrary")),
    )(xb, wb, bb)
    if (Mp, Np) != (M, N):
        out = out[:M, :N]
    return out


# ---------------------------------------------------------------------------
# Tiled BatchNorm (training-mode batch stats) + LeakyReLU
# ---------------------------------------------------------------------------
def _bn_stats_kernel(y_ref, sum_ref, sq_ref):
    @pl.when(pl.program_id(0) == 0)
    def _():
        sum_ref[...] = jnp.zeros_like(sum_ref)
        sq_ref[...] = jnp.zeros_like(sq_ref)

    y = y_ref[...]
    sum_ref[...] += jnp.sum(y, axis=0, keepdims=True)
    sq_ref[...] += jnp.sum(y * y, axis=0, keepdims=True)


def _bn_apply_kernel(y_ref, scale_ref, shift_ref, o_ref, *, slope):
    z = y_ref[...] * scale_ref[...] + shift_ref[...]
    o_ref[...] = jnp.where(z > 0, z, slope * z)


def batchnorm_lrelu(x_nhwc, gamma, beta):
    N, H, W, C = x_nhwc.shape
    M = N * H * W
    y = x_nhwc.reshape(M, C)
    tm, Mp = _pick_tile(M, 8, 512)
    yp = jnp.pad(y, ((0, Mp - M), (0, 0))) if Mp != M else y
    grid = (Mp // tm,)

    # Pass 1: per-channel sum and sum-of-squares (accumulator output blocks,
    # reduction axis marked "arbitrary"); zero row-padding contributes nothing.
    s, sq = pl.pallas_call(
        _bn_stats_kernel,
        out_shape=(jax.ShapeDtypeStruct((1, C), jnp.float32),
                   jax.ShapeDtypeStruct((1, C), jnp.float32)),
        grid=grid,
        in_specs=[pl.BlockSpec((tm, C), lambda i: (i, 0))],
        out_specs=(pl.BlockSpec((1, C), lambda i: (0, 0)),
                   pl.BlockSpec((1, C), lambda i: (0, 0))),
        compiler_params=pltpu.CompilerParams(
            dimension_semantics=("arbitrary",)),
    )(yp)

    mean = s / M
    var = jnp.maximum(sq / M - mean * mean, 0.0)     # biased (training-mode) var
    inv = jax.lax.rsqrt(var + BN_EPS)
    scale = gamma.reshape(1, C) * inv
    shift = beta.reshape(1, C) - mean * scale

    # Pass 2: tiled normalize + LeakyReLU.
    out = pl.pallas_call(
        functools.partial(_bn_apply_kernel, slope=LRELU_SLOPE),
        out_shape=jax.ShapeDtypeStruct((Mp, C), jnp.float32),
        grid=grid,
        in_specs=[pl.BlockSpec((tm, C), lambda i: (i, 0)),
                  pl.BlockSpec((1, C), lambda i: (0, 0)),
                  pl.BlockSpec((1, C), lambda i: (0, 0))],
        out_specs=pl.BlockSpec((tm, C), lambda i: (i, 0)),
        compiler_params=pltpu.CompilerParams(
            dimension_semantics=("parallel",)),
    )(yp, scale, shift)
    if Mp != M:
        out = out[:M]
    return out.reshape(N, H, W, C)


# ---------------------------------------------------------------------------
# Fused head: fc1 + LeakyReLU + fc2 in a single small Pallas call
# ---------------------------------------------------------------------------
def _head_kernel(f_ref, w1_ref, b1_ref, w2_ref, b2_ref, o_ref, *, slope):
    h = jnp.dot(f_ref[...], w1_ref[...],
                preferred_element_type=jnp.float32) + b1_ref[...]
    h = jnp.where(h > 0, h, slope * h)
    o = jnp.dot(h, w2_ref[...],
                preferred_element_type=jnp.float32) + b2_ref[...]
    o_ref[...] = o


def head(feat, w1, b1, w2, b2):
    B, D1 = feat.shape
    D2 = w1.shape[1]
    return pl.pallas_call(
        functools.partial(_head_kernel, slope=LRELU_SLOPE),
        out_shape=jax.ShapeDtypeStruct((B, 1), jnp.float32),
        grid=(1,),
        in_specs=[pl.BlockSpec((B, D1), lambda i: (0, 0)),
                  pl.BlockSpec((D1, D2), lambda i: (0, 0)),
                  pl.BlockSpec((1, D2), lambda i: (0, 0)),
                  pl.BlockSpec((D2, 1), lambda i: (0, 0)),
                  pl.BlockSpec((1, 1), lambda i: (0, 0))],
        out_specs=pl.BlockSpec((B, 1), lambda i: (0, 0)),
    )(feat, w1, b1.reshape(1, D2), w2, b2.reshape(1, 1))


# ---------------------------------------------------------------------------
# Conv layer = im2col (bf16, JAX glue) + Pallas tiled matmul kernel
# ---------------------------------------------------------------------------
def conv3x3(x_nhwc, wm, b, *, stride, slope=None):
    """3x3 conv, padding=1.  wm is the pre-reshaped bf16 weight (9*Cin, Cout)."""
    N, H, W, Cin = x_nhwc.shape
    Cout = wm.shape[1]
    Hout = (H + 2 - 3) // stride + 1
    Wout = (W + 2 - 3) // stride + 1
    xp = jnp.pad(x_nhwc, ((0, 0), (1, 1), (1, 1), (0, 0))).astype(jnp.bfloat16)
    cols = []
    for kh in range(3):
        for kw in range(3):
            cols.append(
                xp[:, kh:kh + (Hout - 1) * stride + 1:stride,
                      kw:kw + (Wout - 1) * stride + 1:stride, :])
    patches = jnp.concatenate(cols, axis=-1).reshape(N * Hout * Wout, 9 * Cin)
    y = matmul_bias_act(patches, wm, b, slope=slope)
    return y.reshape(N, Hout, Wout, Cout)


# (cin, cout, stride, has_bn) — exactly the torch nn.Sequential conv blocks
_BLOCKS = (
    (3, 64, 1, False),
    (64, 64, 2, True),
    (64, 128, 1, True),
    (128, 128, 2, True),
    (128, 256, 1, True),
    (256, 256, 2, True),
    (256, 512, 1, True),
    (512, 512, 2, True),
)


def init_params(key):
    params = {"conv": []}
    for cin, cout, stride, has_bn in _BLOCKS:
        key, kw, kb = jax.random.split(key, 3)
        fan_in = cin * 9
        w = jax.random.normal(kw, (cout, cin, 3, 3), jnp.float32) / math.sqrt(fan_in)
        b = 0.01 * jax.random.normal(kb, (cout,), jnp.float32)
        blk = {"w": w, "b": b}
        if has_bn:
            blk["gamma"] = jnp.ones((cout,), jnp.float32)   # torch BN default
            blk["beta"] = jnp.zeros((cout,), jnp.float32)
        params["conv"].append(blk)
    key, k1, k2, k3, k4 = jax.random.split(key, 5)
    params["fc1_w"] = jax.random.normal(k1, (512, 1024), jnp.float32) / math.sqrt(512)
    params["fc1_b"] = 0.01 * jax.random.normal(k2, (1024,), jnp.float32)
    params["fc2_w"] = jax.random.normal(k3, (1024, 1), jnp.float32) / math.sqrt(1024)
    params["fc2_b"] = 0.01 * jax.random.normal(k4, (1,), jnp.float32)
    return params


def prepare_params(params):
    """One-time weight re-layout (OIHW -> (9*Cin, Cout)) and bf16 cast,
    hoisted out of the per-forward path."""
    prepared = {"conv": []}
    for (cin, cout, stride, has_bn), blk in zip(_BLOCKS, params["conv"]):
        wm = jnp.transpose(blk["w"], (2, 3, 1, 0)).reshape(9 * cin, cout)
        p = {"wm": wm.astype(jnp.bfloat16), "b": blk["b"]}
        if has_bn:
            p["gamma"] = blk["gamma"]
            p["beta"] = blk["beta"]
        prepared["conv"].append(p)
    for k in ("fc1_w", "fc1_b", "fc2_w", "fc2_b"):
        prepared[k] = params[k]
    return prepared


def discriminator_forward(x_nchw, params):
    batch = x_nchw.shape[0]
    x = jnp.transpose(x_nchw, (0, 2, 3, 1)).astype(jnp.float32)  # NCHW -> NHWC
    for (cin, cout, stride, has_bn), blk in zip(_BLOCKS, params["conv"]):
        if has_bn:
            x = conv3x3(x, blk["wm"], blk["b"], stride=stride, slope=None)
            x = batchnorm_lrelu(x, blk["gamma"], blk["beta"])
        else:
            x = conv3x3(x, blk["wm"], blk["b"], stride=stride, slope=LRELU_SLOPE)
    # AdaptiveAvgPool2d(1): global average over spatial dims (cheap glue reduce)
    feat = jnp.mean(x, axis=(1, 2))                                   # (N, 512)
    # 1x1 convs on 1x1 spatial == dense layers; fused fc1+lrelu+fc2 kernel
    out = head(feat, params["fc1_w"], params["fc1_b"],
               params["fc2_w"], params["fc2_b"])
    return out.reshape(batch)


if __name__ == "__main__":
    key = jax.random.PRNGKey(0)
    kx, kp = jax.random.split(key)
    x = jax.random.normal(kx, (2, 3, 16, 16), jnp.float32)  # NCHW, like torch
    params = prepare_params(init_params(kp))
    fwd = jax.jit(discriminator_forward)
    out = fwd(x, params)
    out = jax.block_until_ready(out)
    assert out.shape == (2,) and out.dtype == jnp.float32
    print("KERNEL_OK")
</pallas_src>

<mosaic_0001>
module attributes {stable_mosaic.version = 11 : i64} {
  func.func @_matmul_bias_act_kernel(%arg0: i32, %arg1: i32, %arg2: i32, %arg3: memref<256x128xbf16, #tpu.memory_space<vmem>>, %arg4: memref<128x128xbf16, #tpu.memory_space<vmem>>, %arg5: memref<1x128xf32, #tpu.memory_space<vmem>>, %arg6: memref<256x128xf32, #tpu.memory_space<vmem>>, %arg7: memref<256x128xf32, #tpu.memory_space<vmem>>) attributes {dimension_semantics = [#tpu.dimension_semantics<parallel>, #tpu.dimension_semantics<parallel>, #tpu.dimension_semantics<arbitrary>], iteration_bounds = array<i64: 2, 1, 1>, scalar_prefetch = 0 : i64, scratch_operands = 1 : i64, tpu.core_type = #tpu.core_type<tc>, window_params = [{transform_indices = @transform_0, window_bounds = array<i64: 256, 128>}, {transform_indices = @transform_1, window_bounds = array<i64: 128, 128>}, {transform_indices = @transform_2, window_bounds = array<i64: 1, 128>}, {transform_indices = @transform_3, window_bounds = array<i64: 256, 128>}]} {
    %c0_i32 = arith.constant 0 : i32
    %0 = arith.cmpi eq, %arg2, %c0_i32 : i32
    %1 = arith.extui %0 : i1 to i32
    %c0_i32_0 = arith.constant 0 : i32
    %2 = arith.cmpi ne, %1, %c0_i32_0 : i32
    scf.if %2 {
      %cst_10 = arith.constant 0.000000e+00 : f32
      %12 = vector.broadcast %cst_10 : f32 to vector<256x128xf32>
      %c0_11 = arith.constant 0 : index
      %c0_12 = arith.constant 0 : index
      %13 = vector.load %arg7[%c0_11, %c0_12] : memref<256x128xf32, #tpu.memory_space<vmem>>, vector<256x128xf32>
      tpu.vector_store %arg7[%c0_11, %c0_12], %12 {strides = array<i32>} : memref<256x128xf32, #tpu.memory_space<vmem>>, vector<256x128xf32>,
    } else {
    }
    %c0 = arith.constant 0 : index
    %c0_1 = arith.constant 0 : index
    %3 = vector.load %arg7[%c0, %c0_1] : memref<256x128xf32, #tpu.memory_space<vmem>>, vector<256x128xf32>
    %c0_2 = arith.constant 0 : index
    %c0_3 = arith.constant 0 : index
    %4 = vector.load %arg3[%c0_2, %c0_3] : memref<256x128xbf16, #tpu.memory_space<vmem>>, vector<256x128xbf16>
    %c0_4 = arith.constant 0 : index
    %c0_5 = arith.constant 0 : index
    %5 = vector.load %arg4[%c0_4, %c0_5] : memref<128x128xbf16, #tpu.memory_space<vmem>>, vector<128x128xbf16>
    %cst = arith.constant dense<0.000000e+00> : vector<256x128xf32>
    %6 = tpu.matmul %4, %5, %cst {dimension_numbers = #tpu.dot_dimension_numbers<[1], [0], [0], [1], [0, 0, 1, 1], [], []>} : vector<256x128xbf16>, vector<128x128xbf16>, vector<256x128xf32> -> vector<256x128xf32>
    %7 = arith.addf %3, %6 : vector<256x128xf32>
    %c0_6 = arith.constant 0 : index
    %c0_7 = arith.constant 0 : index
    %8 = vector.load %arg7[%c0_6, %c0_7] : memref<256x128xf32, #tpu.memory_space<vmem>>, vector<256x128xf32>
    tpu.vector_store %arg7[%c0_6, %c0_7], %7 {strides = array<i32>} : memref<256x128xf32, #tpu.memory_space<vmem>>, vector<256x128xf32>,
    %c0_i32_8 = arith.constant 0 : i32
    %9 = arith.cmpi eq, %arg2, %c0_i32_8 : i32
    %10 = arith.extui %9 : i1 to i32
    %c0_i32_9 = arith.constant 0 : i32
    %11 = arith.cmpi ne, %10, %c0_i32_9 : i32
    scf.if %11 {
      %c0_10 = arith.constant 0 : index
      %c0_11 = arith.constant 0 : index
      %12 = vector.load %arg7[%c0_10, %c0_11] : memref<256x128xf32, #tpu.memory_space<vmem>>, vector<256x128xf32>
      %c0_12 = arith.constant 0 : index
      %c0_13 = arith.constant 0 : index
      %13 = vector.load %arg5[%c0_12, %c0_13] : memref<1x128xf32, #tpu.memory_space<vmem>>, vector<1x128xf32>
      %14 = vector.broadcast %13 : vector<1x128xf32> to vector<256x128xf32>
      %15 = arith.addf %12, %14 : vector<256x128xf32>
      %cst_14 = arith.constant 0.000000e+00 : f32
      %16 = vector.broadcast %cst_14 : f32 to vector<256x128xf32>
      %17 = arith.cmpf ogt, %15, %16 : vector<256x128xf32>
      %cst_15 = arith.constant 2.000000e-01 : f32
      %18 = vector.broadcast %cst_15 : f32 to vector<256x128xf32>
      %19 = arith.mulf %18, %15 : vector<256x128xf32>
      %20 = arith.select %17, %15, %19 : vector<256x128xi1>, vector<256x128xf32>
      %c0_16 = arith.constant 0 : index
      %c0_17 = arith.constant 0 : index
      %21 = vector.load %arg6[%c0_16, %c0_17] : memref<256x128xf32, #tpu.memory_space<vmem>>, vector<256x128xf32>
      tpu.vector_store %arg6[%c0_16, %c0_17], %20 {strides = array<i32>} : memref<256x128xf32, #tpu.memory_space<vmem>>, vector<256x128xf32>,
    } else {
    }
    return
  }
  func.func @transform_0(%arg0: i32, %arg1: i32, %arg2: i32) -> (i32, i32) {
    %c0_i32 = arith.constant 0 : i32
    return %arg0, %arg2 : i32, i32
  }
  func.func @transform_1(%arg0: i32, %arg1: i32, %arg2: i32) -> (i32, i32) {
    %c0_i32 = arith.constant 0 : i32
    return %arg2, %arg1 : i32, i32
  }
  func.func @transform_2(%arg0: i32, %arg1: i32, %arg2: i32) -> (i32, i32) {
    %c0_i32 = arith.constant 0 : i32
    %c0_i32_0 = arith.constant 0 : i32
    return %c0_i32, %arg1 : i32, i32
  }
  func.func @transform_3(%arg0: i32, %arg1: i32, %arg2: i32) -> (i32, i32) {
    %c0_i32 = arith.constant 0 : i32
    return %arg0, %arg1 : i32, i32
  }
}

module attributes {stable_mosaic.version = 11 : i64} {
  func.func @_bn_apply_kernel(%arg0: i32, %arg1: memref<128x64xf32, #tpu.memory_space<vmem>>, %arg2: memref<1x64xf32, #tpu.memory_space<vmem>>, %arg3: memref<1x64xf32, #tpu.memory_space<vmem>>, %arg4: memref<128x64xf32, #tpu.memory_space<vmem>>) attributes {dimension_semantics = [#tpu.dimension_semantics<parallel>], iteration_bounds = array<i64: 1>, scalar_prefetch = 0 : i64, scratch_operands = 0 : i64, tpu.core_type = #tpu.core_type<tc>, window_params = [{transform_indices = @transform_0, window_bounds = array<i64: 128, 64>}, {pipeline_mode = #tpu.pipeline_mode<synchronous>, transform_indices = @transform_1, window_bounds = array<i64: 1, 64>}, {pipeline_mode = #tpu.pipeline_mode<synchronous>, transform_indices = @transform_2, window_bounds = array<i64: 1, 64>}, {transform_indices = @transform_3, window_bounds = array<i64: 128, 64>}]} {
    %c0 = arith.constant 0 : index
    %c0_0 = arith.constant 0 : index
    %0 = vector.load %arg1[%c0, %c0_0] : memref<128x64xf32, #tpu.memory_space<vmem>>, vector<128x64xf32>
    %c0_1 = arith.constant 0 : index
    %c0_2 = arith.constant 0 : index
    %1 = vector.load %arg2[%c0_1, %c0_2] : memref<1x64xf32, #tpu.memory_space<vmem>>, vector<1x64xf32>
    %2 = vector.broadcast %1 : vector<1x64xf32> to vector<128x64xf32>
    %3 = arith.mulf %0, %2 : vector<128x64xf32>
    %c0_3 = arith.constant 0 : index
    %c0_4 = arith.constant 0 : index
    %4 = vector.load %arg3[%c0_3, %c0_4] : memref<1x64xf32, #tpu.memory_space<vmem>>, vector<1x64xf32>
    %5 = vector.broadcast %4 : vector<1x64xf32> to vector<128x64xf32>
    %6 = arith.addf %3, %5 : vector<128x64xf32>
    %cst = arith.constant 0.000000e+00 : f32
    %7 = vector.broadcast %cst : f32 to vector<128x64xf32>
    %8 = arith.cmpf ogt, %6, %7 : vector<128x64xf32>
    %cst_5 = arith.constant 2.000000e-01 : f32
    %9 = vector.broadcast %cst_5 : f32 to vector<128x64xf32>
    %10 = arith.mulf %9, %6 : vector<128x64xf32>
    %11 = arith.select %8, %6, %10 : vector<128x64xi1>, vector<128x64xf32>
    %c0_6 = arith.constant 0 : index
    %c0_7 = arith.constant 0 : index
    %12 = vector.load %arg4[%c0_6, %c0_7] : memref<128x64xf32, #tpu.memory_space<vmem>>, vector<128x64xf32>
    tpu.vector_store %arg4[%c0_6, %c0_7], %11 {strides = array<i32>} : memref<128x64xf32, #tpu.memory_space<vmem>>, vector<128x64xf32>,
    return
  }
  func.func @transform_0(%arg0: i32) -> (i32, i32) {
    %c0_i32 = arith.constant 0 : i32
    %c0_i32_0 = arith.constant 0 : i32
    return %arg0, %c0_i32 : i32, i32
  }
  func.func @transform_1(%arg0: i32) -> (i32, i32) {
    %c0_i32 = arith.constant 0 : i32
    %c0_i32_0 = arith.constant 0 : i32
    %c0_i32_1 = arith.constant 0 : i32
    return %c0_i32, %c0_i32_0 : i32, i32
  }
  func.func @transform_2(%arg0: i32) -> (i32, i32) {
    %c0_i32 = arith.constant 0 : i32
    %c0_i32_0 = arith.constant 0 : i32
    %c0_i32_1 = arith.constant 0 : i32
    return %c0_i32, %c0_i32_0 : i32, i32
  }
  func.func @transform_3(%arg0: i32) -> (i32, i32) {
    %c0_i32 = arith.constant 0 : i32
    %c0_i32_0 = arith.constant 0 : i32
    return %arg0, %c0_i32 : i32, i32
  }
}

module attributes {stable_mosaic.version = 11 : i64} {
  func.func @_bn_stats_kernel(%arg0: i32, %arg1: memref<128x64xf32, #tpu.memory_space<vmem>>, %arg2: memref<1x64xf32, #tpu.memory_space<vmem>>, %arg3: memref<1x64xf32, #tpu.memory_space<vmem>>) attributes {dimension_semantics = [#tpu.dimension_semantics<arbitrary>], iteration_bounds = array<i64: 1>, scalar_prefetch = 0 : i64, scratch_operands = 0 : i64, tpu.core_type = #tpu.core_type<tc>, window_params = [{transform_indices = @transform_0, window_bounds = array<i64: 128, 64>}, {pipeline_mode = #tpu.pipeline_mode<synchronous>, transform_indices = @transform_1, window_bounds = array<i64: 1, 64>}, {pipeline_mode = #tpu.pipeline_mode<synchronous>, transform_indices = @transform_2, window_bounds = array<i64: 1, 64>}]} {
    %c0_i32 = arith.constant 0 : i32
    %0 = arith.cmpi eq, %arg0, %c0_i32 : i32
    %1 = arith.extui %0 : i1 to i32
    %c0_i32_0 = arith.constant 0 : i32
    %2 = arith.cmpi ne, %1, %c0_i32_0 : i32
    scf.if %2 {
      %cst_11 = arith.constant 0.000000e+00 : f32
      %15 = vector.broadcast %cst_11 : f32 to vector<1x64xf32>
      %c0_12 = arith.constant 0 : index
      %c0_13 = arith.constant 0 : index
      %16 = vector.load %arg2[%c0_12, %c0_13] : memref<1x64xf32, #tpu.memory_space<vmem>>, vector<1x64xf32>
      tpu.vector_store %arg2[%c0_12, %c0_13], %15 {strides = array<i32>} : memref<1x64xf32, #tpu.memory_space<vmem>>, vector<1x64xf32>,
      %cst_14 = arith.constant 0.000000e+00 : f32
      %17 = vector.broadcast %cst_14 : f32 to vector<1x64xf32>
      %c0_15 = arith.constant 0 : index
      %c0_16 = arith.constant 0 : index
      %18 = vector.load %arg3[%c0_15, %c0_16] : memref<1x64xf32, #tpu.memory_space<vmem>>, vector<1x64xf32>
      tpu.vector_store %arg3[%c0_15, %c0_16], %17 {strides = array<i32>} : memref<1x64xf32, #tpu.memory_space<vmem>>, vector<1x64xf32>,
    } else {
    }
    %c0 = arith.constant 0 : index
    %c0_1 = arith.constant 0 : index
    %3 = vector.load %arg1[%c0, %c0_1] : memref<128x64xf32, #tpu.memory_space<vmem>>, vector<128x64xf32>
    %c0_2 = arith.constant 0 : index
    %c0_3 = arith.constant 0 : index
    %4 = vector.load %arg2[%c0_2, %c0_3] : memref<1x64xf32, #tpu.memory_space<vmem>>, vector<1x64xf32>
    %cst = arith.constant dense<0.000000e+00> : vector<64xf32>
    %5 = vector.multi_reduction <add>, %3, %cst [0] : vector<128x64xf32> to vector<64xf32>
    %6 = vector.shape_cast %5 : vector<64xf32> to vector<1x64xf32>
    %7 = arith.addf %4, %6 : vector<1x64xf32>
    %c0_4 = arith.constant 0 : index
    %c0_5 = arith.constant 0 : index
    %8 = vector.load %arg2[%c0_4, %c0_5] : memref<1x64xf32, #tpu.memory_space<vmem>>, vector<1x64xf32>
    tpu.vector_store %arg2[%c0_4, %c0_5], %7 {strides = array<i32>} : memref<1x64xf32, #tpu.memory_space<vmem>>, vector<1x64xf32>,
    %c0_6 = arith.constant 0 : index
    %c0_7 = arith.constant 0 : index
    %9 = vector.load %arg3[%c0_6, %c0_7] : memref<1x64xf32, #tpu.memory_space<vmem>>, vector<1x64xf32>
    %10 = arith.mulf %3, %3 : vector<128x64xf32>
    %cst_8 = arith.constant dense<0.000000e+00> : vector<64xf32>
    %11 = vector.multi_reduction <add>, %10, %cst_8 [0] : vector<128x64xf32> to vector<64xf32>
    %12 = vector.shape_cast %11 : vector<64xf32> to vector<1x64xf32>
    %13 = arith.addf %9, %12 : vector<1x64xf32>
    %c0_9 = arith.constant 0 : index
    %c0_10 = arith.constant 0 : index
    %14 = vector.load %arg3[%c0_9, %c0_10] : memref<1x64xf32, #tpu.memory_space<vmem>>, vector<1x64xf32>
    tpu.vector_store %arg3[%c0_9, %c0_10], %13 {strides = array<i32>} : memref<1x64xf32, #tpu.memory_space<vmem>>, vector<1x64xf32>,
    return
  }
  func.func @transform_0(%arg0: i32) -> (i32, i32) {
    %c0_i32 = arith.constant 0 : i32
    %c0_i32_0 = arith.constant 0 : i32
    return %arg0, %c0_i32 : i32, i32
  }
  func.func @transform_1(%arg0: i32) -> (i32, i32) {
    %c0_i32 = arith.constant 0 : i32
    %c0_i32_0 = arith.constant 0 : i32
    %c0_i32_1 = arith.constant 0 : i32
    return %c0_i32, %c0_i32_0 : i32, i32
  }
  func.func @transform_2(%arg0: i32) -> (i32, i32) {
    %c0_i32 = arith.constant 0 : i32
    %c0_i32_0 = arith.constant 0 : i32
    %c0_i32_1 = arith.constant 0 : i32
    return %c0_i32, %c0_i32_0 : i32, i32
  }
}

module attributes {stable_mosaic.version = 11 : i64} {
  func.func @_matmul_bias_act_kernel(%arg0: i32, %arg1: i32, %arg2: i32, %arg3: memref<128x128xbf16, #tpu.memory_space<vmem>>, %arg4: memref<128x128xbf16, #tpu.memory_space<vmem>>, %arg5: memref<1x128xf32, #tpu.memory_space<vmem>>, %arg6: memref<128x128xf32, #tpu.memory_space<vmem>>, %arg7: memref<128x128xf32, #tpu.memory_space<vmem>>) attributes {dimension_semantics = [#tpu.dimension_semantics<parallel>, #tpu.dimension_semantics<parallel>, #tpu.dimension_semantics<arbitrary>], iteration_bounds = array<i64: 1, 1, 5>, scalar_prefetch = 0 : i64, scratch_operands = 1 : i64, tpu.core_type = #tpu.core_type<tc>, window_params = [{transform_indices = @transform_0, window_bounds = array<i64: 128, 128>}, {transform_indices = @transform_1, window_bounds = array<i64: 128, 128>}, {transform_indices = @transform_2, window_bounds = array<i64: 1, 128>}, {transform_indices = @transform_3, window_bounds = array<i64: 128, 128>}]} {
    %c0_i32 = arith.constant 0 : i32
    %0 = arith.cmpi eq, %arg2, %c0_i32 : i32
    %1 = arith.extui %0 : i1 to i32
    %c0_i32_0 = arith.constant 0 : i32
    %2 = arith.cmpi ne, %1, %c0_i32_0 : i32
    scf.if %2 {
      %cst_9 = arith.constant 0.000000e+00 : f32
      %12 = vector.broadcast %cst_9 : f32 to vector<128x128xf32>
      %c0_10 = arith.constant 0 : index
      %c0_11 = arith.constant 0 : index
      %13 = vector.load %arg7[%c0_10, %c0_11] : memref<128x128xf32, #tpu.memory_space<vmem>>, vector<128x128xf32>
      tpu.vector_store %arg7[%c0_10, %c0_11], %12 {strides = array<i32>} : memref<128x128xf32, #tpu.memory_space<vmem>>, vector<128x128xf32>,
    } else {
    }
    %c0 = arith.constant 0 : index
    %c0_1 = arith.constant 0 : index
    %3 = vector.load %arg7[%c0, %c0_1] : memref<128x128xf32, #tpu.memory_space<vmem>>, vector<128x128xf32>
    %c0_2 = arith.constant 0 : index
    %c0_3 = arith.constant 0 : index
    %4 = vector.load %arg3[%c0_2, %c0_3] : memref<128x128xbf16, #tpu.memory_space<vmem>>, vector<128x128xbf16>
    %c0_4 = arith.constant 0 : index
    %c0_5 = arith.constant 0 : index
    %5 = vector.load %arg4[%c0_4, %c0_5] : memref<128x128xbf16, #tpu.memory_space<vmem>>, vector<128x128xbf16>
    %cst = arith.constant dense<0.000000e+00> : vector<128x128xf32>
    %6 = tpu.matmul %4, %5, %cst {dimension_numbers = #tpu.dot_dimension_numbers<[1], [0], [0], [1], [0, 0, 1, 1], [], []>} : vector<128x128xbf16>, vector<128x128xbf16>, vector<128x128xf32> -> vector<128x128xf32>
    %7 = arith.addf %3, %6 : vector<128x128xf32>
    %c0_6 = arith.constant 0 : index
    %c0_7 = arith.constant 0 : index
    %8 = vector.load %arg7[%c0_6, %c0_7] : memref<128x128xf32, #tpu.memory_space<vmem>>, vector<128x128xf32>
    tpu.vector_store %arg7[%c0_6, %c0_7], %7 {strides = array<i32>} : memref<128x128xf32, #tpu.memory_space<vmem>>, vector<128x128xf32>,
    %c4_i32 = arith.constant 4 : i32
    %9 = arith.cmpi eq, %arg2, %c4_i32 : i32
    %10 = arith.extui %9 : i1 to i32
    %c0_i32_8 = arith.constant 0 : i32
    %11 = arith.cmpi ne, %10, %c0_i32_8 : i32
    scf.if %11 {
      %c0_9 = arith.constant 0 : index
      %c0_10 = arith.constant 0 : index
      %12 = vector.load %arg7[%c0_9, %c0_10] : memref<128x128xf32, #tpu.memory_space<vmem>>, vector<128x128xf32>
      %c0_11 = arith.constant 0 : index
      %c0_12 = arith.constant 0 : index
      %13 = vector.load %arg5[%c0_11, %c0_12] : memref<1x128xf32, #tpu.memory_space<vmem>>, vector<1x128xf32>
      %14 = vector.broadcast %13 : vector<1x128xf32> to vector<128x128xf32>
      %15 = arith.addf %12, %14 : vector<128x128xf32>
      %c0_13 = arith.constant 0 : index
      %c0_14 = arith.constant 0 : index
      %16 = vector.load %arg6[%c0_13, %c0_14] : memref<128x128xf32, #tpu.memory_space<vmem>>, vector<128x128xf32>
      tpu.vector_store %arg6[%c0_13, %c0_14], %15 {strides = array<i32>} : memref<128x128xf32, #tpu.memory_space<vmem>>, vector<128x128xf32>,
    } else {
    }
    return
  }
  func.func @transform_0(%arg0: i32, %arg1: i32, %arg2: i32) -> (i32, i32) {
    %c0_i32 = arith.constant 0 : i32
    return %arg0, %arg2 : i32, i32
  }
  func.func @transform_1(%arg0: i32, %arg1: i32, %arg2: i32) -> (i32, i32) {
    %c0_i32 = arith.constant 0 : i32
    return %arg2, %arg1 : i32, i32
  }
  func.func @transform_2(%arg0: i32, %arg1: i32, %arg2: i32) -> (i32, i32) {
    %c0_i32 = arith.constant 0 : i32
    %c0_i32_0 = arith.constant 0 : i32
    return %c0_i32, %arg1 : i32, i32
  }
  func.func @transform_3(%arg0: i32, %arg1: i32, %arg2: i32) -> (i32, i32) {
    %c0_i32 = arith.constant 0 : i32
    return %arg0, %arg1 : i32, i32
  }
}

module attributes {stable_mosaic.version = 11 : i64} {
  func.func @_bn_apply_kernel(%arg0: i32, %arg1: memref<128x128xf32, #tpu.memory_space<vmem>>, %arg2: memref<1x128xf32, #tpu.memory_space<vmem>>, %arg3: memref<1x128xf32, #tpu.memory_space<vmem>>, %arg4: memref<128x128xf32, #tpu.memory_space<vmem>>) attributes {dimension_semantics = [#tpu.dimension_semantics<parallel>], iteration_bounds = array<i64: 1>, scalar_prefetch = 0 : i64, scratch_operands = 0 : i64, tpu.core_type = #tpu.core_type<tc>, window_params = [{transform_indices = @transform_0, window_bounds = array<i64: 128, 128>}, {pipeline_mode = #tpu.pipeline_mode<synchronous>, transform_indices = @transform_1, window_bounds = array<i64: 1, 128>}, {pipeline_mode = #tpu.pipeline_mode<synchronous>, transform_indices = @transform_2, window_bounds = array<i64: 1, 128>}, {transform_indices = @transform_3, window_bounds = array<i64: 128, 128>}]} {
    %c0 = arith.constant 0 : index
    %c0_0 = arith.constant 0 : index
    %0 = vector.load %arg1[%c0, %c0_0] : memref<128x128xf32, #tpu.memory_space<vmem>>, vector<128x128xf32>
    %c0_1 = arith.constant 0 : index
    %c0_2 = arith.constant 0 : index
    %1 = vector.load %arg2[%c0_1, %c0_2] : memref<1x128xf32, #tpu.memory_space<vmem>>, vector<1x128xf32>
    %2 = vector.broadcast %1 : vector<1x128xf32> to vector<128x128xf32>
    %3 = arith.mulf %0, %2 : vector<128x128xf32>
    %c0_3 = arith.constant 0 : index
    %c0_4 = arith.constant 0 : index
    %4 = vector.load %arg3[%c0_3, %c0_4] : memref<1x128xf32, #tpu.memory_space<vmem>>, vector<1x128xf32>
    %5 = vector.broadcast %4 : vector<1x128xf32> to vector<128x128xf32>
    %6 = arith.addf %3, %5 : vector<128x128xf32>
    %cst = arith.constant 0.000000e+00 : f32
    %7 = vector.broadcast %cst : f32 to vector<128x128xf32>
    %8 = arith.cmpf ogt, %6, %7 : vector<128x128xf32>
    %cst_5 = arith.constant 2.000000e-01 : f32
    %9 = vector.broadcast %cst_5 : f32 to vector<128x128xf32>
    %10 = arith.mulf %9, %6 : vector<128x128xf32>
    %11 = arith.select %8, %6, %10 : vector<128x128xi1>, vector<128x128xf32>
    %c0_6 = arith.constant 0 : index
    %c0_7 = arith.constant 0 : index
    %12 = vector.load %arg4[%c0_6, %c0_7] : memref<128x128xf32, #tpu.memory_space<vmem>>, vector<128x128xf32>
    tpu.vector_store %arg4[%c0_6, %c0_7], %11 {strides = array<i32>} : memref<128x128xf32, #tpu.memory_space<vmem>>, vector<128x128xf32>,
    return
  }
  func.func @transform_0(%arg0: i32) -> (i32, i32) {
    %c0_i32 = arith.constant 0 : i32
    %c0_i32_0 = arith.constant 0 : i32
    return %arg0, %c0_i32 : i32, i32
  }
  func.func @transform_1(%arg0: i32) -> (i32, i32) {
    %c0_i32 = arith.constant 0 : i32
    %c0_i32_0 = arith.constant 0 : i32
    %c0_i32_1 = arith.constant 0 : i32
    return %c0_i32, %c0_i32_0 : i32, i32
  }
  func.func @transform_2(%arg0: i32) -> (i32, i32) {
    %c0_i32 = arith.constant 0 : i32
    %c0_i32_0 = arith.constant 0 : i32
    %c0_i32_1 = arith.constant 0 : i32
    return %c0_i32, %c0_i32_0 : i32, i32
  }
  func.func @transform_3(%arg0: i32) -> (i32, i32) {
    %c0_i32 = arith.constant 0 : i32
    %c0_i32_0 = arith.constant 0 : i32
    return %arg0, %c0_i32 : i32, i32
  }
}

module attributes {stable_mosaic.version = 11 : i64} {
  func.func @_bn_stats_kernel(%arg0: i32, %arg1: memref<128x128xf32, #tpu.memory_space<vmem>>, %arg2: memref<1x128xf32, #tpu.memory_space<vmem>>, %arg3: memref<1x128xf32, #tpu.memory_space<vmem>>) attributes {dimension_semantics = [#tpu.dimension_semantics<arbitrary>], iteration_bounds = array<i64: 1>, scalar_prefetch = 0 : i64, scratch_operands = 0 : i64, tpu.core_type = #tpu.core_type<tc>, window_params = [{transform_indices = @transform_0, window_bounds = array<i64: 128, 128>}, {pipeline_mode = #tpu.pipeline_mode<synchronous>, transform_indices = @transform_1, window_bounds = array<i64: 1, 128>}, {pipeline_mode = #tpu.pipeline_mode<synchronous>, transform_indices = @transform_2, window_bounds = array<i64: 1, 128>}]} {
    %c0_i32 = arith.constant 0 : i32
    %0 = arith.cmpi eq, %arg0, %c0_i32 : i32
    %1 = arith.extui %0 : i1 to i32
    %c0_i32_0 = arith.constant 0 : i32
    %2 = arith.cmpi ne, %1, %c0_i32_0 : i32
    scf.if %2 {
      %cst_11 = arith.constant 0.000000e+00 : f32
      %15 = vector.broadcast %cst_11 : f32 to vector<1x128xf32>
      %c0_12 = arith.constant 0 : index
      %c0_13 = arith.constant 0 : index
      %16 = vector.load %arg2[%c0_12, %c0_13] : memref<1x128xf32, #tpu.memory_space<vmem>>, vector<1x128xf32>
      tpu.vector_store %arg2[%c0_12, %c0_13], %15 {strides = array<i32>} : memref<1x128xf32, #tpu.memory_space<vmem>>, vector<1x128xf32>,
      %cst_14 = arith.constant 0.000000e+00 : f32
      %17 = vector.broadcast %cst_14 : f32 to vector<1x128xf32>
      %c0_15 = arith.constant 0 : index
      %c0_16 = arith.constant 0 : index
      %18 = vector.load %arg3[%c0_15, %c0_16] : memref<1x128xf32, #tpu.memory_space<vmem>>, vector<1x128xf32>
      tpu.vector_store %arg3[%c0_15, %c0_16], %17 {strides = array<i32>} : memref<1x128xf32, #tpu.memory_space<vmem>>, vector<1x128xf32>,
    } else {
    }
    %c0 = arith.constant 0 : index
    %c0_1 = arith.constant 0 : index
    %3 = vector.load %arg1[%c0, %c0_1] : memref<128x128xf32, #tpu.memory_space<vmem>>, vector<128x128xf32>
    %c0_2 = arith.constant 0 : index
    %c0_3 = arith.constant 0 : index
    %4 = vector.load %arg2[%c0_2, %c0_3] : memref<1x128xf32, #tpu.memory_space<vmem>>, vector<1x128xf32>
    %cst = arith.constant dense<0.000000e+00> : vector<128xf32>
    %5 = vector.multi_reduction <add>, %3, %cst [0] : vector<128x128xf32> to vector<128xf32>
    %6 = vector.shape_cast %5 : vector<128xf32> to vector<1x128xf32>
    %7 = arith.addf %4, %6 : vector<1x128xf32>
    %c0_4 = arith.constant 0 : index
    %c0_5 = arith.constant 0 : index
    %8 = vector.load %arg2[%c0_4, %c0_5] : memref<1x128xf32, #tpu.memory_space<vmem>>, vector<1x128xf32>
    tpu.vector_store %arg2[%c0_4, %c0_5], %7 {strides = array<i32>} : memref<1x128xf32, #tpu.memory_space<vmem>>, vector<1x128xf32>,
    %c0_6 = arith.constant 0 : index
    %c0_7 = arith.constant 0 : index
    %9 = vector.load %arg3[%c0_6, %c0_7] : memref<1x128xf32, #tpu.memory_space<vmem>>, vector<1x128xf32>
    %10 = arith.mulf %3, %3 : vector<128x128xf32>
    %cst_8 = arith.constant dense<0.000000e+00> : vector<128xf32>
    %11 = vector.multi_reduction <add>, %10, %cst_8 [0] : vector<128x128xf32> to vector<128xf32>
    %12 = vector.shape_cast %11 : vector<128xf32> to vector<1x128xf32>
    %13 = arith.addf %9, %12 : vector<1x128xf32>
    %c0_9 = arith.constant 0 : index
    %c0_10 = arith.constant 0 : index
    %14 = vector.load %arg3[%c0_9, %c0_10] : memref<1x128xf32, #tpu.memory_space<vmem>>, vector<1x128xf32>
    tpu.vector_store %arg3[%c0_9, %c0_10], %13 {strides = array<i32>} : memref<1x128xf32, #tpu.memory_space<vmem>>, vector<1x128xf32>,
    return
  }
  func.func @transform_0(%arg0: i32) -> (i32, i32) {
    %c0_i32 = arith.constant 0 : i32
    %c0_i32_0 = arith.constant 0 : i32
    return %arg0, %c0_i32 : i32, i32
  }
  func.func @transform_1(%arg0: i32) -> (i32, i32) {
    %c0_i32 = arith.constant 0 : i32
    %c0_i32_0 = arith.constant 0 : i32
    %c0_i32_1 = arith.constant 0 : i32
    return %c0_i32, %c0_i32_0 : i32, i32
  }
  func.func @transform_2(%arg0: i32) -> (i32, i32) {
    %c0_i32 = arith.constant 0 : i32
    %c0_i32_0 = arith.constant 0 : i32
    %c0_i32_1 = arith.constant 0 : i32
    return %c0_i32, %c0_i32_0 : i32, i32
  }
}

module attributes {stable_mosaic.version = 11 : i64} {
  func.func @_matmul_bias_act_kernel(%arg0: i32, %arg1: i32, %arg2: i32, %arg3: memref<32x384xbf16, #tpu.memory_space<vmem>>, %arg4: memref<384x128xbf16, #tpu.memory_space<vmem>>, %arg5: memref<1x128xf32, #tpu.memory_space<vmem>>, %arg6: memref<32x128xf32, #tpu.memory_space<vmem>>, %arg7: memref<32x128xf32, #tpu.memory_space<vmem>>) attributes {dimension_semantics = [#tpu.dimension_semantics<parallel>, #tpu.dimension_semantics<parallel>, #tpu.dimension_semantics<arbitrary>], iteration_bounds = array<i64: 1, 1, 3>, scalar_prefetch = 0 : i64, scratch_operands = 1 : i64, tpu.core_type = #tpu.core_type<tc>, window_params = [{transform_indices = @transform_0, window_bounds = array<i64: 32, 384>}, {transform_indices = @transform_1, window_bounds = array<i64: 384, 128>}, {transform_indices = @transform_2, window_bounds = array<i64: 1, 128>}, {transform_indices = @transform_3, window_bounds = array<i64: 32, 128>}]} {
    %c0_i32 = arith.constant 0 : i32
    %0 = arith.cmpi eq, %arg2, %c0_i32 : i32
    %1 = arith.extui %0 : i1 to i32
    %c0_i32_0 = arith.constant 0 : i32
    %2 = arith.cmpi ne, %1, %c0_i32_0 : i32
    scf.if %2 {
      %cst_9 = arith.constant 0.000000e+00 : f32
      %12 = vector.broadcast %cst_9 : f32 to vector<32x128xf32>
      %c0_10 = arith.constant 0 : index
      %c0_11 = arith.constant 0 : index
      %13 = vector.load %arg7[%c0_10, %c0_11] : memref<32x128xf32, #tpu.memory_space<vmem>>, vector<32x128xf32>
      tpu.vector_store %arg7[%c0_10, %c0_11], %12 {strides = array<i32>} : memref<32x128xf32, #tpu.memory_space<vmem>>, vector<32x128xf32>,
    } else {
    }
    %c0 = arith.constant 0 : index
    %c0_1 = arith.constant 0 : index
    %3 = vector.load %arg7[%c0, %c0_1] : memref<32x128xf32, #tpu.memory_space<vmem>>, vector<32x128xf32>
    %c0_2 = arith.constant 0 : index
    %c0_3 = arith.constant 0 : index
    %4 = vector.load %arg3[%c0_2, %c0_3] : memref<32x384xbf16, #tpu.memory_space<vmem>>, vector<32x384xbf16>
    %c0_4 = arith.constant 0 : index
    %c0_5 = arith.constant 0 : index
    %5 = vector.load %arg4[%c0_4, %c0_5] : memref<384x128xbf16, #tpu.memory_space<vmem>>, vector<384x128xbf16>
    %cst = arith.constant dense<0.000000e+00> : vector<32x128xf32>
    %6 = tpu.matmul %4, %5, %cst {dimension_numbers = #tpu.dot_dimension_numbers<[1], [0], [0], [1], [0, 0, 1, 1], [], []>} : vector<32x384xbf16>, vector<384x128xbf16>, vector<32x128xf32> -> vector<32x128xf32>
    %7 = arith.addf %3, %6 : vector<32x128xf32>
    %c0_6 = arith.constant 0 : index
    %c0_7 = arith.constant 0 : index
    %8 = vector.load %arg7[%c0_6, %c0_7] : memref<32x128xf32, #tpu.memory_space<vmem>>, vector<32x128xf32>
    tpu.vector_store %arg7[%c0_6, %c0_7], %7 {strides = array<i32>} : memref<32x128xf32, #tpu.memory_space<vmem>>, vector<32x128xf32>,
    %c2_i32 = arith.constant 2 : i32
    %9 = arith.cmpi eq, %arg2, %c2_i32 : i32
    %10 = arith.extui %9 : i1 to i32
    %c0_i32_8 = arith.constant 0 : i32
    %11 = arith.cmpi ne, %10, %c0_i32_8 : i32
    scf.if %11 {
      %c0_9 = arith.constant 0 : index
      %c0_10 = arith.constant 0 : index
      %12 = vector.load %arg7[%c0_9, %c0_10] : memref<32x128xf32, #tpu.memory_space<vmem>>, vector<32x128xf32>
      %c0_11 = arith.constant 0 : index
      %c0_12 = arith.constant 0 : index
      %13 = vector.load %arg5[%c0_11, %c0_12] : memref<1x128xf32, #tpu.memory_space<vmem>>, vector<1x128xf32>
      %14 = vector.broadcast %13 : vector<1x128xf32> to vector<32x128xf32>
      %15 = arith.addf %12, %14 : vector<32x128xf32>
      %c0_13 = arith.constant 0 : index
      %c0_14 = arith.constant 0 : index
      %16 = vector.load %arg6[%c0_13, %c0_14] : memref<32x128xf32, #tpu.memory_space<vmem>>, vector<32x128xf32>
      tpu.vector_store %arg6[%c0_13, %c0_14], %15 {strides = array<i32>} : memref<32x128xf32, #tpu.memory_space<vmem>>, vector<32x128xf32>,
    } else {
    }
    return
  }
  func.func @transform_0(%arg0: i32, %arg1: i32, %arg2: i32) -> (i32, i32) {
    %c0_i32 = arith.constant 0 : i32
    return %arg0, %arg2 : i32, i32
  }
  func.func @transform_1(%arg0: i32, %arg1: i32, %arg2: i32) -> (i32, i32) {
    %c0_i32 = arith.constant 0 : i32
    return %arg2, %arg1 : i32, i32
  }
  func.func @transform_2(%arg0: i32, %arg1: i32, %arg2: i32) -> (i32, i32) {
    %c0_i32 = arith.constant 0 : i32
    %c0_i32_0 = arith.constant 0 : i32
    return %c0_i32, %arg1 : i32, i32
  }
  func.func @transform_3(%arg0: i32, %arg1: i32, %arg2: i32) -> (i32, i32) {
    %c0_i32 = arith.constant 0 : i32
    return %arg0, %arg1 : i32, i32
  }
}

module attributes {stable_mosaic.version = 11 : i64} {
  func.func @_bn_apply_kernel(%arg0: i32, %arg1: memref<32x128xf32, #tpu.memory_space<vmem>>, %arg2: memref<1x128xf32, #tpu.memory_space<vmem>>, %arg3: memref<1x128xf32, #tpu.memory_space<vmem>>, %arg4: memref<32x128xf32, #tpu.memory_space<vmem>>) attributes {dimension_semantics = [#tpu.dimension_semantics<parallel>], iteration_bounds = array<i64: 1>, scalar_prefetch = 0 : i64, scratch_operands = 0 : i64, tpu.core_type = #tpu.core_type<tc>, window_params = [{transform_indices = @transform_0, window_bounds = array<i64: 32, 128>}, {pipeline_mode = #tpu.pipeline_mode<synchronous>, transform_indices = @transform_1, window_bounds = array<i64: 1, 128>}, {pipeline_mode = #tpu.pipeline_mode<synchronous>, transform_indices = @transform_2, window_bounds = array<i64: 1, 128>}, {transform_indices = @transform_3, window_bounds = array<i64: 32, 128>}]} {
    %c0 = arith.constant 0 : index
    %c0_0 = arith.constant 0 : index
    %0 = vector.load %arg1[%c0, %c0_0] : memref<32x128xf32, #tpu.memory_space<vmem>>, vector<32x128xf32>
    %c0_1 = arith.constant 0 : index
    %c0_2 = arith.constant 0 : index
    %1 = vector.load %arg2[%c0_1, %c0_2] : memref<1x128xf32, #tpu.memory_space<vmem>>, vector<1x128xf32>
    %2 = vector.broadcast %1 : vector<1x128xf32> to vector<32x128xf32>
    %3 = arith.mulf %0, %2 : vector<32x128xf32>
    %c0_3 = arith.constant 0 : index
    %c0_4 = arith.constant 0 : index
    %4 = vector.load %arg3[%c0_3, %c0_4] : memref<1x128xf32, #tpu.memory_space<vmem>>, vector<1x128xf32>
    %5 = vector.broadcast %4 : vector<1x128xf32> to vector<32x128xf32>
    %6 = arith.addf %3, %5 : vector<32x128xf32>
    %cst = arith.constant 0.000000e+00 : f32
    %7 = vector.broadcast %cst : f32 to vector<32x128xf32>
    %8 = arith.cmpf ogt, %6, %7 : vector<32x128xf32>
    %cst_5 = arith.constant 2.000000e-01 : f32
    %9 = vector.broadcast %cst_5 : f32 to vector<32x128xf32>
    %10 = arith.mulf %9, %6 : vector<32x128xf32>
    %11 = arith.select %8, %6, %10 : vector<32x128xi1>, vector<32x128xf32>
    %c0_6 = arith.constant 0 : index
    %c0_7 = arith.constant 0 : index
    %12 = vector.load %arg4[%c0_6, %c0_7] : memref<32x128xf32, #tpu.memory_space<vmem>>, vector<32x128xf32>
    tpu.vector_store %arg4[%c0_6, %c0_7], %11 {strides = array<i32>} : memref<32x128xf32, #tpu.memory_space<vmem>>, vector<32x128xf32>,
    return
  }
  func.func @transform_0(%arg0: i32) -> (i32, i32) {
    %c0_i32 = arith.constant 0 : i32
    %c0_i32_0 = arith.constant 0 : i32
    return %arg0, %c0_i32 : i32, i32
  }
  func.func @transform_1(%arg0: i32) -> (i32, i32) {
    %c0_i32 = arith.constant 0 : i32
    %c0_i32_0 = arith.constant 0 : i32
    %c0_i32_1 = arith.constant 0 : i32
    return %c0_i32, %c0_i32_0 : i32, i32
  }
  func.func @transform_2(%arg0: i32) -> (i32, i32) {
    %c0_i32 = arith.constant 0 : i32
    %c0_i32_0 = arith.constant 0 : i32
    %c0_i32_1 = arith.constant 0 : i32
    return %c0_i32, %c0_i32_0 : i32, i32
  }
  func.func @transform_3(%arg0: i32) -> (i32, i32) {
    %c0_i32 = arith.constant 0 : i32
    %c0_i32_0 = arith.constant 0 : i32
    return %arg0, %c0_i32 : i32, i32
  }
}

module attributes {stable_mosaic.version = 11 : i64} {
  func.func @_bn_stats_kernel(%arg0: i32, %arg1: memref<32x128xf32, #tpu.memory_space<vmem>>, %arg2: memref<1x128xf32, #tpu.memory_space<vmem>>, %arg3: memref<1x128xf32, #tpu.memory_space<vmem>>) attributes {dimension_semantics = [#tpu.dimension_semantics<arbitrary>], iteration_bounds = array<i64: 1>, scalar_prefetch = 0 : i64, scratch_operands = 0 : i64, tpu.core_type = #tpu.core_type<tc>, window_params = [{transform_indices = @transform_0, window_bounds = array<i64: 32, 128>}, {pipeline_mode = #tpu.pipeline_mode<synchronous>, transform_indices = @transform_1, window_bounds = array<i64: 1, 128>}, {pipeline_mode = #tpu.pipeline_mode<synchronous>, transform_indices = @transform_2, window_bounds = array<i64: 1, 128>}]} {
    %c0_i32 = arith.constant 0 : i32
    %0 = arith.cmpi eq, %arg0, %c0_i32 : i32
    %1 = arith.extui %0 : i1 to i32
    %c0_i32_0 = arith.constant 0 : i32
    %2 = arith.cmpi ne, %1, %c0_i32_0 : i32
    scf.if %2 {
      %cst_11 = arith.constant 0.000000e+00 : f32
      %15 = vector.broadcast %cst_11 : f32 to vector<1x128xf32>
      %c0_12 = arith.constant 0 : index
      %c0_13 = arith.constant 0 : index
      %16 = vector.load %arg2[%c0_12, %c0_13] : memref<1x128xf32, #tpu.memory_space<vmem>>, vector<1x128xf32>
      tpu.vector_store %arg2[%c0_12, %c0_13], %15 {strides = array<i32>} : memref<1x128xf32, #tpu.memory_space<vmem>>, vector<1x128xf32>,
      %cst_14 = arith.constant 0.000000e+00 : f32
      %17 = vector.broadcast %cst_14 : f32 to vector<1x128xf32>
      %c0_15 = arith.constant 0 : index
      %c0_16 = arith.constant 0 : index
      %18 = vector.load %arg3[%c0_15, %c0_16] : memref<1x128xf32, #tpu.memory_space<vmem>>, vector<1x128xf32>
      tpu.vector_store %arg3[%c0_15, %c0_16], %17 {strides = array<i32>} : memref<1x128xf32, #tpu.memory_space<vmem>>, vector<1x128xf32>,
    } else {
    }
    %c0 = arith.constant 0 : index
    %c0_1 = arith.constant 0 : index
    %3 = vector.load %arg1[%c0, %c0_1] : memref<32x128xf32, #tpu.memory_space<vmem>>, vector<32x128xf32>
    %c0_2 = arith.constant 0 : index
    %c0_3 = arith.constant 0 : index
    %4 = vector.load %arg2[%c0_2, %c0_3] : memref<1x128xf32, #tpu.memory_space<vmem>>, vector<1x128xf32>
    %cst = arith.constant dense<0.000000e+00> : vector<128xf32>
    %5 = vector.multi_reduction <add>, %3, %cst [0] : vector<32x128xf32> to vector<128xf32>
    %6 = vector.shape_cast %5 : vector<128xf32> to vector<1x128xf32>
    %7 = arith.addf %4, %6 : vector<1x128xf32>
    %c0_4 = arith.constant 0 : index
    %c0_5 = arith.constant 0 : index
    %8 = vector.load %arg2[%c0_4, %c0_5] : memref<1x128xf32, #tpu.memory_space<vmem>>, vector<1x128xf32>
    tpu.vector_store %arg2[%c0_4, %c0_5], %7 {strides = array<i32>} : memref<1x128xf32, #tpu.memory_space<vmem>>, vector<1x128xf32>,
    %c0_6 = arith.constant 0 : index
    %c0_7 = arith.constant 0 : index
    %9 = vector.load %arg3[%c0_6, %c0_7] : memref<1x128xf32, #tpu.memory_space<vmem>>, vector<1x128xf32>
    %10 = arith.mulf %3, %3 : vector<32x128xf32>
    %cst_8 = arith.constant dense<0.000000e+00> : vector<128xf32>
    %11 = vector.multi_reduction <add>, %10, %cst_8 [0] : vector<32x128xf32> to vector<128xf32>
    %12 = vector.shape_cast %11 : vector<128xf32> to vector<1x128xf32>
    %13 = arith.addf %9, %12 : vector<1x128xf32>
    %c0_9 = arith.constant 0 : index
    %c0_10 = arith.constant 0 : index
    %14 = vector.load %arg3[%c0_9, %c0_10] : memref<1x128xf32, #tpu.memory_space<vmem>>, vector<1x128xf32>
    tpu.vector_store %arg3[%c0_9, %c0_10], %13 {strides = array<i32>} : memref<1x128xf32, #tpu.memory_space<vmem>>, vector<1x128xf32>,
    return
  }
  func.func @transform_0(%arg0: i32) -> (i32, i32) {
    %c0_i32 = arith.constant 0 : i32
    %c0_i32_0 = arith.constant 0 : i32
    return %arg0, %c0_i32 : i32, i32
  }
  func.func @transform_1(%arg0: i32) -> (i32, i32) {
    %c0_i32 = arith.constant 0 : i32
    %c0_i32_0 = arith.constant 0 : i32
    %c0_i32_1 = arith.constant 0 : i32
    return %c0_i32, %c0_i32_0 : i32, i32
  }
  func.func @transform_2(%arg0: i32) -> (i32, i32) {
    %c0_i32 = arith.constant 0 : i32
    %c0_i32_0 = arith.constant 0 : i32
    %c0_i32_1 = arith.constant 0 : i32
    return %c0_i32, %c0_i32_0 : i32, i32
  }
}

module attributes {stable_mosaic.version = 11 : i64} {
  func.func @_matmul_bias_act_kernel(%arg0: i32, %arg1: i32, %arg2: i32, %arg3: memref<32x384xbf16, #tpu.memory_space<vmem>>, %arg4: memref<384x256xbf16, #tpu.memory_space<vmem>>, %arg5: memref<1x256xf32, #tpu.memory_space<vmem>>, %arg6: memref<32x256xf32, #tpu.memory_space<vmem>>, %arg7: memref<32x256xf32, #tpu.memory_space<vmem>>) attributes {dimension_semantics = [#tpu.dimension_semantics<parallel>, #tpu.dimension_semantics<parallel>, #tpu.dimension_semantics<arbitrary>], iteration_bounds = array<i64: 1, 1, 3>, scalar_prefetch = 0 : i64, scratch_operands = 1 : i64, tpu.core_type = #tpu.core_type<tc>, window_params = [{transform_indices = @transform_0, window_bounds = array<i64: 32, 384>}, {transform_indices = @transform_1, window_bounds = array<i64: 384, 256>}, {transform_indices = @transform_2, window_bounds = array<i64: 1, 256>}, {transform_indices = @transform_3, window_bounds = array<i64: 32, 256>}]} {
    %c0_i32 = arith.constant 0 : i32
    %0 = arith.cmpi eq, %arg2, %c0_i32 : i32
    %1 = arith.extui %0 : i1 to i32
    %c0_i32_0 = arith.constant 0 : i32
    %2 = arith.cmpi ne, %1, %c0_i32_0 : i32
    scf.if %2 {
      %cst_9 = arith.constant 0.000000e+00 : f32
      %12 = vector.broadcast %cst_9 : f32 to vector<32x256xf32>
      %c0_10 = arith.constant 0 : index
      %c0_11 = arith.constant 0 : index
      %13 = vector.load %arg7[%c0_10, %c0_11] : memref<32x256xf32, #tpu.memory_space<vmem>>, vector<32x256xf32>
      tpu.vector_store %arg7[%c0_10, %c0_11], %12 {strides = array<i32>} : memref<32x256xf32, #tpu.memory_space<vmem>>, vector<32x256xf32>,
    } else {
    }
    %c0 = arith.constant 0 : index
    %c0_1 = arith.constant 0 : index
    %3 = vector.load %arg7[%c0, %c0_1] : memref<32x256xf32, #tpu.memory_space<vmem>>, vector<32x256xf32>
    %c0_2 = arith.constant 0 : index
    %c0_3 = arith.constant 0 : index
    %4 = vector.load %arg3[%c0_2, %c0_3] : memref<32x384xbf16, #tpu.memory_space<vmem>>, vector<32x384xbf16>
    %c0_4 = arith.constant 0 : index
    %c0_5 = arith.constant 0 : index
    %5 = vector.load %arg4[%c0_4, %c0_5] : memref<384x256xbf16, #tpu.memory_space<vmem>>, vector<384x256xbf16>
    %cst = arith.constant dense<0.000000e+00> : vector<32x256xf32>
    %6 = tpu.matmul %4, %5, %cst {dimension_numbers = #tpu.dot_dimension_numbers<[1], [0], [0], [1], [0, 0, 1, 1], [], []>} : vector<32x384xbf16>, vector<384x256xbf16>, vector<32x256xf32> -> vector<32x256xf32>
    %7 = arith.addf %3, %6 : vector<32x256xf32>
    %c0_6 = arith.constant 0 : index
    %c0_7 = arith.constant 0 : index
    %8 = vector.load %arg7[%c0_6, %c0_7] : memref<32x256xf32, #tpu.memory_space<vmem>>, vector<32x256xf32>
    tpu.vector_store %arg7[%c0_6, %c0_7], %7 {strides = array<i32>} : memref<32x256xf32, #tpu.memory_space<vmem>>, vector<32x256xf32>,
    %c2_i32 = arith.constant 2 : i32
    %9 = arith.cmpi eq, %arg2, %c2_i32 : i32
    %10 = arith.extui %9 : i1 to i32
    %c0_i32_8 = arith.constant 0 : i32
    %11 = arith.cmpi ne, %10, %c0_i32_8 : i32
    scf.if %11 {
      %c0_9 = arith.constant 0 : index
      %c0_10 = arith.constant 0 : index
      %12 = vector.load %arg7[%c0_9, %c0_10] : memref<32x256xf32, #tpu.memory_space<vmem>>, vector<32x256xf32>
      %c0_11 = arith.constant 0 : index
      %c0_12 = arith.constant 0 : index
      %13 = vector.load %arg5[%c0_11, %c0_12] : memref<1x256xf32, #tpu.memory_space<vmem>>, vector<1x256xf32>
      %14 = vector.broadcast %13 : vector<1x256xf32> to vector<32x256xf32>
      %15 = arith.addf %12, %14 : vector<32x256xf32>
      %c0_13 = arith.constant 0 : index
      %c0_14 = arith.constant 0 : index
      %16 = vector.load %arg6[%c0_13, %c0_14] : memref<32x256xf32, #tpu.memory_space<vmem>>, vector<32x256xf32>
      tpu.vector_store %arg6[%c0_13, %c0_14], %15 {strides = array<i32>} : memref<32x256xf32, #tpu.memory_space<vmem>>, vector<32x256xf32>,
    } else {
    }
    return
  }
  func.func @transform_0(%arg0: i32, %arg1: i32, %arg2: i32) -> (i32, i32) {
    %c0_i32 = arith.constant 0 : i32
    return %arg0, %arg2 : i32, i32
  }
  func.func @transform_1(%arg0: i32, %arg1: i32, %arg2: i32) -> (i32, i32) {
    %c0_i32 = arith.constant 0 : i32
    return %arg2, %arg1 : i32, i32
  }
  func.func @transform_2(%arg0: i32, %arg1: i32, %arg2: i32) -> (i32, i32) {
    %c0_i32 = arith.constant 0 : i32
    %c0_i32_0 = arith.constant 0 : i32
    return %c0_i32, %arg1 : i32, i32
  }
  func.func @transform_3(%arg0: i32, %arg1: i32, %arg2: i32) -> (i32, i32) {
    %c0_i32 = arith.constant 0 : i32
    return %arg0, %arg1 : i32, i32
  }
}

module attributes {stable_mosaic.version = 11 : i64} {
  func.func @_bn_apply_kernel(%arg0: i32, %arg1: memref<32x256xf32, #tpu.memory_space<vmem>>, %arg2: memref<1x256xf32, #tpu.memory_space<vmem>>, %arg3: memref<1x256xf32, #tpu.memory_space<vmem>>, %arg4: memref<32x256xf32, #tpu.memory_space<vmem>>) attributes {dimension_semantics = [#tpu.dimension_semantics<parallel>], iteration_bounds = array<i64: 1>, scalar_prefetch = 0 : i64, scratch_operands = 0 : i64, tpu.core_type = #tpu.core_type<tc>, window_params = [{transform_indices = @transform_0, window_bounds = array<i64: 32, 256>}, {pipeline_mode = #tpu.pipeline_mode<synchronous>, transform_indices = @transform_1, window_bounds = array<i64: 1, 256>}, {pipeline_mode = #tpu.pipeline_mode<synchronous>, transform_indices = @transform_2, window_bounds = array<i64: 1, 256>}, {transform_indices = @transform_3, window_bounds = array<i64: 32, 256>}]} {
    %c0 = arith.constant 0 : index
    %c0_0 = arith.constant 0 : index
    %0 = vector.load %arg1[%c0, %c0_0] : memref<32x256xf32, #tpu.memory_space<vmem>>, vector<32x256xf32>
    %c0_1 = arith.constant 0 : index
    %c0_2 = arith.constant 0 : index
    %1 = vector.load %arg2[%c0_1, %c0_2] : memref<1x256xf32, #tpu.memory_space<vmem>>, vector<1x256xf32>
    %2 = vector.broadcast %1 : vector<1x256xf32> to vector<32x256xf32>
    %3 = arith.mulf %0, %2 : vector<32x256xf32>
    %c0_3 = arith.constant 0 : index
    %c0_4 = arith.constant 0 : index
    %4 = vector.load %arg3[%c0_3, %c0_4] : memref<1x256xf32, #tpu.memory_space<vmem>>, vector<1x256xf32>
    %5 = vector.broadcast %4 : vector<1x256xf32> to vector<32x256xf32>
    %6 = arith.addf %3, %5 : vector<32x256xf32>
    %cst = arith.constant 0.000000e+00 : f32
    %7 = vector.broadcast %cst : f32 to vector<32x256xf32>
    %8 = arith.cmpf ogt, %6, %7 : vector<32x256xf32>
    %cst_5 = arith.constant 2.000000e-01 : f32
    %9 = vector.broadcast %cst_5 : f32 to vector<32x256xf32>
    %10 = arith.mulf %9, %6 : vector<32x256xf32>
    %11 = arith.select %8, %6, %10 : vector<32x256xi1>, vector<32x256xf32>
    %c0_6 = arith.constant 0 : index
    %c0_7 = arith.constant 0 : index
    %12 = vector.load %arg4[%c0_6, %c0_7] : memref<32x256xf32, #tpu.memory_space<vmem>>, vector<32x256xf32>
    tpu.vector_store %arg4[%c0_6, %c0_7], %11 {strides = array<i32>} : memref<32x256xf32, #tpu.memory_space<vmem>>, vector<32x256xf32>,
    return
  }
  func.func @transform_0(%arg0: i32) -> (i32, i32) {
    %c0_i32 = arith.constant 0 : i32
    %c0_i32_0 = arith.constant 0 : i32
    return %arg0, %c0_i32 : i32, i32
  }
  func.func @transform_1(%arg0: i32) -> (i32, i32) {
    %c0_i32 = arith.constant 0 : i32
    %c0_i32_0 = arith.constant 0 : i32
    %c0_i32_1 = arith.constant 0 : i32
    return %c0_i32, %c0_i32_0 : i32, i32
  }
  func.func @transform_2(%arg0: i32) -> (i32, i32) {
    %c0_i32 = arith.constant 0 : i32
    %c0_i32_0 = arith.constant 0 : i32
    %c0_i32_1 = arith.constant 0 : i32
    return %c0_i32, %c0_i32_0 : i32, i32
  }
  func.func @transform_3(%arg0: i32) -> (i32, i32) {
    %c0_i32 = arith.constant 0 : i32
    %c0_i32_0 = arith.constant 0 : i32
    return %arg0, %c0_i32 : i32, i32
  }
}

module attributes {stable_mosaic.version = 11 : i64} {
  func.func @_bn_stats_kernel(%arg0: i32, %arg1: memref<32x256xf32, #tpu.memory_space<vmem>>, %arg2: memref<1x256xf32, #tpu.memory_space<vmem>>, %arg3: memref<1x256xf32, #tpu.memory_space<vmem>>) attributes {dimension_semantics = [#tpu.dimension_semantics<arbitrary>], iteration_bounds = array<i64: 1>, scalar_prefetch = 0 : i64, scratch_operands = 0 : i64, tpu.core_type = #tpu.core_type<tc>, window_params = [{transform_indices = @transform_0, window_bounds = array<i64: 32, 256>}, {pipeline_mode = #tpu.pipeline_mode<synchronous>, transform_indices = @transform_1, window_bounds = array<i64: 1, 256>}, {pipeline_mode = #tpu.pipeline_mode<synchronous>, transform_indices = @transform_2, window_bounds = array<i64: 1, 256>}]} {
    %c0_i32 = arith.constant 0 : i32
    %0 = arith.cmpi eq, %arg0, %c0_i32 : i32
    %1 = arith.extui %0 : i1 to i32
    %c0_i32_0 = arith.constant 0 : i32
    %2 = arith.cmpi ne, %1, %c0_i32_0 : i32
    scf.if %2 {
      %cst_11 = arith.constant 0.000000e+00 : f32
      %15 = vector.broadcast %cst_11 : f32 to vector<1x256xf32>
      %c0_12 = arith.constant 0 : index
      %c0_13 = arith.constant 0 : index
      %16 = vector.load %arg2[%c0_12, %c0_13] : memref<1x256xf32, #tpu.memory_space<vmem>>, vector<1x256xf32>
      tpu.vector_store %arg2[%c0_12, %c0_13], %15 {strides = array<i32>} : memref<1x256xf32, #tpu.memory_space<vmem>>, vector<1x256xf32>,
      %cst_14 = arith.constant 0.000000e+00 : f32
      %17 = vector.broadcast %cst_14 : f32 to vector<1x256xf32>
      %c0_15 = arith.constant 0 : index
      %c0_16 = arith.constant 0 : index
      %18 = vector.load %arg3[%c0_15, %c0_16] : memref<1x256xf32, #tpu.memory_space<vmem>>, vector<1x256xf32>
      tpu.vector_store %arg3[%c0_15, %c0_16], %17 {strides = array<i32>} : memref<1x256xf32, #tpu.memory_space<vmem>>, vector<1x256xf32>,
    } else {
    }
    %c0 = arith.constant 0 : index
    %c0_1 = arith.constant 0 : index
    %3 = vector.load %arg1[%c0, %c0_1] : memref<32x256xf32, #tpu.memory_space<vmem>>, vector<32x256xf32>
    %c0_2 = arith.constant 0 : index
    %c0_3 = arith.constant 0 : index
    %4 = vector.load %arg2[%c0_2, %c0_3] : memref<1x256xf32, #tpu.memory_space<vmem>>, vector<1x256xf32>
    %cst = arith.constant dense<0.000000e+00> : vector<256xf32>
    %5 = vector.multi_reduction <add>, %3, %cst [0] : vector<32x256xf32> to vector<256xf32>
    %6 = vector.shape_cast %5 : vector<256xf32> to vector<1x256xf32>
    %7 = arith.addf %4, %6 : vector<1x256xf32>
    %c0_4 = arith.constant 0 : index
    %c0_5 = arith.constant 0 : index
    %8 = vector.load %arg2[%c0_4, %c0_5] : memref<1x256xf32, #tpu.memory_space<vmem>>, vector<1x256xf32>
    tpu.vector_store %arg2[%c0_4, %c0_5], %7 {strides = array<i32>} : memref<1x256xf32, #tpu.memory_space<vmem>>, vector<1x256xf32>,
    %c0_6 = arith.constant 0 : index
    %c0_7 = arith.constant 0 : index
    %9 = vector.load %arg3[%c0_6, %c0_7] : memref<1x256xf32, #tpu.memory_space<vmem>>, vector<1x256xf32>
    %10 = arith.mulf %3, %3 : vector<32x256xf32>
    %cst_8 = arith.constant dense<0.000000e+00> : vector<256xf32>
    %11 = vector.multi_reduction <add>, %10, %cst_8 [0] : vector<32x256xf32> to vector<256xf32>
    %12 = vector.shape_cast %11 : vector<256xf32> to vector<1x256xf32>
    %13 = arith.addf %9, %12 : vector<1x256xf32>
    %c0_9 = arith.constant 0 : index
    %c0_10 = arith.constant 0 : index
    %14 = vector.load %arg3[%c0_9, %c0_10] : memref<1x256xf32, #tpu.memory_space<vmem>>, vector<1x256xf32>
    tpu.vector_store %arg3[%c0_9, %c0_10], %13 {strides = array<i32>} : memref<1x256xf32, #tpu.memory_space<vmem>>, vector<1x256xf32>,
    return
  }
  func.func @transform_0(%arg0: i32) -> (i32, i32) {
    %c0_i32 = arith.constant 0 : i32
    %c0_i32_0 = arith.constant 0 : i32
    return %arg0, %c0_i32 : i32, i32
  }
  func.func @transform_1(%arg0: i32) -> (i32, i32) {
    %c0_i32 = arith.constant 0 : i32
    %c0_i32_0 = arith.constant 0 : i32
    %c0_i32_1 = arith.constant 0 : i32
    return %c0_i32, %c0_i32_0 : i32, i32
  }
  func.func @transform_2(%arg0: i32) -> (i32, i32) {
    %c0_i32 = arith.constant 0 : i32
    %c0_i32_0 = arith.constant 0 : i32
    %c0_i32_1 = arith.constant 0 : i32
    return %c0_i32, %c0_i32_0 : i32, i32
  }
}

module attributes {stable_mosaic.version = 11 : i64} {
  func.func @_bn_stats_kernel(%arg0: i32, %arg1: memref<8x256xf32, #tpu.memory_space<vmem>>, %arg2: memref<1x256xf32, #tpu.memory_space<vmem>>, %arg3: memref<1x256xf32, #tpu.memory_space<vmem>>) attributes {dimension_semantics = [#tpu.dimension_semantics<arbitrary>], iteration_bounds = array<i64: 1>, scalar_prefetch = 0 : i64, scratch_operands = 0 : i64, tpu.core_type = #tpu.core_type<tc>, window_params = [{transform_indices = @transform_0, window_bounds = array<i64: 8, 256>}, {pipeline_mode = #tpu.pipeline_mode<synchronous>, transform_indices = @transform_1, window_bounds = array<i64: 1, 256>}, {pipeline_mode = #tpu.pipeline_mode<synchronous>, transform_indices = @transform_2, window_bounds = array<i64: 1, 256>}]} {
    %c0_i32 = arith.constant 0 : i32
    %0 = arith.cmpi eq, %arg0, %c0_i32 : i32
    %1 = arith.extui %0 : i1 to i32
    %c0_i32_0 = arith.constant 0 : i32
    %2 = arith.cmpi ne, %1, %c0_i32_0 : i32
    scf.if %2 {
      %cst_11 = arith.constant 0.000000e+00 : f32
      %15 = vector.broadcast %cst_11 : f32 to vector<1x256xf32>
      %c0_12 = arith.constant 0 : index
      %c0_13 = arith.constant 0 : index
      %16 = vector.load %arg2[%c0_12, %c0_13] : memref<1x256xf32, #tpu.memory_space<vmem>>, vector<1x256xf32>
      tpu.vector_store %arg2[%c0_12, %c0_13], %15 {strides = array<i32>} : memref<1x256xf32, #tpu.memory_space<vmem>>, vector<1x256xf32>,
      %cst_14 = arith.constant 0.000000e+00 : f32
      %17 = vector.broadcast %cst_14 : f32 to vector<1x256xf32>
      %c0_15 = arith.constant 0 : index
      %c0_16 = arith.constant 0 : index
      %18 = vector.load %arg3[%c0_15, %c0_16] : memref<1x256xf32, #tpu.memory_space<vmem>>, vector<1x256xf32>
      tpu.vector_store %arg3[%c0_15, %c0_16], %17 {strides = array<i32>} : memref<1x256xf32, #tpu.memory_space<vmem>>, vector<1x256xf32>,
    } else {
    }
    %c0 = arith.constant 0 : index
    %c0_1 = arith.constant 0 : index
    %3 = vector.load %arg1[%c0, %c0_1] : memref<8x256xf32, #tpu.memory_space<vmem>>, vector<8x256xf32>
    %c0_2 = arith.constant 0 : index
    %c0_3 = arith.constant 0 : index
    %4 = vector.load %arg2[%c0_2, %c0_3] : memref<1x256xf32, #tpu.memory_space<vmem>>, vector<1x256xf32>
    %cst = arith.constant dense<0.000000e+00> : vector<256xf32>
    %5 = vector.multi_reduction <add>, %3, %cst [0] : vector<8x256xf32> to vector<256xf32>
    %6 = vector.shape_cast %5 : vector<256xf32> to vector<1x256xf32>
    %7 = arith.addf %4, %6 : vector<1x256xf32>
    %c0_4 = arith.constant 0 : index
    %c0_5 = arith.constant 0 : index
    %8 = vector.load %arg2[%c0_4, %c0_5] : memref<1x256xf32, #tpu.memory_space<vmem>>, vector<1x256xf32>
    tpu.vector_store %arg2[%c0_4, %c0_5], %7 {strides = array<i32>} : memref<1x256xf32, #tpu.memory_space<vmem>>, vector<1x256xf32>,
    %c0_6 = arith.constant 0 : index
    %c0_7 = arith.constant 0 : index
    %9 = vector.load %arg3[%c0_6, %c0_7] : memref<1x256xf32, #tpu.memory_space<vmem>>, vector<1x256xf32>
    %10 = arith.mulf %3, %3 : vector<8x256xf32>
    %cst_8 = arith.constant dense<0.000000e+00> : vector<256xf32>
    %11 = vector.multi_reduction <add>, %10, %cst_8 [0] : vector<8x256xf32> to vector<256xf32>
    %12 = vector.shape_cast %11 : vector<256xf32> to vector<1x256xf32>
    %13 = arith.addf %9, %12 : vector<1x256xf32>
    %c0_9 = arith.constant 0 : index
    %c0_10 = arith.constant 0 : index
    %14 = vector.load %arg3[%c0_9, %c0_10] : memref<1x256xf32, #tpu.memory_space<vmem>>, vector<1x256xf32>
    tpu.vector_store %arg3[%c0_9, %c0_10], %13 {strides = array<i32>} : memref<1x256xf32, #tpu.memory_space<vmem>>, vector<1x256xf32>,
    return
  }
  func.func @transform_0(%arg0: i32) -> (i32, i32) {
    %c0_i32 = arith.constant 0 : i32
    %c0_i32_0 = arith.constant 0 : i32
    return %arg0, %c0_i32 : i32, i32
  }
  func.func @transform_1(%arg0: i32) -> (i32, i32) {
    %c0_i32 = arith.constant 0 : i32
    %c0_i32_0 = arith.constant 0 : i32
    %c0_i32_1 = arith.constant 0 : i32
    return %c0_i32, %c0_i32_0 : i32, i32
  }
  func.func @transform_2(%arg0: i32) -> (i32, i32) {
    %c0_i32 = arith.constant 0 : i32
    %c0_i32_0 = arith.constant 0 : i32
    %c0_i32_1 = arith.constant 0 : i32
    return %c0_i32, %c0_i32_0 : i32, i32
  }
}

module attributes {stable_mosaic.version = 11 : i64} {
  func.func @_bn_apply_kernel(%arg0: i32, %arg1: memref<8x256xf32, #tpu.memory_space<vmem>>, %arg2: memref<1x256xf32, #tpu.memory_space<vmem>>, %arg3: memref<1x256xf32, #tpu.memory_space<vmem>>, %arg4: memref<8x256xf32, #tpu.memory_space<vmem>>) attributes {dimension_semantics = [#tpu.dimension_semantics<parallel>], iteration_bounds = array<i64: 1>, scalar_prefetch = 0 : i64, scratch_operands = 0 : i64, tpu.core_type = #tpu.core_type<tc>, window_params = [{transform_indices = @transform_0, window_bounds = array<i64: 8, 256>}, {pipeline_mode = #tpu.pipeline_mode<synchronous>, transform_indices = @transform_1, window_bounds = array<i64: 1, 256>}, {pipeline_mode = #tpu.pipeline_mode<synchronous>, transform_indices = @transform_2, window_bounds = array<i64: 1, 256>}, {transform_indices = @transform_3, window_bounds = array<i64: 8, 256>}]} {
    %c0 = arith.constant 0 : index
    %c0_0 = arith.constant 0 : index
    %0 = vector.load %arg1[%c0, %c0_0] : memref<8x256xf32, #tpu.memory_space<vmem>>, vector<8x256xf32>
    %c0_1 = arith.constant 0 : index
    %c0_2 = arith.constant 0 : index
    %1 = vector.load %arg2[%c0_1, %c0_2] : memref<1x256xf32, #tpu.memory_space<vmem>>, vector<1x256xf32>
    %2 = vector.broadcast %1 : vector<1x256xf32> to vector<8x256xf32>
    %3 = arith.mulf %0, %2 : vector<8x256xf32>
    %c0_3 = arith.constant 0 : index
    %c0_4 = arith.constant 0 : index
    %4 = vector.load %arg3[%c0_3, %c0_4] : memref<1x256xf32, #tpu.memory_space<vmem>>, vector<1x256xf32>
    %5 = vector.broadcast %4 : vector<1x256xf32> to vector<8x256xf32>
    %6 = arith.addf %3, %5 : vector<8x256xf32>
    %cst = arith.constant 0.000000e+00 : f32
    %7 = vector.broadcast %cst : f32 to vector<8x256xf32>
    %8 = arith.cmpf ogt, %6, %7 : vector<8x256xf32>
    %cst_5 = arith.constant 2.000000e-01 : f32
    %9 = vector.broadcast %cst_5 : f32 to vector<8x256xf32>
    %10 = arith.mulf %9, %6 : vector<8x256xf32>
    %11 = arith.select %8, %6, %10 : vector<8x256xi1>, vector<8x256xf32>
    %c0_6 = arith.constant 0 : index
    %c0_7 = arith.constant 0 : index
    %12 = vector.load %arg4[%c0_6, %c0_7] : memref<8x256xf32, #tpu.memory_space<vmem>>, vector<8x256xf32>
    tpu.vector_store %arg4[%c0_6, %c0_7], %11 {strides = array<i32>} : memref<8x256xf32, #tpu.memory_space<vmem>>, vector<8x256xf32>,
    return
  }
  func.func @transform_0(%arg0: i32) -> (i32, i32) {
    %c0_i32 = arith.constant 0 : i32
    %c0_i32_0 = arith.constant 0 : i32
    return %arg0, %c0_i32 : i32, i32
  }
  func.func @transform_1(%arg0: i32) -> (i32, i32) {
    %c0_i32 = arith.constant 0 : i32
    %c0_i32_0 = arith.constant 0 : i32
    %c0_i32_1 = arith.constant 0 : i32
    return %c0_i32, %c0_i32_0 : i32, i32
  }
  func.func @transform_2(%arg0: i32) -> (i32, i32) {
    %c0_i32 = arith.constant 0 : i32
    %c0_i32_0 = arith.constant 0 : i32
    %c0_i32_1 = arith.constant 0 : i32
    return %c0_i32, %c0_i32_0 : i32, i32
  }
  func.func @transform_3(%arg0: i32) -> (i32, i32) {
    %c0_i32 = arith.constant 0 : i32
    %c0_i32_0 = arith.constant 0 : i32
    return %arg0, %c0_i32 : i32, i32
  }
}

module attributes {stable_mosaic.version = 11 : i64} {
  func.func @_matmul_bias_act_kernel(%arg0: i32, %arg1: i32, %arg2: i32, %arg3: memref<8x384xbf16, #tpu.memory_space<vmem>>, %arg4: memref<384x256xbf16, #tpu.memory_space<vmem>>, %arg5: memref<1x256xf32, #tpu.memory_space<vmem>>, %arg6: memref<8x256xf32, #tpu.memory_space<vmem>>, %arg7: memref<8x256xf32, #tpu.memory_space<vmem>>) attributes {dimension_semantics = [#tpu.dimension_semantics<parallel>, #tpu.dimension_semantics<parallel>, #tpu.dimension_semantics<arbitrary>], iteration_bounds = array<i64: 1, 1, 6>, scalar_prefetch = 0 : i64, scratch_operands = 1 : i64, tpu.core_type = #tpu.core_type<tc>, window_params = [{transform_indices = @transform_0, window_bounds = array<i64: 8, 384>}, {transform_indices = @transform_1, window_bounds = array<i64: 384, 256>}, {transform_indices = @transform_2, window_bounds = array<i64: 1, 256>}, {transform_indices = @transform_3, window_bounds = array<i64: 8, 256>}]} {
    %c0_i32 = arith.constant 0 : i32
    %0 = arith.cmpi eq, %arg2, %c0_i32 : i32
    %1 = arith.extui %0 : i1 to i32
    %c0_i32_0 = arith.constant 0 : i32
    %2 = arith.cmpi ne, %1, %c0_i32_0 : i32
    scf.if %2 {
      %cst_9 = arith.constant 0.000000e+00 : f32
      %12 = vector.broadcast %cst_9 : f32 to vector<8x256xf32>
      %c0_10 = arith.constant 0 : index
      %c0_11 = arith.constant 0 : index
      %13 = vector.load %arg7[%c0_10, %c0_11] : memref<8x256xf32, #tpu.memory_space<vmem>>, vector<8x256xf32>
      tpu.vector_store %arg7[%c0_10, %c0_11], %12 {strides = array<i32>} : memref<8x256xf32, #tpu.memory_space<vmem>>, vector<8x256xf32>,
    } else {
    }
    %c0 = arith.constant 0 : index
    %c0_1 = arith.constant 0 : index
    %3 = vector.load %arg7[%c0, %c0_1] : memref<8x256xf32, #tpu.memory_space<vmem>>, vector<8x256xf32>
    %c0_2 = arith.constant 0 : index
    %c0_3 = arith.constant 0 : index
    %4 = vector.load %arg3[%c0_2, %c0_3] : memref<8x384xbf16, #tpu.memory_space<vmem>>, vector<8x384xbf16>
    %c0_4 = arith.constant 0 : index
    %c0_5 = arith.constant 0 : index
    %5 = vector.load %arg4[%c0_4, %c0_5] : memref<384x256xbf16, #tpu.memory_space<vmem>>, vector<384x256xbf16>
    %cst = arith.constant dense<0.000000e+00> : vector<8x256xf32>
    %6 = tpu.matmul %4, %5, %cst {dimension_numbers = #tpu.dot_dimension_numbers<[1], [0], [0], [1], [0, 0, 1, 1], [], []>} : vector<8x384xbf16>, vector<384x256xbf16>, vector<8x256xf32> -> vector<8x256xf32>
    %7 = arith.addf %3, %6 : vector<8x256xf32>
    %c0_6 = arith.constant 0 : index
    %c0_7 = arith.constant 0 : index
    %8 = vector.load %arg7[%c0_6, %c0_7] : memref<8x256xf32, #tpu.memory_space<vmem>>, vector<8x256xf32>
    tpu.vector_store %arg7[%c0_6, %c0_7], %7 {strides = array<i32>} : memref<8x256xf32, #tpu.memory_space<vmem>>, vector<8x256xf32>,
    %c5_i32 = arith.constant 5 : i32
    %9 = arith.cmpi eq, %arg2, %c5_i32 : i32
    %10 = arith.extui %9 : i1 to i32
    %c0_i32_8 = arith.constant 0 : i32
    %11 = arith.cmpi ne, %10, %c0_i32_8 : i32
    scf.if %11 {
      %c0_9 = arith.constant 0 : index
      %c0_10 = arith.constant 0 : index
      %12 = vector.load %arg7[%c0_9, %c0_10] : memref<8x256xf32, #tpu.memory_space<vmem>>, vector<8x256xf32>
      %c0_11 = arith.constant 0 : index
      %c0_12 = arith.constant 0 : index
      %13 = vector.load %arg5[%c0_11, %c0_12] : memref<1x256xf32, #tpu.memory_space<vmem>>, vector<1x256xf32>
      %14 = vector.broadcast %13 : vector<1x256xf32> to vector<8x256xf32>
      %15 = arith.addf %12, %14 : vector<8x256xf32>
      %c0_13 = arith.constant 0 : index
      %c0_14 = arith.constant 0 : index
      %16 = vector.load %arg6[%c0_13, %c0_14] : memref<8x256xf32, #tpu.memory_space<vmem>>, vector<8x256xf32>
      tpu.vector_store %arg6[%c0_13, %c0_14], %15 {strides = array<i32>} : memref<8x256xf32, #tpu.memory_space<vmem>>, vector<8x256xf32>,
    } else {
    }
    return
  }
  func.func @transform_0(%arg0: i32, %arg1: i32, %arg2: i32) -> (i32, i32) {
    %c0_i32 = arith.constant 0 : i32
    return %arg0, %arg2 : i32, i32
  }
  func.func @transform_1(%arg0: i32, %arg1: i32, %arg2: i32) -> (i32, i32) {
    %c0_i32 = arith.constant 0 : i32
    return %arg2, %arg1 : i32, i32
  }
  func.func @transform_2(%arg0: i32, %arg1: i32, %arg2: i32) -> (i32, i32) {
    %c0_i32 = arith.constant 0 : i32
    %c0_i32_0 = arith.constant 0 : i32
    return %c0_i32, %arg1 : i32, i32
  }
  func.func @transform_3(%arg0: i32, %arg1: i32, %arg2: i32) -> (i32, i32) {
    %c0_i32 = arith.constant 0 : i32
    return %arg0, %arg1 : i32, i32
  }
}

module attributes {stable_mosaic.version = 11 : i64} {
  func.func @_matmul_bias_act_kernel(%arg0: i32, %arg1: i32, %arg2: i32, %arg3: memref<8x384xbf16, #tpu.memory_space<vmem>>, %arg4: memref<384x256xbf16, #tpu.memory_space<vmem>>, %arg5: memref<1x256xf32, #tpu.memory_space<vmem>>, %arg6: memref<8x256xf32, #tpu.memory_space<vmem>>, %arg7: memref<8x256xf32, #tpu.memory_space<vmem>>) attributes {dimension_semantics = [#tpu.dimension_semantics<parallel>, #tpu.dimension_semantics<parallel>, #tpu.dimension_semantics<arbitrary>], iteration_bounds = array<i64: 1, 2, 6>, scalar_prefetch = 0 : i64, scratch_operands = 1 : i64, tpu.core_type = #tpu.core_type<tc>, window_params = [{transform_indices = @transform_0, window_bounds = array<i64: 8, 384>}, {transform_indices = @transform_1, window_bounds = array<i64: 384, 256>}, {transform_indices = @transform_2, window_bounds = array<i64: 1, 256>}, {transform_indices = @transform_3, window_bounds = array<i64: 8, 256>}]} {
    %c0_i32 = arith.constant 0 : i32
    %0 = arith.cmpi eq, %arg2, %c0_i32 : i32
    %1 = arith.extui %0 : i1 to i32
    %c0_i32_0 = arith.constant 0 : i32
    %2 = arith.cmpi ne, %1, %c0_i32_0 : i32
    scf.if %2 {
      %cst_9 = arith.constant 0.000000e+00 : f32
      %12 = vector.broadcast %cst_9 : f32 to vector<8x256xf32>
      %c0_10 = arith.constant 0 : index
      %c0_11 = arith.constant 0 : index
      %13 = vector.load %arg7[%c0_10, %c0_11] : memref<8x256xf32, #tpu.memory_space<vmem>>, vector<8x256xf32>
      tpu.vector_store %arg7[%c0_10, %c0_11], %12 {strides = array<i32>} : memref<8x256xf32, #tpu.memory_space<vmem>>, vector<8x256xf32>,
    } else {
    }
    %c0 = arith.constant 0 : index
    %c0_1 = arith.constant 0 : index
    %3 = vector.load %arg7[%c0, %c0_1] : memref<8x256xf32, #tpu.memory_space<vmem>>, vector<8x256xf32>
    %c0_2 = arith.constant 0 : index
    %c0_3 = arith.constant 0 : index
    %4 = vector.load %arg3[%c0_2, %c0_3] : memref<8x384xbf16, #tpu.memory_space<vmem>>, vector<8x384xbf16>
    %c0_4 = arith.constant 0 : index
    %c0_5 = arith.constant 0 : index
    %5 = vector.load %arg4[%c0_4, %c0_5] : memref<384x256xbf16, #tpu.memory_space<vmem>>, vector<384x256xbf16>
    %cst = arith.constant dense<0.000000e+00> : vector<8x256xf32>
    %6 = tpu.matmul %4, %5, %cst {dimension_numbers = #tpu.dot_dimension_numbers<[1], [0], [0], [1], [0, 0, 1, 1], [], []>} : vector<8x384xbf16>, vector<384x256xbf16>, vector<8x256xf32> -> vector<8x256xf32>
    %7 = arith.addf %3, %6 : vector<8x256xf32>
    %c0_6 = arith.constant 0 : index
    %c0_7 = arith.constant 0 : index
    %8 = vector.load %arg7[%c0_6, %c0_7] : memref<8x256xf32, #tpu.memory_space<vmem>>, vector<8x256xf32>
    tpu.vector_store %arg7[%c0_6, %c0_7], %7 {strides = array<i32>} : memref<8x256xf32, #tpu.memory_space<vmem>>, vector<8x256xf32>,
    %c5_i32 = arith.constant 5 : i32
    %9 = arith.cmpi eq, %arg2, %c5_i32 : i32
    %10 = arith.extui %9 : i1 to i32
    %c0_i32_8 = arith.constant 0 : i32
    %11 = arith.cmpi ne, %10, %c0_i32_8 : i32
    scf.if %11 {
      %c0_9 = arith.constant 0 : index
      %c0_10 = arith.constant 0 : index
      %12 = vector.load %arg7[%c0_9, %c0_10] : memref<8x256xf32, #tpu.memory_space<vmem>>, vector<8x256xf32>
      %c0_11 = arith.constant 0 : index
      %c0_12 = arith.constant 0 : index
      %13 = vector.load %arg5[%c0_11, %c0_12] : memref<1x256xf32, #tpu.memory_space<vmem>>, vector<1x256xf32>
      %14 = vector.broadcast %13 : vector<1x256xf32> to vector<8x256xf32>
      %15 = arith.addf %12, %14 : vector<8x256xf32>
      %c0_13 = arith.constant 0 : index
      %c0_14 = arith.constant 0 : index
      %16 = vector.load %arg6[%c0_13, %c0_14] : memref<8x256xf32, #tpu.memory_space<vmem>>, vector<8x256xf32>
      tpu.vector_store %arg6[%c0_13, %c0_14], %15 {strides = array<i32>} : memref<8x256xf32, #tpu.memory_space<vmem>>, vector<8x256xf32>,
    } else {
    }
    return
  }
  func.func @transform_0(%arg0: i32, %arg1: i32, %arg2: i32) -> (i32, i32) {
    %c0_i32 = arith.constant 0 : i32
    return %arg0, %arg2 : i32, i32
  }
  func.func @transform_1(%arg0: i32, %arg1: i32, %arg2: i32) -> (i32, i32) {
    %c0_i32 = arith.constant 0 : i32
    return %arg2, %arg1 : i32, i32
  }
  func.func @transform_2(%arg0: i32, %arg1: i32, %arg2: i32) -> (i32, i32) {
    %c0_i32 = arith.constant 0 : i32
    %c0_i32_0 = arith.constant 0 : i32
    return %c0_i32, %arg1 : i32, i32
  }
  func.func @transform_3(%arg0: i32, %arg1: i32, %arg2: i32) -> (i32, i32) {
    %c0_i32 = arith.constant 0 : i32
    return %arg0, %arg1 : i32, i32
  }
}

module attributes {stable_mosaic.version = 11 : i64} {
  func.func @_bn_stats_kernel(%arg0: i32, %arg1: memref<8x512xf32, #tpu.memory_space<vmem>>, %arg2: memref<1x512xf32, #tpu.memory_space<vmem>>, %arg3: memref<1x512xf32, #tpu.memory_space<vmem>>) attributes {dimension_semantics = [#tpu.dimension_semantics<arbitrary>], iteration_bounds = array<i64: 1>, scalar_prefetch = 0 : i64, scratch_operands = 0 : i64, tpu.core_type = #tpu.core_type<tc>, window_params = [{transform_indices = @transform_0, window_bounds = array<i64: 8, 512>}, {pipeline_mode = #tpu.pipeline_mode<synchronous>, transform_indices = @transform_1, window_bounds = array<i64: 1, 512>}, {pipeline_mode = #tpu.pipeline_mode<synchronous>, transform_indices = @transform_2, window_bounds = array<i64: 1, 512>}]} {
    %c0_i32 = arith.constant 0 : i32
    %0 = arith.cmpi eq, %arg0, %c0_i32 : i32
    %1 = arith.extui %0 : i1 to i32
    %c0_i32_0 = arith.constant 0 : i32
    %2 = arith.cmpi ne, %1, %c0_i32_0 : i32
    scf.if %2 {
      %cst_11 = arith.constant 0.000000e+00 : f32
      %15 = vector.broadcast %cst_11 : f32 to vector<1x512xf32>
      %c0_12 = arith.constant 0 : index
      %c0_13 = arith.constant 0 : index
      %16 = vector.load %arg2[%c0_12, %c0_13] : memref<1x512xf32, #tpu.memory_space<vmem>>, vector<1x512xf32>
      tpu.vector_store %arg2[%c0_12, %c0_13], %15 {strides = array<i32>} : memref<1x512xf32, #tpu.memory_space<vmem>>, vector<1x512xf32>,
      %cst_14 = arith.constant 0.000000e+00 : f32
      %17 = vector.broadcast %cst_14 : f32 to vector<1x512xf32>
      %c0_15 = arith.constant 0 : index
      %c0_16 = arith.constant 0 : index
      %18 = vector.load %arg3[%c0_15, %c0_16] : memref<1x512xf32, #tpu.memory_space<vmem>>, vector<1x512xf32>
      tpu.vector_store %arg3[%c0_15, %c0_16], %17 {strides = array<i32>} : memref<1x512xf32, #tpu.memory_space<vmem>>, vector<1x512xf32>,
    } else {
    }
    %c0 = arith.constant 0 : index
    %c0_1 = arith.constant 0 : index
    %3 = vector.load %arg1[%c0, %c0_1] : memref<8x512xf32, #tpu.memory_space<vmem>>, vector<8x512xf32>
    %c0_2 = arith.constant 0 : index
    %c0_3 = arith.constant 0 : index
    %4 = vector.load %arg2[%c0_2, %c0_3] : memref<1x512xf32, #tpu.memory_space<vmem>>, vector<1x512xf32>
    %cst = arith.constant dense<0.000000e+00> : vector<512xf32>
    %5 = vector.multi_reduction <add>, %3, %cst [0] : vector<8x512xf32> to vector<512xf32>
    %6 = vector.shape_cast %5 : vector<512xf32> to vector<1x512xf32>
    %7 = arith.addf %4, %6 : vector<1x512xf32>
    %c0_4 = arith.constant 0 : index
    %c0_5 = arith.constant 0 : index
    %8 = vector.load %arg2[%c0_4, %c0_5] : memref<1x512xf32, #tpu.memory_space<vmem>>, vector<1x512xf32>
    tpu.vector_store %arg2[%c0_4, %c0_5], %7 {strides = array<i32>} : memref<1x512xf32, #tpu.memory_space<vmem>>, vector<1x512xf32>,
    %c0_6 = arith.constant 0 : index
    %c0_7 = arith.constant 0 : index
    %9 = vector.load %arg3[%c0_6, %c0_7] : memref<1x512xf32, #tpu.memory_space<vmem>>, vector<1x512xf32>
    %10 = arith.mulf %3, %3 : vector<8x512xf32>
    %cst_8 = arith.constant dense<0.000000e+00> : vector<512xf32>
    %11 = vector.multi_reduction <add>, %10, %cst_8 [0] : vector<8x512xf32> to vector<512xf32>
    %12 = vector.shape_cast %11 : vector<512xf32> to vector<1x512xf32>
    %13 = arith.addf %9, %12 : vector<1x512xf32>
    %c0_9 = arith.constant 0 : index
    %c0_10 = arith.constant 0 : index
    %14 = vector.load %arg3[%c0_9, %c0_10] : memref<1x512xf32, #tpu.memory_space<vmem>>, vector<1x512xf32>
    tpu.vector_store %arg3[%c0_9, %c0_10], %13 {strides = array<i32>} : memref<1x512xf32, #tpu.memory_space<vmem>>, vector<1x512xf32>,
    return
  }
  func.func @transform_0(%arg0: i32) -> (i32, i32) {
    %c0_i32 = arith.constant 0 : i32
    %c0_i32_0 = arith.constant 0 : i32
    return %arg0, %c0_i32 : i32, i32
  }
  func.func @transform_1(%arg0: i32) -> (i32, i32) {
    %c0_i32 = arith.constant 0 : i32
    %c0_i32_0 = arith.constant 0 : i32
    %c0_i32_1 = arith.constant 0 : i32
    return %c0_i32, %c0_i32_0 : i32, i32
  }
  func.func @transform_2(%arg0: i32) -> (i32, i32) {
    %c0_i32 = arith.constant 0 : i32
    %c0_i32_0 = arith.constant 0 : i32
    %c0_i32_1 = arith.constant 0 : i32
    return %c0_i32, %c0_i32_0 : i32, i32
  }
}

module attributes {stable_mosaic.version = 11 : i64} {
  func.func @_bn_apply_kernel(%arg0: i32, %arg1: memref<8x512xf32, #tpu.memory_space<vmem>>, %arg2: memref<1x512xf32, #tpu.memory_space<vmem>>, %arg3: memref<1x512xf32, #tpu.memory_space<vmem>>, %arg4: memref<8x512xf32, #tpu.memory_space<vmem>>) attributes {dimension_semantics = [#tpu.dimension_semantics<parallel>], iteration_bounds = array<i64: 1>, scalar_prefetch = 0 : i64, scratch_operands = 0 : i64, tpu.core_type = #tpu.core_type<tc>, window_params = [{transform_indices = @transform_0, window_bounds = array<i64: 8, 512>}, {pipeline_mode = #tpu.pipeline_mode<synchronous>, transform_indices = @transform_1, window_bounds = array<i64: 1, 512>}, {pipeline_mode = #tpu.pipeline_mode<synchronous>, transform_indices = @transform_2, window_bounds = array<i64: 1, 512>}, {transform_indices = @transform_3, window_bounds = array<i64: 8, 512>}]} {
    %c0 = arith.constant 0 : index
    %c0_0 = arith.constant 0 : index
    %0 = vector.load %arg1[%c0, %c0_0] : memref<8x512xf32, #tpu.memory_space<vmem>>, vector<8x512xf32>
    %c0_1 = arith.constant 0 : index
    %c0_2 = arith.constant 0 : index
    %1 = vector.load %arg2[%c0_1, %c0_2] : memref<1x512xf32, #tpu.memory_space<vmem>>, vector<1x512xf32>
    %2 = vector.broadcast %1 : vector<1x512xf32> to vector<8x512xf32>
    %3 = arith.mulf %0, %2 : vector<8x512xf32>
    %c0_3 = arith.constant 0 : index
    %c0_4 = arith.constant 0 : index
    %4 = vector.load %arg3[%c0_3, %c0_4] : memref<1x512xf32, #tpu.memory_space<vmem>>, vector<1x512xf32>
    %5 = vector.broadcast %4 : vector<1x512xf32> to vector<8x512xf32>
    %6 = arith.addf %3, %5 : vector<8x512xf32>
    %cst = arith.constant 0.000000e+00 : f32
    %7 = vector.broadcast %cst : f32 to vector<8x512xf32>
    %8 = arith.cmpf ogt, %6, %7 : vector<8x512xf32>
    %cst_5 = arith.constant 2.000000e-01 : f32
    %9 = vector.broadcast %cst_5 : f32 to vector<8x512xf32>
    %10 = arith.mulf %9, %6 : vector<8x512xf32>
    %11 = arith.select %8, %6, %10 : vector<8x512xi1>, vector<8x512xf32>
    %c0_6 = arith.constant 0 : index
    %c0_7 = arith.constant 0 : index
    %12 = vector.load %arg4[%c0_6, %c0_7] : memref<8x512xf32, #tpu.memory_space<vmem>>, vector<8x512xf32>
    tpu.vector_store %arg4[%c0_6, %c0_7], %11 {strides = array<i32>} : memref<8x512xf32, #tpu.memory_space<vmem>>, vector<8x512xf32>,
    return
  }
  func.func @transform_0(%arg0: i32) -> (i32, i32) {
    %c0_i32 = arith.constant 0 : i32
    %c0_i32_0 = arith.constant 0 : i32
    return %arg0, %c0_i32 : i32, i32
  }
  func.func @transform_1(%arg0: i32) -> (i32, i32) {
    %c0_i32 = arith.constant 0 : i32
    %c0_i32_0 = arith.constant 0 : i32
    %c0_i32_1 = arith.constant 0 : i32
    return %c0_i32, %c0_i32_0 : i32, i32
  }
  func.func @transform_2(%arg0: i32) -> (i32, i32) {
    %c0_i32 = arith.constant 0 : i32
    %c0_i32_0 = arith.constant 0 : i32
    %c0_i32_1 = arith.constant 0 : i32
    return %c0_i32, %c0_i32_0 : i32, i32
  }
  func.func @transform_3(%arg0: i32) -> (i32, i32) {
    %c0_i32 = arith.constant 0 : i32
    %c0_i32_0 = arith.constant 0 : i32
    return %arg0, %c0_i32 : i32, i32
  }
}

module attributes {stable_mosaic.version = 11 : i64} {
  func.func @_matmul_bias_act_kernel(%arg0: i32, %arg1: i32, %arg2: i32, %arg3: memref<8x512xbf16, #tpu.memory_space<vmem>>, %arg4: memref<512x256xbf16, #tpu.memory_space<vmem>>, %arg5: memref<1x256xf32, #tpu.memory_space<vmem>>, %arg6: memref<8x256xf32, #tpu.memory_space<vmem>>, %arg7: memref<8x256xf32, #tpu.memory_space<vmem>>) attributes {dimension_semantics = [#tpu.dimension_semantics<parallel>, #tpu.dimension_semantics<parallel>, #tpu.dimension_semantics<arbitrary>], iteration_bounds = array<i64: 1, 2, 9>, scalar_prefetch = 0 : i64, scratch_operands = 1 : i64, tpu.core_type = #tpu.core_type<tc>, window_params = [{transform_indices = @transform_0, window_bounds = array<i64: 8, 512>}, {transform_indices = @transform_1, window_bounds = array<i64: 512, 256>}, {transform_indices = @transform_2, window_bounds = array<i64: 1, 256>}, {transform_indices = @transform_3, window_bounds = array<i64: 8, 256>}]} {
    %c0_i32 = arith.constant 0 : i32
    %0 = arith.cmpi eq, %arg2, %c0_i32 : i32
    %1 = arith.extui %0 : i1 to i32
    %c0_i32_0 = arith.constant 0 : i32
    %2 = arith.cmpi ne, %1, %c0_i32_0 : i32
    scf.if %2 {
      %cst_9 = arith.constant 0.000000e+00 : f32
      %12 = vector.broadcast %cst_9 : f32 to vector<8x256xf32>
      %c0_10 = arith.constant 0 : index
      %c0_11 = arith.constant 0 : index
      %13 = vector.load %arg7[%c0_10, %c0_11] : memref<8x256xf32, #tpu.memory_space<vmem>>, vector<8x256xf32>
      tpu.vector_store %arg7[%c0_10, %c0_11], %12 {strides = array<i32>} : memref<8x256xf32, #tpu.memory_space<vmem>>, vector<8x256xf32>,
    } else {
    }
    %c0 = arith.constant 0 : index
    %c0_1 = arith.constant 0 : index
    %3 = vector.load %arg7[%c0, %c0_1] : memref<8x256xf32, #tpu.memory_space<vmem>>, vector<8x256xf32>
    %c0_2 = arith.constant 0 : index
    %c0_3 = arith.constant 0 : index
    %4 = vector.load %arg3[%c0_2, %c0_3] : memref<8x512xbf16, #tpu.memory_space<vmem>>, vector<8x512xbf16>
    %c0_4 = arith.constant 0 : index
    %c0_5 = arith.constant 0 : index
    %5 = vector.load %arg4[%c0_4, %c0_5] : memref<512x256xbf16, #tpu.memory_space<vmem>>, vector<512x256xbf16>
    %cst = arith.constant dense<0.000000e+00> : vector<8x256xf32>
    %6 = tpu.matmul %4, %5, %cst {dimension_numbers = #tpu.dot_dimension_numbers<[1], [0], [0], [1], [0, 0, 1, 1], [], []>} : vector<8x512xbf16>, vector<512x256xbf16>, vector<8x256xf32> -> vector<8x256xf32>
    %7 = arith.addf %3, %6 : vector<8x256xf32>
    %c0_6 = arith.constant 0 : index
    %c0_7 = arith.constant 0 : index
    %8 = vector.load %arg7[%c0_6, %c0_7] : memref<8x256xf32, #tpu.memory_space<vmem>>, vector<8x256xf32>
    tpu.vector_store %arg7[%c0_6, %c0_7], %7 {strides = array<i32>} : memref<8x256xf32, #tpu.memory_space<vmem>>, vector<8x256xf32>,
    %c8_i32 = arith.constant 8 : i32
    %9 = arith.cmpi eq, %arg2, %c8_i32 : i32
    %10 = arith.extui %9 : i1 to i32
    %c0_i32_8 = arith.constant 0 : i32
    %11 = arith.cmpi ne, %10, %c0_i32_8 : i32
    scf.if %11 {
      %c0_9 = arith.constant 0 : index
      %c0_10 = arith.constant 0 : index
      %12 = vector.load %arg7[%c0_9, %c0_10] : memref<8x256xf32, #tpu.memory_space<vmem>>, vector<8x256xf32>
      %c0_11 = arith.constant 0 : index
      %c0_12 = arith.constant 0 : index
      %13 = vector.load %arg5[%c0_11, %c0_12] : memref<1x256xf32, #tpu.memory_space<vmem>>, vector<1x256xf32>
      %14 = vector.broadcast %13 : vector<1x256xf32> to vector<8x256xf32>
      %15 = arith.addf %12, %14 : vector<8x256xf32>
      %c0_13 = arith.constant 0 : index
      %c0_14 = arith.constant 0 : index
      %16 = vector.load %arg6[%c0_13, %c0_14] : memref<8x256xf32, #tpu.memory_space<vmem>>, vector<8x256xf32>
      tpu.vector_store %arg6[%c0_13, %c0_14], %15 {strides = array<i32>} : memref<8x256xf32, #tpu.memory_space<vmem>>, vector<8x256xf32>,
    } else {
    }
    return
  }
  func.func @transform_0(%arg0: i32, %arg1: i32, %arg2: i32) -> (i32, i32) {
    %c0_i32 = arith.constant 0 : i32
    return %arg0, %arg2 : i32, i32
  }
  func.func @transform_1(%arg0: i32, %arg1: i32, %arg2: i32) -> (i32, i32) {
    %c0_i32 = arith.constant 0 : i32
    return %arg2, %arg1 : i32, i32
  }
  func.func @transform_2(%arg0: i32, %arg1: i32, %arg2: i32) -> (i32, i32) {
    %c0_i32 = arith.constant 0 : i32
    %c0_i32_0 = arith.constant 0 : i32
    return %c0_i32, %arg1 : i32, i32
  }
  func.func @transform_3(%arg0: i32, %arg1: i32, %arg2: i32) -> (i32, i32) {
    %c0_i32 = arith.constant 0 : i32
    return %arg0, %arg1 : i32, i32
  }
}

module attributes {stable_mosaic.version = 11 : i64} {
  func.func @_head_kernel(%arg0: i32, %arg1: memref<2x512xf32, #tpu.memory_space<vmem>>, %arg2: memref<512x1024xf32, #tpu.memory_space<vmem>>, %arg3: memref<1x1024xf32, #tpu.memory_space<vmem>>, %arg4: memref<1024x1xf32, #tpu.memory_space<vmem>>, %arg5: memref<1x1xf32, #tpu.memory_space<vmem>>, %arg6: memref<2x1xf32, #tpu.memory_space<vmem>>) attributes {dimension_semantics = [#tpu.dimension_semantics<arbitrary>], iteration_bounds = array<i64: 1>, scalar_prefetch = 0 : i64, scratch_operands = 0 : i64, tpu.core_type = #tpu.core_type<tc>, window_params = [{pipeline_mode = #tpu.pipeline_mode<synchronous>, transform_indices = @transform_0, window_bounds = array<i64: 2, 512>}, {pipeline_mode = #tpu.pipeline_mode<synchronous>, transform_indices = @transform_1, window_bounds = array<i64: 512, 1024>}, {pipeline_mode = #tpu.pipeline_mode<synchronous>, transform_indices = @transform_2, window_bounds = array<i64: 1, 1024>}, {pipeline_mode = #tpu.pipeline_mode<synchronous>, transform_indices = @transform_3, window_bounds = array<i64: 1024, 1>}, {pipeline_mode = #tpu.pipeline_mode<synchronous>, transform_indices = @transform_4, window_bounds = array<i64: 1, 1>}, {pipeline_mode = #tpu.pipeline_mode<synchronous>, transform_indices = @transform_5, window_bounds = array<i64: 2, 1>}]} {
    %c0 = arith.constant 0 : index
    %c0_0 = arith.constant 0 : index
    %0 = vector.load %arg1[%c0, %c0_0] : memref<2x512xf32, #tpu.memory_space<vmem>>, vector<2x512xf32>
    %c0_1 = arith.constant 0 : index
    %c0_2 = arith.constant 0 : index
    %1 = vector.load %arg2[%c0_1, %c0_2] : memref<512x1024xf32, #tpu.memory_space<vmem>>, vector<512x1024xf32>
    %cst = arith.constant dense<0.000000e+00> : vector<2x1024xf32>
    %2 = tpu.matmul %0, %1, %cst {dimension_numbers = #tpu.dot_dimension_numbers<[1], [0], [0], [1], [0, 0, 1, 1], [], []>} : vector<2x512xf32>, vector<512x1024xf32>, vector<2x1024xf32> -> vector<2x1024xf32>
    %c0_3 = arith.constant 0 : index
    %c0_4 = arith.constant 0 : index
    %3 = vector.load %arg3[%c0_3, %c0_4] : memref<1x1024xf32, #tpu.memory_space<vmem>>, vector<1x1024xf32>
    %4 = vector.broadcast %3 : vector<1x1024xf32> to vector<2x1024xf32>
    %5 = arith.addf %2, %4 : vector<2x1024xf32>
    %cst_5 = arith.constant 0.000000e+00 : f32
    %6 = vector.broadcast %cst_5 : f32 to vector<2x1024xf32>
    %7 = arith.cmpf ogt, %5, %6 : vector<2x1024xf32>
    %cst_6 = arith.constant 2.000000e-01 : f32
    %8 = vector.broadcast %cst_6 : f32 to vector<2x1024xf32>
    %9 = arith.mulf %8, %5 : vector<2x1024xf32>
    %10 = arith.select %7, %5, %9 : vector<2x1024xi1>, vector<2x1024xf32>
    %c0_7 = arith.constant 0 : index
    %c0_8 = arith.constant 0 : index
    %11 = vector.load %arg4[%c0_7, %c0_8] : memref<1024x1xf32, #tpu.memory_space<vmem>>, vector<1024x1xf32>
    %cst_9 = arith.constant dense<0.000000e+00> : vector<2x1xf32>
    %12 = tpu.matmul %10, %11, %cst_9 {dimension_numbers = #tpu.dot_dimension_numbers<[1], [0], [0], [1], [0, 0, 1, 1], [], []>} : vector<2x1024xf32>, vector<1024x1xf32>, vector<2x1xf32> -> vector<2x1xf32>
    %c0_10 = arith.constant 0 : index
    %c0_11 = arith.constant 0 : index
    %13 = vector.load %arg5[%c0_10, %c0_11] : memref<1x1xf32, #tpu.memory_space<vmem>>, vector<1x1xf32>
    %14 = vector.broadcast %13 : vector<1x1xf32> to vector<2x1xf32>
    %15 = arith.addf %12, %14 : vector<2x1xf32>
    %c0_12 = arith.constant 0 : index
    %c0_13 = arith.constant 0 : index
    %16 = vector.load %arg6[%c0_12, %c0_13] : memref<2x1xf32, #tpu.memory_space<vmem>>, vector<2x1xf32>
    tpu.vector_store %arg6[%c0_12, %c0_13], %15 {strides = array<i32>} : memref<2x1xf32, #tpu.memory_space<vmem>>, vector<2x1xf32>,
    return
  }
  func.func @transform_0(%arg0: i32) -> (i32, i32) {
    %c0_i32 = arith.constant 0 : i32
    %c0_i32_0 = arith.constant 0 : i32
    %c0_i32_1 = arith.constant 0 : i32
    return %c0_i32, %c0_i32_0 : i32, i32
  }
  func.func @transform_1(%arg0: i32) -> (i32, i32) {
    %c0_i32 = arith.constant 0 : i32
    %c0_i32_0 = arith.constant 0 : i32
    %c0_i32_1 = arith.constant 0 : i32
    return %c0_i32, %c0_i32_0 : i32, i32
  }
  func.func @transform_2(%arg0: i32) -> (i32, i32) {
    %c0_i32 = arith.constant 0 : i32
    %c0_i32_0 = arith.constant 0 : i32
    %c0_i32_1 = arith.constant 0 : i32
    return %c0_i32, %c0_i32_0 : i32, i32
  }
  func.func @transform_3(%arg0: i32) -> (i32, i32) {
    %c0_i32 = arith.constant 0 : i32
    %c0_i32_0 = arith.constant 0 : i32
    %c0_i32_1 = arith.constant 0 : i32
    return %c0_i32, %c0_i32_0 : i32, i32
  }
  func.func @transform_4(%arg0: i32) -> (i32, i32) {
    %c0_i32 = arith.constant 0 : i32
    %c0_i32_0 = arith.constant 0 : i32
    %c0_i32_1 = arith.constant 0 : i32
    return %c0_i32, %c0_i32_0 : i32, i32
  }
  func.func @transform_5(%arg0: i32) -> (i32, i32) {
    %c0_i32 = arith.constant 0 : i32
    %c0_i32_0 = arith.constant 0 : i32
    %c0_i32_1 = arith.constant 0 : i32
    return %c0_i32, %c0_i32_0 : i32, i32
  }
}

</mosaic_0001>

<bundles_post_ra>
// kernel: discriminator_forward.23
= control target key start
LH: loop header
LB: loop body
LE: loop exit
PB: predicated region body
PF: predicated region fallthrough
CT: control target
= control target key end

     0   :  { %s1276_s12 = smov 0   ;;  %s1278_s13 = smov 0   ;;  %s1426_s0 = inlined_call_operand.vmem [shape: bf16[512,128], index: 0, kind: input, shape index: {}]   ;;  %s1427_s1 = inlined_call_operand.vmem [shape: bf16[128,128], index: 1, kind: input, shape index: {}]   ;;  %s1428_s2 = inlined_call_operand.vmem [shape: f32[1,128], index: 2, kind: input, shape index: {}]   ;;  %s1429_s3 = inlined_call_operand.vmem [shape: f32[512,128], index: 3, kind: output, shape index: {}]  }
   0x1   :  { %s1280_s14 = smov 0  }
   0x2 LB: > { %s32_s15 = sadd.s32 1, %s1250_s13  ;;  %p1064_p0 = scmp.ge.s32.totalorder %s1254_s14, 1  ;;  %s1254_s14 = sphi %s1280_s14, %s13_s14   ;;  %s1250_s13 = sphi %s1278_s13, %s1431_s13   ;;  %s1246_s12 = sphi %s1276_s12, %s1430_s12  }
   0x3   : > { %p34_p1 = scmp.ge.s32.totalorder %s32_s15, 2  ;;  %p188_p2 = scmp.lt.s32.totalorder %s1254_s14, 3 }
   0x5   : > { %s1433_s15 = smov (%p34_p1, %s32_s15), 0  ;;  %p189_p3 = pnand %p1064_p0, %p188_p2 }
   0x6   : > { %s1065_s18 = sshll.u32 (!%p189_p3), %s1246_s12, 5 }
   0x7   : > { %192 = sbr.rel (%p189_p3) target bundleno = 275 (0x113), region = 32  ;;  %p230_p4 = scmp.lt.s32.totalorder (!%p189_p3), %s1065_s18, 63 }
   0xc   : > { %v1208_v0 = vld [vmem:[%s1427_s1 + $0x38] sm:$0xff]   ;;  %v1209_v1 = vld [vmem:[%s1427_s1 + $0x30] sm:$0xff]   ;;  %s1435_s18 = smov (!%p230_p4, %s1065_s18), 63  ;;  %v1210_v2 = vld [vmem:[%s1427_s1 + $0x28] sm:$0xff]  }
   0xd   : > { %1120 = vmatprep.subr.bf16.mxu0 %v1208_v0  ;;  %1168 = vmatprep.subr.bf16.mxu1 %v1208_v0  ;;  %s1066_s23 = sshll.u32 %s1435_s18, 2  ;;  %v1211_v3 = vld [vmem:[%s1427_s1 + $0x20] sm:$0xff]   ;;  %v1212_v6 = vld [vmem:[%s1427_s1 + $0x18] sm:$0xff]   ;;  %v1213_v7 = vld [vmem:[%s1427_s1 + $0x10] sm:$0xff]   ;;  %s1068_s12 = sshll.u32 %s1435_s18, 3 }
   0xe   : > { %1121 = vmatpush3.bf16.msra.mxu0 %v1208_v0  ;;  %1176 = vmatpush3.bf16.msra.mxu1 %v1208_v0  ;;  %s1309_s26 = scalar_lea.vmem %s1426_s0, %s1066_s23  ;;  %v1214_v8 = vld [vmem:[%s1427_s1 + $0x8] sm:$0xff]   ;;  %v1215_v9 = vld [vmem:[%s1427_s1] sm:$0xff]   ;;  %s1353_s19 = scalar_lea.vmem %s1429_s3, %s1068_s12 }
   0xf   : > { %1122 = vmatprep.subr.bf16.mxu0 %v1209_v1  ;;  %1169 = vmatprep.subr.bf16.mxu1 %v1209_v1  ;;  %v1216_v4 = vld [vmem:[%s1309_s26] sm:$0xff]   ;;  %v1218_v10 = vld [vmem:[%s1309_s26 + $0x8] sm:$0xff]   ;;  %v1220_v12 = vld [vmem:[%s1309_s26 + $0x10] sm:$0xff]  }
  0x10   : > { %v1217_v5 = vld [vmem:[%s1309_s26 + $0x40] sm:$0xff]   ;;  %1136 = vmatprep.mubr.bf16.mxu0 %v1216_v4  ;;  %v1219_v11 = vld [vmem:[%s1309_s26 + $0x48] sm:$0xff]   ;;  %v1221_v13 = vld [vmem:[%s1309_s26 + $0x50] sm:$0xff]  }
  0x11   : > { %1152 = vmatprep.mubr.bf16.mxu1 %v1217_v5  ;;  %v1222_v14 = vld [vmem:[%s1309_s26 + $0x18] sm:$0xff]   ;;  %v1224_v16 = vld [vmem:[%s1309_s26 + $0x20] sm:$0xff]   ;;  %v1226_v18 = vld [vmem:[%s1309_s26 + $0x28] sm:$0xff]  }
  0x12   : > { %1123 = vmatpush3.bf16.msra.mxu0 %v1209_v1  ;;  %1177 = vmatpush3.bf16.msra.mxu1 %v1209_v1  ;;  %v1223_v15 = vld [vmem:[%s1309_s26 + $0x58] sm:$0xff]   ;;  %v1225_v17 = vld [vmem:[%s1309_s26 + $0x60] sm:$0xff]   ;;  %v1227_v19 = vld [vmem:[%s1309_s26 + $0x68] sm:$0xff]  }
  0x13   : > { %1124 = vmatprep.subr.bf16.mxu0 %v1210_v2  ;;  %1170 = vmatprep.subr.bf16.mxu1 %v1210_v2  ;;  %v1228_v20 = vld [vmem:[%s1309_s26 + $0x30] sm:$0xff]   ;;  %v1230_v22 = vld [vmem:[%s1309_s26 + $0x38] sm:$0xff]   ;;  %v1345_v24 = vld [vmem:[%s1428_s2] ss:$0 sm:$0xff] }
  0x14   : > { %v1229_v21 = vld [vmem:[%s1309_s26 + $0x70] sm:$0xff]   ;;  %v1231_v23 = vld [vmem:[%s1309_s26 + $0x78] sm:$0xff]  }
  0x16   : > { %1125 = vmatpush3.bf16.msra.mxu0 %v1210_v2  ;;  %1178 = vmatpush3.bf16.msra.mxu1 %v1210_v2 }
  0x17   : > { %1126 = vmatprep.subr.bf16.mxu0 %v1211_v3  ;;  %1171 = vmatprep.subr.bf16.mxu1 %v1211_v3 }
  0x1a   : > { %1127 = vmatpush3.bf16.msra.mxu0 %v1211_v3  ;;  %1179 = vmatpush3.bf16.msra.mxu1 %v1211_v3 }
  0x1b   : > { %1128 = vmatprep.subr.bf16.mxu0 %v1212_v6  ;;  %1172 = vmatprep.subr.bf16.mxu1 %v1212_v6 }
  0x1e   : > { %1129 = vmatpush3.bf16.msra.mxu0 %v1212_v6  ;;  %1180 = vmatpush3.bf16.msra.mxu1 %v1212_v6 }
  0x1f   : > { %1130 = vmatprep.subr.bf16.mxu0 %v1213_v7  ;;  %1173 = vmatprep.subr.bf16.mxu1 %v1213_v7 }
  0x22   : > { %1131 = vmatpush3.bf16.msra.mxu0 %v1213_v7  ;;  %1181 = vmatpush3.bf16.msra.mxu1 %v1213_v7 }
  0x23   : > { %1132 = vmatprep.subr.bf16.mxu0 %v1214_v8  ;;  %1174 = vmatprep.subr.bf16.mxu1 %v1214_v8 }
  0x26   : > { %1133 = vmatpush3.bf16.msra.mxu0 %v1214_v8  ;;  %1182 = vmatpush3.bf16.msra.mxu1 %v1214_v8 }
  0x27   : > { %1134 = vmatprep.subr.bf16.mxu0 %v1215_v9  ;;  %1175 = vmatprep.subr.bf16.mxu1 %v1215_v9 }
  0x2a   : > { %1135 = vmatpush3.bf16.msra.mxu0 %v1215_v9  ;;  %1183 = vmatpush3.bf16.msra.mxu1 %v1215_v9 }
  0x2d   : > { %1137 = vmatmul.mubr.bf16.vlgmr.msra.gmra.mxu0 %v1218_v10  ;;  %1153 = vmatmul.mubr.bf16.vlgmr.msra.gmra.mxu1 %v1219_v11 }
  0x2e   : > { %1140 = vmatprep.mubr.bf16.mxu0 %v1220_v12  ;;  %1156 = vmatprep.mubr.bf16.mxu1 %v1221_v13 }
  0x35   : > { %1141 = vmatmul.mubr.bf16.gmra.mxu0 %v1222_v14  ;;  %1157 = vmatmul.mubr.bf16.gmra.mxu1 %v1223_v15 }
  0x36   : > { %1144 = vmatprep.mubr.bf16.mxu0 %v1224_v16  ;;  %1160 = vmatprep.mubr.bf16.mxu1 %v1225_v17 }
  0x3d   : > { %1145 = vmatmul.mubr.bf16.gmra.mxu0 %v1226_v18  ;;  %1161 = vmatmul.mubr.bf16.gmra.mxu1 %v1227_v19 }
  0x3e   : > { %1148 = vmatprep.mubr.bf16.mxu0 %v1228_v20  ;;  %1164 = vmatprep.mubr.bf16.mxu1 %v1229_v21 }
  0x45   : > { %1149 = vmatmul.mubr.bf16.gmra.mxu0 %v1230_v22  ;;  %1165 = vmatmul.mubr.bf16.gmra.mxu1 %v1231_v23 }
  0xed   : > { %v1138_v25 = vpop.f32.mrf.mxu0  ;;  %v1154_v26 = vpop.f32.mrf.mxu1 }
  0xee   : > { %v789_v27 = vadd.f32 %v1138_v25, %v1345_v24  ;;  %v805_v28 = vadd.f32 %v1154_v26, %v1345_v24 }
  0xef   : > { %v554_v29 = vpop.f32.mrf.mxu0  ;;  %v618_v30 = vpop.f32.mrf.mxu1 }
  0xf0   : > { %vm821_vm0 = vcmp.gt.f32.partialorder %v789_v27, 0.0  ;;  %v853_v31 = vmul.f32 0.2, %v789_v27  ;;  %vm837_vm1 = vcmp.gt.f32.partialorder %v805_v28, 0.0  ;;  %v869_v32 = vmul.f32 0.2, %v805_v28 }
  0xf1   : > { %v787_v33 = vadd.f32 %v1345_v24, %v554_v29  ;;  %v803_v34 = vadd.f32 %v1345_v24, %v618_v30  ;;  %v1139_v35 = vpop.f32.mrf.mxu0  ;;  %v1155_v36 = vpop.f32.mrf.mxu1 }
  0xf2   : > { %v885_v37 = vsel %vm821_vm0, %v789_v27, %v853_v31  ;;  %v901_v38 = vsel %vm837_vm1, %v805_v28, %v869_v32  ;;  %v790_v39 = vadd.f32 %v1139_v35, %v1345_v24  ;;  %v806_v40 = vadd.f32 %v1155_v36, %v1345_v24 }
  0xf3   : > { %917 = vst [vmem:[%s1353_s19 + $0x10] sm:$0xff] %v885_v37  ;;  %933 = vst [vmem:[%s1353_s19 + $0x90] sm:$0xff] %v901_v38  ;;  %vm819_vm2 = vcmp.gt.f32.partialorder %v787_v33, 0.0  ;;  %v851_v41 = vmul.f32 0.2, %v787_v33  ;;  %vm835_vm3 = vcmp.gt.f32.partialorder %v803_v34, 0.0  ;;  %v557_v43 = vpop.f32.mrf.mxu0  ;;  %v621_v44 = vpop.f32.mrf.mxu1 }
  0xf4   : > { %v867_v42 = vmul.f32 0.2, %v803_v34  ;;  %vm822_vm4 = vcmp.gt.f32.partialorder %v790_v39, 0.0  ;;  %v854_v45 = vmul.f32 0.2, %v790_v39  ;;  %vm838_vm5 = vcmp.gt.f32.partialorder %v806_v40, 0.0 }
  0xf5   : > { %v870_v46 = vmul.f32 0.2, %v806_v40  ;;  %v883_v47 = vsel %vm819_vm2, %v787_v33, %v851_v41  ;;  %v788_v49 = vadd.f32 %v1345_v24, %v557_v43  ;;  %v804_v50 = vadd.f32 %v1345_v24, %v621_v44  ;;  %v1142_v51 = vpop.f32.mrf.mxu0  ;;  %v1158_v52 = vpop.f32.mrf.mxu1 }
  0xf6   : > { %v899_v48 = vsel %vm835_vm3, %v803_v34, %v867_v42  ;;  %915 = vst [vmem:[%s1353_s19] sm:$0xff] %v883_v47  ;;  %v886_v53 = vsel %vm822_vm4, %v790_v39, %v854_v45  ;;  %v793_v55 = vadd.f32 %v1142_v51, %v1345_v24  ;;  %v809_v56 = vadd.f32 %v1158_v52, %v1345_v24 }
  0xf7   : > { %931 = vst [vmem:[%s1353_s19 + $0x80] sm:$0xff] %v899_v48  ;;  %v902_v54 = vsel %vm838_vm5, %v806_v40, %v870_v46  ;;  %918 = vst [vmem:[%s1353_s19 + $0x18] sm:$0xff] %v886_v53  ;;  %vm820_vm6 = vcmp.gt.f32.partialorder %v788_v49, 0.0  ;;  %v852_v57 = vmul.f32 0.2, %v788_v49  ;;  %vm836_vm7 = vcmp.gt.f32.partialorder %v804_v50, 0.0  ;;  %v570_v59 = vpop.f32.mrf.mxu0  ;;  %v634_v60 = vpop.f32.mrf.mxu1 }
  0xf8   : > { %934 = vst [vmem:[%s1353_s19 + $0x98] sm:$0xff] %v902_v54  ;;  %v868_v58 = vmul.f32 0.2, %v804_v50  ;;  %vm825_vm8 = vcmp.gt.f32.partialorder %v793_v55, 0.0  ;;  %v857_v61 = vmul.f32 0.2, %v793_v55  ;;  %v791_v1 = vadd.f32 %v1345_v24, %v570_v59 }
  0xf9   : > { %vm841_vm9 = vcmp.gt.f32.partialorder %v809_v56, 0.0  ;;  %v873_v62 = vmul.f32 0.2, %v809_v56  ;;  %v884_v63 = vsel %vm820_vm6, %v788_v49, %v852_v57  ;;  %v807_v2 = vadd.f32 %v1345_v24, %v634_v60  ;;  %v1143_v3 = vpop.f32.mrf.mxu0  ;;  %v1159_v4 = vpop.f32.mrf.mxu1 }
  0xfa   : > { %v900_v0 = vsel %vm836_vm7, %v804_v50, %v868_v58  ;;  %916 = vst [vmem:[%s1353_s19 + $0x8] sm:$0xff] %v884_v63  ;;  %v889_v5 = vsel %vm825_vm8, %v793_v55, %v857_v61  ;;  %v794_v7 = vadd.f32 %v1143_v3, %v1345_v24  ;;  %v810_v8 = vadd.f32 %v1159_v4, %v1345_v24 }
  0xfb   : > { %932 = vst [vmem:[%s1353_s19 + $0x88] sm:$0xff] %v900_v0  ;;  %v905_v6 = vsel %vm841_vm9, %v809_v56, %v873_v62  ;;  %921 = vst [vmem:[%s1353_s19 + $0x30] sm:$0xff] %v889_v5  ;;  %vm823_vm10 = vcmp.gt.f32.partialorder %v791_v1, 0.0  ;;  %v855_v9 = vmul.f32 0.2, %v791_v1  ;;  %vm839_vm11 = vcmp.gt.f32.partialorder %v807_v2, 0.0  ;;  %v573_v11 = vpop.f32.mrf.mxu0  ;;  %v637_v12 = vpop.f32.mrf.mxu1 }
  0xfc   : > { %937 = vst [vmem:[%s1353_s19 + $0xb0] sm:$0xff] %v905_v6  ;;  %v871_v10 = vmul.f32 0.2, %v807_v2  ;;  %vm826_vm12 = vcmp.gt.f32.partialorder %v794_v7, 0.0  ;;  %v858_v13 = vmul.f32 0.2, %v794_v7  ;;  %v792_v17 = vadd.f32 %v1345_v24, %v573_v11 }
  0xfd   : > { %vm842_vm13 = vcmp.gt.f32.partialorder %v810_v8, 0.0  ;;  %v874_v14 = vmul.f32 0.2, %v810_v8  ;;  %v887_v15 = vsel %vm823_vm10, %v791_v1, %v855_v9  ;;  %v808_v18 = vadd.f32 %v1345_v24, %v637_v12  ;;  %v1146_v19 = vpop.f32.mrf.mxu0  ;;  %v1162_v20 = vpop.f32.mrf.mxu1 }
  0xfe   : > { %v903_v16 = vsel %vm839_vm11, %v807_v2, %v871_v10  ;;  %919 = vst [vmem:[%s1353_s19 + $0x20] sm:$0xff] %v887_v15  ;;  %v890_v21 = vsel %vm826_vm12, %v794_v7, %v858_v13  ;;  %v797_v23 = vadd.f32 %v1146_v19, %v1345_v24  ;;  %v813_v25 = vadd.f32 %v1162_v20, %v1345_v24 }
  0xff   : > { %935 = vst [vmem:[%s1353_s19 + $0xa0] sm:$0xff] %v903_v16  ;;  %v906_v22 = vsel %vm842_vm13, %v810_v8, %v874_v14  ;;  %922 = vst [vmem:[%s1353_s19 + $0x38] sm:$0xff] %v890_v21  ;;  %vm824_vm14 = vcmp.gt.f32.partialorder %v792_v17, 0.0  ;;  %v856_v26 = vmul.f32 0.2, %v792_v17  ;;  %vm840_vm15 = vcmp.gt.f32.partialorder %v808_v18, 0.0  ;;  %v586_v28 = vpop.f32.mrf.mxu0  ;;  %v650_v29 = vpop.f32.mrf.mxu1 }
 0x100   : > { %938 = vst [vmem:[%s1353_s19 + $0xb8] sm:$0xff] %v906_v22  ;;  %v872_v27 = vmul.f32 0.2, %v808_v18  ;;  %vm829_vm0 = vcmp.gt.f32.partialorder %v797_v23, 0.0  ;;  %v861_v30 = vmul.f32 0.2, %v797_v23  ;;  %v795_v34 = vadd.f32 %v1345_v24, %v586_v28 }
 0x101   : > { %vm845_vm1 = vcmp.gt.f32.partialorder %v813_v25, 0.0  ;;  %v877_v31 = vmul.f32 0.2, %v813_v25  ;;  %v888_v32 = vsel %vm824_vm14, %v792_v17, %v856_v26  ;;  %v811_v35 = vadd.f32 %v1345_v24, %v650_v29  ;;  %v1147_v36 = vpop.f32.mrf.mxu0  ;;  %v1163_v37 = vpop.f32.mrf.mxu1 }
 0x102   : > { %v904_v33 = vsel %vm840_vm15, %v808_v18, %v872_v27  ;;  %920 = vst [vmem:[%s1353_s19 + $0x28] sm:$0xff] %v888_v32  ;;  %v893_v38 = vsel %vm829_vm0, %v797_v23, %v861_v30  ;;  %v798_v40 = vadd.f32 %v1147_v36, %v1345_v24  ;;  %v814_v41 = vadd.f32 %v1163_v37, %v1345_v24 }
 0x103   : > { %936 = vst [vmem:[%s1353_s19 + $0xa8] sm:$0xff] %v904_v33  ;;  %v909_v39 = vsel %vm845_vm1, %v813_v25, %v877_v31  ;;  %925 = vst [vmem:[%s1353_s19 + $0x50] sm:$0xff] %v893_v38  ;;  %vm827_vm2 = vcmp.gt.f32.partialorder %v795_v34, 0.0  ;;  %v859_v42 = vmul.f32 0.2, %v795_v34  ;;  %vm843_vm3 = vcmp.gt.f32.partialorder %v811_v35, 0.0  ;;  %v589_v44 = vpop.f32.mrf.mxu0  ;;  %v653_v45 = vpop.f32.mrf.mxu1 }
 0x104   : > { %941 = vst [vmem:[%s1353_s19 + $0xd0] sm:$0xff] %v909_v39  ;;  %v875_v43 = vmul.f32 0.2, %v811_v35  ;;  %vm830_vm4 = vcmp.gt.f32.partialorder %v798_v40, 0.0  ;;  %v862_v46 = vmul.f32 0.2, %v798_v40  ;;  %v796_v50 = vadd.f32 %v1345_v24, %v589_v44 }
 0x105   : > { %vm846_vm5 = vcmp.gt.f32.partialorder %v814_v41, 0.0  ;;  %v878_v47 = vmul.f32 0.2, %v814_v41  ;;  %v891_v48 = vsel %vm827_vm2, %v795_v34, %v859_v42  ;;  %v812_v51 = vadd.f32 %v1345_v24, %v653_v45  ;;  %v1150_v52 = vpop.f32.mrf.mxu0  ;;  %v1166_v53 = vpop.f32.mrf.mxu1 }
 0x106   : > { %v907_v49 = vsel %vm843_vm3, %v811_v35, %v875_v43  ;;  %923 = vst [vmem:[%s1353_s19 + $0x40] sm:$0xff] %v891_v48  ;;  %v894_v54 = vsel %vm830_vm4, %v798_v40, %v862_v46  ;;  %v801_v56 = vadd.f32 %v1150_v52, %v1345_v24  ;;  %v817_v57 = vadd.f32 %v1166_v53, %v1345_v24 }
 0x107   : > { %939 = vst [vmem:[%s1353_s19 + $0xc0] sm:$0xff] %v907_v49  ;;  %v910_v55 = vsel %vm846_vm5, %v814_v41, %v878_v47  ;;  %926 = vst [vmem:[%s1353_s19 + $0x58] sm:$0xff] %v894_v54  ;;  %vm828_vm6 = vcmp.gt.f32.partialorder %v796_v50, 0.0  ;;  %v860_v58 = vmul.f32 0.2, %v796_v50  ;;  %vm844_vm7 = vcmp.gt.f32.partialorder %v812_v51, 0.0  ;;  %v602_v60 = vpop.f32.mrf.mxu0  ;;  %v666_v61 = vpop.f32.mrf.mxu1 }
 0x108   : > { %942 = vst [vmem:[%s1353_s19 + $0xd8] sm:$0xff] %v910_v55  ;;  %v876_v59 = vmul.f32 0.2, %v812_v51  ;;  %vm833_vm8 = vcmp.gt.f32.partialorder %v801_v56, 0.0  ;;  %v865_v62 = vmul.f32 0.2, %v801_v56  ;;  %v799_v2 = vadd.f32 %v1345_v24, %v602_v60 }
 0x109   : > { %vm849_vm9 = vcmp.gt.f32.partialorder %v817_v57, 0.0  ;;  %v881_v63 = vmul.f32 0.2, %v817_v57  ;;  %v892_v0 = vsel %vm828_vm6, %v796_v50, %v860_v58  ;;  %v815_v3 = vadd.f32 %v1345_v24, %v666_v61  ;;  %v1151_v4 = vpop.f32.mrf.mxu0  ;;  %v1167_v5 = vpop.f32.mrf.mxu1 }
 0x10a   : > { %v908_v1 = vsel %vm844_vm7, %v812_v51, %v876_v59  ;;  %924 = vst [vmem:[%s1353_s19 + $0x48] sm:$0xff] %v892_v0  ;;  %v897_v6 = vsel %vm833_vm8, %v801_v56, %v865_v62  ;;  %v802_v8 = vadd.f32 %v1151_v4, %v1345_v24  ;;  %v818_v9 = vadd.f32 %v1167_v5, %v1345_v24 }
 0x10b   : > { %940 = vst [vmem:[%s1353_s19 + $0xc8] sm:$0xff] %v908_v1  ;;  %v913_v7 = vsel %vm849_vm9, %v817_v57, %v881_v63  ;;  %929 = vst [vmem:[%s1353_s19 + $0x70] sm:$0xff] %v897_v6  ;;  %vm831_vm10 = vcmp.gt.f32.partialorder %v799_v2, 0.0  ;;  %v863_v10 = vmul.f32 0.2, %v799_v2  ;;  %vm847_vm11 = vcmp.gt.f32.partialorder %v815_v3, 0.0  ;;  %v605_v12 = vpop.f32.mrf.mxu0  ;;  %v669_v13 = vpop.f32.mrf.mxu1 }
 0x10c   : > { %945 = vst [vmem:[%s1353_s19 + $0xf0] sm:$0xff] %v913_v7  ;;  %v879_v11 = vmul.f32 0.2, %v815_v3  ;;  %vm834_vm12 = vcmp.gt.f32.partialorder %v802_v8, 0.0  ;;  %v866_v14 = vmul.f32 0.2, %v802_v8  ;;  %v800_v18 = vadd.f32 %v1345_v24, %v605_v12 }
 0x10d   : > { %vm850_vm13 = vcmp.gt.f32.partialorder %v818_v9, 0.0  ;;  %v882_v15 = vmul.f32 0.2, %v818_v9  ;;  %v895_v16 = vsel %vm831_vm10, %v799_v2, %v863_v10  ;;  %v816_v19 = vadd.f32 %v1345_v24, %v669_v13 }
 0x10e   : > { %v911_v17 = vsel %vm847_vm11, %v815_v3, %v879_v11  ;;  %927 = vst [vmem:[%s1353_s19 + $0x60] sm:$0xff] %v895_v16  ;;  %v898_v20 = vsel %vm834_vm12, %v802_v8, %v866_v14  ;;  %vm832_vm14 = vcmp.gt.f32.partialorder %v800_v18, 0.0  ;;  %v864_v22 = vmul.f32 0.2, %v800_v18 }
 0x10f   : > { %943 = vst [vmem:[%s1353_s19 + $0xe0] sm:$0xff] %v911_v17  ;;  %v914_v21 = vsel %vm850_vm13, %v818_v9, %v882_v15  ;;  %930 = vst [vmem:[%s1353_s19 + $0x78] sm:$0xff] %v898_v20  ;;  %vm848_vm15 = vcmp.gt.f32.partialorder %v816_v19, 0.0  ;;  %v880_v23 = vmul.f32 0.2, %v816_v19 }
 0x110   : > { %946 = vst [vmem:[%s1353_s19 + $0xf8] sm:$0xff] %v914_v21  ;;  %v896_v25 = vsel %vm832_vm14, %v800_v18, %v864_v22 }
 0x111   : > { %v912_v26 = vsel %vm848_vm15, %v816_v19, %v880_v23  ;;  %928 = vst [vmem:[%s1353_s19 + $0x68] sm:$0xff] %v896_v25 }
 0x112   : > { %944 = vst [vmem:[%s1353_s19 + $0xe8] sm:$0xff] %v912_v26 }
 0x113 PF: > { %s13_s14 = sadd.s32 1, %s1254_s14   ;;  %s1430_s12 = smov %s1250_s13 }
 0x114   : > { %p10_p5 = scmp.ge.s32.totalorder %s13_s14, 4   ;;  %s1431_s13 = smov %s1433_s15 }
 0x116   :  { %12 = sbr.rel (!%p10_p5) target bundleno = 2 (0x2), region = 76 }

// kernel: discriminator_forward.25
= control target key start
LH: loop header
LB: loop body
LE: loop exit
PB: predicated region body
PF: predicated region fallthrough
CT: control target
= control target key end

     0   :  { %vm14_vm0 = vcmask 516096   ;;  %vm34_vm1 = vcmask 523264   ;;  %v140_v0 = vmov 0.0   ;;  %s258_s0 = inlined_call_operand.vmem [shape: f32[128,64], index: 0, kind: input, shape index: {}]   ;;  %s259_s1 = inlined_call_operand.vmem [shape: f32[1,64], index: 1, kind: output, shape index: {0}]   ;;  %s260_s2 = inlined_call_operand.vmem [shape: f32[1,64], index: 2, kind: output, shape index: {1}]  }
   0x1   :  { %15 = vst.msk [vmem:[%s259_s1] sm:$0x1] %vm14_vm0, %v140_v0  ;;  %v17_v1 = vld [vmem:[%s258_s0] sm:$0xff]  ;;  %v18_v2 = vld [vmem:[%s258_s0 + $0x8] sm:$0xff]  ;;  %v19_v3 = vld [vmem:[%s258_s0 + $0x10] sm:$0xff] }
   0x2   :  { %16 = vst.msk [vmem:[%s260_s2] sm:$0x1] %vm14_vm0, %v140_v0  ;;  %v35_v4 = vsel %vm34_vm1, %v17_v1, 0.0  ;;  %v36_v5 = vsel %vm34_vm1, %v18_v2, 0.0  ;;  %v38_v6 = vsel %vm34_vm1, %v19_v3, 0.0  ;;  %v20_v7 = vld [vmem:[%s258_s0 + $0x18] sm:$0xff]  ;;  %v76_v15 = vmul.f32 %v17_v1, %v17_v1 }
   0x3   :  { %v37_v8 = vadd.f32 %v36_v5, %v35_v4  ;;  %v40_v9 = vsel %vm34_vm1, %v20_v7, 0.0  ;;  %v21_v10 = vld [vmem:[%s258_s0 + $0x20] sm:$0xff]  ;;  %v22_v13 = vld [vmem:[%s258_s0 + $0x28] sm:$0xff]  ;;  %v77_v16 = vmul.f32 %v18_v2, %v18_v2  ;;  %v78_v17 = vmul.f32 %v19_v3, %v19_v3  ;;  %v23_v19 = vld [vmem:[%s258_s0 + $0x30] sm:$0xff] }
   0x4   :  { %v42_v12 = vsel %vm34_vm1, %v21_v10, 0.0  ;;  %v44_v18 = vsel %vm34_vm1, %v22_v13, 0.0  ;;  %v79_v21 = vmul.f32 %v20_v7, %v20_v7  ;;  %v46_v22 = vsel %vm34_vm1, %v23_v19, 0.0  ;;  %v24_v24 = vld [vmem:[%s258_s0 + $0x38] sm:$0xff]  ;;  %v25_v31 = vld [vmem:[%s258_s0 + $0x40] sm:$0xff]  ;;  %v26_v37 = vld [vmem:[%s258_s0 + $0x48] sm:$0xff] }
   0x5   :  { %v39_v11 = vadd.f32 %v38_v6, %v37_v8  ;;  %v80_v23 = vmul.f32 %v21_v10, %v21_v10  ;;  %v92_v26 = vsel %vm34_vm1, %v76_v15, 0.0  ;;  %v93_v27 = vsel %vm34_vm1, %v77_v16, 0.0  ;;  %v27_v43 = vld [vmem:[%s258_s0 + $0x50] sm:$0xff]  ;;  %v28_v49 = vld [vmem:[%s258_s0 + $0x58] sm:$0xff]  ;;  %v29_v55 = vld [vmem:[%s258_s0 + $0x60] sm:$0xff] }
   0x6   :  { %v95_v28 = vsel %vm34_vm1, %v78_v17, 0.0  ;;  %v48_v29 = vsel %vm34_vm1, %v24_v24, 0.0  ;;  %v94_v30 = vadd.f32 %v93_v27, %v92_v26  ;;  %v81_v33 = vmul.f32 %v22_v13, %v22_v13  ;;  %v30_v61 = vld [vmem:[%s258_s0 + $0x68] sm:$0xff]  ;;  %v31_v3 = vld [vmem:[%s258_s0 + $0x70] sm:$0xff] }
   0x7   :  { %v41_v14 = vadd.f32 %v40_v9, %v39_v11  ;;  %v97_v34 = vsel %vm34_vm1, %v79_v21, 0.0  ;;  %v50_v35 = vsel %vm34_vm1, %v25_v31, 0.0  ;;  %v82_v39 = vmul.f32 %v23_v19, %v23_v19  ;;  %v32_v9 = vld [vmem:[%s258_s0 + $0x78] sm:$0xff] }
   0x8   :  { %v96_v36 = vadd.f32 %v95_v28, %v94_v30  ;;  %v99_v40 = vsel %vm34_vm1, %v80_v23, 0.0  ;;  %v52_v41 = vsel %vm34_vm1, %v26_v37, 0.0  ;;  %v83_v45 = vmul.f32 %v24_v24, %v24_v24 }
   0x9   :  { %v43_v20 = vadd.f32 %v42_v12, %v41_v14  ;;  %v101_v46 = vsel %vm34_vm1, %v81_v33, 0.0  ;;  %v54_v47 = vsel %vm34_vm1, %v27_v43, 0.0  ;;  %v84_v51 = vmul.f32 %v25_v31, %v25_v31 }
   0xa   :  { %v98_v42 = vadd.f32 %v97_v34, %v96_v36  ;;  %v103_v52 = vsel %vm34_vm1, %v82_v39, 0.0  ;;  %v56_v53 = vsel %vm34_vm1, %v28_v49, 0.0  ;;  %v85_v57 = vmul.f32 %v26_v37, %v26_v37  ;;  %v33_v36 = vld [vmem:[%s259_s1] sm:$0x1] }
   0xb   :  { %v45_v25 = vadd.f32 %v44_v18, %v43_v20  ;;  %v105_v58 = vsel %vm34_vm1, %v83_v45, 0.0  ;;  %v58_v59 = vsel %vm34_vm1, %v29_v55, 0.0  ;;  %v86_v63 = vmul.f32 %v27_v43, %v27_v43 }
   0xc   :  { %v100_v48 = vadd.f32 %v99_v40, %v98_v42  ;;  %v107_v0 = vsel %vm34_vm1, %v84_v51, 0.0  ;;  %v60_v1 = vsel %vm34_vm1, %v30_v61, 0.0  ;;  %v87_v5 = vmul.f32 %v28_v49, %v28_v49 }
   0xd   :  { %v47_v32 = vadd.f32 %v46_v22, %v45_v25  ;;  %v109_v6 = vsel %vm34_vm1, %v85_v57, 0.0  ;;  %v62_v7 = vsel %vm34_vm1, %v31_v3, 0.0  ;;  %v88_v11 = vmul.f32 %v29_v55, %v29_v55 }
   0xe   :  { %v102_v54 = vadd.f32 %v101_v46, %v100_v48  ;;  %v111_v12 = vsel %vm34_vm1, %v86_v63, 0.0  ;;  %v64_v13 = vsel %vm34_vm1, %v32_v9, 0.0  ;;  %v89_v16 = vmul.f32 %v30_v61, %v30_v61 }
   0xf   :  { %v49_v38 = vadd.f32 %v48_v29, %v47_v32  ;;  %v113_v17 = vsel %vm34_vm1, %v87_v5, 0.0  ;;  %v90_v20 = vmul.f32 %v31_v3, %v31_v3  ;;  %v115_v21 = vsel %vm34_vm1, %v88_v11, 0.0 }
  0x10   :  { %v104_v60 = vadd.f32 %v103_v52, %v102_v54  ;;  %v91_v24 = vmul.f32 %v32_v9, %v32_v9  ;;  %v117_v25 = vsel %vm34_vm1, %v89_v16, 0.0 }
  0x11   :  { %v51_v44 = vadd.f32 %v50_v35, %v49_v38  ;;  %v119_v28 = vsel %vm34_vm1, %v90_v20, 0.0 }
  0x12   :  { %v106_v2 = vadd.f32 %v105_v58, %v104_v60  ;;  %v121_v31 = vsel %vm34_vm1, %v91_v24, 0.0 }
  0x13   :  { %v53_v50 = vadd.f32 %v52_v41, %v51_v44  ;;  %v75_v44 = vld [vmem:[%s260_s2] sm:$0x1] }
  0x14   :  { %v108_v8 = vadd.f32 %v107_v0, %v106_v2 }
  0x15   :  { %v55_v56 = vadd.f32 %v54_v47, %v53_v50 }
  0x16   :  { %v110_v14 = vadd.f32 %v109_v6, %v108_v8 }
  0x17   :  { %v57_v62 = vadd.f32 %v56_v53, %v55_v56 }
  0x18   :  { %v112_v18 = vadd.f32 %v111_v12, %v110_v14 }
  0x19   :  { %v59_v4 = vadd.f32 %v58_v59, %v57_v62 }
  0x1a   :  { %v114_v22 = vadd.f32 %v113_v17, %v112_v18 }
  0x1b   :  { %v61_v10 = vadd.f32 %v60_v1, %v59_v4 }
  0x1c   :  { %v116_v26 = vadd.f32 %v115_v21, %v114_v22 }
  0x1d   :  { %v63_v15 = vadd.f32 %v62_v7, %v61_v10 }
  0x1e   :  { %v118_v29 = vadd.f32 %v117_v25, %v116_v26 }
  0x1f   :  { %v65_v19 = vadd.f32 %v64_v13, %v63_v15 }
  0x20   :  { %v120_v32 = vadd.f32 %v119_v28, %v118_v29 }
  0x21   :  { %v66_v23 = vrot.slane %v65_v19, 4 }
  0x22   :  { %v122_v34 = vadd.f32 %v121_v31, %v120_v32 }
  0x23   :  { %v67_v27 = vadd.f32 %v66_v23, %v65_v19 }
  0x24   :  { %v123_v37 = vrot.slane %v122_v34, 4 }
  0x25   :  { %v68_v30 = vrot.slane %v67_v27, 2 }
  0x26   :  { %v124_v39 = vadd.f32 %v123_v37, %v122_v34 }
  0x27   :  { %v69_v33 = vadd.f32 %v68_v30, %v67_v27 }
  0x28   :  { %v125_v41 = vrot.slane %v124_v39, 2 }
  0x29   :  { %v70_v35 = vrot.slane %v69_v33, 1 }
  0x2a   :  { %v126_v42 = vadd.f32 %v125_v41, %v124_v39 }
  0x2b   :  { %v71_v38 = vadd.f32 %v70_v35, %v69_v33 }
  0x2c   :  { %v127_v43 = vrot.slane %v126_v42, 1 }
  0x2d   :  { %v72_v40 = vadd.f32 %v71_v38, %v33_v36 }
  0x2e   :  { %v128_v45 = vadd.f32 %v127_v43, %v126_v42 }
  0x2f   :  { %74 = vst.msk [vmem:[%s259_s1] sm:$0x1] %vm14_vm0, %v72_v40 }
  0x30   :  { %v129_v46 = vadd.f32 %v128_v45, %v75_v44 }
  0x32   :  { %130 = vst.msk [vmem:[%s260_s2] sm:$0x1] %vm14_vm0, %v129_v46 }

// kernel: discriminator_forward.26
= control target key start
LH: loop header
LB: loop body
LE: loop exit
PB: predicated region body
PF: predicated region fallthrough
CT: control target
= control target key end

     0   :  { %vm124_vm0 = vcmask 523264   ;;  %s322_s0 = inlined_call_operand.vmem [shape: f32[128,64], index: 0, kind: input, shape index: {}]   ;;  %s323_s1 = inlined_call_operand.vmem [shape: f32[1,64], index: 1, kind: input, shape index: {}]   ;;  %s324_s2 = inlined_call_operand.vmem [shape: f32[1,64], index: 2, kind: input, shape index: {}]   ;;  %s325_s3 = inlined_call_operand.vmem [shape: f32[128,64], index: 3, kind: output, shape index: {}]  }
   0x1   :  { %v14_v0 = vld [vmem:[%s322_s0] sm:$0xff]  ;;  %v15_v4 = vld [vmem:[%s322_s0 + $0x8] sm:$0xff]  ;;  %v16_v5 = vld [vmem:[%s322_s0 + $0x10] sm:$0xff] }
   0x2   :  { %v173_v1 = vld [vmem:[%s323_s1] ss:$0 sm:$0xff]  ;;  %v17_v6 = vld [vmem:[%s322_s0 + $0x18] sm:$0xff]  ;;  %v19_v11 = vld [vmem:[%s322_s0 + $0x28] sm:$0xff] }
   0x3   :  { %v178_v2 = vld [vmem:[%s324_s2] ss:$0 sm:$0xff]  ;;  %v37_v3 = vmul.f32 %v173_v1, %v14_v0  ;;  %v38_v7 = vmul.f32 %v173_v1, %v15_v4  ;;  %v39_v8 = vmul.f32 %v173_v1, %v16_v5  ;;  %v40_v9 = vmul.f32 %v173_v1, %v17_v6  ;;  %v20_v12 = vld [vmem:[%s322_s0 + $0x30] sm:$0xff]  ;;  %v21_v17 = vld [vmem:[%s322_s0 + $0x38] sm:$0xff] }
   0x4   :  { %v18_v10 = vld [vmem:[%s322_s0 + $0x20] sm:$0xff]  ;;  %v42_v15 = vmul.f32 %v173_v1, %v19_v11  ;;  %v43_v16 = vmul.f32 %v173_v1, %v20_v12  ;;  %v44_v21 = vmul.f32 %v173_v1, %v21_v17  ;;  %v23_v30 = vld [vmem:[%s322_s0 + $0x48] sm:$0xff]  ;;  %v24_v31 = vld [vmem:[%s322_s0 + $0x50] sm:$0xff] }
   0x5   :  { %v60_v13 = vadd.f32 %v178_v2, %v37_v3  ;;  %v41_v14 = vmul.f32 %v173_v1, %v18_v10  ;;  %v61_v18 = vadd.f32 %v178_v2, %v38_v7  ;;  %v62_v19 = vadd.f32 %v178_v2, %v39_v8  ;;  %v22_v25 = vld [vmem:[%s322_s0 + $0x40] sm:$0xff]  ;;  %v25_v43 = vld [vmem:[%s322_s0 + $0x58] sm:$0xff]  ;;  %v27_v45 = vld [vmem:[%s322_s0 + $0x68] sm:$0xff] }
   0x6   :  { %v63_v20 = vadd.f32 %v178_v2, %v40_v9  ;;  %v65_v24 = vadd.f32 %v178_v2, %v42_v15  ;;  %v66_v37 = vadd.f32 %v178_v2, %v43_v16  ;;  %v67_v38 = vadd.f32 %v178_v2, %v44_v21  ;;  %v26_v44 = vld [vmem:[%s322_s0 + $0x60] sm:$0xff]  ;;  %v28_v56 = vld [vmem:[%s322_s0 + $0x70] sm:$0xff]  ;;  %v29_v4 = vld [vmem:[%s322_s0 + $0x78] sm:$0xff] }
   0x7   :  { %vm76_vm1 = vcmp.gt.f32.partialorder %v60_v13, 0.0  ;;  %v92_v22 = vmul.f32 0.2, %v60_v13  ;;  %v64_v23 = vadd.f32 %v178_v2, %v41_v14  ;;  %vm77_vm2 = vcmp.gt.f32.partialorder %v61_v18, 0.0 }
   0x8   :  { %v93_v26 = vmul.f32 0.2, %v61_v18  ;;  %vm78_vm3 = vcmp.gt.f32.partialorder %v62_v19, 0.0  ;;  %v94_v27 = vmul.f32 0.2, %v62_v19  ;;  %vm79_vm4 = vcmp.gt.f32.partialorder %v63_v20, 0.0 }
   0x9   :  { %v108_v28 = vsel %vm76_vm1, %v60_v13, %v92_v22  ;;  %v95_v29 = vmul.f32 0.2, %v63_v20  ;;  %vm80_vm5 = vcmp.gt.f32.partialorder %v64_v23, 0.0  ;;  %v96_v34 = vmul.f32 0.2, %v64_v23 }
   0xa   :  { %125 = vst.msk [vmem:[%s325_s3] sm:$0xff] %vm124_vm0, %v108_v28  ;;  %v109_v32 = vsel %vm77_vm2, %v61_v18, %v93_v26  ;;  %v110_v33 = vsel %vm78_vm3, %v62_v19, %v94_v27  ;;  %vm81_vm6 = vcmp.gt.f32.partialorder %v65_v24, 0.0  ;;  %v97_v36 = vmul.f32 0.2, %v65_v24 }
   0xb   :  { %126 = vst.msk [vmem:[%s325_s3 + $0x8] sm:$0xff] %vm124_vm0, %v109_v32  ;;  %127 = vst.msk [vmem:[%s325_s3 + $0x10] sm:$0xff] %vm124_vm0, %v110_v33  ;;  %v111_v35 = vsel %vm79_vm4, %v63_v20, %v95_v29  ;;  %v112_v39 = vsel %vm80_vm5, %v64_v23, %v96_v34  ;;  %v45_v40 = vmul.f32 %v173_v1, %v22_v25  ;;  %vm82_vm7 = vcmp.gt.f32.partialorder %v66_v37, 0.0 }
   0xc   :  { %128 = vst.msk [vmem:[%s325_s3 + $0x18] sm:$0xff] %vm124_vm0, %v111_v35  ;;  %v46_v41 = vmul.f32 %v173_v1, %v23_v30  ;;  %v47_v42 = vmul.f32 %v173_v1, %v24_v31  ;;  %129 = vst.msk [vmem:[%s325_s3 + $0x20] sm:$0xff] %vm124_vm0, %v112_v39  ;;  %v113_v46 = vsel %vm81_vm6, %v65_v24, %v97_v36  ;;  %v98_v47 = vmul.f32 0.2, %v66_v37 }
   0xd   :  { %vm83_vm8 = vcmp.gt.f32.partialorder %v67_v38, 0.0  ;;  %130 = vst.msk [vmem:[%s325_s3 + $0x28] sm:$0xff] %vm124_vm0, %v113_v46  ;;  %v99_v48 = vmul.f32 0.2, %v67_v38  ;;  %v68_v49 = vadd.f32 %v178_v2, %v45_v40  ;;  %v48_v53 = vmul.f32 %v173_v1, %v25_v43 }
   0xe   :  { %v69_v50 = vadd.f32 %v178_v2, %v46_v41  ;;  %v70_v51 = vadd.f32 %v178_v2, %v47_v42  ;;  %v114_v52 = vsel %vm82_vm7, %v66_v37, %v98_v47  ;;  %v49_v54 = vmul.f32 %v173_v1, %v26_v44 }
   0xf   :  { %v50_v55 = vmul.f32 %v173_v1, %v27_v45  ;;  %131 = vst.msk [vmem:[%s325_s3 + $0x30] sm:$0xff] %vm124_vm0, %v114_v52  ;;  %v115_v57 = vsel %vm83_vm8, %v67_v38, %v99_v48  ;;  %vm84_vm9 = vcmp.gt.f32.partialorder %v68_v49, 0.0  ;;  %v100_v58 = vmul.f32 0.2, %v68_v49 }
  0x10   :  { %vm85_vm10 = vcmp.gt.f32.partialorder %v69_v50, 0.0  ;;  %132 = vst.msk [vmem:[%s325_s3 + $0x38] sm:$0xff] %vm124_vm0, %v115_v57  ;;  %v101_v59 = vmul.f32 0.2, %v69_v50  ;;  %vm86_vm11 = vcmp.gt.f32.partialorder %v70_v51, 0.0  ;;  %v71_v61 = vadd.f32 %v178_v2, %v48_v53 }
  0x11   :  { %v102_v60 = vmul.f32 0.2, %v70_v51  ;;  %v116_v62 = vsel %vm84_vm9, %v68_v49, %v100_v58  ;;  %v72_v63 = vadd.f32 %v178_v2, %v49_v54  ;;  %v73_v0 = vadd.f32 %v178_v2, %v50_v55 }
  0x12   :  { %v51_v3 = vmul.f32 %v173_v1, %v28_v56  ;;  %133 = vst.msk [vmem:[%s325_s3 + $0x40] sm:$0xff] %vm124_vm0, %v116_v62  ;;  %v117_v5 = vsel %vm85_vm10, %v69_v50, %v101_v59  ;;  %vm87_vm12 = vcmp.gt.f32.partialorder %v71_v61, 0.0  ;;  %v103_v7 = vmul.f32 0.2, %v71_v61 }
  0x13   :  { %v118_v6 = vsel %vm86_vm11, %v70_v51, %v102_v60  ;;  %134 = vst.msk [vmem:[%s325_s3 + $0x48] sm:$0xff] %vm124_vm0, %v117_v5  ;;  %vm88_vm13 = vcmp.gt.f32.partialorder %v72_v63, 0.0  ;;  %v104_v8 = vmul.f32 0.2, %v72_v63  ;;  %vm89_vm14 = vcmp.gt.f32.partialorder %v73_v0, 0.0 }
  0x14   :  { %135 = vst.msk [vmem:[%s325_s3 + $0x50] sm:$0xff] %vm124_vm0, %v118_v6  ;;  %v105_v9 = vmul.f32 0.2, %v73_v0  ;;  %v119_v10 = vsel %vm87_vm12, %v71_v61, %v103_v7  ;;  %v74_v11 = vadd.f32 %v178_v2, %v51_v3  ;;  %v52_v12 = vmul.f32 %v173_v1, %v29_v4 }
  0x15   :  { %136 = vst.msk [vmem:[%s325_s3 + $0x58] sm:$0xff] %vm124_vm0, %v119_v10  ;;  %v120_v13 = vsel %vm88_vm13, %v72_v63, %v104_v8 }
  0x16   :  { %v121_v14 = vsel %vm89_vm14, %v73_v0, %v105_v9  ;;  %137 = vst.msk [vmem:[%s325_s3 + $0x60] sm:$0xff] %vm124_vm0, %v120_v13  ;;  %vm90_vm15 = vcmp.gt.f32.partialorder %v74_v11, 0.0  ;;  %v106_v15 = vmul.f32 0.2, %v74_v11  ;;  %v75_v1 = vadd.f32 %v178_v2, %v52_v12 }
  0x17   :  { %138 = vst.msk [vmem:[%s325_s3 + $0x68] sm:$0xff] %vm124_vm0, %v121_v14 }
  0x18   :  { %v122_v16 = vsel %vm90_vm15, %v74_v11, %v106_v15  ;;  %vm91_vm1 = vcmp.gt.f32.partialorder %v75_v1, 0.0  ;;  %v107_v17 = vmul.f32 0.2, %v75_v1 }
  0x19   :  { %139 = vst.msk [vmem:[%s325_s3 + $0x70] sm:$0xff] %vm124_vm0, %v122_v16 }
  0x1a   :  { %v123_v18 = vsel %vm91_vm1, %v75_v1, %v107_v17 }
  0x1b   :  { %140 = vst.msk [vmem:[%s325_s3 + $0x78] sm:$0xff] %vm124_vm0, %v123_v18 }

// kernel: discriminator_forward.24
= control target key start
LH: loop header
LB: loop body
LE: loop exit
PB: predicated region body
PF: predicated region fallthrough
CT: control target
= control target key end

     0   :  { %s1033_s12 = smov 0   ;;  %s1035_s13 = smov 0   ;;  %s1189_s0 = inlined_call_operand.vmem [shape: bf16[128,640], index: 0, kind: input, shape index: {}]   ;;  %s1190_s1 = inlined_call_operand.vmem [shape: bf16[640,128], index: 1, kind: input, shape index: {}]   ;;  %s1191_s2 = inlined_call_operand.vmem [shape: f32[1,128], index: 2, kind: input, shape index: {}]   ;;  %s1192_s3 = inlined_call_operand.vmem [shape: f32[128,128], index: 3, kind: output, shape index: {}]  }
   0x1   :  { %s1037_s14 = smov 0   ;;  %s1039_s15 = smov 0  }
   0x2   :  { %s1041_s16 = smov 0  }
   0x3 LB: > { %s25_s17 = sadd.s32 1, %s1006_s15  ;;  %p48_p1 = scmp.ne.s32.totalorder %s998_s13, %s994_s12  ;;  %s1010_s16 = sphi %s1041_s16, %s13_s16   ;;  %s1006_s15 = sphi %s1039_s15, %s1196_s15   ;;  %s1002_s14 = sphi %s1037_s14, %s1195_s14   ;;  %s998_s13 = sphi %s1035_s13, %s1194_s13   ;;  %s994_s12 = sphi %s1033_s12, %s1193_s12  }
   0x4   : > { %p26_p0 = scmp.ge.s32.totalorder %s25_s17, 5  ;;  %p49_p2 = scmp.eq.s32.totalorder %s1010_s16, 0 }
   0x5   : > { %s41_s19 = sadd.s32 1, %s998_s13  ;;  %p821_p5 = scmp.ge.s32.totalorder %s1010_s16, 5 }
   0x6   : > { %s1198_s17 = smov (%p26_p0, %s25_s17), 0  ;;  %p50_p3 = por %p49_p2, %p48_p1 }
   0x7   : > { %s37_s18 = ssub.s32 %s1006_s15, %s1198_s17  ;;  %162 = sbr.rel (%p821_p5) target bundleno = 26 (0x1a), region = 20 }
   0x8   : > { %p39_p4 = scmp.eq.s32.totalorder %s37_s18, 0 }
   0xa   : > { %s1068_s20 = scalar_select %p39_p4, %s998_s13, %s41_s19  }
   0xc   : > { %165 = sbr.rel (!%p50_p3) target bundleno = 26 (0x1a), region = 24  ;;  %s167_s21 = sand.u32 (%p50_p3), 1, %s998_s13  }
   0xd   : > { %s823_s22 = sshll.u32 (%p50_p3), %s1006_s15, 2  ;;  %s822_s23 = sshll.u32 (%p50_p3), %s167_s21, 6 }
   0xe   : > { %s1076_s26 = scalar_lea.vmem (%p50_p3), %s1189_s0, %s823_s22  ;;  %s169_s27 = scalar_lea.vmem (%p50_p3), [#allocation3], %s822_s23 }
   0xf   : > { %v191_v0 = vld [vmem:[%s1076_s26] sm:$0xf] (%p50_p3)  ;;  %v193_v1 = vld [vmem:[%s1076_s26 + $0x14] sm:$0xf] (%p50_p3)  ;;  %v195_v2 = vld [vmem:[%s1076_s26 + $0x28] sm:$0xf] (%p50_p3) }
  0x10   : > { %192 = vst [vmem:[%s169_s27] sm:$0xf] (%p50_p3), %v191_v0  ;;  %194 = vst [vmem:[%s169_s27 + $0x4] sm:$0xf] (%p50_p3), %v193_v1  ;;  %v197_v3 = vld [vmem:[%s1076_s26 + $0x3c] sm:$0xf] (%p50_p3) }
  0x11   : > { %v199_v4 = vld [vmem:[%s1076_s26 + $0x50] sm:$0xf]  ;;  %196 = vst [vmem:[%s169_s27 + $0x8] sm:$0xf] %v195_v2  ;;  %198 = vst [vmem:[%s169_s27 + $0xc] sm:$0xf] %v197_v3 }
  0x12   : > { %200 = vst [vmem:[%s169_s27 + $0x10] sm:$0xf] %v199_v4  ;;  %v201_v5 = vld [vmem:[%s1076_s26 + $0x64] sm:$0xf]  ;;  %v203_v6 = vld [vmem:[%s1076_s26 + $0x78] sm:$0xf] }
  0x13   : > { %v205_v7 = vld [vmem:[%s1076_s26 + $0x8c] sm:$0xf]  ;;  %202 = vst [vmem:[%s169_s27 + $0x14] sm:$0xf] %v201_v5  ;;  %204 = vst [vmem:[%s169_s27 + $0x18] sm:$0xf] %v203_v6 }
  0x14   : > { %206 = vst [vmem:[%s169_s27 + $0x1c] sm:$0xf] %v205_v7  ;;  %v207_v8 = vld [vmem:[%s1076_s26 + $0xa0] sm:$0xf]  ;;  %v209_v9 = vld [vmem:[%s1076_s26 + $0xb4] sm:$0xf] }
  0x15   : > { %v211_v10 = vld [vmem:[%s1076_s26 + $0xc8] sm:$0xf]  ;;  %208 = vst [vmem:[%s169_s27 + $0x20] sm:$0xf] %v207_v8  ;;  %210 = vst [vmem:[%s169_s27 + $0x24] sm:$0xf] %v209_v9 }
  0x16   : > { %212 = vst [vmem:[%s169_s27 + $0x28] sm:$0xf] %v211_v10  ;;  %v213_v11 = vld [vmem:[%s1076_s26 + $0xdc] sm:$0xf]  ;;  %v215_v12 = vld [vmem:[%s1076_s26 + $0xf0] sm:$0xf] }
  0x17   : > { %v217_v13 = vld [vmem:[%s1076_s26 + $0x104] sm:$0xf]  ;;  %214 = vst [vmem:[%s169_s27 + $0x2c] sm:$0xf] %v213_v11  ;;  %216 = vst [vmem:[%s169_s27 + $0x30] sm:$0xf] %v215_v12 }
  0x18   : > { %218 = vst [vmem:[%s169_s27 + $0x34] sm:$0xf] %v217_v13  ;;  %v219_v14 = vld [vmem:[%s1076_s26 + $0x118] sm:$0xf]  ;;  %v221_v15 = vld [vmem:[%s1076_s26 + $0x12c] sm:$0xf] }
  0x19   : > { %220 = vst [vmem:[%s169_s27 + $0x38] sm:$0xf] %v219_v14  ;;  %222 = vst [vmem:[%s169_s27 + $0x3c] sm:$0xf] %v221_v15 }
  0x1a PF: > { %p824_p6 = scmp.ge.s32.totalorder %s1010_s16, 1  ;;  %p289_p7 = scmp.lt.s32.totalorder %s1010_s16, 6 }
  0x1c   : > { %p290_p8 = pnand %p824_p6, %p289_p7 }
  0x1d   : > { %s296_s28 = sand.u32 (!%p290_p8), 1, %s994_s12   ;;  %s826_s29 = sshll.u32 (!%p290_p8), %s1002_s14, 4 }
  0x1e   : > { %293 = sbr.rel (%p290_p8) target bundleno = 303 (0x12f), region = 69  ;;  %s825_s30 = sshll.u32 (!%p290_p8), %s296_s28, 6 }
  0x1f   : > { %p335_p9 = scmp.lt.s32.totalorder (!%p290_p8), %s826_s29, 79  ;;  %s1103_s8 = scalar_lea.vmem (!%p290_p8), [#allocation3], %s825_s30 }
  0x20   : > { %p828_p10 = scmp.ne.s32.totalorder (!%p290_p8), %s1002_s14, 0 }
  0x23   : > { %s1200_s29 = smov (!%p335_p9, %s826_s29), 79  ;;  %359 = sbr.rel (%p828_p10) target bundleno = 49 (0x31), region = 77 }
  0x24   : > { %s827_s4 = sshll.u32 %s1200_s29, 2 }
  0x25   : > { %s1101_s7 = scalar_lea.vmem %s1190_s1, %s827_s4 }
  0x28   : > { %v1012_v16 = vmov 0.0  }
  0x29   : > { %360 = vst [vmem:[#allocation2 + $0x30] sm:$0xff] %v1012_v16  ;;  %361 = vst [vmem:[#allocation2] sm:$0xff] %v1012_v16 }
  0x2a   : > { %362 = vst [vmem:[#allocation2 + $0x58] sm:$0xff] %v1012_v16  ;;  %363 = vst [vmem:[#allocation2 + $0x18] sm:$0xff] %v1012_v16 }
  0x2b   : > { %364 = vst [vmem:[#allocation2 + $0x50] sm:$0xff] %v1012_v16  ;;  %365 = vst [vmem:[#allocation2 + $0x68] sm:$0xff] %v1012_v16 }
  0x2c   : > { %366 = vst [vmem:[#allocation2 + $0x8] sm:$0xff] %v1012_v16  ;;  %367 = vst [vmem:[#allocation2 + $0x48] sm:$0xff] %v1012_v16 }
  0x2d   : > { %368 = vst [vmem:[#allocation2 + $0x40] sm:$0xff] %v1012_v16  ;;  %369 = vst [vmem:[#allocation2 + $0x20] sm:$0xff] %v1012_v16 }
  0x2e   : > { %370 = vst [vmem:[#allocation2 + $0x10] sm:$0xff] %v1012_v16  ;;  %371 = vst [vmem:[#allocation2 + $0x38] sm:$0xff] %v1012_v16 }
  0x2f   : > { %372 = vst [vmem:[#allocation2 + $0x60] sm:$0xff] %v1012_v16  ;;  %373 = vst [vmem:[#allocation2 + $0x70] sm:$0xff] %v1012_v16 }
  0x30   : > { %374 = vst [vmem:[#allocation2 + $0x78] sm:$0xff] %v1012_v16  ;;  %375 = vst [vmem:[#allocation2 + $0x28] sm:$0xff] %v1012_v16 }
  0x31 PF: > { %v956_v17 = vld [vmem:[%s1101_s7 + $0x38] sm:$0xff]   ;;  %v957_v18 = vld [vmem:[%s1101_s7 + $0x30] sm:$0xff]   ;;  %v958_v19 = vld [vmem:[%s1101_s7 + $0x28] sm:$0xff]   ;;  %p845_p11 = scmp.ne.s32.totalorder %s1002_s14, 4 }
  0x32   : > { %867 = vmatprep.subr.bf16.mxu0 %v956_v17  ;;  %899 = vmatprep.subr.bf16.mxu1 %v956_v17  ;;  %v959_v20 = vld [vmem:[%s1101_s7 + $0x20] sm:$0xff]   ;;  %v960_v23 = vld [vmem:[%s1101_s7 + $0x18] sm:$0xff]   ;;  %v961_v24 = vld [vmem:[%s1101_s7 + $0x10] sm:$0xff]  }
  0x33   : > { %868 = vmatpush3.bf16.msra.mxu0 %v956_v17  ;;  %907 = vmatpush3.bf16.msra.mxu1 %v956_v17  ;;  %v964_v21 = vld [vmem:[%s1103_s8] sm:$0xff]   ;;  %v962_v25 = vld [vmem:[%s1101_s7 + $0x8] sm:$0xff]   ;;  %v968_v29 = vld [vmem:[%s1103_s8 + $0x10] sm:$0xff]  }
  0x34   : > { %869 = vmatprep.subr.bf16.mxu0 %v957_v18  ;;  %900 = vmatprep.subr.bf16.mxu1 %v957_v18  ;;  %v965_v22 = vld [vmem:[%s1103_s8 + $0x20] sm:$0xff]   ;;  %v966_v27 = vld [vmem:[%s1103_s8 + $0x8] sm:$0xff]   ;;  %v969_v30 = vld [vmem:[%s1103_s8 + $0x30] sm:$0xff]  }
  0x35   : > { %883 = vmatprep.mubr.bf16.mxu0 %v964_v21  ;;  %891 = vmatprep.mubr.bf16.mxu1 %v965_v22  ;;  %v963_v26 = vld [vmem:[%s1101_s7] sm:$0xff]   ;;  %v967_v28 = vld [vmem:[%s1103_s8 + $0x28] sm:$0xff]   ;;  %v970_v31 = vld [vmem:[%s1103_s8 + $0x18] sm:$0xff]  }
  0x36   : > { %v971_v32 = vld [vmem:[%s1103_s8 + $0x38] sm:$0xff]   ;;  %v386_v34 = vld [vmem:[#allocation2 + $0x10] sm:$0xff]  ;;  %v384_v38 = vld [vmem:[#allocation2 + $0x40] sm:$0xff] }
  0x37   : > { %870 = vmatpush3.bf16.msra.mxu0 %v957_v18  ;;  %908 = vmatpush3.bf16.msra.mxu1 %v957_v18  ;;  %v378_v33 = vld [vmem:[#allocation2 + $0x58] sm:$0xff]  ;;  %v376_v37 = vld [vmem:[#allocation2 + $0x30] sm:$0xff]  ;;  %v377_v49 = vld [vmem:[#allocation2] sm:$0xff] }
  0x38   : > { %871 = vmatprep.subr.bf16.mxu0 %v958_v19  ;;  %901 = vmatprep.subr.bf16.mxu1 %v958_v19  ;;  %v379_v43 = vld [vmem:[#allocation2 + $0x18] sm:$0xff]  ;;  %v385_v50 = vld [vmem:[#allocation2 + $0x20] sm:$0xff]  ;;  %v382_v55 = vld [vmem:[#allocation2 + $0x8] sm:$0xff] }
  0x39   : > { %v387_v44 = vld [vmem:[#allocation2 + $0x38] sm:$0xff]  ;;  %v380_v61 = vld [vmem:[#allocation2 + $0x50] sm:$0xff]  ;;  %v388_v62 = vld [vmem:[#allocation2 + $0x60] sm:$0xff] }
  0x3a   : > { %v390_v56 = vld [vmem:[#allocation2 + $0x78] sm:$0xff]  ;;  %v383_v3 = vld [vmem:[#allocation2 + $0x48] sm:$0xff]  ;;  %v389_v10 = vld [vmem:[#allocation2 + $0x70] sm:$0xff] }
  0x3b   : > { %872 = vmatpush3.bf16.msra.mxu0 %v958_v19  ;;  %909 = vmatpush3.bf16.msra.mxu1 %v958_v19  ;;  %v391_v4 = vld [vmem:[#allocation2 + $0x28] sm:$0xff] }
  0x3c   : > { %873 = vmatprep.subr.bf16.mxu0 %v959_v20  ;;  %902 = vmatprep.subr.bf16.mxu1 %v959_v20  ;;  %v381_v9 = vld [vmem:[#allocation2 + $0x68] sm:$0xff] }
  0x3f   : > { %874 = vmatpush3.bf16.msra.mxu0 %v959_v20  ;;  %910 = vmatpush3.bf16.msra.mxu1 %v959_v20 }
  0x40   : > { %875 = vmatprep.subr.bf16.mxu0 %v960_v23  ;;  %903 = vmatprep.subr.bf16.mxu1 %v960_v23 }
  0x43   : > { %876 = vmatpush3.bf16.msra.mxu0 %v960_v23  ;;  %911 = vmatpush3.bf16.msra.mxu1 %v960_v23 }
  0x44   : > { %877 = vmatprep.subr.bf16.mxu0 %v961_v24  ;;  %904 = vmatprep.subr.bf16.mxu1 %v961_v24 }
  0x47   : > { %878 = vmatpush3.bf16.msra.mxu0 %v961_v24  ;;  %912 = vmatpush3.bf16.msra.mxu1 %v961_v24 }
  0x48   : > { %879 = vmatprep.subr.bf16.mxu0 %v962_v25  ;;  %905 = vmatprep.subr.bf16.mxu1 %v962_v25 }
  0x4b   : > { %880 = vmatpush3.bf16.msra.mxu0 %v962_v25  ;;  %913 = vmatpush3.bf16.msra.mxu1 %v962_v25 }
  0x4c   : > { %881 = vmatprep.subr.bf16.mxu0 %v963_v26  ;;  %906 = vmatprep.subr.bf16.mxu1 %v963_v26 }
  0x4f   : > { %882 = vmatpush3.bf16.msra.mxu0 %v963_v26  ;;  %914 = vmatpush3.bf16.msra.mxu1 %v963_v26 }
  0x52   : > { %884 = vmatmul.mubr.bf16.vlgmr.msra.gmra.mxu0 %v966_v27  ;;  %892 = vmatmul.mubr.bf16.vlgmr.msra.gmra.mxu1 %v967_v28 }
  0x53   : > { %887 = vmatprep.mubr.bf16.mxu0 %v968_v29  ;;  %895 = vmatprep.mubr.bf16.mxu1 %v969_v30 }
  0x5a   : > { %888 = vmatmul.mubr.bf16.gmra.mxu0 %v970_v31  ;;  %896 = vmatmul.mubr.bf16.gmra.mxu1 %v971_v32 }
 0x112   : > { %v885_v35 = vpop.f32.mrf.mxu0  ;;  %v893_v36 = vpop.f32.mrf.mxu1 }
 0x113   : > { %v619_v39 = vadd.f32 %v885_v35, %v378_v33  ;;  %v627_v40 = vadd.f32 %v893_v36, %v386_v34 }
 0x114   : > { %v554_v41 = vpop.f32.mrf.mxu0  ;;  %v586_v42 = vpop.f32.mrf.mxu1 }
 0x115   : > { %635 = vst [vmem:[#allocation2 + $0x58] sm:$0xff] %v619_v39  ;;  %643 = vst [vmem:[#allocation2 + $0x10] sm:$0xff] %v627_v40  ;;  %v617_v45 = vadd.f32 %v554_v41, %v376_v37  ;;  %v625_v46 = vadd.f32 %v586_v42, %v384_v38 }
 0x116   : > { %v886_v47 = vpop.f32.mrf.mxu0  ;;  %v894_v48 = vpop.f32.mrf.mxu1 }
 0x117   : > { %633 = vst [vmem:[#allocation2 + $0x30] sm:$0xff] %v617_v45  ;;  %641 = vst [vmem:[#allocation2 + $0x40] sm:$0xff] %v625_v46  ;;  %v620_v51 = vadd.f32 %v886_v47, %v379_v43  ;;  %v628_v52 = vadd.f32 %v894_v48, %v387_v44 }
 0x118   : > { %v557_v53 = vpop.f32.mrf.mxu0  ;;  %v589_v54 = vpop.f32.mrf.mxu1 }
 0x119   : > { %636 = vst [vmem:[#allocation2 + $0x18] sm:$0xff] %v620_v51  ;;  %644 = vst [vmem:[#allocation2 + $0x38] sm:$0xff] %v628_v52  ;;  %v618_v57 = vadd.f32 %v557_v53, %v377_v49  ;;  %v626_v58 = vadd.f32 %v589_v54, %v385_v50 }
 0x11a   : > { %v889_v59 = vpop.f32.mrf.mxu0  ;;  %v897_v60 = vpop.f32.mrf.mxu1 }
 0x11b   : > { %634 = vst [vmem:[#allocation2] sm:$0xff] %v618_v57  ;;  %642 = vst [vmem:[#allocation2 + $0x20] sm:$0xff] %v626_v58  ;;  %v623_v63 = vadd.f32 %v889_v59, %v382_v55  ;;  %v631_v0 = vadd.f32 %v897_v60, %v390_v56 }
 0x11c   : > { %v570_v1 = vpop.f32.mrf.mxu0  ;;  %v602_v2 = vpop.f32.mrf.mxu1 }
 0x11d   : > { %639 = vst [vmem:[#allocation2 + $0x8] sm:$0xff] %v623_v63  ;;  %647 = vst [vmem:[#allocation2 + $0x78] sm:$0xff] %v631_v0  ;;  %v621_v5 = vadd.f32 %v570_v1, %v380_v61  ;;  %v629_v6 = vadd.f32 %v602_v2, %v388_v62 }
 0x11e   : > { %v890_v7 = vpop.f32.mrf.mxu0  ;;  %v898_v8 = vpop.f32.mrf.mxu1 }
 0x11f   : > { %637 = vst [vmem:[#allocation2 + $0x50] sm:$0xff] %v621_v5  ;;  %645 = vst [vmem:[#allocation2 + $0x60] sm:$0xff] %v629_v6  ;;  %v624_v11 = vadd.f32 %v890_v7, %v383_v3  ;;  %v632_v12 = vadd.f32 %v898_v8, %v391_v4  ;;  %652 = sbr.rel (%p845_p11) target bundleno = 303 (0x12f), region = 81 }
 0x120   : > { %v573_v13 = vpop.f32.mrf.mxu0  ;;  %v605_v14 = vpop.f32.mrf.mxu1 }
 0x121   : > { %640 = vst [vmem:[#allocation2 + $0x48] sm:$0xff] %v624_v11  ;;  %648 = vst [vmem:[#allocation2 + $0x28] sm:$0xff] %v632_v12  ;;  %v622_v15 = vadd.f32 %v573_v13, %v381_v9  ;;  %v630_v16 = vadd.f32 %v605_v14, %v389_v10 }
 0x123   : > { %638 = vst [vmem:[#allocation2 + $0x68] sm:$0xff] %v622_v15  ;;  %646 = vst [vmem:[#allocation2 + $0x70] sm:$0xff] %v630_v16 }
 0x124   : > { %v653_v17 = vld [vmem:[#allocation2 + $0x30] sm:$0xff]  ;;  %v846_v18 = vld [vmem:[%s1191_s2] ss:$0 sm:$0xff]  ;;  %v655_v22 = vld [vmem:[#allocation2 + $0x58] sm:$0xff] }
 0x125   : > { %v654_v19 = vld [vmem:[#allocation2] sm:$0xff]  ;;  %v676_v20 = vadd.f32 %v846_v18, %v653_v17  ;;  %v656_v23 = vld [vmem:[#allocation2 + $0x18] sm:$0xff]  ;;  %v678_v25 = vadd.f32 %v846_v18, %v655_v22  ;;  %v659_v29 = vld [vmem:[#allocation2 + $0x8] sm:$0xff] }
 0x126   : > { %v677_v21 = vadd.f32 %v846_v18, %v654_v19  ;;  %v657_v24 = vld [vmem:[#allocation2 + $0x50] sm:$0xff]  ;;  %v679_v26 = vadd.f32 %v846_v18, %v656_v23  ;;  %v682_v32 = vadd.f32 %v846_v18, %v659_v29  ;;  %v661_v34 = vld [vmem:[#allocation2 + $0x40] sm:$0xff]  ;;  %v664_v40 = vld [vmem:[#allocation2 + $0x38] sm:$0xff] }
 0x127   : > { %v680_v27 = vadd.f32 %v846_v18, %v657_v24  ;;  %692 = vst [vmem:[%s1192_s3] sm:$0xff] %v676_v20  ;;  %v662_v35 = vld [vmem:[#allocation2 + $0x20] sm:$0xff]  ;;  %v663_v36 = vld [vmem:[#allocation2 + $0x10] sm:$0xff]  ;;  %694 = vst [vmem:[%s1192_s3 + $0x10] sm:$0xff] %v678_v25  ;;  %v684_v37 = vadd.f32 %v846_v18, %v661_v34  ;;  %v687_v43 = vadd.f32 %v846_v18, %v664_v40 }
 0x128   : > { %v660_v30 = vld [vmem:[#allocation2 + $0x48] sm:$0xff]  ;;  %693 = vst [vmem:[%s1192_s3 + $0x8] sm:$0xff] %v677_v21  ;;  %695 = vst [vmem:[%s1192_s3 + $0x18] sm:$0xff] %v679_v26  ;;  %v685_v38 = vadd.f32 %v846_v18, %v662_v35  ;;  %v686_v39 = vadd.f32 %v846_v18, %v663_v36  ;;  %v665_v41 = vld [vmem:[#allocation2 + $0x60] sm:$0xff] }
 0x129   : > { %v683_v33 = vadd.f32 %v846_v18, %v660_v30  ;;  %696 = vst [vmem:[%s1192_s3 + $0x20] sm:$0xff] %v680_v27  ;;  %698 = vst [vmem:[%s1192_s3 + $0x30] sm:$0xff] %v682_v32  ;;  %v688_v44 = vadd.f32 %v846_v18, %v665_v41  ;;  %v667_v46 = vld [vmem:[#allocation2 + $0x78] sm:$0xff]  ;;  %v668_v47 = vld [vmem:[#allocation2 + $0x28] sm:$0xff] }
 0x12a   : > { %v658_v28 = vld [vmem:[#allocation2 + $0x68] sm:$0xff]  ;;  %v666_v42 = vld [vmem:[#allocation2 + $0x70] sm:$0xff]  ;;  %700 = vst [vmem:[%s1192_s3 + $0x40] sm:$0xff] %v684_v37  ;;  %701 = vst [vmem:[%s1192_s3 + $0x48] sm:$0xff] %v685_v38  ;;  %v690_v48 = vadd.f32 %v846_v18, %v667_v46  ;;  %v691_v49 = vadd.f32 %v846_v18, %v668_v47 }
 0x12b   : > { %v681_v31 = vadd.f32 %v846_v18, %v658_v28  ;;  %699 = vst [vmem:[%s1192_s3 + $0x38] sm:$0xff] %v683_v33  ;;  %v689_v45 = vadd.f32 %v846_v18, %v666_v42  ;;  %702 = vst [vmem:[%s1192_s3 + $0x50] sm:$0xff] %v686_v39 }
 0x12c   : > { %703 = vst [vmem:[%s1192_s3 + $0x58] sm:$0xff] %v687_v43  ;;  %704 = vst [vmem:[%s1192_s3 + $0x60] sm:$0xff] %v688_v44 }
 0x12d   : > { %697 = vst [vmem:[%s1192_s3 + $0x28] sm:$0xff] %v681_v31  ;;  %705 = vst [vmem:[%s1192_s3 + $0x68] sm:$0xff] %v689_v45 }
 0x12e   : > { %706 = vst [vmem:[%s1192_s3 + $0x70] sm:$0xff] %v690_v48  ;;  %707 = vst [vmem:[%s1192_s3 + $0x78] sm:$0xff] %v691_v49 }
 0x12f PF: > { %s13_s16 = sadd.s32 1, %s1010_s16   ;;  %s1193_s12 = smov %s998_s13 }
 0x130   : > { %p10_p12 = scmp.ge.s32.totalorder %s13_s16, 7   ;;  %s1194_s13 = smov %s1068_s20 }
 0x131   : > { %s1195_s14 = smov %s1006_s15  ;;  %s1196_s15 = smov %s1198_s17 }
 0x132   :  { %12 = sbr.rel (!%p10_p12) target bundleno = 3 (0x3), region = 122 }

// kernel: discriminator_forward.29
= control target key start
LH: loop header
LB: loop body
LE: loop exit
PB: predicated region body
PF: predicated region fallthrough
CT: control target
= control target key end

     0   :  { %s305_s0 = inlined_call_operand.vmem [shape: f32[128,128], index: 0, kind: input, shape index: {}]   ;;  %s306_s1 = inlined_call_operand.vmem [shape: f32[1,128], index: 1, kind: input, shape index: {}]   ;;  %s307_s2 = inlined_call_operand.vmem [shape: f32[1,128], index: 2, kind: input, shape index: {}]   ;;  %s308_s3 = inlined_call_operand.vmem [shape: f32[128,128], index: 3, kind: output, shape index: {}]  }
   0x1   :  { %v14_v0 = vld [vmem:[%s305_s0] sm:$0xff]  ;;  %v15_v4 = vld [vmem:[%s305_s0 + $0x8] sm:$0xff]  ;;  %v16_v5 = vld [vmem:[%s305_s0 + $0x10] sm:$0xff] }
   0x2   :  { %v172_v1 = vld [vmem:[%s306_s1] ss:$0 sm:$0xff]  ;;  %v17_v6 = vld [vmem:[%s305_s0 + $0x18] sm:$0xff]  ;;  %v19_v11 = vld [vmem:[%s305_s0 + $0x28] sm:$0xff] }
   0x3   :  { %v177_v2 = vld [vmem:[%s307_s2] ss:$0 sm:$0xff]  ;;  %v37_v3 = vmul.f32 %v172_v1, %v14_v0  ;;  %v38_v7 = vmul.f32 %v172_v1, %v15_v4  ;;  %v39_v8 = vmul.f32 %v172_v1, %v16_v5  ;;  %v40_v9 = vmul.f32 %v172_v1, %v17_v6  ;;  %v20_v12 = vld [vmem:[%s305_s0 + $0x30] sm:$0xff]  ;;  %v21_v17 = vld [vmem:[%s305_s0 + $0x38] sm:$0xff] }
   0x4   :  { %v18_v10 = vld [vmem:[%s305_s0 + $0x20] sm:$0xff]  ;;  %v42_v15 = vmul.f32 %v172_v1, %v19_v11  ;;  %v43_v16 = vmul.f32 %v172_v1, %v20_v12  ;;  %v44_v21 = vmul.f32 %v172_v1, %v21_v17  ;;  %v23_v30 = vld [vmem:[%s305_s0 + $0x48] sm:$0xff]  ;;  %v24_v31 = vld [vmem:[%s305_s0 + $0x50] sm:$0xff] }
   0x5   :  { %v60_v13 = vadd.f32 %v177_v2, %v37_v3  ;;  %v41_v14 = vmul.f32 %v172_v1, %v18_v10  ;;  %v61_v18 = vadd.f32 %v177_v2, %v38_v7  ;;  %v62_v19 = vadd.f32 %v177_v2, %v39_v8  ;;  %v22_v25 = vld [vmem:[%s305_s0 + $0x40] sm:$0xff]  ;;  %v25_v43 = vld [vmem:[%s305_s0 + $0x58] sm:$0xff]  ;;  %v27_v45 = vld [vmem:[%s305_s0 + $0x68] sm:$0xff] }
   0x6   :  { %v63_v20 = vadd.f32 %v177_v2, %v40_v9  ;;  %v65_v24 = vadd.f32 %v177_v2, %v42_v15  ;;  %v66_v37 = vadd.f32 %v177_v2, %v43_v16  ;;  %v67_v38 = vadd.f32 %v177_v2, %v44_v21  ;;  %v26_v44 = vld [vmem:[%s305_s0 + $0x60] sm:$0xff]  ;;  %v28_v56 = vld [vmem:[%s305_s0 + $0x70] sm:$0xff]  ;;  %v29_v4 = vld [vmem:[%s305_s0 + $0x78] sm:$0xff] }
   0x7   :  { %vm76_vm0 = vcmp.gt.f32.partialorder %v60_v13, 0.0  ;;  %v92_v22 = vmul.f32 0.2, %v60_v13  ;;  %v64_v23 = vadd.f32 %v177_v2, %v41_v14  ;;  %vm77_vm1 = vcmp.gt.f32.partialorder %v61_v18, 0.0 }
   0x8   :  { %v93_v26 = vmul.f32 0.2, %v61_v18  ;;  %vm78_vm2 = vcmp.gt.f32.partialorder %v62_v19, 0.0  ;;  %v94_v27 = vmul.f32 0.2, %v62_v19  ;;  %vm79_vm3 = vcmp.gt.f32.partialorder %v63_v20, 0.0 }
   0x9   :  { %v108_v28 = vsel %vm76_vm0, %v60_v13, %v92_v22  ;;  %v95_v29 = vmul.f32 0.2, %v63_v20  ;;  %vm80_vm4 = vcmp.gt.f32.partialorder %v64_v23, 0.0  ;;  %v96_v34 = vmul.f32 0.2, %v64_v23 }
   0xa   :  { %124 = vst [vmem:[%s308_s3] sm:$0xff] %v108_v28  ;;  %v109_v32 = vsel %vm77_vm1, %v61_v18, %v93_v26  ;;  %v110_v33 = vsel %vm78_vm2, %v62_v19, %v94_v27  ;;  %vm81_vm5 = vcmp.gt.f32.partialorder %v65_v24, 0.0  ;;  %v97_v36 = vmul.f32 0.2, %v65_v24 }
   0xb   :  { %125 = vst [vmem:[%s308_s3 + $0x8] sm:$0xff] %v109_v32  ;;  %126 = vst [vmem:[%s308_s3 + $0x10] sm:$0xff] %v110_v33  ;;  %v111_v35 = vsel %vm79_vm3, %v63_v20, %v95_v29  ;;  %v112_v39 = vsel %vm80_vm4, %v64_v23, %v96_v34  ;;  %v45_v40 = vmul.f32 %v172_v1, %v22_v25  ;;  %vm82_vm6 = vcmp.gt.f32.partialorder %v66_v37, 0.0 }
   0xc   :  { %127 = vst [vmem:[%s308_s3 + $0x18] sm:$0xff] %v111_v35  ;;  %v46_v41 = vmul.f32 %v172_v1, %v23_v30  ;;  %v47_v42 = vmul.f32 %v172_v1, %v24_v31  ;;  %128 = vst [vmem:[%s308_s3 + $0x20] sm:$0xff] %v112_v39  ;;  %v113_v46 = vsel %vm81_vm5, %v65_v24, %v97_v36  ;;  %v98_v47 = vmul.f32 0.2, %v66_v37 }
   0xd   :  { %vm83_vm7 = vcmp.gt.f32.partialorder %v67_v38, 0.0  ;;  %129 = vst [vmem:[%s308_s3 + $0x28] sm:$0xff] %v113_v46  ;;  %v99_v48 = vmul.f32 0.2, %v67_v38  ;;  %v68_v49 = vadd.f32 %v177_v2, %v45_v40  ;;  %v48_v53 = vmul.f32 %v172_v1, %v25_v43 }
   0xe   :  { %v69_v50 = vadd.f32 %v177_v2, %v46_v41  ;;  %v70_v51 = vadd.f32 %v177_v2, %v47_v42  ;;  %v114_v52 = vsel %vm82_vm6, %v66_v37, %v98_v47  ;;  %v49_v54 = vmul.f32 %v172_v1, %v26_v44 }
   0xf   :  { %v50_v55 = vmul.f32 %v172_v1, %v27_v45  ;;  %130 = vst [vmem:[%s308_s3 + $0x30] sm:$0xff] %v114_v52  ;;  %v115_v57 = vsel %vm83_vm7, %v67_v38, %v99_v48  ;;  %vm84_vm8 = vcmp.gt.f32.partialorder %v68_v49, 0.0  ;;  %v100_v58 = vmul.f32 0.2, %v68_v49 }
  0x10   :  { %vm85_vm9 = vcmp.gt.f32.partialorder %v69_v50, 0.0  ;;  %131 = vst [vmem:[%s308_s3 + $0x38] sm:$0xff] %v115_v57  ;;  %v101_v59 = vmul.f32 0.2, %v69_v50  ;;  %vm86_vm10 = vcmp.gt.f32.partialorder %v70_v51, 0.0  ;;  %v71_v61 = vadd.f32 %v177_v2, %v48_v53 }
  0x11   :  { %v102_v60 = vmul.f32 0.2, %v70_v51  ;;  %v116_v62 = vsel %vm84_vm8, %v68_v49, %v100_v58  ;;  %v72_v63 = vadd.f32 %v177_v2, %v49_v54  ;;  %v73_v0 = vadd.f32 %v177_v2, %v50_v55 }
  0x12   :  { %v51_v3 = vmul.f32 %v172_v1, %v28_v56  ;;  %132 = vst [vmem:[%s308_s3 + $0x40] sm:$0xff] %v116_v62  ;;  %v117_v5 = vsel %vm85_vm9, %v69_v50, %v101_v59  ;;  %vm87_vm11 = vcmp.gt.f32.partialorder %v71_v61, 0.0  ;;  %v103_v7 = vmul.f32 0.2, %v71_v61 }
  0x13   :  { %v118_v6 = vsel %vm86_vm10, %v70_v51, %v102_v60  ;;  %133 = vst [vmem:[%s308_s3 + $0x48] sm:$0xff] %v117_v5  ;;  %vm88_vm12 = vcmp.gt.f32.partialorder %v72_v63, 0.0  ;;  %v104_v8 = vmul.f32 0.2, %v72_v63  ;;  %vm89_vm13 = vcmp.gt.f32.partialorder %v73_v0, 0.0 }
  0x14   :  { %134 = vst [vmem:[%s308_s3 + $0x50] sm:$0xff] %v118_v6  ;;  %v105_v9 = vmul.f32 0.2, %v73_v0  ;;  %v119_v10 = vsel %vm87_vm11, %v71_v61, %v103_v7  ;;  %v74_v11 = vadd.f32 %v177_v2, %v51_v3  ;;  %v52_v12 = vmul.f32 %v172_v1, %v29_v4 }
  0x15   :  { %135 = vst [vmem:[%s308_s3 + $0x58] sm:$0xff] %v119_v10  ;;  %v120_v13 = vsel %vm88_vm12, %v72_v63, %v104_v8 }
  0x16   :  { %v121_v14 = vsel %vm89_vm13, %v73_v0, %v105_v9  ;;  %136 = vst [vmem:[%s308_s3 + $0x60] sm:$0xff] %v120_v13  ;;  %vm90_vm14 = vcmp.gt.f32.partialorder %v74_v11, 0.0  ;;  %v106_v15 = vmul.f32 0.2, %v74_v11  ;;  %v75_v16 = vadd.f32 %v177_v2, %v52_v12 }
  0x17   :  { %137 = vst [vmem:[%s308_s3 + $0x68] sm:$0xff] %v121_v14 }
  0x18   :  { %v122_v17 = vsel %vm90_vm14, %v74_v11, %v106_v15  ;;  %vm91_vm15 = vcmp.gt.f32.partialorder %v75_v16, 0.0  ;;  %v107_v1 = vmul.f32 0.2, %v75_v16 }
  0x19   :  { %138 = vst [vmem:[%s308_s3 + $0x70] sm:$0xff] %v122_v17 }
  0x1a   :  { %v123_v18 = vsel %vm91_vm15, %v75_v16, %v107_v1 }
  0x1b   :  { %139 = vst [vmem:[%s308_s3 + $0x78] sm:$0xff] %v123_v18 }

// kernel: discriminator_forward.28
= control target key start
LH: loop header
LB: loop body
LE: loop exit
PB: predicated region body
PF: predicated region fallthrough
CT: control target
= control target key end

     0   :  { %v105_v0 = vmov 0.0   ;;  %s187_s1 = inlined_call_operand.vmem [shape: f32[1,128], index: 1, kind: output, shape index: {0}]   ;;  %s188_s2 = inlined_call_operand.vmem [shape: f32[1,128], index: 2, kind: output, shape index: {1}]   ;;  %s189_s0 = inlined_call_operand.vmem [shape: f32[128,128], index: 0, kind: input, shape index: {}]  }
   0x1   :  { %14 = vst [vmem:[%s187_s1] sm:$0x1] %v105_v0  ;;  %15 = vst [vmem:[%s188_s2] sm:$0x1] %v105_v0  ;;  %v16_v1 = vld [vmem:[%s189_s0] sm:$0xff]  ;;  %v17_v2 = vld [vmem:[%s189_s0 + $0x8] sm:$0xff] }
   0x2   :  { %v18_v3 = vld [vmem:[%s189_s0 + $0x10] sm:$0xff]  ;;  %v19_v4 = vld [vmem:[%s189_s0 + $0x18] sm:$0xff]  ;;  %v33_v5 = vadd.f32 %v17_v2, %v16_v1  ;;  %v57_v6 = vmul.f32 %v16_v1, %v16_v1  ;;  %v58_v7 = vmul.f32 %v17_v2, %v17_v2  ;;  %v20_v9 = vld [vmem:[%s189_s0 + $0x20] sm:$0xff] }
   0x3   :  { %v59_v8 = vmul.f32 %v18_v3, %v18_v3  ;;  %v60_v11 = vmul.f32 %v19_v4, %v19_v4  ;;  %v21_v13 = vld [vmem:[%s189_s0 + $0x28] sm:$0xff]  ;;  %v61_v15 = vmul.f32 %v20_v9, %v20_v9  ;;  %v22_v17 = vld [vmem:[%s189_s0 + $0x30] sm:$0xff]  ;;  %v23_v21 = vld [vmem:[%s189_s0 + $0x38] sm:$0xff] }
   0x4   :  { %v34_v10 = vadd.f32 %v33_v5, %v18_v3  ;;  %v73_v12 = vadd.f32 %v58_v7, %v57_v6  ;;  %v62_v19 = vmul.f32 %v21_v13, %v21_v13  ;;  %v63_v23 = vmul.f32 %v22_v17, %v22_v17  ;;  %v24_v25 = vld [vmem:[%s189_s0 + $0x40] sm:$0xff]  ;;  %v25_v29 = vld [vmem:[%s189_s0 + $0x48] sm:$0xff]  ;;  %v26_v33 = vld [vmem:[%s189_s0 + $0x50] sm:$0xff] }
   0x5   :  { %v64_v27 = vmul.f32 %v23_v21, %v23_v21  ;;  %v65_v31 = vmul.f32 %v24_v25, %v24_v25  ;;  %v66_v35 = vmul.f32 %v25_v29, %v25_v29  ;;  %v27_v37 = vld [vmem:[%s189_s0 + $0x58] sm:$0xff]  ;;  %v67_v39 = vmul.f32 %v26_v33, %v26_v33  ;;  %v28_v41 = vld [vmem:[%s189_s0 + $0x60] sm:$0xff]  ;;  %v29_v45 = vld [vmem:[%s189_s0 + $0x68] sm:$0xff] }
   0x6   :  { %v35_v14 = vadd.f32 %v34_v10, %v19_v4  ;;  %v74_v16 = vadd.f32 %v73_v12, %v59_v8  ;;  %v68_v43 = vmul.f32 %v27_v37, %v27_v37  ;;  %v69_v47 = vmul.f32 %v28_v41, %v28_v41  ;;  %v30_v49 = vld [vmem:[%s189_s0 + $0x70] sm:$0xff]  ;;  %v31_v53 = vld [vmem:[%s189_s0 + $0x78] sm:$0xff] }
   0x7   :  { %v70_v51 = vmul.f32 %v29_v45, %v29_v45  ;;  %v71_v55 = vmul.f32 %v30_v49, %v30_v49  ;;  %v72_v58 = vmul.f32 %v31_v53, %v31_v53 }
   0x8   :  { %v36_v18 = vadd.f32 %v35_v14, %v20_v9  ;;  %v75_v20 = vadd.f32 %v74_v16, %v60_v11  ;;  %v32_v7 = vld [vmem:[%s187_s1] sm:$0x1] }
   0x9   :  { %v56_v12 = vld [vmem:[%s188_s2] sm:$0x1] }
   0xa   :  { %v37_v22 = vadd.f32 %v36_v18, %v21_v13  ;;  %v76_v24 = vadd.f32 %v75_v20, %v61_v15 }
   0xc   :  { %v38_v26 = vadd.f32 %v37_v22, %v22_v17  ;;  %v77_v28 = vadd.f32 %v76_v24, %v62_v19 }
   0xe   :  { %v39_v30 = vadd.f32 %v38_v26, %v23_v21  ;;  %v78_v32 = vadd.f32 %v77_v28, %v63_v23 }
  0x10   :  { %v40_v34 = vadd.f32 %v39_v30, %v24_v25  ;;  %v79_v36 = vadd.f32 %v78_v32, %v64_v27 }
  0x12   :  { %v41_v38 = vadd.f32 %v40_v34, %v25_v29  ;;  %v80_v40 = vadd.f32 %v79_v36, %v65_v31 }
  0x14   :  { %v42_v42 = vadd.f32 %v41_v38, %v26_v33  ;;  %v81_v44 = vadd.f32 %v80_v40, %v66_v35 }
  0x16   :  { %v43_v46 = vadd.f32 %v42_v42, %v27_v37  ;;  %v82_v48 = vadd.f32 %v81_v44, %v67_v39 }
  0x18   :  { %v44_v50 = vadd.f32 %v43_v46, %v28_v41  ;;  %v83_v52 = vadd.f32 %v82_v48, %v68_v43 }
  0x1a   :  { %v45_v54 = vadd.f32 %v44_v50, %v29_v45  ;;  %v84_v56 = vadd.f32 %v83_v52, %v69_v47 }
  0x1c   :  { %v46_v57 = vadd.f32 %v45_v54, %v30_v49  ;;  %v85_v59 = vadd.f32 %v84_v56, %v70_v51 }
  0x1e   :  { %v47_v60 = vadd.f32 %v46_v57, %v31_v53  ;;  %v86_v61 = vadd.f32 %v85_v59, %v71_v55 }
  0x20   :  { %v48_v62 = vrot.slane %v47_v60, 4  ;;  %v87_v63 = vadd.f32 %v86_v61, %v72_v58 }
  0x22   :  { %v49_v0 = vadd.f32 %v48_v62, %v47_v60  ;;  %v88_v1 = vrot.slane %v87_v63, 4 }
  0x24   :  { %v50_v2 = vrot.slane %v49_v0, 2  ;;  %v89_v3 = vadd.f32 %v88_v1, %v87_v63 }
  0x26   :  { %v51_v4 = vadd.f32 %v50_v2, %v49_v0  ;;  %v90_v5 = vrot.slane %v89_v3, 2 }
  0x28   :  { %v52_v6 = vrot.slane %v51_v4, 1  ;;  %v91_v8 = vadd.f32 %v90_v5, %v89_v3 }
  0x2a   :  { %v53_v9 = vadd.f32 %v52_v6, %v51_v4  ;;  %v92_v10 = vrot.slane %v91_v8, 1 }
  0x2c   :  { %v54_v11 = vadd.f32 %v53_v9, %v32_v7  ;;  %v93_v13 = vadd.f32 %v92_v10, %v91_v8 }
  0x2e   :  { %55 = vst [vmem:[%s187_s1] sm:$0x1] %v54_v11  ;;  %v94_v14 = vadd.f32 %v93_v13, %v56_v12 }
  0x30   :  { %95 = vst [vmem:[%s188_s2] sm:$0x1] %v94_v14 }

// kernel: discriminator_forward.32
= control target key start
LH: loop header
LB: loop body
LE: loop exit
PB: predicated region body
PF: predicated region fallthrough
CT: control target
= control target key end

     0   :  { %s112_s0 = inlined_call_operand.vmem [shape: f32[32,128], index: 0, kind: input, shape index: {}]   ;;  %s113_s1 = inlined_call_operand.vmem [shape: f32[1,128], index: 1, kind: input, shape index: {}]   ;;  %s114_s2 = inlined_call_operand.vmem [shape: f32[1,128], index: 2, kind: input, shape index: {}]   ;;  %s115_s3 = inlined_call_operand.vmem [shape: f32[32,128], index: 3, kind: output, shape index: {}]  }
   0x1   :  { %v14_v0 = vld [vmem:[%s112_s0] sm:$0xff]  ;;  %v15_v4 = vld [vmem:[%s112_s0 + $0x8] sm:$0xff]  ;;  %v16_v5 = vld [vmem:[%s112_s0 + $0x10] sm:$0xff] }
   0x2   :  { %v60_v1 = vld [vmem:[%s113_s1] ss:$0 sm:$0xff]  ;;  %v17_v6 = vld [vmem:[%s112_s0 + $0x18] sm:$0xff] }
   0x3   :  { %v61_v2 = vld [vmem:[%s114_s2] ss:$0 sm:$0xff]  ;;  %v25_v3 = vmul.f32 %v60_v1, %v14_v0  ;;  %v26_v7 = vmul.f32 %v60_v1, %v15_v4  ;;  %v27_v8 = vmul.f32 %v60_v1, %v16_v5  ;;  %v28_v9 = vmul.f32 %v60_v1, %v17_v6 }
   0x5   :  { %v36_v10 = vadd.f32 %v61_v2, %v25_v3  ;;  %v37_v11 = vadd.f32 %v61_v2, %v26_v7  ;;  %v38_v12 = vadd.f32 %v61_v2, %v27_v8  ;;  %v39_v13 = vadd.f32 %v61_v2, %v28_v9 }
   0x7   :  { %vm40_vm0 = vcmp.gt.f32.partialorder %v36_v10, 0.0  ;;  %v44_v14 = vmul.f32 0.2, %v36_v10  ;;  %vm41_vm1 = vcmp.gt.f32.partialorder %v37_v11, 0.0  ;;  %v45_v15 = vmul.f32 0.2, %v37_v11 }
   0x8   :  { %vm42_vm2 = vcmp.gt.f32.partialorder %v38_v12, 0.0  ;;  %v46_v16 = vmul.f32 0.2, %v38_v12  ;;  %vm43_vm3 = vcmp.gt.f32.partialorder %v39_v13, 0.0  ;;  %v47_v18 = vmul.f32 0.2, %v39_v13 }
   0x9   :  { %v48_v17 = vsel %vm40_vm0, %v36_v10, %v44_v14  ;;  %v49_v19 = vsel %vm41_vm1, %v37_v11, %v45_v15 }
   0xa   :  { %52 = vst [vmem:[%s115_s3] sm:$0xff] %v48_v17  ;;  %v50_v20 = vsel %vm42_vm2, %v38_v12, %v46_v16  ;;  %53 = vst [vmem:[%s115_s3 + $0x8] sm:$0xff] %v49_v19  ;;  %v51_v21 = vsel %vm43_vm3, %v39_v13, %v47_v18 }
   0xb   :  { %54 = vst [vmem:[%s115_s3 + $0x10] sm:$0xff] %v50_v20  ;;  %55 = vst [vmem:[%s115_s3 + $0x18] sm:$0xff] %v51_v21 }

// kernel: discriminator_forward.31
= control target key start
LH: loop header
LB: loop body
LE: loop exit
PB: predicated region body
PF: predicated region fallthrough
CT: control target
= control target key end

     0   :  { %v57_v0 = vmov 0.0   ;;  %s103_s1 = inlined_call_operand.vmem [shape: f32[1,128], index: 1, kind: output, shape index: {0}]   ;;  %s104_s2 = inlined_call_operand.vmem [shape: f32[1,128], index: 2, kind: output, shape index: {1}]   ;;  %s105_s0 = inlined_call_operand.vmem [shape: f32[32,128], index: 0, kind: input, shape index: {}]  }
   0x1   :  { %14 = vst [vmem:[%s103_s1] sm:$0x1] %v57_v0  ;;  %15 = vst [vmem:[%s104_s2] sm:$0x1] %v57_v0  ;;  %v16_v1 = vld [vmem:[%s105_s0] sm:$0xff]  ;;  %v17_v2 = vld [vmem:[%s105_s0 + $0x8] sm:$0xff] }
   0x2   :  { %v18_v3 = vld [vmem:[%s105_s0 + $0x10] sm:$0xff]  ;;  %v19_v4 = vld [vmem:[%s105_s0 + $0x18] sm:$0xff]  ;;  %v21_v5 = vadd.f32 %v17_v2, %v16_v1  ;;  %v33_v6 = vmul.f32 %v16_v1, %v16_v1  ;;  %v34_v7 = vmul.f32 %v17_v2, %v17_v2 }
   0x3   :  { %v35_v8 = vmul.f32 %v18_v3, %v18_v3  ;;  %v36_v10 = vmul.f32 %v19_v4, %v19_v4 }
   0x4   :  { %v22_v9 = vadd.f32 %v21_v5, %v18_v3  ;;  %v37_v11 = vadd.f32 %v34_v7, %v33_v6 }
   0x6   :  { %v23_v12 = vadd.f32 %v22_v9, %v19_v4  ;;  %v38_v13 = vadd.f32 %v37_v11, %v35_v8 }
   0x8   :  { %v24_v14 = vrot.slane %v23_v12, 4  ;;  %v39_v15 = vadd.f32 %v38_v13, %v36_v10  ;;  %v20_v24 = vld [vmem:[%s103_s1] sm:$0x1] }
   0x9   :  { %v32_v27 = vld [vmem:[%s104_s2] sm:$0x1] }
   0xa   :  { %v25_v16 = vadd.f32 %v24_v14, %v23_v12  ;;  %v40_v17 = vrot.slane %v39_v15, 4 }
   0xc   :  { %v26_v18 = vrot.slane %v25_v16, 2  ;;  %v41_v19 = vadd.f32 %v40_v17, %v39_v15 }
   0xe   :  { %v27_v20 = vadd.f32 %v26_v18, %v25_v16  ;;  %v42_v21 = vrot.slane %v41_v19, 2 }
  0x10   :  { %v28_v22 = vrot.slane %v27_v20, 1  ;;  %v43_v23 = vadd.f32 %v42_v21, %v41_v19 }
  0x12   :  { %v29_v25 = vadd.f32 %v28_v22, %v27_v20  ;;  %v44_v26 = vrot.slane %v43_v23, 1 }
  0x14   :  { %v30_v28 = vadd.f32 %v29_v25, %v20_v24  ;;  %v45_v29 = vadd.f32 %v44_v26, %v43_v23 }
  0x16   :  { %31 = vst [vmem:[%s103_s1] sm:$0x1] %v30_v28  ;;  %v46_v30 = vadd.f32 %v45_v29, %v32_v27 }
  0x18   :  { %47 = vst [vmem:[%s104_s2] sm:$0x1] %v46_v30 }

// kernel: discriminator_forward.30
= control target key start
LH: loop header
LB: loop body
LE: loop exit
PB: predicated region body
PF: predicated region fallthrough
CT: control target
= control target key end

     0   :  { %s1033_s12 = smov 0   ;;  %s1035_s13 = smov 0   ;;  %s1149_s0 = inlined_call_operand.vmem [shape: bf16[32,1152], index: 0, kind: input, shape index: {}]   ;;  %s1150_s1 = inlined_call_operand.vmem [shape: bf16[1152,128], index: 1, kind: input, shape index: {}]   ;;  %s1151_s2 = inlined_call_operand.vmem [shape: f32[1,128], index: 2, kind: input, shape index: {}]   ;;  %s1152_s3 = inlined_call_operand.vmem [shape: f32[32,128], index: 3, kind: output, shape index: {}]  }
   0x1   :  { %s1037_s14 = smov 0   ;;  %s1039_s15 = smov 0  }
   0x2   :  { %s1041_s16 = smov 0  }
   0x3 LB: > { %s25_s17 = sadd.s32 1, %s1006_s15  ;;  %p48_p1 = scmp.ne.s32.totalorder %s998_s13, %s994_s12  ;;  %s1010_s16 = sphi %s1041_s16, %s13_s16   ;;  %s1006_s15 = sphi %s1039_s15, %s1156_s15   ;;  %s1002_s14 = sphi %s1037_s14, %s1155_s14   ;;  %s998_s13 = sphi %s1035_s13, %s1154_s13   ;;  %s994_s12 = sphi %s1033_s12, %s1153_s12  }
   0x4   : > { %p26_p0 = scmp.ge.s32.totalorder %s25_s17, 3  ;;  %p49_p2 = scmp.eq.s32.totalorder %s1010_s16, 0 }
   0x5   : > { %s41_s19 = sadd.s32 1, %s998_s13  ;;  %p789_p5 = scmp.ge.s32.totalorder %s1010_s16, 3 }
   0x6   : > { %s1158_s17 = smov (%p26_p0, %s25_s17), 0  ;;  %p50_p3 = por %p49_p2, %p48_p1 }
   0x7   : > { %s37_s18 = ssub.s32 %s1006_s15, %s1158_s17  ;;  %162 = sbr.rel (%p789_p5) target bundleno = 21 (0x15), region = 20 }
   0x8   : > { %p39_p4 = scmp.eq.s32.totalorder %s37_s18, 0 }
   0xa   : > { %s1068_s20 = scalar_select %p39_p4, %s998_s13, %s41_s19  }
   0xc   : > { %165 = sbr.rel (!%p50_p3) target bundleno = 21 (0x15), region = 24  ;;  %s167_s21 = sand.u32 (%p50_p3), 1, %s998_s13  }
   0xd   : > { %s838_s22 = smul.u32 (%p50_p3), 12, %s1006_s15 }
   0xe   : > { %s897_s23 = smul.u32 (%p50_p3), 48, %s167_s21 }
   0xf   : > { %s175_s26 = scalar_lea.vmem (%p50_p3), %s1149_s0, %s838_s22 }
  0x10   : > { %v190_v0 = vld [vmem:[%s175_s26] sm:$0xff] (%p50_p3)  ;;  %v194_v2 = vld [vmem:[%s175_s26 + $0x48] sm:$0xff] (%p50_p3)  ;;  %s169_s27 = scalar_lea.vmem (%p50_p3), [#allocation3], %s897_s23  ;;  %v795_v6 = vld [vmem:[%s175_s26 + $0x50] sm:$0xf] (%p50_p3) }
  0x11   : > { %v192_v1 = vld [vmem:[%s175_s26 + $0x24] sm:$0xff]  ;;  %191 = vst [vmem:[%s169_s27] sm:$0xff] %v190_v0  ;;  %195 = vst [vmem:[%s169_s27 + $0x18] sm:$0xff] %v194_v2  ;;  %v196_v3 = vld [vmem:[%s175_s26 + $0x6c] sm:$0xff] }
  0x12   : > { %193 = vst [vmem:[%s169_s27 + $0xc] sm:$0xff] %v192_v1  ;;  %v791_v4 = vld [vmem:[%s175_s26 + $0x8] sm:$0xf]  ;;  %v793_v5 = vld [vmem:[%s175_s26 + $0x2c] sm:$0xf]  ;;  %197 = vst [vmem:[%s169_s27 + $0x24] sm:$0xff] %v196_v3 }
  0x13   : > { %792 = vst [vmem:[%s169_s27 + $0x8] sm:$0xf] %v791_v4  ;;  %794 = vst [vmem:[%s169_s27 + $0x14] sm:$0xf] %v793_v5  ;;  %v797_v7 = vld [vmem:[%s175_s26 + $0x74] sm:$0xf] }
  0x14   : > { %796 = vst [vmem:[%s169_s27 + $0x20] sm:$0xf] %v795_v6  ;;  %798 = vst [vmem:[%s169_s27 + $0x2c] sm:$0xf] %v797_v7 }
  0x15 PF: > { %p799_p6 = scmp.ge.s32.totalorder %s1010_s16, 1  ;;  %p230_p7 = scmp.lt.s32.totalorder %s1010_s16, 4 }
  0x17   : > { %p231_p8 = pnand %p799_p6, %p230_p7 }
  0x18   : > { %s237_s28 = sand.u32 (!%p231_p8), 1, %s994_s12   ;;  %s276_s29 = smul.u32 (!%p231_p8), 48, %s1002_s14 }
  0x19   : > { %234 = sbr.rel (%p231_p8) target bundleno = 295 (0x127), region = 54  ;;  %p801_p10 = scmp.ne.s32.totalorder (!%p231_p8), %s1002_s14, 0 }
  0x1a   : > { %s898_s30 = smul.u32 (!%p231_p8), 48, %s237_s28  ;;  %p277_p9 = scmp.lt.s32.totalorder (!%p231_p8), %s276_s29, 143 }
  0x1c   : > { %s1085_s8 = scalar_lea.vmem (!%p231_p8), [#allocation3], %s898_s30 }
  0x1e   : > { %s1160_s29 = smov (!%p277_p9, %s276_s29), 143  ;;  %301 = sbr.rel (%p801_p10) target bundleno = 38 (0x26), region = 62 }
  0x1f   : > { %s800_s4 = sshll.u32 %s1160_s29, 2 }
  0x20   : > { %s1083_s7 = scalar_lea.vmem %s1150_s1, %s800_s4 }
  0x23   : > { %v1012_v8 = vmov 0.0  }
  0x24   : > { %302 = vst [vmem:[#allocation2 + $0x10] sm:$0xff] %v1012_v8  ;;  %303 = vst [vmem:[#allocation2] sm:$0xff] %v1012_v8 }
  0x25   : > { %304 = vst [vmem:[#allocation2 + $0x18] sm:$0xff] %v1012_v8  ;;  %305 = vst [vmem:[#allocation2 + $0x8] sm:$0xff] %v1012_v8 }
  0x26 PF: > { %v940_v9 = vld [vmem:[%s1083_s7 + $0x78] sm:$0xff]   ;;  %v943_v12 = vld [vmem:[%s1083_s7 + $0x70] sm:$0xff]   ;;  %v946_v15 = vld [vmem:[%s1083_s7 + $0x68] sm:$0xff]   ;;  %p832_p11 = scmp.ne.s32.totalorder %s1002_s14, 2 }
  0x27   : > { %v941_v10 = vld [vmem:[%s1083_s7 + $0x38] sm:$0xff]   ;;  %839 = vmatprep.subr.bf16.mxu0 %v940_v9  ;;  %v944_v13 = vld [vmem:[%s1083_s7 + $0x30] sm:$0xff]   ;;  %v947_v16 = vld [vmem:[%s1083_s7 + $0x28] sm:$0xff]  }
  0x28   : > { %v942_v11 = vld [vmem:[%s1083_s7 + $0xb8] sm:$0xff]   ;;  %840 = vmatpush3.bf16.msra.mxu0 %v941_v10  ;;  %v945_v14 = vld [vmem:[%s1083_s7 + $0xb0] sm:$0xff]   ;;  %v948_v17 = vld [vmem:[%s1083_s7 + $0xa8] sm:$0xff]  }
  0x29   : > { %877 = vmatprep.subr.bf16.mxu1 %v942_v11  ;;  %841 = vmatprep.subr.bf16.mxu0 %v943_v12  ;;  %v949_v18 = vld [vmem:[%s1083_s7 + $0x60] sm:$0xff]   ;;  %v952_v21 = vld [vmem:[%s1083_s7 + $0x58] sm:$0xff]   ;;  %v955_v24 = vld [vmem:[%s1083_s7 + $0x50] sm:$0xff]  }
  0x2a   : > { %878 = vmatpush3.bf16.msra.mxu1 %v942_v11  ;;  %v950_v19 = vld [vmem:[%s1083_s7 + $0x20] sm:$0xff]   ;;  %v954_v22 = vld [vmem:[%s1083_s7 + $0x98] sm:$0xff]   ;;  %v957_v25 = vld [vmem:[%s1083_s7 + $0x90] sm:$0xff]  }
  0x2b   : > { %879 = vmatprep.subr.bf16.mxu1 %v945_v14  ;;  %v951_v20 = vld [vmem:[%s1083_s7 + $0xa0] sm:$0xff]   ;;  %v953_v23 = vld [vmem:[%s1083_s7 + $0x18] sm:$0xff]   ;;  %v956_v26 = vld [vmem:[%s1083_s7 + $0x10] sm:$0xff]  }
  0x2c   : > { %842 = vmatpush3.bf16.msra.mxu0 %v944_v13  ;;  %v958_v27 = vld [vmem:[%s1083_s7 + $0x48] sm:$0xff]   ;;  %v961_v30 = vld [vmem:[%s1083_s7 + $0x40] sm:$0xff]   ;;  %v306_v44 = vld [vmem:[#allocation2 + $0x10] sm:$0xff] }
  0x2d   : > { %843 = vmatprep.subr.bf16.mxu0 %v946_v15  ;;  %v959_v28 = vld [vmem:[%s1083_s7 + $0x8] sm:$0xff]   ;;  %v963_v31 = vld [vmem:[%s1083_s7 + $0x80] sm:$0xff]   ;;  %v308_v58 = vld [vmem:[#allocation2 + $0x18] sm:$0xff] }
  0x2e   : > { %880 = vmatpush3.bf16.msra.mxu1 %v945_v14  ;;  %v960_v29 = vld [vmem:[%s1083_s7 + $0x88] sm:$0xff]   ;;  %v966_v32 = vld [vmem:[%s1085_s8 + $0x4] ss:$12 sps:$4 sm:$0xff]  }
  0x2f   : > { %881 = vmatprep.subr.bf16.mxu1 %v948_v17  ;;  %v967_v33 = vld [vmem:[%s1085_s8 + $0x8] ss:$12 sps:$4 sm:$0xff]   ;;  %574 = vmatprep.mubr.bf16.mxu0 %v966_v32  ;;  %v964_v35 = vld [vmem:[%s1085_s8] ss:$12 sps:$4 sm:$0xff]   ;;  %v971_v38 = vld [vmem:[%s1085_s8 + $0x18] ss:$12 sps:$4 sm:$0xff]  }
  0x30   : > { %844 = vmatpush3.bf16.msra.mxu0 %v947_v16  ;;  %v962_v34 = vld [vmem:[%s1083_s7] sm:$0xff]   ;;  %893 = vmatprep.mubr.bf16.mxu1 %v967_v33  ;;  %v969_v36 = vld [vmem:[%s1085_s8 + $0x1c] ss:$12 sps:$4 sm:$0xff]  }
  0x31   : > { %845 = vmatprep.subr.bf16.mxu0 %v949_v18  ;;  %v968_v37 = vld [vmem:[%s1085_s8 + $0x20] ss:$12 sps:$4 sm:$0xff]  }
  0x32   : > { %882 = vmatpush3.bf16.msra.mxu1 %v948_v17  ;;  %v307_v52 = vld [vmem:[#allocation2] sm:$0xff]  ;;  %v309_v0 = vld [vmem:[#allocation2 + $0x8] sm:$0xff] }
  0x33   : > { %883 = vmatprep.subr.bf16.mxu1 %v951_v20 }
  0x34   : > { %846 = vmatpush3.bf16.msra.mxu0 %v950_v19 }
  0x35   : > { %847 = vmatprep.subr.bf16.mxu0 %v952_v21 }
  0x36   : > { %884 = vmatpush3.bf16.msra.mxu1 %v951_v20 }
  0x37   : > { %885 = vmatprep.subr.bf16.mxu1 %v954_v22 }
  0x38   : > { %848 = vmatpush3.bf16.msra.mxu0 %v953_v23 }
  0x39   : > { %849 = vmatprep.subr.bf16.mxu0 %v955_v24 }
  0x3a   : > { %886 = vmatpush3.bf16.msra.mxu1 %v954_v22 }
  0x3b   : > { %887 = vmatprep.subr.bf16.mxu1 %v957_v25 }
  0x3c   : > { %850 = vmatpush3.bf16.msra.mxu0 %v956_v26 }
  0x3d   : > { %851 = vmatprep.subr.bf16.mxu0 %v958_v27 }
  0x3e   : > { %888 = vmatpush3.bf16.msra.mxu1 %v957_v25 }
  0x3f   : > { %889 = vmatprep.subr.bf16.mxu1 %v960_v29 }
  0x40   : > { %852 = vmatpush3.bf16.msra.mxu0 %v959_v28 }
  0x41   : > { %853 = vmatprep.subr.bf16.mxu0 %v961_v30 }
  0x42   : > { %890 = vmatpush3.bf16.msra.mxu1 %v960_v29 }
  0x43   : > { %891 = vmatprep.subr.bf16.mxu1 %v963_v31 }
  0x44   : > { %854 = vmatpush3.bf16.msra.mxu0 %v962_v34 }
  0x46   : > { %892 = vmatpush3.bf16.msra.mxu1 %v963_v31 }
  0x47   : > { %575 = vmatmul.mubr.bf16.vlgmr.msra.gmra.mxu0 %v964_v35 }
  0x48   : > { %582 = vmatprep.mubr.bf16.mxu0 %v969_v36 }
  0x49   : > { %894 = vmatmul.mubr.bf16.vlgmr.msra.gmra.mxu1 %v968_v37 }
  0x4f   : > { %583 = vmatmul.mubr.bf16.gmra.mxu0 %v971_v38 }
 0x107   : > { %v855_v39 = vpop.f32.mrf.mxu0 }
 0x109   : > { %v856_v40 = vpop.f32.mrf.mxu0  ;;  %v895_v41 = vpop.f32.mrf.mxu1 }
 0x10a   : > { %v857_v42 = vadd.f32 %v856_v40, %v855_v39 }
 0x10b   : > { %v858_v43 = vpop.f32.mrf.mxu0  ;;  %v625_v45 = vpop.f32.mrf.mxu1 }
 0x10c   : > { %v626_v46 = vadd.f32 %v857_v42, %v625_v45 }
 0x10d   : > { %v859_v47 = vpop.f32.mrf.mxu0  ;;  %v896_v48 = vpop.f32.mrf.mxu1 }
 0x10e   : > { %v640_v49 = vadd.f32 %v626_v46, %v306_v44  ;;  %v860_v50 = vadd.f32 %v859_v47, %v858_v43 }
 0x10f   : > { %v861_v51 = vpop.f32.mrf.mxu0  ;;  %v628_v53 = vpop.f32.mrf.mxu1 }
 0x110   : > { %644 = vst [vmem:[#allocation2 + $0x10] sm:$0xff] %v640_v49  ;;  %v629_v54 = vadd.f32 %v860_v50, %v628_v53 }
 0x111   : > { %v862_v55 = vpop.f32.mrf.mxu0 }
 0x112   : > { %v641_v56 = vadd.f32 %v629_v54, %v307_v52  ;;  %v863_v57 = vadd.f32 %v862_v55, %v861_v51 }
 0x113   : > { %v864_v59 = vpop.f32.mrf.mxu0 }
 0x114   : > { %645 = vst [vmem:[#allocation2] sm:$0xff] %v641_v56  ;;  %v634_v60 = vadd.f32 %v895_v41, %v863_v57 }
 0x115   : > { %v865_v61 = vpop.f32.mrf.mxu0 }
 0x116   : > { %v642_v62 = vadd.f32 %v634_v60, %v308_v58  ;;  %v866_v63 = vadd.f32 %v865_v61, %v864_v59 }
 0x118   : > { %646 = vst [vmem:[#allocation2 + $0x18] sm:$0xff] %v642_v62  ;;  %v637_v1 = vadd.f32 %v896_v48, %v866_v63  ;;  %651 = sbr.rel (%p832_p11) target bundleno = 295 (0x127), region = 66 }
 0x11a   : > { %v643_v2 = vadd.f32 %v637_v1, %v309_v0 }
 0x11c   : > { %647 = vst [vmem:[#allocation2 + $0x8] sm:$0xff] %v643_v2 }
 0x11d   : > { %v652_v3 = vld [vmem:[#allocation2 + $0x10] sm:$0xff]  ;;  %v833_v4 = vld [vmem:[%s1151_s2] ss:$0 sm:$0xff] }
 0x11e   : > { %v653_v5 = vld [vmem:[#allocation2] sm:$0xff]  ;;  %v663_v6 = vadd.f32 %v833_v4, %v652_v3 }
 0x11f   : > { %v664_v7 = vadd.f32 %v833_v4, %v653_v5  ;;  %v654_v8 = vld [vmem:[#allocation2 + $0x18] sm:$0xff] }
 0x120   : > { %v665_v10 = vadd.f32 %v833_v4, %v654_v8  ;;  %667 = vst [vmem:[%s1152_s3] sm:$0xff] %v663_v6 }
 0x121   : > { %668 = vst [vmem:[%s1152_s3 + $0x8] sm:$0xff] %v664_v7 }
 0x122   : > { %669 = vst [vmem:[%s1152_s3 + $0x10] sm:$0xff] %v665_v10 }
 0x123   : > { %v655_v9 = vld [vmem:[#allocation2 + $0x8] sm:$0xff] }
 0x124   : > { %v666_v11 = vadd.f32 %v833_v4, %v655_v9 }
 0x126   : > { %670 = vst [vmem:[%s1152_s3 + $0x18] sm:$0xff] %v666_v11 }
 0x127 PF: > { %s13_s16 = sadd.s32 1, %s1010_s16   ;;  %s1153_s12 = smov %s998_s13 }
 0x128   : > { %p10_p12 = scmp.ge.s32.totalorder %s13_s16, 5   ;;  %s1154_s13 = smov %s1068_s20 }
 0x129   : > { %s1155_s14 = smov %s1006_s15  ;;  %s1156_s15 = smov %s1158_s17 }
 0x12a   :  { %12 = sbr.rel (!%p10_p12) target bundleno = 3 (0x3), region = 113 }

// kernel: discriminator_forward.35
= control target key start
LH: loop header
LB: loop body
LE: loop exit
PB: predicated region body
PF: predicated region fallthrough
CT: control target
= control target key end

     0   :  { %v24_v0 = vlaneseq  ;;  %s172_s1 = inlined_call_operand.vmem [shape: f32[1,256], index: 1, kind: input, shape index: {}]   ;;  %s173_s2 = inlined_call_operand.vmem [shape: f32[1,256], index: 2, kind: input, shape index: {}]   ;;  %s174_s0 = inlined_call_operand.vmem [shape: f32[32,256], index: 0, kind: input, shape index: {}]   ;;  %s175_s3 = inlined_call_operand.vmem [shape: f32[32,256], index: 3, kind: output, shape index: {}]  }
   0x1   :  { %v22_v2 = vld [vmem:[%s172_s1] sm:$0x3]  ;;  %v15_v6 = vld [vmem:[%s174_s0 + $0x8] sm:$0xff]  ;;  %v16_v8 = vld [vmem:[%s174_s0 + $0x10] sm:$0xff] }
   0x2   :  { %v25_v1 = vshrl.u32 %v24_v0, 7  ;;  %v42_v3 = vld [vmem:[%s173_s2] sm:$0x3]  ;;  %v17_v9 = vld [vmem:[%s174_s0 + $0x18] sm:$0xff]  ;;  %v19_v15 = vld [vmem:[%s174_s0 + $0x28] sm:$0xff] }
   0x3   :  { %v14_v4 = vld [vmem:[%s174_s0] sm:$0xff]  ;;  %v20_v16 = vld [vmem:[%s174_s0 + $0x30] sm:$0xff]  ;;  %v21_v17 = vld [vmem:[%s174_s0 + $0x38] sm:$0xff] }
   0x4   :  { %v26_v5 = vsub.s32 0, %v25_v1  ;;  %v30_v7 = vsub.s32 1, %v25_v1  ;;  %v18_v10 = vld [vmem:[%s174_s0 + $0x20] sm:$0xff] }
   0x6   :  { %v27_v11 = vrot.slane %v22_v2, %v26_v5  ;;  %v47_v12 = vrot.slane %v42_v3, %v26_v5  ;;  %v31_v13 = vrot.slane %v22_v2, %v30_v7  ;;  %v51_v14 = vrot.slane %v42_v3, %v30_v7 }
   0x8   :  { %v34_v18 = vmul.f32 %v27_v11, %v14_v4  ;;  %v35_v19 = vmul.f32 %v31_v13, %v15_v6  ;;  %v36_v20 = vmul.f32 %v27_v11, %v16_v8  ;;  %v37_v21 = vmul.f32 %v31_v13, %v17_v9 }
   0x9   :  { %v38_v22 = vmul.f32 %v27_v11, %v18_v10  ;;  %v39_v23 = vmul.f32 %v31_v13, %v19_v15  ;;  %v40_v24 = vmul.f32 %v27_v11, %v20_v16  ;;  %v41_v25 = vmul.f32 %v31_v13, %v21_v17 }
   0xa   :  { %v54_v26 = vadd.f32 %v47_v12, %v34_v18  ;;  %v55_v27 = vadd.f32 %v51_v14, %v35_v19  ;;  %v56_v28 = vadd.f32 %v47_v12, %v36_v20  ;;  %v57_v29 = vadd.f32 %v51_v14, %v37_v21 }
   0xb   :  { %v58_v30 = vadd.f32 %v47_v12, %v38_v22  ;;  %v59_v31 = vadd.f32 %v51_v14, %v39_v23  ;;  %v60_v32 = vadd.f32 %v47_v12, %v40_v24  ;;  %v61_v33 = vadd.f32 %v51_v14, %v41_v25 }
   0xc   :  { %vm62_vm0 = vcmp.gt.f32.partialorder %v54_v26, 0.0  ;;  %v70_v34 = vmul.f32 0.2, %v54_v26  ;;  %vm63_vm1 = vcmp.gt.f32.partialorder %v55_v27, 0.0  ;;  %v71_v35 = vmul.f32 0.2, %v55_v27 }
   0xd   :  { %vm64_vm2 = vcmp.gt.f32.partialorder %v56_v28, 0.0  ;;  %v72_v36 = vmul.f32 0.2, %v56_v28  ;;  %vm65_vm3 = vcmp.gt.f32.partialorder %v57_v29, 0.0  ;;  %v73_v37 = vmul.f32 0.2, %v57_v29 }
   0xe   :  { %v78_v38 = vsel %vm62_vm0, %v54_v26, %v70_v34  ;;  %v79_v39 = vsel %vm63_vm1, %v55_v27, %v71_v35  ;;  %vm66_vm4 = vcmp.gt.f32.partialorder %v58_v30, 0.0  ;;  %v74_v40 = vmul.f32 0.2, %v58_v30 }
   0xf   :  { %86 = vst [vmem:[%s175_s3] sm:$0xff] %v78_v38  ;;  %87 = vst [vmem:[%s175_s3 + $0x8] sm:$0xff] %v79_v39  ;;  %v80_v41 = vsel %vm64_vm2, %v56_v28, %v72_v36  ;;  %v81_v42 = vsel %vm65_vm3, %v57_v29, %v73_v37  ;;  %vm67_vm5 = vcmp.gt.f32.partialorder %v59_v31, 0.0  ;;  %v75_v43 = vmul.f32 0.2, %v59_v31 }
  0x10   :  { %88 = vst [vmem:[%s175_s3 + $0x10] sm:$0xff] %v80_v41  ;;  %89 = vst [vmem:[%s175_s3 + $0x18] sm:$0xff] %v81_v42  ;;  %v82_v44 = vsel %vm66_vm4, %v58_v30, %v74_v40  ;;  %vm68_vm6 = vcmp.gt.f32.partialorder %v60_v32, 0.0  ;;  %v76_v45 = vmul.f32 0.2, %v60_v32  ;;  %vm69_vm7 = vcmp.gt.f32.partialorder %v61_v33, 0.0 }
  0x11   :  { %90 = vst [vmem:[%s175_s3 + $0x20] sm:$0xff] %v82_v44  ;;  %v83_v46 = vsel %vm67_vm5, %v59_v31, %v75_v43  ;;  %v77_v47 = vmul.f32 0.2, %v61_v33 }
  0x12   :  { %91 = vst [vmem:[%s175_s3 + $0x28] sm:$0xff] %v83_v46  ;;  %v84_v48 = vsel %vm68_vm6, %v60_v32, %v76_v45 }
  0x13   :  { %92 = vst [vmem:[%s175_s3 + $0x30] sm:$0xff] %v84_v48  ;;  %v85_v49 = vsel %vm69_vm7, %v61_v33, %v77_v47 }
  0x14   :  { %93 = vst [vmem:[%s175_s3 + $0x38] sm:$0xff] %v85_v49 }

// kernel: discriminator_forward.34
= control target key start
LH: loop header
LB: loop body
LE: loop exit
PB: predicated region body
PF: predicated region fallthrough
CT: control target
= control target key end

     0   :  { %v14_v0 = vlaneseq  ;;  %v128_v10 = vmov 0.0   ;;  %v129_v35 = vmov 1966171168   ;;  %s199_s0 = inlined_call_operand.vmem [shape: f32[32,256], index: 0, kind: input, shape index: {}]   ;;  %s200_s1 = inlined_call_operand.vmem [shape: f32[1,256], index: 1, kind: output, shape index: {0}]   ;;  %s201_s2 = inlined_call_operand.vmem [shape: f32[1,256], index: 2, kind: output, shape index: {1}]  }
   0x1   :  { %v20_v1 = vld [vmem:[%s199_s0] sm:$0xff]  ;;  %v21_v2 = vld [vmem:[%s199_s0 + $0x8] sm:$0xff]  ;;  %v22_v3 = vld [vmem:[%s199_s0 + $0x10] sm:$0xff]  ;;  %v51_v36 = vunpack.c.l.s4 %v129_v35 }
   0x2   :  { %vm154_vm0 = vcmp.lt.s32.totalorder %v14_v0, 256  ;;  %v23_v5 = vld [vmem:[%s199_s0 + $0x18] sm:$0xff]  ;;  %v24_v6 = vld [vmem:[%s199_s0 + $0x20] sm:$0xff]  ;;  %v25_v7 = vld [vmem:[%s199_s0 + $0x28] sm:$0xff]  ;;  %v29_v8 = vadd.f32 %v22_v3, %v20_v1  ;;  %v72_v9 = vmul.f32 %v20_v1, %v20_v1  ;;  %v73_v14 = vmul.f32 %v21_v2, %v21_v2 }
   0x3   :  { %18 = vst.msk [vmem:[%s200_s1] sm:$0x3] %vm154_vm0, %v128_v10  ;;  %v26_v11 = vld [vmem:[%s199_s0 + $0x30] sm:$0xff]  ;;  %v27_v12 = vld [vmem:[%s199_s0 + $0x38] sm:$0xff]  ;;  %v38_v13 = vadd.f32 %v23_v5, %v21_v2  ;;  %19 = vst.msk [vmem:[%s201_s2] sm:$0x3] %vm154_vm0, %v128_v10  ;;  %v74_v15 = vmul.f32 %v22_v3, %v22_v3  ;;  %v75_v17 = vmul.f32 %v23_v5, %v23_v5  ;;  %v52_v45 = vunpack.c.0.s8 %v51_v36 }
   0x4   :  { %v30_v16 = vadd.f32 %v29_v8, %v24_v6  ;;  %v76_v18 = vmul.f32 %v24_v6, %v24_v6  ;;  %v77_v19 = vmul.f32 %v25_v7, %v25_v7  ;;  %v78_v21 = vmul.f32 %v26_v11, %v26_v11 }
   0x5   :  { %v39_v20 = vadd.f32 %v38_v13, %v25_v7  ;;  %v79_v23 = vmul.f32 %v27_v12, %v27_v12  ;;  %v80_v24 = vadd.f32 %v74_v15, %v72_v9  ;;  %v89_v25 = vadd.f32 %v75_v17, %v73_v14 }
   0x6   :  { %v31_v22 = vadd.f32 %v30_v16, %v26_v11  ;;  %v54_v46 = vshrl.u32 %v14_v0, 7 }
   0x7   :  { %v40_v26 = vadd.f32 %v39_v20, %v27_v12  ;;  %v81_v28 = vadd.f32 %v80_v24, %v76_v18  ;;  %v90_v29 = vadd.f32 %v89_v25, %v77_v19 }
   0x8   :  { %v32_v27 = vrot.slane %v31_v22, 4  ;;  %v55_v55 = vsub.s32 %v52_v45, %v54_v46 }
   0x9   :  { %v41_v30 = vrot.slane %v40_v26, 4  ;;  %v82_v32 = vadd.f32 %v81_v28, %v78_v21  ;;  %v91_v33 = vadd.f32 %v90_v29, %v79_v23 }
   0xa   :  { %v33_v31 = vadd.f32 %v32_v27, %v31_v22  ;;  %v28_v62 = vld [vmem:[%s200_s1] sm:$0x3] }
   0xb   :  { %v42_v34 = vadd.f32 %v41_v30, %v40_v26  ;;  %v83_v38 = vrot.slane %v82_v32, 4  ;;  %v92_v39 = vrot.slane %v91_v33, 4  ;;  %v71_v3 = vld [vmem:[%s201_s2] sm:$0x3] }
   0xc   :  { %v34_v37 = vrot.slane %v33_v31, 2 }
   0xd   :  { %v43_v40 = vrot.slane %v42_v34, 2  ;;  %v84_v42 = vadd.f32 %v83_v38, %v82_v32  ;;  %v93_v43 = vadd.f32 %v92_v39, %v91_v33 }
   0xe   :  { %v35_v41 = vadd.f32 %v34_v37, %v33_v31 }
   0xf   :  { %v44_v44 = vadd.f32 %v43_v40, %v42_v34  ;;  %v85_v48 = vrot.slane %v84_v42, 2  ;;  %v94_v49 = vrot.slane %v93_v43, 2 }
  0x10   :  { %v36_v47 = vrot.slane %v35_v41, 1 }
  0x11   :  { %v45_v50 = vrot.slane %v44_v44, 1  ;;  %v86_v52 = vadd.f32 %v85_v48, %v84_v42  ;;  %v95_v53 = vadd.f32 %v94_v49, %v93_v43 }
  0x12   :  { %v37_v51 = vadd.f32 %v36_v47, %v35_v41 }
  0x13   :  { %v46_v54 = vadd.f32 %v45_v50, %v44_v44  ;;  %v87_v56 = vrot.slane %v86_v52, 1  ;;  %v96_v57 = vrot.slane %v95_v53, 1 }
  0x15   :  { %v49_v58 = vcombine.low %v37_v51, %v46_v54  ;;  %v88_v59 = vadd.f32 %v87_v56, %v86_v52  ;;  %v97_v60 = vadd.f32 %v96_v57, %v95_v53 }
  0x17   :  { %v56_v61 = vrot.slane %v49_v58, %v55_v55  ;;  %v100_v63 = vcombine.low %v88_v59, %v97_v60 }
  0x19   :  { %v63_v0 = vrot.slane %v56_v61, %v55_v55  ;;  %v107_v1 = vrot.slane %v100_v63, %v55_v55 }
  0x1b   :  { %v65_v2 = vadd.f32 %v63_v0, %v28_v62  ;;  %v114_v5 = vrot.slane %v107_v1, %v55_v55 }
  0x1d   :  { %70 = vst.msk [vmem:[%s200_s1] sm:$0x3] %vm154_vm0, %v65_v2  ;;  %v116_v6 = vadd.f32 %v114_v5, %v71_v3 }
  0x1f   :  { %117 = vst.msk [vmem:[%s201_s2] sm:$0x3] %vm154_vm0, %v116_v6 }

// kernel: discriminator_forward.33
= control target key start
LH: loop header
LB: loop body
LE: loop exit
PB: predicated region body
PF: predicated region fallthrough
CT: control target
= control target key end

     0   :  { %s1217_s12 = smov 0   ;;  %s1219_s13 = smov 0   ;;  %s1371_s0 = inlined_call_operand.vmem [shape: bf16[32,1152], index: 0, kind: input, shape index: {}]   ;;  %s1372_s1 = inlined_call_operand.vmem [shape: bf16[1152,256], index: 1, kind: input, shape index: {}]   ;;  %s1373_s2 = inlined_call_operand.vmem [shape: f32[1,256], index: 2, kind: input, shape index: {}]   ;;  %s1374_s3 = inlined_call_operand.vmem [shape: f32[32,256], index: 3, kind: output, shape index: {}]  }
   0x1   :  { %s1221_s14 = smov 0   ;;  %s1223_s15 = smov 0  }
   0x2   :  { %s1225_s16 = smov 0  }
   0x3 LB: > { %s25_s17 = sadd.s32 1, %s1189_s15  ;;  %p48_p1 = scmp.ne.s32.totalorder %s1181_s13, %s1177_s12  ;;  %s1193_s16 = sphi %s1225_s16, %s13_s16   ;;  %s1189_s15 = sphi %s1223_s15, %s1378_s15   ;;  %s1185_s14 = sphi %s1221_s14, %s1377_s14   ;;  %s1181_s13 = sphi %s1219_s13, %s1376_s13   ;;  %s1177_s12 = sphi %s1217_s12, %s1375_s12  }
   0x4   : > { %p26_p0 = scmp.ge.s32.totalorder %s25_s17, 3  ;;  %p49_p2 = scmp.eq.s32.totalorder %s1193_s16, 0 }
   0x5   : > { %s41_s19 = sadd.s32 1, %s1181_s13  ;;  %p956_p5 = scmp.ge.s32.totalorder %s1193_s16, 3 }
   0x6   : > { %s1380_s17 = smov (%p26_p0, %s25_s17), 0  ;;  %p50_p3 = por %p49_p2, %p48_p1 }
   0x7   : > { %s37_s18 = ssub.s32 %s1189_s15, %s1380_s17  ;;  %164 = sbr.rel (%p956_p5) target bundleno = 21 (0x15), region = 20 }
   0x8   : > { %p39_p4 = scmp.eq.s32.totalorder %s37_s18, 0 }
   0xa   : > { %s1252_s20 = scalar_select %p39_p4, %s1181_s13, %s41_s19  }
   0xc   : > { %167 = sbr.rel (!%p50_p3) target bundleno = 21 (0x15), region = 24  ;;  %s169_s21 = sand.u32 (%p50_p3), 1, %s1181_s13  }
   0xd   : > { %s1029_s22 = smul.u32 (%p50_p3), 12, %s1189_s15 }
   0xe   : > { %s1031_s23 = smul.u32 (%p50_p3), 48, %s169_s21 }
   0xf   : > { %s177_s26 = scalar_lea.vmem (%p50_p3), %s1371_s0, %s1029_s22 }
  0x10   : > { %v192_v0 = vld [vmem:[%s177_s26] sm:$0xff] (%p50_p3)  ;;  %v196_v2 = vld [vmem:[%s177_s26 + $0x48] sm:$0xff] (%p50_p3)  ;;  %s171_s27 = scalar_lea.vmem (%p50_p3), [#allocation3], %s1031_s23  ;;  %v962_v6 = vld [vmem:[%s177_s26 + $0x50] sm:$0xf] (%p50_p3) }
  0x11   : > { %v194_v1 = vld [vmem:[%s177_s26 + $0x24] sm:$0xff]  ;;  %193 = vst [vmem:[%s171_s27] sm:$0xff] %v192_v0  ;;  %197 = vst [vmem:[%s171_s27 + $0x18] sm:$0xff] %v196_v2  ;;  %v198_v3 = vld [vmem:[%s177_s26 + $0x6c] sm:$0xff] }
  0x12   : > { %195 = vst [vmem:[%s171_s27 + $0xc] sm:$0xff] %v194_v1  ;;  %v958_v4 = vld [vmem:[%s177_s26 + $0x8] sm:$0xf]  ;;  %v960_v5 = vld [vmem:[%s177_s26 + $0x2c] sm:$0xf]  ;;  %199 = vst [vmem:[%s171_s27 + $0x24] sm:$0xff] %v198_v3 }
  0x13   : > { %959 = vst [vmem:[%s171_s27 + $0x8] sm:$0xf] %v958_v4  ;;  %961 = vst [vmem:[%s171_s27 + $0x14] sm:$0xf] %v960_v5  ;;  %v964_v7 = vld [vmem:[%s177_s26 + $0x74] sm:$0xf] }
  0x14   : > { %963 = vst [vmem:[%s171_s27 + $0x20] sm:$0xf] %v962_v6  ;;  %965 = vst [vmem:[%s171_s27 + $0x2c] sm:$0xf] %v964_v7 }
  0x15 PF: > { %p966_p6 = scmp.ge.s32.totalorder %s1193_s16, 1  ;;  %p235_p7 = scmp.lt.s32.totalorder %s1193_s16, 4 }
  0x17   : > { %p236_p8 = pnand %p966_p6, %p235_p7 }
  0x18   : > { %s242_s28 = sand.u32 (!%p236_p8), 1, %s1177_s12   ;;  %s286_s29 = smul.u32 (!%p236_p8), 48, %s1185_s14 }
  0x19   : > { %239 = sbr.rel (%p236_p8) target bundleno = 331 (0x14b), region = 54  ;;  %p969_p10 = scmp.ne.s32.totalorder (!%p236_p8), %s1185_s14, 0 }
  0x1a   : > { %s1032_s30 = smul.u32 (!%p236_p8), 48, %s242_s28  ;;  %p288_p9 = scmp.lt.s32.totalorder (!%p236_p8), %s286_s29, 143 }
  0x1c   : > { %s1269_s8 = scalar_lea.vmem (!%p236_p8), [#allocation3], %s1032_s30 }
  0x1e   : > { %s1382_s29 = smov (!%p288_p9, %s286_s29), 143  ;;  %319 = sbr.rel (%p969_p10) target bundleno = 40 (0x28), region = 62 }
  0x1f   : > { %s1030_s4 = sshll.u32 %s1382_s29, 3 }
  0x20   : > { %s1267_s7 = scalar_lea.vmem %s1372_s1, %s1030_s4 }
  0x23   : > { %v1195_v8 = vmov 0.0  }
  0x24   : > { %320 = vst [vmem:[#allocation2 + $0x30] sm:$0xff] %v1195_v8  ;;  %321 = vst [vmem:[#allocation2] sm:$0xff] %v1195_v8 }
  0x25   : > { %322 = vst [vmem:[#allocation2 + $0x18] sm:$0xff] %v1195_v8  ;;  %323 = vst [vmem:[#allocation2 + $0x10] sm:$0xff] %v1195_v8 }
  0x26   : > { %324 = vst [vmem:[#allocation2 + $0x8] sm:$0xff] %v1195_v8  ;;  %325 = vst [vmem:[#allocation2 + $0x20] sm:$0xff] %v1195_v8 }
  0x27   : > { %326 = vst [vmem:[#allocation2 + $0x28] sm:$0xff] %v1195_v8  ;;  %327 = vst [vmem:[#allocation2 + $0x38] sm:$0xff] %v1195_v8 }
  0x28 PF: > { %v1075_v9 = vld [vmem:[%s1267_s7 + $0x74] ss:$8 sps:$4 sm:$0xff]   ;;  %v1077_v10 = vld [vmem:[%s1267_s7 + $0x70] ss:$8 sps:$4 sm:$0xff]   ;;  %v1196_v11 = vmov 0   ;;  %p1024_p11 = scmp.ne.s32.totalorder %s1185_s14, 2 }
  0x29   : > { %749 = vmatprep.mubr.bf16.mxu1 %v1196_v11  ;;  %664 = vmatprep.subr.bf16.mxu0 %v1075_v9  ;;  %v1078_v12 = vld [vmem:[%s1267_s7 + $0x64] ss:$8 sps:$4 sm:$0xff]   ;;  %v1080_v13 = vld [vmem:[%s1267_s7 + $0x60] ss:$8 sps:$4 sm:$0xff]   ;;  %v1081_v14 = vld [vmem:[%s1267_s7 + $0x54] ss:$8 sps:$4 sm:$0xff]  }
  0x2a   : > { %665 = vmatpush1.bf16.msra.mxu0 %v1077_v10  ;;  %v1083_v15 = vld [vmem:[%s1267_s7 + $0x50] ss:$8 sps:$4 sm:$0xff]   ;;  %v1084_v16 = vld [vmem:[%s1267_s7 + $0x44] ss:$8 sps:$4 sm:$0xff]   ;;  %v1096_v17 = vld [vmem:[%s1267_s7 + $0x174] ss:$8 sps:$4 sm:$0xff]  }
  0x2b   : > { %666 = vmatprep.subr.bf16.mxu0 %v1078_v12  ;;  %v1098_v18 = vld [vmem:[%s1267_s7 + $0x170] ss:$8 sps:$4 sm:$0xff]   ;;  %v1086_v19 = vld [vmem:[%s1267_s7 + $0x40] ss:$8 sps:$4 sm:$0xff]   ;;  %v1087_v20 = vld [vmem:[%s1267_s7 + $0x34] ss:$8 sps:$4 sm:$0xff]   ;;  %717 = vmatprep.subr.bf16.mxu1 %v1096_v17 }
  0x2c   : > { %v1102_v21 = vld [vmem:[%s1267_s7 + $0x164] ss:$8 sps:$4 sm:$0xff]   ;;  %718 = vmatpush1.bf16.msra.mxu1 %v1098_v18  ;;  %v1104_v22 = vld [vmem:[%s1267_s7 + $0x160] ss:$8 sps:$4 sm:$0xff]   ;;  %v1089_v23 = vld [vmem:[%s1267_s7 + $0x30] ss:$8 sps:$4 sm:$0xff]  }
  0x2d   : > { %719 = vmatprep.subr.bf16.mxu1 %v1102_v21  ;;  %v1108_v24 = vld [vmem:[%s1267_s7 + $0x154] ss:$8 sps:$4 sm:$0xff]   ;;  %v1090_v25 = vld [vmem:[%s1267_s7 + $0x24] ss:$8 sps:$4 sm:$0xff]   ;;  %v1110_v26 = vld [vmem:[%s1267_s7 + $0x150] ss:$8 sps:$4 sm:$0xff]  }
  0x2e   : > { %667 = vmatpush1.bf16.msra.mxu0 %v1080_v13  ;;  %v1114_v27 = vld [vmem:[%s1267_s7 + $0x144] ss:$8 sps:$4 sm:$0xff]   ;;  %v1092_v28 = vld [vmem:[%s1267_s7 + $0x20] ss:$8 sps:$4 sm:$0xff]   ;;  %v1093_v29 = vld [vmem:[%s1267_s7 + $0x14] ss:$8 sps:$4 sm:$0xff]  }
  0x2f   : > { %668 = vmatprep.subr.bf16.mxu0 %v1081_v14  ;;  %v1116_v30 = vld [vmem:[%s1267_s7 + $0x140] ss:$8 sps:$4 sm:$0xff]   ;;  %v1120_v31 = vld [vmem:[%s1267_s7 + $0x134] ss:$8 sps:$4 sm:$0xff]   ;;  %v1095_v32 = vld [vmem:[%s1267_s7 + $0x10] ss:$8 sps:$4 sm:$0xff]  }
  0x30   : > { %720 = vmatpush1.bf16.msra.mxu1 %v1104_v22  ;;  %v1099_v33 = vld [vmem:[%s1267_s7 + $0x4] ss:$8 sps:$4 sm:$0xff]   ;;  %v1122_v34 = vld [vmem:[%s1267_s7 + $0x130] ss:$8 sps:$4 sm:$0xff]   ;;  %v1101_v36 = vld [vmem:[%s1267_s7] ss:$8 sps:$4 sm:$0xff]  }
  0x31   : > { %721 = vmatprep.subr.bf16.mxu1 %v1108_v24  ;;  %v1126_v35 = vld [vmem:[%s1267_s7 + $0x124] ss:$8 sps:$4 sm:$0xff]   ;;  %v1105_v37 = vld [vmem:[%s1267_s7 + $0xf4] ss:$8 sps:$4 sm:$0xff]   ;;  %v1128_v38 = vld [vmem:[%s1267_s7 + $0x120] ss:$8 sps:$4 sm:$0xff]  }
  0x32   : > { %669 = vmatpush1.bf16.msra.mxu0 %v1083_v15  ;;  %v1132_v39 = vld [vmem:[%s1267_s7 + $0x114] ss:$8 sps:$4 sm:$0xff]   ;;  %v1107_v40 = vld [vmem:[%s1267_s7 + $0xf0] ss:$8 sps:$4 sm:$0xff]   ;;  %v1111_v41 = vld [vmem:[%s1267_s7 + $0xe4] ss:$8 sps:$4 sm:$0xff]  }
  0x33   : > { %670 = vmatprep.subr.bf16.mxu0 %v1084_v16  ;;  %v1134_v42 = vld [vmem:[%s1267_s7 + $0x110] ss:$8 sps:$4 sm:$0xff]   ;;  %v1138_v43 = vld [vmem:[%s1267_s7 + $0x104] ss:$8 sps:$4 sm:$0xff]   ;;  %v1113_v45 = vld [vmem:[%s1267_s7 + $0xe0] ss:$8 sps:$4 sm:$0xff]  }
  0x34   : > { %722 = vmatpush1.bf16.msra.mxu1 %v1110_v26  ;;  %v1150_v44 = vld [vmem:[%s1269_s8 + $0x4] ss:$12 sps:$4 sm:$0xff]   ;;  %v1144_v50 = vld [vmem:[%s1269_s8 + $0x8] ss:$12 sps:$4 sm:$0xff]   ;;  %v1151_v55 = vld [vmem:[%s1269_s8 + $0x20] ss:$12 sps:$4 sm:$0xff]  }
  0x35   : > { %723 = vmatprep.subr.bf16.mxu1 %v1114_v27  ;;  %v1117_v46 = vld [vmem:[%s1267_s7 + $0xd4] ss:$8 sps:$4 sm:$0xff]   ;;  %696 = vmatprep.mubr.bf16.mxu0 %v1150_v44  ;;  %v1140_v47 = vld [vmem:[%s1267_s7 + $0x100] ss:$8 sps:$4 sm:$0xff]   ;;  %v1119_v48 = vld [vmem:[%s1267_s7 + $0xd0] ss:$8 sps:$4 sm:$0xff]  }
  0x36   : > { %671 = vmatpush1.bf16.msra.mxu0 %v1086_v19  ;;  %v1123_v49 = vld [vmem:[%s1267_s7 + $0xc4] ss:$8 sps:$4 sm:$0xff]   ;;  %v1125_v51 = vld [vmem:[%s1267_s7 + $0xc0] ss:$8 sps:$4 sm:$0xff]   ;;  %v1129_v52 = vld [vmem:[%s1267_s7 + $0xb4] ss:$8 sps:$4 sm:$0xff]  }
  0x37   : > { %672 = vmatprep.subr.bf16.mxu0 %v1087_v20  ;;  %v1131_v53 = vld [vmem:[%s1267_s7 + $0xb0] ss:$8 sps:$4 sm:$0xff]   ;;  %v1135_v54 = vld [vmem:[%s1267_s7 + $0xa4] ss:$8 sps:$4 sm:$0xff]   ;;  %v1137_v56 = vld [vmem:[%s1267_s7 + $0xa0] ss:$8 sps:$4 sm:$0xff]  }
  0x38   : > { %724 = vmatpush1.bf16.msra.mxu1 %v1116_v30  ;;  %v1141_v57 = vld [vmem:[%s1267_s7 + $0x94] ss:$8 sps:$4 sm:$0xff]   ;;  %v1143_v58 = vld [vmem:[%s1267_s7 + $0x90] ss:$8 sps:$4 sm:$0xff]   ;;  %v1145_v59 = vld [vmem:[%s1267_s7 + $0x84] ss:$8 sps:$4 sm:$0xff]  }
  0x39   : > { %725 = vmatprep.subr.bf16.mxu1 %v1120_v31  ;;  %v1147_v60 = vld [vmem:[%s1267_s7 + $0x80] ss:$8 sps:$4 sm:$0xff]   ;;  %v328_v4 = vld [vmem:[#allocation2 + $0x30] sm:$0xff]  ;;  %v330_v12 = vld [vmem:[#allocation2 + $0x18] sm:$0xff] }
  0x3a   : > { %673 = vmatpush1.bf16.msra.mxu0 %v1089_v23  ;;  %v1148_v61 = vld [vmem:[%s1269_s8] ss:$12 sps:$4 sm:$0xff]   ;;  %v1152_v62 = vld [vmem:[%s1269_s8 + $0x1c] ss:$12 sps:$4 sm:$0xff]   ;;  %v1154_v63 = vld [vmem:[%s1269_s8 + $0x18] ss:$12 sps:$4 sm:$0xff]  }
  0x3b   : > { %674 = vmatprep.subr.bf16.mxu0 %v1090_v25  ;;  %v329_v7 = vld [vmem:[#allocation2] sm:$0xff]  ;;  %v331_v17 = vld [vmem:[#allocation2 + $0x10] sm:$0xff]  ;;  %v332_v21 = vld [vmem:[#allocation2 + $0x8] sm:$0xff] }
  0x3c   : > { %726 = vmatpush1.bf16.msra.mxu1 %v1122_v34  ;;  %v333_v26 = vld [vmem:[#allocation2 + $0x20] sm:$0xff]  ;;  %v334_v30 = vld [vmem:[#allocation2 + $0x28] sm:$0xff] }
  0x3d   : > { %727 = vmatprep.subr.bf16.mxu1 %v1126_v35  ;;  %v335_v35 = vld [vmem:[#allocation2 + $0x38] sm:$0xff] }
  0x3e   : > { %675 = vmatpush1.bf16.msra.mxu0 %v1092_v28 }
  0x3f   : > { %676 = vmatprep.subr.bf16.mxu0 %v1093_v29 }
  0x40   : > { %728 = vmatpush1.bf16.msra.mxu1 %v1128_v38 }
  0x41   : > { %729 = vmatprep.subr.bf16.mxu1 %v1132_v39 }
  0x42   : > { %677 = vmatpush1.bf16.msra.mxu0 %v1095_v32 }
  0x43   : > { %678 = vmatprep.subr.bf16.mxu0 %v1099_v33 }
  0x44   : > { %730 = vmatpush1.bf16.msra.mxu1 %v1134_v42 }
  0x45   : > { %731 = vmatprep.subr.bf16.mxu1 %v1138_v43 }
  0x46   : > { %679 = vmatpush1.bf16.msra.mxu0 %v1101_v36 }
  0x47   : > { %680 = vmatprep.subr.bf16.mxu0 %v1105_v37 }
  0x48   : > { %732 = vmatpush1.bf16.msra.mxu1 %v1140_v47 }
  0x4a   : > { %681 = vmatpush2.bf16.msra.mxu0 %v1107_v40 }
  0x4b   : > { %682 = vmatprep.subr.bf16.mxu0 %v1111_v41  ;;  %750 = vmatmul.mubr.bf16.vlgmr.msra.gmra.mxu1 %v1144_v50 }
  0x4c   : > { %759 = vmatprep.mubr.bf16.mxu1 %v1196_v11 }
  0x4e   : > { %683 = vmatpush2.bf16.msra.mxu0 %v1113_v45 }
  0x4f   : > { %684 = vmatprep.subr.bf16.mxu0 %v1117_v46 }
  0x52   : > { %685 = vmatpush2.bf16.msra.mxu0 %v1119_v48 }
  0x53   : > { %686 = vmatprep.subr.bf16.mxu0 %v1123_v49  ;;  %760 = vmatmul.mubr.bf16.gmra.mxu1 %v1151_v55 }
  0x56   : > { %687 = vmatpush2.bf16.msra.mxu0 %v1125_v51 }
  0x57   : > { %688 = vmatprep.subr.bf16.mxu0 %v1129_v52 }
  0x5a   : > { %689 = vmatpush2.bf16.msra.mxu0 %v1131_v53 }
  0x5b   : > { %690 = vmatprep.subr.bf16.mxu0 %v1135_v54 }
  0x5e   : > { %691 = vmatpush2.bf16.msra.mxu0 %v1137_v56 }
  0x5f   : > { %692 = vmatprep.subr.bf16.mxu0 %v1141_v57 }
  0x62   : > { %693 = vmatpush2.bf16.msra.mxu0 %v1143_v58 }
  0x63   : > { %694 = vmatprep.subr.bf16.mxu0 %v1145_v59 }
  0x66   : > { %695 = vmatpush2.bf16.msra.mxu0 %v1147_v60 }
  0x69   : > { %697 = vmatmul.mubr.bf16.vlgmr.msra.gmra.mxu0 %v1148_v61 }
  0x6a   : > { %706 = vmatprep.mubr.bf16.mxu0 %v1152_v62 }
  0x71   : > { %707 = vmatmul.mubr.bf16.gmra.mxu0 %v1154_v63 }
 0x10b   : > { %v751_v0 = vpop.f32.mrf.mxu1 }
 0x10d   : > { %v753_v1 = vpop.f32.mrf.mxu1 }
 0x10f   : > { %v755_v2 = vpop.f32.mrf.mxu1 }
 0x111   : > { %v757_v3 = vpop.f32.mrf.mxu1 }
 0x113   : > { %v761_v9 = vpop.f32.mrf.mxu1 }
 0x115   : > { %v763_v16 = vpop.f32.mrf.mxu1 }
 0x117   : > { %v765_v25 = vpop.f32.mrf.mxu1 }
 0x119   : > { %v767_v34 = vpop.f32.mrf.mxu1 }
 0x129   : > { %v698_v5 = vpop.f32.mrf.mxu0 }
 0x12a   : > { %v752_v6 = vadd.f32 %v751_v0, %v698_v5 }
 0x12b   : > { %v700_v8 = vpop.f32.mrf.mxu0 }
 0x12c   : > { %v770_v10 = vadd.f32 %v752_v6, %v328_v4  ;;  %v754_v11 = vadd.f32 %v753_v1, %v700_v8 }
 0x12d   : > { %v702_v13 = vpop.f32.mrf.mxu0 }
 0x12e   : > { %778 = vst [vmem:[#allocation2 + $0x30] sm:$0xff] %v770_v10  ;;  %v771_v14 = vadd.f32 %v754_v11, %v329_v7  ;;  %v756_v15 = vadd.f32 %v755_v2, %v702_v13 }
 0x12f   : > { %v704_v18 = vpop.f32.mrf.mxu0 }
 0x130   : > { %779 = vst [vmem:[#allocation2] sm:$0xff] %v771_v14  ;;  %v772_v19 = vadd.f32 %v756_v15, %v330_v12  ;;  %v758_v20 = vadd.f32 %v757_v3, %v704_v18 }
 0x131   : > { %v708_v22 = vpop.f32.mrf.mxu0 }
 0x132   : > { %780 = vst [vmem:[#allocation2 + $0x18] sm:$0xff] %v772_v19  ;;  %v773_v23 = vadd.f32 %v758_v20, %v331_v17  ;;  %v762_v24 = vadd.f32 %v761_v9, %v708_v22 }
 0x133   : > { %v710_v27 = vpop.f32.mrf.mxu0 }
 0x134   : > { %781 = vst [vmem:[#allocation2 + $0x10] sm:$0xff] %v773_v23  ;;  %v774_v28 = vadd.f32 %v762_v24, %v332_v21  ;;  %v764_v29 = vadd.f32 %v763_v16, %v710_v27 }
 0x135   : > { %v712_v31 = vpop.f32.mrf.mxu0 }
 0x136   : > { %782 = vst [vmem:[#allocation2 + $0x8] sm:$0xff] %v774_v28  ;;  %v775_v32 = vadd.f32 %v764_v29, %v333_v26  ;;  %v766_v33 = vadd.f32 %v765_v25, %v712_v31 }
 0x137   : > { %v714_v36 = vpop.f32.mrf.mxu0 }
 0x138   : > { %783 = vst [vmem:[#allocation2 + $0x20] sm:$0xff] %v775_v32  ;;  %v776_v37 = vadd.f32 %v766_v33, %v334_v30  ;;  %v768_v38 = vadd.f32 %v767_v34, %v714_v36  ;;  %789 = sbr.rel (%p1024_p11) target bundleno = 331 (0x14b), region = 66 }
 0x13a   : > { %784 = vst [vmem:[#allocation2 + $0x28] sm:$0xff] %v776_v37  ;;  %v777_v39 = vadd.f32 %v768_v38, %v335_v35 }
 0x13c   : > { %785 = vst [vmem:[#allocation2 + $0x38] sm:$0xff] %v777_v39 }
 0x13d   : > { %v800_v40 = vlaneseq  ;;  %v798_v42 = vld [vmem:[%s1373_s2] sm:$0x3]  ;;  %v790_v43 = vld [vmem:[#allocation2 + $0x30] sm:$0xff]  ;;  %v792_v47 = vld [vmem:[#allocation2 + $0x18] sm:$0xff] }
 0x13e   : > { %v791_v45 = vld [vmem:[#allocation2] sm:$0xff]  ;;  %v793_v48 = vld [vmem:[#allocation2 + $0x10] sm:$0xff]  ;;  %v794_v49 = vld [vmem:[#allocation2 + $0x8] sm:$0xff] }
 0x13f   : > { %v801_v41 = vshrl.u32 %v800_v40, 7  ;;  %v795_v52 = vld [vmem:[#allocation2 + $0x20] sm:$0xff] }
 0x141   : > { %v802_v44 = vsub.s32 0, %v801_v41  ;;  %v806_v46 = vsub.s32 1, %v801_v41  ;;  %v796_v53 = vld [vmem:[#allocation2 + $0x28] sm:$0xff] }
 0x143   : > { %v803_v50 = vrot.slane %v798_v42, %v802_v44  ;;  %v807_v51 = vrot.slane %v798_v42, %v806_v46  ;;  %v797_v54 = vld [vmem:[#allocation2 + $0x38] sm:$0xff] }
 0x145   : > { %v810_v55 = vadd.f32 %v803_v50, %v790_v43  ;;  %v811_v56 = vadd.f32 %v807_v51, %v791_v45  ;;  %v812_v57 = vadd.f32 %v803_v50, %v792_v47  ;;  %v813_v58 = vadd.f32 %v807_v51, %v793_v48 }
 0x146   : > { %v814_v59 = vadd.f32 %v803_v50, %v794_v49  ;;  %v815_v60 = vadd.f32 %v807_v51, %v795_v52  ;;  %v816_v61 = vadd.f32 %v803_v50, %v796_v53  ;;  %v817_v62 = vadd.f32 %v807_v51, %v797_v54 }
 0x147   : > { %818 = vst [vmem:[%s1374_s3] sm:$0xff] %v810_v55  ;;  %819 = vst [vmem:[%s1374_s3 + $0x8] sm:$0xff] %v811_v56 }
 0x148   : > { %820 = vst [vmem:[%s1374_s3 + $0x10] sm:$0xff] %v812_v57  ;;  %821 = vst [vmem:[%s1374_s3 + $0x18] sm:$0xff] %v813_v58 }
 0x149   : > { %822 = vst [vmem:[%s1374_s3 + $0x20] sm:$0xff] %v814_v59  ;;  %823 = vst [vmem:[%s1374_s3 + $0x28] sm:$0xff] %v815_v60 }
 0x14a   : > { %824 = vst [vmem:[%s1374_s3 + $0x30] sm:$0xff] %v816_v61  ;;  %825 = vst [vmem:[%s1374_s3 + $0x38] sm:$0xff] %v817_v62 }
 0x14b PF: > { %s13_s16 = sadd.s32 1, %s1193_s16   ;;  %s1375_s12 = smov %s1181_s13 }
 0x14c   : > { %p10_p12 = scmp.ge.s32.totalorder %s13_s16, 5   ;;  %s1376_s13 = smov %s1252_s20 }
 0x14d   : > { %s1377_s14 = smov %s1189_s15  ;;  %s1378_s15 = smov %s1380_s17 }
 0x14e   :  { %12 = sbr.rel (!%p10_p12) target bundleno = 3 (0x3), region = 113 }

// kernel: discriminator_forward.38
= control target key start
LH: loop header
LB: loop body
LE: loop exit
PB: predicated region body
PF: predicated region fallthrough
CT: control target
= control target key end

     0   :  { %v18_v0 = vlaneseq  ;;  %s94_s1 = inlined_call_operand.vmem [shape: f32[1,256], index: 1, kind: input, shape index: {}]   ;;  %s95_s2 = inlined_call_operand.vmem [shape: f32[1,256], index: 2, kind: input, shape index: {}]   ;;  %s96_s0 = inlined_call_operand.vmem [shape: f32[8,256], index: 0, kind: input, shape index: {}]   ;;  %s97_s3 = inlined_call_operand.vmem [shape: f32[8,256], index: 3, kind: output, shape index: {}]  }
   0x1   :  { %v16_v2 = vld [vmem:[%s94_s1] sm:$0x3]  ;;  %v15_v7 = vld [vmem:[%s96_s0 + $0x8] sm:$0xff] }
   0x2   :  { %v19_v1 = vshrl.u32 %v18_v0, 7  ;;  %v30_v3 = vld [vmem:[%s95_s2] sm:$0x3] }
   0x3   :  { %v14_v6 = vld [vmem:[%s96_s0] sm:$0xff] }
   0x4   :  { %v20_v4 = vsub.s32 0, %v19_v1  ;;  %v24_v5 = vsub.s32 1, %v19_v1 }
   0x6   :  { %v21_v8 = vrot.slane %v16_v2, %v20_v4  ;;  %v35_v9 = vrot.slane %v30_v3, %v20_v4  ;;  %v25_v10 = vrot.slane %v16_v2, %v24_v5  ;;  %v39_v11 = vrot.slane %v30_v3, %v24_v5 }
   0x8   :  { %v28_v12 = vmul.f32 %v21_v8, %v14_v6  ;;  %v29_v13 = vmul.f32 %v25_v10, %v15_v7 }
   0xa   :  { %v42_v14 = vadd.f32 %v35_v9, %v28_v12  ;;  %v43_v15 = vadd.f32 %v39_v11, %v29_v13 }
   0xc   :  { %vm44_vm0 = vcmp.gt.f32.partialorder %v42_v14, 0.0  ;;  %v46_v16 = vmul.f32 0.2, %v42_v14  ;;  %vm45_vm1 = vcmp.gt.f32.partialorder %v43_v15, 0.0  ;;  %v47_v17 = vmul.f32 0.2, %v43_v15 }
   0xe   :  { %v48_v18 = vsel %vm44_vm0, %v42_v14, %v46_v16  ;;  %v49_v19 = vsel %vm45_vm1, %v43_v15, %v47_v17 }
   0xf   :  { %50 = vst [vmem:[%s97_s3] sm:$0xff] %v48_v18  ;;  %51 = vst [vmem:[%s97_s3 + $0x8] sm:$0xff] %v49_v19 }

// kernel: discriminator_forward.37
= control target key start
LH: loop header
LB: loop body
LE: loop exit
PB: predicated region body
PF: predicated region fallthrough
CT: control target
= control target key end

     0   :  { %v14_v0 = vlaneseq  ;;  %v104_v6 = vmov 0.0   ;;  %v105_v11 = vmov 1966171168   ;;  %s157_s0 = inlined_call_operand.vmem [shape: f32[8,256], index: 0, kind: input, shape index: {}]   ;;  %s158_s1 = inlined_call_operand.vmem [shape: f32[1,256], index: 1, kind: output, shape index: {0}]   ;;  %s159_s2 = inlined_call_operand.vmem [shape: f32[1,256], index: 2, kind: output, shape index: {1}]  }
   0x1   :  { %v20_v1 = vld [vmem:[%s157_s0] sm:$0xff]  ;;  %v21_v2 = vld [vmem:[%s157_s0 + $0x8] sm:$0xff]  ;;  %v39_v12 = vunpack.c.l.s4 %v105_v11 }
   0x2   :  { %vm127_vm0 = vcmp.lt.s32.totalorder %v14_v0, 256  ;;  %v23_v4 = vrot.slane %v20_v1, 4  ;;  %v29_v5 = vrot.slane %v21_v2, 4  ;;  %v60_v7 = vmul.f32 %v20_v1, %v20_v1 }
   0x3   :  { %18 = vst.msk [vmem:[%s158_s1] sm:$0x3] %vm127_vm0, %v104_v6  ;;  %19 = vst.msk [vmem:[%s159_s2] sm:$0x3] %vm127_vm0, %v104_v6  ;;  %v61_v8 = vmul.f32 %v21_v2, %v21_v2  ;;  %v40_v21 = vunpack.c.0.s8 %v39_v12  ;;  %v42_v22 = vshrl.u32 %v14_v0, 7 }
   0x4   :  { %v24_v9 = vadd.f32 %v23_v4, %v20_v1  ;;  %v30_v10 = vadd.f32 %v29_v5, %v21_v2  ;;  %v62_v13 = vrot.slane %v60_v7, 4 }
   0x5   :  { %v68_v14 = vrot.slane %v61_v8, 4  ;;  %v43_v31 = vsub.s32 %v40_v21, %v42_v22 }
   0x6   :  { %v25_v15 = vrot.slane %v24_v9, 2  ;;  %v31_v16 = vrot.slane %v30_v10, 2  ;;  %v63_v17 = vadd.f32 %v62_v13, %v60_v7 }
   0x7   :  { %v69_v18 = vadd.f32 %v68_v14, %v61_v8 }
   0x8   :  { %v26_v19 = vadd.f32 %v25_v15, %v24_v9  ;;  %v32_v20 = vadd.f32 %v31_v16, %v30_v10  ;;  %v64_v23 = vrot.slane %v63_v17, 2 }
   0x9   :  { %v70_v24 = vrot.slane %v69_v18, 2 }
   0xa   :  { %v27_v25 = vrot.slane %v26_v19, 1  ;;  %v33_v26 = vrot.slane %v32_v20, 1  ;;  %v65_v27 = vadd.f32 %v64_v23, %v63_v17  ;;  %v22_v38 = vld [vmem:[%s158_s1] sm:$0x3] }
   0xb   :  { %v71_v28 = vadd.f32 %v70_v24, %v69_v18  ;;  %v59_v43 = vld [vmem:[%s159_s2] sm:$0x3] }
   0xc   :  { %v28_v29 = vadd.f32 %v27_v25, %v26_v19  ;;  %v34_v30 = vadd.f32 %v33_v26, %v32_v20  ;;  %v66_v32 = vrot.slane %v65_v27, 1 }
   0xd   :  { %v72_v33 = vrot.slane %v71_v28, 1 }
   0xe   :  { %v37_v34 = vcombine.low %v28_v29, %v34_v30  ;;  %v67_v35 = vadd.f32 %v66_v32, %v65_v27 }
   0xf   :  { %v73_v36 = vadd.f32 %v72_v33, %v71_v28 }
  0x10   :  { %v44_v37 = vrot.slane %v37_v34, %v43_v31 }
  0x11   :  { %v76_v39 = vcombine.low %v67_v35, %v73_v36 }
  0x12   :  { %v51_v40 = vrot.slane %v44_v37, %v43_v31 }
  0x13   :  { %v83_v41 = vrot.slane %v76_v39, %v43_v31 }
  0x14   :  { %v53_v42 = vadd.f32 %v51_v40, %v22_v38 }
  0x15   :  { %v90_v44 = vrot.slane %v83_v41, %v43_v31 }
  0x16   :  { %58 = vst.msk [vmem:[%s158_s1] sm:$0x3] %vm127_vm0, %v53_v42 }
  0x17   :  { %v92_v45 = vadd.f32 %v90_v44, %v59_v43 }
  0x19   :  { %93 = vst.msk [vmem:[%s159_s2] sm:$0x3] %vm127_vm0, %v92_v45 }

// kernel: discriminator_forward.36
= control target key start
LH: loop header
LB: loop body
LE: loop exit
PB: predicated region body
PF: predicated region fallthrough
CT: control target
= control target key end

     0   :  { %s1025_s12 = smov 0   ;;  %s1027_s13 = smov 0   ;;  %s1127_s0 = inlined_call_operand.vmem [shape: bf16[8,2304], index: 0, kind: input, shape index: {}]   ;;  %s1128_s1 = inlined_call_operand.vmem [shape: bf16[2304,256], index: 1, kind: input, shape index: {}]   ;;  %s1129_s2 = inlined_call_operand.vmem [shape: f32[1,256], index: 2, kind: input, shape index: {}]   ;;  %s1130_s3 = inlined_call_operand.vmem [shape: f32[8,256], index: 3, kind: output, shape index: {}]  }
   0x1   :  { %s1029_s14 = smov 0  }
   0x2 LB: > { %s25_s15 = sadd.s32 1, %s997_s13  ;;  %p816_p0 = scmp.ge.s32.totalorder %s1001_s14, 1  ;;  %s1001_s14 = sphi %s1029_s14, %s13_s14   ;;  %s997_s13 = sphi %s1027_s13, %s1132_s13   ;;  %s993_s12 = sphi %s1025_s12, %s1131_s12  }
   0x3   : > { %p26_p1 = scmp.ge.s32.totalorder %s25_s15, 6  ;;  %p194_p2 = scmp.lt.s32.totalorder %s1001_s14, 7 }
   0x5   : > { %s1134_s15 = smov (%p26_p1, %s25_s15), 0  ;;  %p195_p3 = pnand %p816_p0, %p194_p2 }
   0x6   : > { %s240_s16 = smul.u32 (!%p195_p3), 3, %s993_s12  ;;  %p820_p6 = scmp.ne.s32.totalorder (!%p195_p3), %s993_s12, 0 }
   0x7   : > { %198 = sbr.rel (%p195_p3) target bundleno = 298 (0x12a), region = 32 }
   0x8   : > { %s250_s17 = smul.u32 (!%p195_p3), 48, %s993_s12  ;;  %p243_p4 = scmp.lt.s32.totalorder (!%p195_p3), %s240_s16, 17 }
   0xa   : > { %p252_p5 = scmp.lt.s32.totalorder (!%p195_p3), %s250_s17, 287 }
   0xc   : > { %s1136_s16 = smov (!%p243_p4, %s240_s16), 17  ;;  %s1138_s17 = smov (!%p252_p5, %s250_s17), 287 }
   0xd   : > { %s817_s18 = sshll.u32 %s1136_s16, 2  ;;  %s877_s22 = sshll.u32 %s1138_s17, 3 }
   0xe   : > { %s1050_s21 = scalar_lea.vmem %s1127_s0, %s817_s18  ;;  %s1055_s25 = scalar_lea.vmem %s1128_s1, %s877_s22 }
   0xf   : > { %281 = sbr.rel (%p820_p6) target bundleno = 22 (0x16), region = 36 }
  0x14   : > { %v1003_v0 = vmov 0.0  }
  0x15   : > { %282 = vst [vmem:[#allocation2] sm:$0xff] %v1003_v0  ;;  %283 = vst [vmem:[#allocation2 + $0x8] sm:$0xff] %v1003_v0 }
  0x16 PF: > { %v904_v1 = vld [vmem:[%s1055_s25 + $0x74] ss:$8 sps:$4 sm:$0xff]   ;;  %v906_v2 = vld [vmem:[%s1055_s25 + $0x70] ss:$8 sps:$4 sm:$0xff]   ;;  %v1004_v3 = vmov 0   ;;  %v286_v34 = vld [vmem:[%s1050_s21] sm:$0xff] }
  0x17   : > { %660 = vmatprep.mubr.bf16.mxu1 %v1004_v3  ;;  %587 = vmatprep.subr.bf16.mxu0 %v904_v1  ;;  %v907_v4 = vld [vmem:[%s1055_s25 + $0x64] ss:$8 sps:$4 sm:$0xff]   ;;  %v909_v5 = vld [vmem:[%s1055_s25 + $0x60] ss:$8 sps:$4 sm:$0xff]   ;;  %v910_v6 = vld [vmem:[%s1055_s25 + $0x54] ss:$8 sps:$4 sm:$0xff]   ;;  %v822_v36 = vcombine.high %v286_v34, %v286_v34  ;;  %v821_v53 = vcombine.low %v286_v34, %v286_v34 }
  0x18   : > { %588 = vmatpush1.bf16.msra.mxu0 %v906_v2  ;;  %v912_v7 = vld [vmem:[%s1055_s25 + $0x50] ss:$8 sps:$4 sm:$0xff]   ;;  %v913_v8 = vld [vmem:[%s1055_s25 + $0x44] ss:$8 sps:$4 sm:$0xff]   ;;  %v925_v9 = vld [vmem:[%s1055_s25 + $0x174] ss:$8 sps:$4 sm:$0xff]  }
  0x19   : > { %589 = vmatprep.subr.bf16.mxu0 %v907_v4  ;;  %v927_v10 = vld [vmem:[%s1055_s25 + $0x170] ss:$8 sps:$4 sm:$0xff]   ;;  %v915_v11 = vld [vmem:[%s1055_s25 + $0x40] ss:$8 sps:$4 sm:$0xff]   ;;  %v916_v12 = vld [vmem:[%s1055_s25 + $0x34] ss:$8 sps:$4 sm:$0xff]   ;;  %628 = vmatprep.subr.bf16.mxu1 %v925_v9 }
  0x1a   : > { %v931_v13 = vld [vmem:[%s1055_s25 + $0x164] ss:$8 sps:$4 sm:$0xff]   ;;  %629 = vmatpush1.bf16.msra.mxu1 %v927_v10  ;;  %v933_v14 = vld [vmem:[%s1055_s25 + $0x160] ss:$8 sps:$4 sm:$0xff]   ;;  %v918_v15 = vld [vmem:[%s1055_s25 + $0x30] ss:$8 sps:$4 sm:$0xff]   ;;  %619 = vmatprep.mubr.bf16.mxu0 %v822_v36 }
  0x1b   : > { %630 = vmatprep.subr.bf16.mxu1 %v931_v13  ;;  %v937_v16 = vld [vmem:[%s1055_s25 + $0x154] ss:$8 sps:$4 sm:$0xff]   ;;  %v919_v17 = vld [vmem:[%s1055_s25 + $0x24] ss:$8 sps:$4 sm:$0xff]   ;;  %v939_v18 = vld [vmem:[%s1055_s25 + $0x150] ss:$8 sps:$4 sm:$0xff]  }
  0x1c   : > { %590 = vmatpush1.bf16.msra.mxu0 %v909_v5  ;;  %v943_v19 = vld [vmem:[%s1055_s25 + $0x144] ss:$8 sps:$4 sm:$0xff]   ;;  %v921_v20 = vld [vmem:[%s1055_s25 + $0x20] ss:$8 sps:$4 sm:$0xff]   ;;  %v922_v21 = vld [vmem:[%s1055_s25 + $0x14] ss:$8 sps:$4 sm:$0xff]  }
  0x1d   : > { %591 = vmatprep.subr.bf16.mxu0 %v910_v6  ;;  %v945_v22 = vld [vmem:[%s1055_s25 + $0x140] ss:$8 sps:$4 sm:$0xff]   ;;  %v949_v23 = vld [vmem:[%s1055_s25 + $0x134] ss:$8 sps:$4 sm:$0xff]   ;;  %v924_v24 = vld [vmem:[%s1055_s25 + $0x10] ss:$8 sps:$4 sm:$0xff]  }
  0x1e   : > { %631 = vmatpush1.bf16.msra.mxu1 %v933_v14  ;;  %v928_v25 = vld [vmem:[%s1055_s25 + $0x4] ss:$8 sps:$4 sm:$0xff]   ;;  %v951_v26 = vld [vmem:[%s1055_s25 + $0x130] ss:$8 sps:$4 sm:$0xff]   ;;  %v930_v28 = vld [vmem:[%s1055_s25] ss:$8 sps:$4 sm:$0xff]  }
  0x1f   : > { %632 = vmatprep.subr.bf16.mxu1 %v937_v16  ;;  %v955_v27 = vld [vmem:[%s1055_s25 + $0x124] ss:$8 sps:$4 sm:$0xff]   ;;  %v934_v29 = vld [vmem:[%s1055_s25 + $0xf4] ss:$8 sps:$4 sm:$0xff]   ;;  %v957_v30 = vld [vmem:[%s1055_s25 + $0x120] ss:$8 sps:$4 sm:$0xff]  }
  0x20   : > { %592 = vmatpush1.bf16.msra.mxu0 %v912_v7  ;;  %v961_v31 = vld [vmem:[%s1055_s25 + $0x114] ss:$8 sps:$4 sm:$0xff]   ;;  %v936_v32 = vld [vmem:[%s1055_s25 + $0xf0] ss:$8 sps:$4 sm:$0xff]   ;;  %v940_v33 = vld [vmem:[%s1055_s25 + $0xe4] ss:$8 sps:$4 sm:$0xff]  }
  0x21   : > { %593 = vmatprep.subr.bf16.mxu0 %v913_v8  ;;  %v963_v35 = vld [vmem:[%s1055_s25 + $0x110] ss:$8 sps:$4 sm:$0xff]   ;;  %v967_v37 = vld [vmem:[%s1055_s25 + $0x104] ss:$8 sps:$4 sm:$0xff]   ;;  %v942_v38 = vld [vmem:[%s1055_s25 + $0xe0] ss:$8 sps:$4 sm:$0xff]  }
  0x22   : > { %633 = vmatpush1.bf16.msra.mxu1 %v939_v18  ;;  %v946_v39 = vld [vmem:[%s1055_s25 + $0xd4] ss:$8 sps:$4 sm:$0xff]   ;;  %v969_v40 = vld [vmem:[%s1055_s25 + $0x100] ss:$8 sps:$4 sm:$0xff]   ;;  %v948_v41 = vld [vmem:[%s1055_s25 + $0xd0] ss:$8 sps:$4 sm:$0xff]  }
  0x23   : > { %634 = vmatprep.subr.bf16.mxu1 %v943_v19  ;;  %v952_v42 = vld [vmem:[%s1055_s25 + $0xc4] ss:$8 sps:$4 sm:$0xff]   ;;  %v973_v43 = vld [vmem:[%s1050_s21 + $0x8] ss:$0 sps:$4 sm:$0xff]   ;;  %v958_v45 = vld [vmem:[%s1055_s25 + $0xb4] ss:$8 sps:$4 sm:$0xff]  }
  0x24   : > { %594 = vmatpush1.bf16.msra.mxu0 %v915_v11  ;;  %v954_v44 = vld [vmem:[%s1055_s25 + $0xc0] ss:$8 sps:$4 sm:$0xff]   ;;  %v960_v46 = vld [vmem:[%s1055_s25 + $0xb0] ss:$8 sps:$4 sm:$0xff]   ;;  %v964_v47 = vld [vmem:[%s1055_s25 + $0xa4] ss:$8 sps:$4 sm:$0xff]  }
  0x25   : > { %595 = vmatprep.subr.bf16.mxu0 %v916_v12  ;;  %v966_v48 = vld [vmem:[%s1055_s25 + $0xa0] ss:$8 sps:$4 sm:$0xff]   ;;  %v970_v49 = vld [vmem:[%s1055_s25 + $0x94] ss:$8 sps:$4 sm:$0xff]   ;;  %v972_v50 = vld [vmem:[%s1055_s25 + $0x90] ss:$8 sps:$4 sm:$0xff]  }
  0x26   : > { %635 = vmatpush1.bf16.msra.mxu1 %v945_v22  ;;  %v974_v51 = vld [vmem:[%s1055_s25 + $0x84] ss:$8 sps:$4 sm:$0xff]   ;;  %v976_v52 = vld [vmem:[%s1055_s25 + $0x80] ss:$8 sps:$4 sm:$0xff]   ;;  %p872_p7 = scmp.ne.s32.totalorder %s993_s12, 5 }
  0x27   : > { %636 = vmatprep.subr.bf16.mxu1 %v949_v23  ;;  %v284_v58 = vld [vmem:[#allocation2] sm:$0xff]  ;;  %v285_v61 = vld [vmem:[#allocation2 + $0x8] sm:$0xff] }
  0x28   : > { %596 = vmatpush1.bf16.msra.mxu0 %v918_v15 }
  0x29   : > { %597 = vmatprep.subr.bf16.mxu0 %v919_v17 }
  0x2a   : > { %637 = vmatpush1.bf16.msra.mxu1 %v951_v26 }
  0x2b   : > { %638 = vmatprep.subr.bf16.mxu1 %v955_v27 }
  0x2c   : > { %598 = vmatpush1.bf16.msra.mxu0 %v921_v20 }
  0x2d   : > { %599 = vmatprep.subr.bf16.mxu0 %v922_v21 }
  0x2e   : > { %639 = vmatpush1.bf16.msra.mxu1 %v957_v30 }
  0x2f   : > { %640 = vmatprep.subr.bf16.mxu1 %v961_v31 }
  0x30   : > { %600 = vmatpush1.bf16.msra.mxu0 %v924_v24 }
  0x31   : > { %601 = vmatprep.subr.bf16.mxu0 %v928_v25 }
  0x32   : > { %641 = vmatpush1.bf16.msra.mxu1 %v963_v35 }
  0x33   : > { %642 = vmatprep.subr.bf16.mxu1 %v967_v37 }
  0x34   : > { %602 = vmatpush1.bf16.msra.mxu0 %v930_v28 }
  0x35   : > { %603 = vmatprep.subr.bf16.mxu0 %v934_v29 }
  0x36   : > { %643 = vmatpush1.bf16.msra.mxu1 %v969_v40 }
  0x38   : > { %604 = vmatpush2.bf16.msra.mxu0 %v936_v32 }
  0x39   : > { %605 = vmatprep.subr.bf16.mxu0 %v940_v33  ;;  %661 = vmatmul.mubr.bf16.vlgmr.msra.gmra.mxu1 %v973_v43 }
  0x3c   : > { %606 = vmatpush2.bf16.msra.mxu0 %v942_v38 }
  0x3d   : > { %607 = vmatprep.subr.bf16.mxu0 %v946_v39 }
  0x40   : > { %608 = vmatpush2.bf16.msra.mxu0 %v948_v41 }
  0x41   : > { %609 = vmatprep.subr.bf16.mxu0 %v952_v42 }
  0x44   : > { %610 = vmatpush2.bf16.msra.mxu0 %v954_v44 }
  0x45   : > { %611 = vmatprep.subr.bf16.mxu0 %v958_v45 }
  0x48   : > { %612 = vmatpush2.bf16.msra.mxu0 %v960_v46 }
  0x49   : > { %613 = vmatprep.subr.bf16.mxu0 %v964_v47 }
  0x4c   : > { %614 = vmatpush2.bf16.msra.mxu0 %v966_v48 }
  0x4d   : > { %615 = vmatprep.subr.bf16.mxu0 %v970_v49 }
  0x50   : > { %616 = vmatpush2.bf16.msra.mxu0 %v972_v50 }
  0x51   : > { %617 = vmatprep.subr.bf16.mxu0 %v974_v51 }
  0x54   : > { %618 = vmatpush2.bf16.msra.mxu0 %v976_v52 }
  0x57   : > { %620 = vmatmul.mubr.bf16.vlgmr.msra.gmra.mxu0 %v821_v53 }
  0xf9   : > { %v662_v54 = vpop.f32.mrf.mxu1 }
  0xfb   : > { %v664_v55 = vpop.f32.mrf.mxu1 }
  0xfd   : > { %v666_v56 = vpop.f32.mrf.mxu1 }
  0xff   : > { %v667_v57 = vpop.f32.mrf.mxu1 }
 0x117   : > { %v621_v59 = vpop.f32.mrf.mxu0 }
 0x118   : > { %v663_v60 = vadd.f32 %v662_v54, %v621_v59 }
 0x119   : > { %v623_v62 = vpop.f32.mrf.mxu0 }
 0x11a   : > { %v669_v63 = vadd.f32 %v663_v60, %v284_v58  ;;  %v665_v0 = vadd.f32 %v664_v55, %v623_v62  ;;  %676 = sbr.rel (%p872_p7) target bundleno = 298 (0x12a), region = 40 }
 0x11b   : > { %v625_v1 = vpop.f32.mrf.mxu0 }
 0x11c   : > { %671 = vst [vmem:[#allocation2] sm:$0xff] %v669_v63  ;;  %v670_v2 = vadd.f32 %v665_v0, %v285_v61 }
 0x11d   : > { %v626_v3 = vpop.f32.mrf.mxu0 }
 0x11e   : > { %672 = vst [vmem:[#allocation2 + $0x8] sm:$0xff] %v670_v2 }
 0x11f   : > { %v681_v4 = vlaneseq  ;;  %v679_v6 = vld [vmem:[%s1129_s2] sm:$0x3] }
 0x121   : > { %v682_v5 = vshrl.u32 %v681_v4, 7 }
 0x123   : > { %v683_v7 = vsub.s32 0, %v682_v5  ;;  %v687_v8 = vsub.s32 1, %v682_v5  ;;  %v677_v9 = vld [vmem:[#allocation2] sm:$0xff] }
 0x125   : > { %v678_v10 = vld [vmem:[#allocation2 + $0x8] sm:$0xff]  ;;  %v684_v11 = vrot.slane %v679_v6, %v683_v7  ;;  %v688_v12 = vrot.slane %v679_v6, %v687_v8 }
 0x127   : > { %v691_v13 = vadd.f32 %v684_v11, %v677_v9  ;;  %v692_v14 = vadd.f32 %v688_v12, %v678_v10 }
 0x129   : > { %693 = vst [vmem:[%s1130_s3] sm:$0xff] %v691_v13  ;;  %694 = vst [vmem:[%s1130_s3 + $0x8] sm:$0xff] %v692_v14 }
 0x12a PF: > { %s13_s14 = sadd.s32 1, %s1001_s14   ;;  %s1131_s12 = smov %s997_s13 }
 0x12b   : > { %p10_p8 = scmp.ge.s32.totalorder %s13_s14, 8   ;;  %s1132_s13 = smov %s1134_s15 }
 0x12d   :  { %12 = sbr.rel (!%p10_p8) target bundleno = 2 (0x2), region = 76 }

// kernel: discriminator_forward.40
= control target key start
LH: loop header
LB: loop body
LE: loop exit
PB: predicated region body
PF: predicated region fallthrough
CT: control target
= control target key end

     0   :  { %v14_v0 = vlaneseq  ;;  %v154_v4 = vmov 1966171168   ;;  %v155_v11 = vmov 0.0   ;;  %s213_s0 = inlined_call_operand.vmem [shape: f32[8,512], index: 0, kind: input, shape index: {}]   ;;  %s214_s1 = inlined_call_operand.vmem [shape: f32[1,512], index: 1, kind: output, shape index: {0}]   ;;  %s215_s2 = inlined_call_operand.vmem [shape: f32[1,512], index: 2, kind: output, shape index: {1}]  }
   0x1   :  { %v20_v1 = vld [vmem:[%s213_s0] sm:$0xff]  ;;  %v21_v2 = vld [vmem:[%s213_s0 + $0x8] sm:$0xff]  ;;  %v22_v3 = vld [vmem:[%s213_s0 + $0x10] sm:$0xff]  ;;  %v56_v5 = vunpack.c.l.s4 %v154_v4 }
   0x2   :  { %vm180_vm0 = vcmp.lt.s32.totalorder %v14_v0, 512  ;;  %v23_v7 = vld [vmem:[%s213_s0 + $0x18] sm:$0xff]  ;;  %v25_v8 = vrot.slane %v20_v1, 4  ;;  %v31_v9 = vrot.slane %v21_v2, 4  ;;  %v37_v10 = vrot.slane %v22_v3, 4 }
   0x3   :  { %18 = vst.msk [vmem:[%s214_s1] sm:$0xf] %vm180_vm0, %v155_v11  ;;  %v43_v12 = vrot.slane %v23_v7, 4  ;;  %v57_v13 = vunpack.c.0.s8 %v56_v5  ;;  %v59_v14 = vshrl.u32 %v14_v0, 7  ;;  %19 = vst.msk [vmem:[%s215_s2] sm:$0xf] %vm180_vm0, %v155_v11  ;;  %v85_v15 = vmul.f32 %v20_v1, %v20_v1 }
   0x4   :  { %v26_v16 = vadd.f32 %v25_v8, %v20_v1  ;;  %v32_v17 = vadd.f32 %v31_v9, %v21_v2  ;;  %v38_v18 = vadd.f32 %v37_v10, %v22_v3  ;;  %v86_v19 = vmul.f32 %v21_v2, %v21_v2 }
   0x5   :  { %v44_v20 = vadd.f32 %v43_v12, %v23_v7  ;;  %v60_v21 = vsub.s32 %v57_v13, %v59_v14  ;;  %v87_v22 = vmul.f32 %v22_v3, %v22_v3  ;;  %v88_v23 = vmul.f32 %v23_v7, %v23_v7 }
   0x6   :  { %v27_v24 = vrot.slane %v26_v16, 2  ;;  %v33_v25 = vrot.slane %v32_v17, 2  ;;  %v39_v26 = vrot.slane %v38_v18, 2  ;;  %v89_v27 = vrot.slane %v85_v15, 4 }
   0x7   :  { %v45_v28 = vrot.slane %v44_v20, 2  ;;  %v95_v29 = vrot.slane %v86_v19, 4  ;;  %v101_v30 = vrot.slane %v87_v22, 4  ;;  %v107_v31 = vrot.slane %v88_v23, 4 }
   0x8   :  { %v28_v32 = vadd.f32 %v27_v24, %v26_v16  ;;  %v34_v33 = vadd.f32 %v33_v25, %v32_v17  ;;  %v40_v34 = vadd.f32 %v39_v26, %v38_v18  ;;  %v90_v35 = vadd.f32 %v89_v27, %v85_v15 }
   0x9   :  { %v46_v36 = vadd.f32 %v45_v28, %v44_v20  ;;  %v96_v37 = vadd.f32 %v95_v29, %v86_v19  ;;  %v102_v38 = vadd.f32 %v101_v30, %v87_v22  ;;  %v108_v39 = vadd.f32 %v107_v31, %v88_v23 }
   0xa   :  { %v29_v40 = vrot.slane %v28_v32, 1  ;;  %v35_v41 = vrot.slane %v34_v33, 1  ;;  %v41_v42 = vrot.slane %v40_v34, 1  ;;  %v91_v43 = vrot.slane %v90_v35, 2  ;;  %v24_v8 = vld [vmem:[%s214_s1] sm:$0xf] }
   0xb   :  { %v47_v44 = vrot.slane %v46_v36, 1  ;;  %v97_v45 = vrot.slane %v96_v37, 2  ;;  %v103_v46 = vrot.slane %v102_v38, 2  ;;  %v109_v47 = vrot.slane %v108_v39, 2  ;;  %v84_v14 = vld [vmem:[%s215_s2] sm:$0xf] }
   0xc   :  { %v30_v48 = vadd.f32 %v29_v40, %v28_v32  ;;  %v36_v49 = vadd.f32 %v35_v41, %v34_v33  ;;  %v42_v50 = vadd.f32 %v41_v42, %v40_v34  ;;  %v92_v51 = vadd.f32 %v91_v43, %v90_v35 }
   0xd   :  { %v48_v52 = vadd.f32 %v47_v44, %v46_v36  ;;  %v98_v53 = vadd.f32 %v97_v45, %v96_v37  ;;  %v104_v54 = vadd.f32 %v103_v46, %v102_v38  ;;  %v110_v55 = vadd.f32 %v109_v47, %v108_v39 }
   0xe   :  { %v53_v56 = vcombine.low %v30_v48, %v36_v49  ;;  %v93_v57 = vrot.slane %v92_v51, 1 }
   0xf   :  { %v54_v58 = vcombine.low %v42_v50, %v48_v52  ;;  %v99_v59 = vrot.slane %v98_v53, 1  ;;  %v105_v60 = vrot.slane %v104_v54, 1  ;;  %v111_v61 = vrot.slane %v110_v55, 1 }
  0x10   :  { %v61_v62 = vrot.slane %v53_v56, %v60_v21  ;;  %v94_v63 = vadd.f32 %v93_v57, %v92_v51 }
  0x11   :  { %v68_v0 = vrot.slane %v54_v58, %v60_v21  ;;  %v100_v1 = vadd.f32 %v99_v59, %v98_v53  ;;  %v106_v2 = vadd.f32 %v105_v60, %v104_v54  ;;  %v112_v3 = vadd.f32 %v111_v61, %v110_v55 }
  0x13   :  { %v69_v4 = vcombine.low %v61_v62, %v68_v0  ;;  %v117_v5 = vcombine.low %v94_v63, %v100_v1  ;;  %v118_v7 = vcombine.low %v106_v2, %v112_v3 }
  0x15   :  { %v76_v9 = vrot.slane %v69_v4, %v60_v21  ;;  %v125_v10 = vrot.slane %v117_v5, %v60_v21  ;;  %v132_v11 = vrot.slane %v118_v7, %v60_v21 }
  0x17   :  { %v78_v12 = vadd.f32 %v76_v9, %v24_v8  ;;  %v133_v13 = vcombine.low %v125_v10, %v132_v11 }
  0x19   :  { %83 = vst.msk [vmem:[%s214_s1] sm:$0xf] %vm180_vm0, %v78_v12  ;;  %v140_v15 = vrot.slane %v133_v13, %v60_v21 }
  0x1b   :  { %v142_v16 = vadd.f32 %v140_v15, %v84_v14 }
  0x1d   :  { %143 = vst.msk [vmem:[%s215_s2] sm:$0xf] %vm180_vm0, %v142_v16 }

// kernel: discriminator_forward.41
= control target key start
LH: loop header
LB: loop body
LE: loop exit
PB: predicated region body
PF: predicated region fallthrough
CT: control target
= control target key end

     0   :  { %v20_v0 = vlaneseq  ;;  %s140_s1 = inlined_call_operand.vmem [shape: f32[1,512], index: 1, kind: input, shape index: {}]   ;;  %s141_s2 = inlined_call_operand.vmem [shape: f32[1,512], index: 2, kind: input, shape index: {}]   ;;  %s142_s0 = inlined_call_operand.vmem [shape: f32[8,512], index: 0, kind: input, shape index: {}]   ;;  %s143_s3 = inlined_call_operand.vmem [shape: f32[8,512], index: 3, kind: output, shape index: {}]  }
   0x1   :  { %v18_v2 = vld [vmem:[%s140_s1] sm:$0xf]  ;;  %v15_v9 = vld [vmem:[%s142_s0 + $0x8] sm:$0xff]  ;;  %v16_v14 = vld [vmem:[%s142_s0 + $0x10] sm:$0xff] }
   0x2   :  { %v21_v1 = vshrl.u32 %v20_v0, 7  ;;  %v44_v3 = vld [vmem:[%s141_s2] sm:$0xf]  ;;  %v17_v15 = vld [vmem:[%s142_s0 + $0x18] sm:$0xff] }
   0x3   :  { %v14_v8 = vld [vmem:[%s142_s0] sm:$0xff] }
   0x4   :  { %v22_v4 = vsub.s32 0, %v21_v1  ;;  %v26_v5 = vsub.s32 1, %v21_v1  ;;  %v30_v6 = vsub.s32 2, %v21_v1  ;;  %v34_v7 = vsub.s32 3, %v21_v1 }
   0x6   :  { %v23_v10 = vrot.slane %v18_v2, %v22_v4  ;;  %v49_v11 = vrot.slane %v44_v3, %v22_v4  ;;  %v27_v12 = vrot.slane %v18_v2, %v26_v5  ;;  %v53_v13 = vrot.slane %v44_v3, %v26_v5 }
   0x7   :  { %v31_v16 = vrot.slane %v18_v2, %v30_v6  ;;  %v57_v17 = vrot.slane %v44_v3, %v30_v6  ;;  %v35_v18 = vrot.slane %v18_v2, %v34_v7  ;;  %v61_v19 = vrot.slane %v44_v3, %v34_v7 }
   0x8   :  { %v40_v20 = vmul.f32 %v23_v10, %v14_v8  ;;  %v41_v21 = vmul.f32 %v27_v12, %v15_v9 }
   0x9   :  { %v42_v22 = vmul.f32 %v31_v16, %v16_v14  ;;  %v43_v23 = vmul.f32 %v35_v18, %v17_v15 }
   0xa   :  { %v66_v24 = vadd.f32 %v49_v11, %v40_v20  ;;  %v67_v25 = vadd.f32 %v53_v13, %v41_v21 }
   0xb   :  { %v68_v26 = vadd.f32 %v57_v17, %v42_v22  ;;  %v69_v27 = vadd.f32 %v61_v19, %v43_v23 }
   0xc   :  { %vm70_vm0 = vcmp.gt.f32.partialorder %v66_v24, 0.0  ;;  %v74_v28 = vmul.f32 0.2, %v66_v24  ;;  %vm71_vm1 = vcmp.gt.f32.partialorder %v67_v25, 0.0  ;;  %v75_v29 = vmul.f32 0.2, %v67_v25 }
   0xd   :  { %vm72_vm2 = vcmp.gt.f32.partialorder %v68_v26, 0.0  ;;  %v76_v30 = vmul.f32 0.2, %v68_v26  ;;  %vm73_vm3 = vcmp.gt.f32.partialorder %v69_v27, 0.0  ;;  %v77_v31 = vmul.f32 0.2, %v69_v27 }
   0xe   :  { %v78_v32 = vsel %vm70_vm0, %v66_v24, %v74_v28  ;;  %v79_v33 = vsel %vm71_vm1, %v67_v25, %v75_v29 }
   0xf   :  { %82 = vst [vmem:[%s143_s3] sm:$0xff] %v78_v32  ;;  %83 = vst [vmem:[%s143_s3 + $0x8] sm:$0xff] %v79_v33  ;;  %v80_v34 = vsel %vm72_vm2, %v68_v26, %v76_v30  ;;  %v81_v35 = vsel %vm73_vm3, %v69_v27, %v77_v31 }
  0x10   :  { %84 = vst [vmem:[%s143_s3 + $0x10] sm:$0xff] %v80_v34  ;;  %85 = vst [vmem:[%s143_s3 + $0x18] sm:$0xff] %v81_v35 }

// kernel: discriminator_forward.39
= control target key start
LH: loop header
LB: loop body
LE: loop exit
PB: predicated region body
PF: predicated region fallthrough
CT: control target
= control target key end

     0   :  { %s1309_s12 = smov 0   ;;  %s1311_s13 = smov 0   ;;  %s1573_s0 = inlined_call_operand.vmem [shape: bf16[8,2304], index: 0, kind: input, shape index: {}]   ;;  %s1574_s1 = inlined_call_operand.vmem [shape: bf16[2304,512], index: 1, kind: input, shape index: {}]   ;;  %s1575_s2 = inlined_call_operand.vmem [shape: f32[1,512], index: 2, kind: input, shape index: {}]   ;;  %s1576_s3 = inlined_call_operand.vmem [shape: f32[8,512], index: 3, kind: output, shape index: {}]  }
   0x1   :  { %s1313_s14 = smov 0   ;;  %s1315_s15 = smov 0  }
   0x2   :  { %s1317_s16 = smov 0   ;;  %s1319_s17 = smov 0  }
   0x3   :  { %s1321_s18 = smov 0  }
   0x4 LB: > { %s25_s19 = sadd.s32 1, %s1277_s16  ;;  %s28_s20 = sadd.s32 1, %s1281_s17  ;;  %s1285_s18 = sphi %s1321_s18, %s13_s18   ;;  %s1281_s17 = sphi %s1319_s17, %s1582_s17   ;;  %s1277_s16 = sphi %s1317_s16, %s1581_s16   ;;  %s1273_s15 = sphi %s1315_s15, %s1580_s15   ;;  %s1269_s14 = sphi %s1313_s14, %s1579_s14   ;;  %s1265_s13 = sphi %s1311_s13, %s1578_s13   ;;  %s1261_s12 = sphi %s1309_s12, %s1577_s12  }
   0x5   : > { %p26_p0 = scmp.ge.s32.totalorder %s25_s19, 6  ;;  %p76_p1 = scmp.ne.s32.totalorder %s1265_s13, %s1261_s12 }
   0x6   : > { %p77_p2 = scmp.eq.s32.totalorder %s1285_s18, 0  ;;  %s69_s24 = sadd.s32 1, %s1265_s13 }
   0x7   : > { %s1584_s19 = smov (%p26_p0, %s25_s19), 0  ;;  %s1586_s20 = smov (!%p26_p0, %s28_s20), %s1281_s17 }
   0x8   : > { %p78_p3 = por %p77_p2, %p76_p1  ;;  %p30_p4 = scmp.ge.s32.totalorder %s1586_s20, 2 }
   0x9   : > { %s64_s21 = ssub.s32 %s1277_s16, %s1584_s19  ;;  %p1031_p6 = scmp.ge.s32.totalorder %s1285_s18, 12 }
   0xa   : > { %s1588_s20 = smov (%p30_p4, %s1586_s20), 0 }
   0xb   : > { %s65_s22 = ssub.s32 %s1281_s17, %s1588_s20  ;;  %156 = sbr.rel (%p1031_p6) target bundleno = 48 (0x30), region = 16 }
   0xc   : > { %s66_s23 = sor.u32 %s65_s22, %s64_s21 }
   0xd   : > { %p67_p5 = scmp.eq.s32.totalorder %s66_s23, 0 }
   0xf   : > { %s1360_s25 = scalar_select %p67_p5, %s1265_s13, %s69_s24  }
  0x10   : > { %172 = sbr.rel (!%p78_p3) target bundleno = 48 (0x30), region = 24  ;;  %s174_s26 = sand.u32 (%p78_p3), 1, %s1265_s13  }
  0x11   : > { %s1096_s27 = smul.u32 (%p78_p3), 384, %s174_s26  ;;  %s1032_s28 = sshll.u32 (%p78_p3), %s1281_s17, 1 }
  0x12   : > { %s1095_s29 = smul.u32 (%p78_p3), 192, %s1277_s16 }
  0x13   : > { %s1374_s8 = scalar_lea.vmem (%p78_p3), [#allocation3], %s1096_s27 }
  0x14   : > { %s180_s30 = sadd.s32 (%p78_p3), %s1095_s29, %s1032_s28 }
  0x15   : > { %s1034_s4 = sshll.u32 %s180_s30, 2 }
  0x16   : > { %s1369_s7 = scalar_lea.vmem %s1574_s1, %s1034_s4 }
  0x17   : > { %v305_v0 = vld [vmem:[%s1369_s7] sm:$0xff]  ;;  %v307_v1 = vld [vmem:[%s1369_s7 + $0x10] sm:$0xff] }
  0x18   : > { %v309_v2 = vld [vmem:[%s1369_s7 + $0x20] sm:$0xff]  ;;  %306 = vst [vmem:[%s1374_s8] sm:$0xff] %v305_v0  ;;  %308 = vst [vmem:[%s1374_s8 + $0x8] sm:$0xff] %v307_v1  ;;  %v311_v3 = vld [vmem:[%s1369_s7 + $0x30] sm:$0xff] }
  0x19   : > { %310 = vst [vmem:[%s1374_s8 + $0x10] sm:$0xff] %v309_v2  ;;  %v313_v4 = vld [vmem:[%s1369_s7 + $0x40] sm:$0xff]  ;;  %v315_v5 = vld [vmem:[%s1369_s7 + $0x50] sm:$0xff]  ;;  %312 = vst [vmem:[%s1374_s8 + $0x18] sm:$0xff] %v311_v3 }
  0x1a   : > { %314 = vst [vmem:[%s1374_s8 + $0x20] sm:$0xff] %v313_v4  ;;  %316 = vst [vmem:[%s1374_s8 + $0x28] sm:$0xff] %v315_v5  ;;  %v317_v6 = vld [vmem:[%s1369_s7 + $0x60] sm:$0xff]  ;;  %v319_v7 = vld [vmem:[%s1369_s7 + $0x70] sm:$0xff] }
  0x1b   : > { %v321_v8 = vld [vmem:[%s1369_s7 + $0x80] sm:$0xff]  ;;  %318 = vst [vmem:[%s1374_s8 + $0x30] sm:$0xff] %v317_v6  ;;  %320 = vst [vmem:[%s1374_s8 + $0x38] sm:$0xff] %v319_v7  ;;  %v323_v9 = vld [vmem:[%s1369_s7 + $0x90] sm:$0xff] }
  0x1c   : > { %322 = vst [vmem:[%s1374_s8 + $0x40] sm:$0xff] %v321_v8  ;;  %v325_v10 = vld [vmem:[%s1369_s7 + $0xa0] sm:$0xff]  ;;  %v327_v11 = vld [vmem:[%s1369_s7 + $0xb0] sm:$0xff]  ;;  %324 = vst [vmem:[%s1374_s8 + $0x48] sm:$0xff] %v323_v9 }
  0x1d   : > { %326 = vst [vmem:[%s1374_s8 + $0x50] sm:$0xff] %v325_v10  ;;  %328 = vst [vmem:[%s1374_s8 + $0x58] sm:$0xff] %v327_v11  ;;  %v329_v12 = vld [vmem:[%s1369_s7 + $0xc0] sm:$0xff]  ;;  %v331_v13 = vld [vmem:[%s1369_s7 + $0xd0] sm:$0xff] }
  0x1e   : > { %v333_v14 = vld [vmem:[%s1369_s7 + $0xe0] sm:$0xff]  ;;  %330 = vst [vmem:[%s1374_s8 + $0x60] sm:$0xff] %v329_v12  ;;  %332 = vst [vmem:[%s1374_s8 + $0x68] sm:$0xff] %v331_v13  ;;  %v335_v15 = vld [vmem:[%s1369_s7 + $0xf0] sm:$0xff] }
  0x1f   : > { %334 = vst [vmem:[%s1374_s8 + $0x70] sm:$0xff] %v333_v14  ;;  %v337_v16 = vld [vmem:[%s1369_s7 + $0x100] sm:$0xff]  ;;  %v339_v17 = vld [vmem:[%s1369_s7 + $0x110] sm:$0xff]  ;;  %336 = vst [vmem:[%s1374_s8 + $0x78] sm:$0xff] %v335_v15 }
  0x20   : > { %338 = vst [vmem:[%s1374_s8 + $0x80] sm:$0xff] %v337_v16  ;;  %340 = vst [vmem:[%s1374_s8 + $0x88] sm:$0xff] %v339_v17  ;;  %v341_v18 = vld [vmem:[%s1369_s7 + $0x120] sm:$0xff]  ;;  %v343_v19 = vld [vmem:[%s1369_s7 + $0x130] sm:$0xff] }
  0x21   : > { %v345_v20 = vld [vmem:[%s1369_s7 + $0x140] sm:$0xff]  ;;  %342 = vst [vmem:[%s1374_s8 + $0x90] sm:$0xff] %v341_v18  ;;  %344 = vst [vmem:[%s1374_s8 + $0x98] sm:$0xff] %v343_v19  ;;  %v347_v21 = vld [vmem:[%s1369_s7 + $0x150] sm:$0xff] }
  0x22   : > { %346 = vst [vmem:[%s1374_s8 + $0xa0] sm:$0xff] %v345_v20  ;;  %v349_v22 = vld [vmem:[%s1369_s7 + $0x160] sm:$0xff]  ;;  %v351_v23 = vld [vmem:[%s1369_s7 + $0x170] sm:$0xff]  ;;  %348 = vst [vmem:[%s1374_s8 + $0xa8] sm:$0xff] %v347_v21 }
  0x23   : > { %350 = vst [vmem:[%s1374_s8 + $0xb0] sm:$0xff] %v349_v22  ;;  %352 = vst [vmem:[%s1374_s8 + $0xb8] sm:$0xff] %v351_v23  ;;  %v353_v24 = vld [vmem:[%s1369_s7 + $0x180] sm:$0xff]  ;;  %v355_v25 = vld [vmem:[%s1369_s7 + $0x190] sm:$0xff] }
  0x24   : > { %v357_v26 = vld [vmem:[%s1369_s7 + $0x1a0] sm:$0xff]  ;;  %354 = vst [vmem:[%s1374_s8 + $0xc0] sm:$0xff] %v353_v24  ;;  %356 = vst [vmem:[%s1374_s8 + $0xc8] sm:$0xff] %v355_v25  ;;  %v359_v27 = vld [vmem:[%s1369_s7 + $0x1b0] sm:$0xff] }
  0x25   : > { %358 = vst [vmem:[%s1374_s8 + $0xd0] sm:$0xff] %v357_v26  ;;  %v361_v28 = vld [vmem:[%s1369_s7 + $0x1c0] sm:$0xff]  ;;  %v363_v29 = vld [vmem:[%s1369_s7 + $0x1d0] sm:$0xff]  ;;  %360 = vst [vmem:[%s1374_s8 + $0xd8] sm:$0xff] %v359_v27 }
  0x26   : > { %362 = vst [vmem:[%s1374_s8 + $0xe0] sm:$0xff] %v361_v28  ;;  %364 = vst [vmem:[%s1374_s8 + $0xe8] sm:$0xff] %v363_v29  ;;  %v365_v30 = vld [vmem:[%s1369_s7 + $0x1e0] sm:$0xff]  ;;  %v367_v31 = vld [vmem:[%s1369_s7 + $0x1f0] sm:$0xff] }
  0x27   : > { %v369_v32 = vld [vmem:[%s1369_s7 + $0x200] sm:$0xff]  ;;  %366 = vst [vmem:[%s1374_s8 + $0xf0] sm:$0xff] %v365_v30  ;;  %368 = vst [vmem:[%s1374_s8 + $0xf8] sm:$0xff] %v367_v31  ;;  %v371_v33 = vld [vmem:[%s1369_s7 + $0x210] sm:$0xff] }
  0x28   : > { %370 = vst [vmem:[%s1374_s8 + $0x100] sm:$0xff] %v369_v32  ;;  %v373_v34 = vld [vmem:[%s1369_s7 + $0x220] sm:$0xff]  ;;  %v375_v35 = vld [vmem:[%s1369_s7 + $0x230] sm:$0xff]  ;;  %372 = vst [vmem:[%s1374_s8 + $0x108] sm:$0xff] %v371_v33 }
  0x29   : > { %374 = vst [vmem:[%s1374_s8 + $0x110] sm:$0xff] %v373_v34  ;;  %376 = vst [vmem:[%s1374_s8 + $0x118] sm:$0xff] %v375_v35  ;;  %v377_v36 = vld [vmem:[%s1369_s7 + $0x240] sm:$0xff]  ;;  %v379_v37 = vld [vmem:[%s1369_s7 + $0x250] sm:$0xff] }
  0x2a   : > { %v381_v38 = vld [vmem:[%s1369_s7 + $0x260] sm:$0xff]  ;;  %378 = vst [vmem:[%s1374_s8 + $0x120] sm:$0xff] %v377_v36  ;;  %380 = vst [vmem:[%s1374_s8 + $0x128] sm:$0xff] %v379_v37  ;;  %v383_v39 = vld [vmem:[%s1369_s7 + $0x270] sm:$0xff] }
  0x2b   : > { %382 = vst [vmem:[%s1374_s8 + $0x130] sm:$0xff] %v381_v38  ;;  %v385_v40 = vld [vmem:[%s1369_s7 + $0x280] sm:$0xff]  ;;  %v387_v41 = vld [vmem:[%s1369_s7 + $0x290] sm:$0xff]  ;;  %384 = vst [vmem:[%s1374_s8 + $0x138] sm:$0xff] %v383_v39 }
  0x2c   : > { %386 = vst [vmem:[%s1374_s8 + $0x140] sm:$0xff] %v385_v40  ;;  %388 = vst [vmem:[%s1374_s8 + $0x148] sm:$0xff] %v387_v41  ;;  %v389_v42 = vld [vmem:[%s1369_s7 + $0x2a0] sm:$0xff]  ;;  %v391_v43 = vld [vmem:[%s1369_s7 + $0x2b0] sm:$0xff] }
  0x2d   : > { %v393_v44 = vld [vmem:[%s1369_s7 + $0x2c0] sm:$0xff]  ;;  %390 = vst [vmem:[%s1374_s8 + $0x150] sm:$0xff] %v389_v42  ;;  %392 = vst [vmem:[%s1374_s8 + $0x158] sm:$0xff] %v391_v43  ;;  %v395_v45 = vld [vmem:[%s1369_s7 + $0x2d0] sm:$0xff] }
  0x2e   : > { %394 = vst [vmem:[%s1374_s8 + $0x160] sm:$0xff] %v393_v44  ;;  %v397_v46 = vld [vmem:[%s1369_s7 + $0x2e0] sm:$0xff]  ;;  %v399_v47 = vld [vmem:[%s1369_s7 + $0x2f0] sm:$0xff]  ;;  %396 = vst [vmem:[%s1374_s8 + $0x168] sm:$0xff] %v395_v45 }
  0x2f   : > { %398 = vst [vmem:[%s1374_s8 + $0x170] sm:$0xff] %v397_v46  ;;  %400 = vst [vmem:[%s1374_s8 + $0x178] sm:$0xff] %v399_v47 }
  0x30 PF: > { %p1035_p7 = scmp.ge.s32.totalorder %s1285_s18, 1  ;;  %p413_p8 = scmp.lt.s32.totalorder %s1285_s18, 13 }
  0x32   : > { %p414_p9 = pnand %p1035_p7, %p413_p8 }
  0x33   : > { %s420_s9 = sand.u32 (!%p414_p9), 1, %s1261_s12   ;;  %s460_s10 = smul.u32 (!%p414_p9), 3, %s1269_s14 }
  0x34   : > { %417 = sbr.rel (%p414_p9) target bundleno = 343 (0x157), region = 66  ;;  %s1037_s21 = sshll.u32 (!%p414_p9), %s1273_s15, 1 }
  0x35   : > { %s1097_s11 = smul.u32 (!%p414_p9), 384, %s420_s9  ;;  %p463_p10 = scmp.lt.s32.totalorder (!%p414_p9), %s460_s10, 17 }
  0x36   : > { %p473_p11 = scmp.lt.s32.totalorder (!%p414_p9), %s1037_s21, 3  ;;  %p1040_p12 = scmp.ne.s32.totalorder (!%p414_p9), %s1269_s14, 0 }
  0x37   : > { %s1491_s5 = scalar_lea.vmem (!%p414_p9), [#allocation3], %s1097_s11 }
  0x39   : > { %s1590_s10 = smov (!%p463_p10, %s460_s10), 17  ;;  %s1592_s21 = smov (!%p473_p11, %s1037_s21), 3 }
  0x3a   : > { %s1036_s22 = sshll.u32 %s1590_s10, 2  ;;  %s475_s12 = scalar_lea.vmem %s1575_s2, %s1592_s21 }
  0x3b   : > { %s1479_s26 = scalar_lea.vmem %s1573_s0, %s1036_s22  ;;  %s1039_s29 = sshll.u32 %s1592_s21, 3 }
  0x3c   : > { %s1489_s4 = scalar_lea.vmem %s1576_s3, %s1039_s29  ;;  %491 = sbr.rel (%p1040_p12) target bundleno = 67 (0x43), region = 74 }
  0x41   : > { %v1287_v48 = vmov 0.0  }
  0x42   : > { %492 = vst [vmem:[#allocation2] sm:$0xff] %v1287_v48  ;;  %493 = vst [vmem:[#allocation2 + $0x8] sm:$0xff] %v1287_v48 }
  0x43 PF: > { %v1156_v49 = vld [vmem:[%s1491_s5 + $0x74] ss:$8 sps:$4 sm:$0xff]   ;;  %v1158_v50 = vld [vmem:[%s1491_s5 + $0x70] ss:$8 sps:$4 sm:$0xff]   ;;  %v1288_v51 = vmov 0   ;;  %p1092_p13 = scmp.ne.s32.totalorder %s1269_s14, 5 }
  0x44   : > { %870 = vmatprep.mubr.bf16.mxu1 %v1288_v51  ;;  %797 = vmatprep.subr.bf16.mxu0 %v1156_v49  ;;  %v1159_v52 = vld [vmem:[%s1491_s5 + $0x64] ss:$8 sps:$4 sm:$0xff]   ;;  %v1161_v53 = vld [vmem:[%s1491_s5 + $0x60] ss:$8 sps:$4 sm:$0xff]   ;;  %v1162_v54 = vld [vmem:[%s1491_s5 + $0x54] ss:$8 sps:$4 sm:$0xff]  }
  0x45   : > { %798 = vmatpush1.bf16.msra.mxu0 %v1158_v50  ;;  %v1164_v55 = vld [vmem:[%s1491_s5 + $0x50] ss:$8 sps:$4 sm:$0xff]   ;;  %v1165_v56 = vld [vmem:[%s1491_s5 + $0x44] ss:$8 sps:$4 sm:$0xff]   ;;  %v1177_v57 = vld [vmem:[%s1491_s5 + $0x174] ss:$8 sps:$4 sm:$0xff]  }
  0x46   : > { %799 = vmatprep.subr.bf16.mxu0 %v1159_v52  ;;  %v1179_v58 = vld [vmem:[%s1491_s5 + $0x170] ss:$8 sps:$4 sm:$0xff]   ;;  %v1167_v59 = vld [vmem:[%s1491_s5 + $0x40] ss:$8 sps:$4 sm:$0xff]   ;;  %v1168_v60 = vld [vmem:[%s1491_s5 + $0x34] ss:$8 sps:$4 sm:$0xff]   ;;  %838 = vmatprep.subr.bf16.mxu1 %v1177_v57 }
  0x47   : > { %v1183_v61 = vld [vmem:[%s1491_s5 + $0x164] ss:$8 sps:$4 sm:$0xff]   ;;  %839 = vmatpush1.bf16.msra.mxu1 %v1179_v58  ;;  %v1185_v62 = vld [vmem:[%s1491_s5 + $0x160] ss:$8 sps:$4 sm:$0xff]   ;;  %v1170_v63 = vld [vmem:[%s1491_s5 + $0x30] ss:$8 sps:$4 sm:$0xff]  }
  0x48   : > { %840 = vmatprep.subr.bf16.mxu1 %v1183_v61  ;;  %v1189_v0 = vld [vmem:[%s1491_s5 + $0x154] ss:$8 sps:$4 sm:$0xff]   ;;  %v1171_v1 = vld [vmem:[%s1491_s5 + $0x24] ss:$8 sps:$4 sm:$0xff]   ;;  %v1191_v2 = vld [vmem:[%s1491_s5 + $0x150] ss:$8 sps:$4 sm:$0xff]  }
  0x49   : > { %800 = vmatpush1.bf16.msra.mxu0 %v1161_v53  ;;  %v1195_v3 = vld [vmem:[%s1491_s5 + $0x144] ss:$8 sps:$4 sm:$0xff]   ;;  %v1173_v4 = vld [vmem:[%s1491_s5 + $0x20] ss:$8 sps:$4 sm:$0xff]   ;;  %v1174_v5 = vld [vmem:[%s1491_s5 + $0x14] ss:$8 sps:$4 sm:$0xff]  }
  0x4a   : > { %801 = vmatprep.subr.bf16.mxu0 %v1162_v54  ;;  %v1197_v6 = vld [vmem:[%s1491_s5 + $0x140] ss:$8 sps:$4 sm:$0xff]   ;;  %v1201_v7 = vld [vmem:[%s1491_s5 + $0x134] ss:$8 sps:$4 sm:$0xff]   ;;  %v1176_v8 = vld [vmem:[%s1491_s5 + $0x10] ss:$8 sps:$4 sm:$0xff]  }
  0x4b   : > { %841 = vmatpush1.bf16.msra.mxu1 %v1185_v62  ;;  %v1180_v9 = vld [vmem:[%s1491_s5 + $0x4] ss:$8 sps:$4 sm:$0xff]   ;;  %v1203_v10 = vld [vmem:[%s1491_s5 + $0x130] ss:$8 sps:$4 sm:$0xff]   ;;  %v1182_v12 = vld [vmem:[%s1491_s5] ss:$8 sps:$4 sm:$0xff]  }
  0x4c   : > { %842 = vmatprep.subr.bf16.mxu1 %v1189_v0  ;;  %v1207_v11 = vld [vmem:[%s1491_s5 + $0x124] ss:$8 sps:$4 sm:$0xff]   ;;  %v1186_v13 = vld [vmem:[%s1491_s5 + $0xf4] ss:$8 sps:$4 sm:$0xff]   ;;  %v1209_v14 = vld [vmem:[%s1491_s5 + $0x120] ss:$8 sps:$4 sm:$0xff]  }
  0x4d   : > { %802 = vmatpush1.bf16.msra.mxu0 %v1164_v55  ;;  %v1213_v15 = vld [vmem:[%s1491_s5 + $0x114] ss:$8 sps:$4 sm:$0xff]   ;;  %v1188_v16 = vld [vmem:[%s1491_s5 + $0xf0] ss:$8 sps:$4 sm:$0xff]   ;;  %v1192_v17 = vld [vmem:[%s1491_s5 + $0xe4] ss:$8 sps:$4 sm:$0xff]  }
  0x4e   : > { %803 = vmatprep.subr.bf16.mxu0 %v1165_v56  ;;  %v496_v18 = vld [vmem:[%s1479_s26] sm:$0xff]  ;;  %v1219_v21 = vld [vmem:[%s1491_s5 + $0x104] ss:$8 sps:$4 sm:$0xff]   ;;  %v1194_v22 = vld [vmem:[%s1491_s5 + $0xe0] ss:$8 sps:$4 sm:$0xff]  }
  0x4f   : > { %843 = vmatpush1.bf16.msra.mxu1 %v1191_v2  ;;  %v1215_v19 = vld [vmem:[%s1491_s5 + $0x110] ss:$8 sps:$4 sm:$0xff]   ;;  %v1042_v20 = vcombine.high %v496_v18, %v496_v18  ;;  %v1198_v23 = vld [vmem:[%s1491_s5 + $0xd4] ss:$8 sps:$4 sm:$0xff]   ;;  %v1221_v24 = vld [vmem:[%s1491_s5 + $0x100] ss:$8 sps:$4 sm:$0xff]   ;;  %v1041_v37 = vcombine.low %v496_v18, %v496_v18 }
  0x50   : > { %844 = vmatprep.subr.bf16.mxu1 %v1195_v3  ;;  %v1200_v25 = vld [vmem:[%s1491_s5 + $0xd0] ss:$8 sps:$4 sm:$0xff]   ;;  %v1204_v26 = vld [vmem:[%s1491_s5 + $0xc4] ss:$8 sps:$4 sm:$0xff]   ;;  %v1206_v28 = vld [vmem:[%s1491_s5 + $0xc0] ss:$8 sps:$4 sm:$0xff]  }
  0x51   : > { %804 = vmatpush1.bf16.msra.mxu0 %v1167_v59  ;;  %829 = vmatprep.mubr.bf16.mxu0 %v1042_v20  ;;  %v1225_v27 = vld [vmem:[%s1479_s26 + $0x8] ss:$0 sps:$4 sm:$0xff]   ;;  %v1210_v29 = vld [vmem:[%s1491_s5 + $0xb4] ss:$8 sps:$4 sm:$0xff]   ;;  %v1216_v31 = vld [vmem:[%s1491_s5 + $0xa4] ss:$8 sps:$4 sm:$0xff]  }
  0x52   : > { %805 = vmatprep.subr.bf16.mxu0 %v1168_v60  ;;  %v1212_v30 = vld [vmem:[%s1491_s5 + $0xb0] ss:$8 sps:$4 sm:$0xff]   ;;  %v1218_v32 = vld [vmem:[%s1491_s5 + $0xa0] ss:$8 sps:$4 sm:$0xff]   ;;  %v1222_v33 = vld [vmem:[%s1491_s5 + $0x94] ss:$8 sps:$4 sm:$0xff]  }
  0x53   : > { %845 = vmatpush1.bf16.msra.mxu1 %v1197_v6  ;;  %v1224_v34 = vld [vmem:[%s1491_s5 + $0x90] ss:$8 sps:$4 sm:$0xff]   ;;  %v1226_v35 = vld [vmem:[%s1491_s5 + $0x84] ss:$8 sps:$4 sm:$0xff]   ;;  %v1228_v36 = vld [vmem:[%s1491_s5 + $0x80] ss:$8 sps:$4 sm:$0xff]  }
  0x54   : > { %846 = vmatprep.subr.bf16.mxu1 %v1201_v7  ;;  %v494_v42 = vld [vmem:[#allocation2] sm:$0xff]  ;;  %v495_v45 = vld [vmem:[#allocation2 + $0x8] sm:$0xff] }
  0x55   : > { %806 = vmatpush1.bf16.msra.mxu0 %v1170_v63 }
  0x56   : > { %807 = vmatprep.subr.bf16.mxu0 %v1171_v1 }
  0x57   : > { %847 = vmatpush1.bf16.msra.mxu1 %v1203_v10 }
  0x58   : > { %848 = vmatprep.subr.bf16.mxu1 %v1207_v11 }
  0x59   : > { %808 = vmatpush1.bf16.msra.mxu0 %v1173_v4 }
  0x5a   : > { %809 = vmatprep.subr.bf16.mxu0 %v1174_v5 }
  0x5b   : > { %849 = vmatpush1.bf16.msra.mxu1 %v1209_v14 }
  0x5c   : > { %850 = vmatprep.subr.bf16.mxu1 %v1213_v15 }
  0x5d   : > { %810 = vmatpush1.bf16.msra.mxu0 %v1176_v8 }
  0x5e   : > { %811 = vmatprep.subr.bf16.mxu0 %v1180_v9 }
  0x5f   : > { %851 = vmatpush1.bf16.msra.mxu1 %v1215_v19 }
  0x60   : > { %852 = vmatprep.subr.bf16.mxu1 %v1219_v21 }
  0x61   : > { %812 = vmatpush1.bf16.msra.mxu0 %v1182_v12 }
  0x62   : > { %813 = vmatprep.subr.bf16.mxu0 %v1186_v13 }
  0x63   : > { %853 = vmatpush1.bf16.msra.mxu1 %v1221_v24 }
  0x65   : > { %814 = vmatpush2.bf16.msra.mxu0 %v1188_v16 }
  0x66   : > { %815 = vmatprep.subr.bf16.mxu0 %v1192_v17  ;;  %871 = vmatmul.mubr.bf16.vlgmr.msra.gmra.mxu1 %v1225_v27 }
  0x69   : > { %816 = vmatpush2.bf16.msra.mxu0 %v1194_v22 }
  0x6a   : > { %817 = vmatprep.subr.bf16.mxu0 %v1198_v23 }
  0x6d   : > { %818 = vmatpush2.bf16.msra.mxu0 %v1200_v25 }
  0x6e   : > { %819 = vmatprep.subr.bf16.mxu0 %v1204_v26 }
  0x71   : > { %820 = vmatpush2.bf16.msra.mxu0 %v1206_v28 }
  0x72   : > { %821 = vmatprep.subr.bf16.mxu0 %v1210_v29 }
  0x75   : > { %822 = vmatpush2.bf16.msra.mxu0 %v1212_v30 }
  0x76   : > { %823 = vmatprep.subr.bf16.mxu0 %v1216_v31 }
  0x79   : > { %824 = vmatpush2.bf16.msra.mxu0 %v1218_v32 }
  0x7a   : > { %825 = vmatprep.subr.bf16.mxu0 %v1222_v33 }
  0x7d   : > { %826 = vmatpush2.bf16.msra.mxu0 %v1224_v34 }
  0x7e   : > { %827 = vmatprep.subr.bf16.mxu0 %v1226_v35 }
  0x81   : > { %828 = vmatpush2.bf16.msra.mxu0 %v1228_v36 }
  0x84   : > { %830 = vmatmul.mubr.bf16.vlgmr.msra.gmra.mxu0 %v1041_v37 }
 0x126   : > { %v872_v38 = vpop.f32.mrf.mxu1 }
 0x128   : > { %v874_v39 = vpop.f32.mrf.mxu1 }
 0x12a   : > { %v876_v40 = vpop.f32.mrf.mxu1 }
 0x12c   : > { %v877_v41 = vpop.f32.mrf.mxu1 }
 0x144   : > { %v831_v43 = vpop.f32.mrf.mxu0 }
 0x145   : > { %v873_v44 = vadd.f32 %v872_v38, %v831_v43 }
 0x146   : > { %v833_v46 = vpop.f32.mrf.mxu0 }
 0x147   : > { %v879_v47 = vadd.f32 %v873_v44, %v494_v42  ;;  %v875_v48 = vadd.f32 %v874_v39, %v833_v46  ;;  %886 = sbr.rel (%p1092_p13) target bundleno = 343 (0x157), region = 78 }
 0x148   : > { %v835_v49 = vpop.f32.mrf.mxu0 }
 0x149   : > { %881 = vst [vmem:[#allocation2] sm:$0xff] %v879_v47  ;;  %v880_v50 = vadd.f32 %v875_v48, %v495_v45 }
 0x14a   : > { %v836_v51 = vpop.f32.mrf.mxu0 }
 0x14b   : > { %882 = vst [vmem:[#allocation2 + $0x8] sm:$0xff] %v880_v50 }
 0x14c   : > { %v891_v52 = vlaneseq  ;;  %v889_v54 = vld [vmem:[%s475_s12] sm:$0x3] }
 0x14e   : > { %v892_v53 = vshrl.u32 %v891_v52, 7 }
 0x150   : > { %v893_v55 = vsub.s32 0, %v892_v53  ;;  %v897_v56 = vsub.s32 1, %v892_v53  ;;  %v887_v57 = vld [vmem:[#allocation2] sm:$0xff] }
 0x152   : > { %v888_v58 = vld [vmem:[#allocation2 + $0x8] sm:$0xff]  ;;  %v894_v59 = vrot.slane %v889_v54, %v893_v55  ;;  %v898_v60 = vrot.slane %v889_v54, %v897_v56 }
 0x154   : > { %v901_v61 = vadd.f32 %v894_v59, %v887_v57  ;;  %v902_v62 = vadd.f32 %v898_v60, %v888_v58 }
 0x156   : > { %903 = vst [vmem:[%s1489_s4] sm:$0xff] %v901_v61  ;;  %904 = vst [vmem:[%s1489_s4 + $0x8] sm:$0xff] %v902_v62 }
 0x157 PF: > { %s13_s18 = sadd.s32 1, %s1285_s18   ;;  %s1577_s12 = smov %s1265_s13 }
 0x158   : > { %p10_p0 = scmp.ge.s32.totalorder %s13_s18, 14   ;;  %s1578_s13 = smov %s1360_s25 }
 0x159   : > { %s1579_s14 = smov %s1277_s16  ;;  %s1580_s15 = smov %s1281_s17 }
 0x15a   : > { %s1581_s16 = smov %s1584_s19  ;;  %s1582_s17 = smov %s1588_s20 }
 0x15b   :  { %12 = sbr.rel (!%p10_p0) target bundleno = 4 (0x4), region = 119 }

// kernel: discriminator_forward.42
= control target key start
LH: loop header
LB: loop body
LE: loop exit
PB: predicated region body
PF: predicated region fallthrough
CT: control target
= control target key end

     0   :  { %s1513_s12 = smov 0   ;;  %s1515_s13 = smov 0   ;;  %s1825_s0 = inlined_call_operand.vmem [shape: bf16[8,4608], index: 0, kind: input, shape index: {}]   ;;  %s1826_s1 = inlined_call_operand.vmem [shape: bf16[4608,512], index: 1, kind: input, shape index: {}]   ;;  %s1827_s2 = inlined_call_operand.vmem [shape: f32[1,512], index: 2, kind: input, shape index: {}]   ;;  %s1828_s3 = inlined_call_operand.vmem [shape: f32[8,512], index: 3, kind: output, shape index: {}]  }
   0x1   :  { %s1517_s14 = smov 0   ;;  %s1519_s15 = smov 0  }
   0x2   :  { %s1521_s16 = smov 0   ;;  %s1523_s17 = smov 0  }
   0x3   :  { %s1525_s18 = smov 0  }
   0x4 LB: > { %s25_s19 = sadd.s32 1, %s1482_s16  ;;  %s28_s20 = sadd.s32 1, %s1486_s17  ;;  %s1490_s18 = sphi %s1525_s18, %s13_s18   ;;  %s1486_s17 = sphi %s1523_s17, %s1834_s17   ;;  %s1482_s16 = sphi %s1521_s16, %s1833_s16   ;;  %s1478_s15 = sphi %s1519_s15, %s1832_s15   ;;  %s1474_s14 = sphi %s1517_s14, %s1831_s14   ;;  %s1470_s13 = sphi %s1515_s13, %s1830_s13   ;;  %s1466_s12 = sphi %s1513_s12, %s1829_s12  }
   0x5   : > { %p26_p0 = scmp.ge.s32.totalorder %s25_s19, 9  ;;  %p76_p1 = scmp.ne.s32.totalorder %s1470_s13, %s1466_s12 }
   0x6   : > { %p77_p2 = scmp.eq.s32.totalorder %s1490_s18, 0  ;;  %s69_s24 = sadd.s32 1, %s1470_s13 }
   0x7   : > { %s1836_s19 = smov (%p26_p0, %s25_s19), 0  ;;  %s1838_s20 = smov (!%p26_p0, %s28_s20), %s1486_s17 }
   0x8   : > { %p78_p3 = por %p77_p2, %p76_p1  ;;  %p30_p4 = scmp.ge.s32.totalorder %s1838_s20, 2 }
   0x9   : > { %s64_s21 = ssub.s32 %s1482_s16, %s1836_s19  ;;  %p1193_p6 = scmp.ge.s32.totalorder %s1490_s18, 18 }
   0xa   : > { %s1840_s20 = smov (%p30_p4, %s1838_s20), 0 }
   0xb   : > { %s65_s22 = ssub.s32 %s1486_s17, %s1840_s20  ;;  %156 = sbr.rel (%p1193_p6) target bundleno = 55 (0x37), region = 16 }
   0xc   : > { %s66_s23 = sor.u32 %s65_s22, %s64_s21 }
   0xd   : > { %p67_p5 = scmp.eq.s32.totalorder %s66_s23, 0 }
   0xf   : > { %s1564_s25 = scalar_select %p67_p5, %s1470_s13, %s69_s24  }
  0x10   : > { %172 = sbr.rel (!%p78_p3) target bundleno = 55 (0x37), region = 24  ;;  %s174_s26 = sand.u32 (%p78_p3), 1, %s1470_s13  }
  0x11   : > { %s1196_s27 = sshll.u32 (%p78_p3), %s1486_s17, 1  ;;  %s1194_s28 = sshll.u32 (%p78_p3), %s174_s26, 9 }
  0x12   : > { %s1278_s29 = sshll.u32 (%p78_p3), %s1482_s16, 8  ;;  %s1578_s8 = scalar_lea.vmem (%p78_p3), [#allocation3], %s1194_s28 }
  0x13   : > { %s180_s30 = sadd.s32 (%p78_p3), %s1278_s29, %s1196_s27 }
  0x14   : > { %s1198_s4 = sshll.u32 (%p78_p3), %s180_s30, 2 }
  0x15   : > { %s1573_s7 = scalar_lea.vmem %s1826_s1, %s1198_s4 }
  0x16   : > { %v337_v0 = vld [vmem:[%s1573_s7] sm:$0xff]  ;;  %v339_v1 = vld [vmem:[%s1573_s7 + $0x10] sm:$0xff] }
  0x17   : > { %v341_v2 = vld [vmem:[%s1573_s7 + $0x20] sm:$0xff]  ;;  %338 = vst [vmem:[%s1578_s8] sm:$0xff] %v337_v0  ;;  %340 = vst [vmem:[%s1578_s8 + $0x8] sm:$0xff] %v339_v1  ;;  %v343_v3 = vld [vmem:[%s1573_s7 + $0x30] sm:$0xff] }
  0x18   : > { %342 = vst [vmem:[%s1578_s8 + $0x10] sm:$0xff] %v341_v2  ;;  %v345_v4 = vld [vmem:[%s1573_s7 + $0x40] sm:$0xff]  ;;  %v347_v5 = vld [vmem:[%s1573_s7 + $0x50] sm:$0xff]  ;;  %344 = vst [vmem:[%s1578_s8 + $0x18] sm:$0xff] %v343_v3 }
  0x19   : > { %346 = vst [vmem:[%s1578_s8 + $0x20] sm:$0xff] %v345_v4  ;;  %348 = vst [vmem:[%s1578_s8 + $0x28] sm:$0xff] %v347_v5  ;;  %v349_v6 = vld [vmem:[%s1573_s7 + $0x60] sm:$0xff]  ;;  %v351_v7 = vld [vmem:[%s1573_s7 + $0x70] sm:$0xff] }
  0x1a   : > { %v353_v8 = vld [vmem:[%s1573_s7 + $0x80] sm:$0xff]  ;;  %350 = vst [vmem:[%s1578_s8 + $0x30] sm:$0xff] %v349_v6  ;;  %352 = vst [vmem:[%s1578_s8 + $0x38] sm:$0xff] %v351_v7  ;;  %v355_v9 = vld [vmem:[%s1573_s7 + $0x90] sm:$0xff] }
  0x1b   : > { %354 = vst [vmem:[%s1578_s8 + $0x40] sm:$0xff] %v353_v8  ;;  %v357_v10 = vld [vmem:[%s1573_s7 + $0xa0] sm:$0xff]  ;;  %v359_v11 = vld [vmem:[%s1573_s7 + $0xb0] sm:$0xff]  ;;  %356 = vst [vmem:[%s1578_s8 + $0x48] sm:$0xff] %v355_v9 }
  0x1c   : > { %358 = vst [vmem:[%s1578_s8 + $0x50] sm:$0xff] %v357_v10  ;;  %360 = vst [vmem:[%s1578_s8 + $0x58] sm:$0xff] %v359_v11  ;;  %v361_v12 = vld [vmem:[%s1573_s7 + $0xc0] sm:$0xff]  ;;  %v363_v13 = vld [vmem:[%s1573_s7 + $0xd0] sm:$0xff] }
  0x1d   : > { %v365_v14 = vld [vmem:[%s1573_s7 + $0xe0] sm:$0xff]  ;;  %362 = vst [vmem:[%s1578_s8 + $0x60] sm:$0xff] %v361_v12  ;;  %364 = vst [vmem:[%s1578_s8 + $0x68] sm:$0xff] %v363_v13  ;;  %v367_v15 = vld [vmem:[%s1573_s7 + $0xf0] sm:$0xff] }
  0x1e   : > { %366 = vst [vmem:[%s1578_s8 + $0x70] sm:$0xff] %v365_v14  ;;  %v369_v16 = vld [vmem:[%s1573_s7 + $0x100] sm:$0xff]  ;;  %v371_v17 = vld [vmem:[%s1573_s7 + $0x110] sm:$0xff]  ;;  %368 = vst [vmem:[%s1578_s8 + $0x78] sm:$0xff] %v367_v15 }
  0x1f   : > { %370 = vst [vmem:[%s1578_s8 + $0x80] sm:$0xff] %v369_v16  ;;  %372 = vst [vmem:[%s1578_s8 + $0x88] sm:$0xff] %v371_v17  ;;  %v373_v18 = vld [vmem:[%s1573_s7 + $0x120] sm:$0xff]  ;;  %v375_v19 = vld [vmem:[%s1573_s7 + $0x130] sm:$0xff] }
  0x20   : > { %v377_v20 = vld [vmem:[%s1573_s7 + $0x140] sm:$0xff]  ;;  %374 = vst [vmem:[%s1578_s8 + $0x90] sm:$0xff] %v373_v18  ;;  %376 = vst [vmem:[%s1578_s8 + $0x98] sm:$0xff] %v375_v19  ;;  %v379_v21 = vld [vmem:[%s1573_s7 + $0x150] sm:$0xff] }
  0x21   : > { %378 = vst [vmem:[%s1578_s8 + $0xa0] sm:$0xff] %v377_v20  ;;  %v381_v22 = vld [vmem:[%s1573_s7 + $0x160] sm:$0xff]  ;;  %v383_v23 = vld [vmem:[%s1573_s7 + $0x170] sm:$0xff]  ;;  %380 = vst [vmem:[%s1578_s8 + $0xa8] sm:$0xff] %v379_v21 }
  0x22   : > { %382 = vst [vmem:[%s1578_s8 + $0xb0] sm:$0xff] %v381_v22  ;;  %384 = vst [vmem:[%s1578_s8 + $0xb8] sm:$0xff] %v383_v23  ;;  %v385_v24 = vld [vmem:[%s1573_s7 + $0x180] sm:$0xff]  ;;  %v387_v25 = vld [vmem:[%s1573_s7 + $0x190] sm:$0xff] }
  0x23   : > { %v389_v26 = vld [vmem:[%s1573_s7 + $0x1a0] sm:$0xff]  ;;  %386 = vst [vmem:[%s1578_s8 + $0xc0] sm:$0xff] %v385_v24  ;;  %388 = vst [vmem:[%s1578_s8 + $0xc8] sm:$0xff] %v387_v25  ;;  %v391_v27 = vld [vmem:[%s1573_s7 + $0x1b0] sm:$0xff] }
  0x24   : > { %390 = vst [vmem:[%s1578_s8 + $0xd0] sm:$0xff] %v389_v26  ;;  %v393_v28 = vld [vmem:[%s1573_s7 + $0x1c0] sm:$0xff]  ;;  %v395_v29 = vld [vmem:[%s1573_s7 + $0x1d0] sm:$0xff]  ;;  %392 = vst [vmem:[%s1578_s8 + $0xd8] sm:$0xff] %v391_v27 }
  0x25   : > { %394 = vst [vmem:[%s1578_s8 + $0xe0] sm:$0xff] %v393_v28  ;;  %396 = vst [vmem:[%s1578_s8 + $0xe8] sm:$0xff] %v395_v29  ;;  %v397_v30 = vld [vmem:[%s1573_s7 + $0x1e0] sm:$0xff]  ;;  %v399_v31 = vld [vmem:[%s1573_s7 + $0x1f0] sm:$0xff] }
  0x26   : > { %v401_v32 = vld [vmem:[%s1573_s7 + $0x200] sm:$0xff]  ;;  %398 = vst [vmem:[%s1578_s8 + $0xf0] sm:$0xff] %v397_v30  ;;  %400 = vst [vmem:[%s1578_s8 + $0xf8] sm:$0xff] %v399_v31  ;;  %v403_v33 = vld [vmem:[%s1573_s7 + $0x210] sm:$0xff] }
  0x27   : > { %402 = vst [vmem:[%s1578_s8 + $0x100] sm:$0xff] %v401_v32  ;;  %v405_v34 = vld [vmem:[%s1573_s7 + $0x220] sm:$0xff]  ;;  %v407_v35 = vld [vmem:[%s1573_s7 + $0x230] sm:$0xff]  ;;  %404 = vst [vmem:[%s1578_s8 + $0x108] sm:$0xff] %v403_v33 }
  0x28   : > { %406 = vst [vmem:[%s1578_s8 + $0x110] sm:$0xff] %v405_v34  ;;  %408 = vst [vmem:[%s1578_s8 + $0x118] sm:$0xff] %v407_v35  ;;  %v409_v36 = vld [vmem:[%s1573_s7 + $0x240] sm:$0xff]  ;;  %v411_v37 = vld [vmem:[%s1573_s7 + $0x250] sm:$0xff] }
  0x29   : > { %v413_v38 = vld [vmem:[%s1573_s7 + $0x260] sm:$0xff]  ;;  %410 = vst [vmem:[%s1578_s8 + $0x120] sm:$0xff] %v409_v36  ;;  %412 = vst [vmem:[%s1578_s8 + $0x128] sm:$0xff] %v411_v37  ;;  %v415_v39 = vld [vmem:[%s1573_s7 + $0x270] sm:$0xff] }
  0x2a   : > { %414 = vst [vmem:[%s1578_s8 + $0x130] sm:$0xff] %v413_v38  ;;  %v417_v40 = vld [vmem:[%s1573_s7 + $0x280] sm:$0xff]  ;;  %v419_v41 = vld [vmem:[%s1573_s7 + $0x290] sm:$0xff]  ;;  %416 = vst [vmem:[%s1578_s8 + $0x138] sm:$0xff] %v415_v39 }
  0x2b   : > { %418 = vst [vmem:[%s1578_s8 + $0x140] sm:$0xff] %v417_v40  ;;  %420 = vst [vmem:[%s1578_s8 + $0x148] sm:$0xff] %v419_v41  ;;  %v421_v42 = vld [vmem:[%s1573_s7 + $0x2a0] sm:$0xff]  ;;  %v423_v43 = vld [vmem:[%s1573_s7 + $0x2b0] sm:$0xff] }
  0x2c   : > { %v425_v44 = vld [vmem:[%s1573_s7 + $0x2c0] sm:$0xff]  ;;  %422 = vst [vmem:[%s1578_s8 + $0x150] sm:$0xff] %v421_v42  ;;  %424 = vst [vmem:[%s1578_s8 + $0x158] sm:$0xff] %v423_v43  ;;  %v427_v45 = vld [vmem:[%s1573_s7 + $0x2d0] sm:$0xff] }
  0x2d   : > { %426 = vst [vmem:[%s1578_s8 + $0x160] sm:$0xff] %v425_v44  ;;  %v429_v46 = vld [vmem:[%s1573_s7 + $0x2e0] sm:$0xff]  ;;  %v431_v47 = vld [vmem:[%s1573_s7 + $0x2f0] sm:$0xff]  ;;  %428 = vst [vmem:[%s1578_s8 + $0x168] sm:$0xff] %v427_v45 }
  0x2e   : > { %430 = vst [vmem:[%s1578_s8 + $0x170] sm:$0xff] %v429_v46  ;;  %432 = vst [vmem:[%s1578_s8 + $0x178] sm:$0xff] %v431_v47  ;;  %v433_v48 = vld [vmem:[%s1573_s7 + $0x300] sm:$0xff]  ;;  %v435_v49 = vld [vmem:[%s1573_s7 + $0x310] sm:$0xff] }
  0x2f   : > { %v437_v50 = vld [vmem:[%s1573_s7 + $0x320] sm:$0xff]  ;;  %434 = vst [vmem:[%s1578_s8 + $0x180] sm:$0xff] %v433_v48  ;;  %436 = vst [vmem:[%s1578_s8 + $0x188] sm:$0xff] %v435_v49  ;;  %v439_v51 = vld [vmem:[%s1573_s7 + $0x330] sm:$0xff] }
  0x30   : > { %438 = vst [vmem:[%s1578_s8 + $0x190] sm:$0xff] %v437_v50  ;;  %v441_v52 = vld [vmem:[%s1573_s7 + $0x340] sm:$0xff]  ;;  %v443_v53 = vld [vmem:[%s1573_s7 + $0x350] sm:$0xff]  ;;  %440 = vst [vmem:[%s1578_s8 + $0x198] sm:$0xff] %v439_v51 }
  0x31   : > { %442 = vst [vmem:[%s1578_s8 + $0x1a0] sm:$0xff] %v441_v52  ;;  %444 = vst [vmem:[%s1578_s8 + $0x1a8] sm:$0xff] %v443_v53  ;;  %v445_v54 = vld [vmem:[%s1573_s7 + $0x360] sm:$0xff]  ;;  %v447_v55 = vld [vmem:[%s1573_s7 + $0x370] sm:$0xff] }
  0x32   : > { %v449_v56 = vld [vmem:[%s1573_s7 + $0x380] sm:$0xff]  ;;  %446 = vst [vmem:[%s1578_s8 + $0x1b0] sm:$0xff] %v445_v54  ;;  %448 = vst [vmem:[%s1578_s8 + $0x1b8] sm:$0xff] %v447_v55  ;;  %v451_v57 = vld [vmem:[%s1573_s7 + $0x390] sm:$0xff] }
  0x33   : > { %450 = vst [vmem:[%s1578_s8 + $0x1c0] sm:$0xff] %v449_v56  ;;  %v453_v58 = vld [vmem:[%s1573_s7 + $0x3a0] sm:$0xff]  ;;  %v455_v59 = vld [vmem:[%s1573_s7 + $0x3b0] sm:$0xff]  ;;  %452 = vst [vmem:[%s1578_s8 + $0x1c8] sm:$0xff] %v451_v57 }
  0x34   : > { %454 = vst [vmem:[%s1578_s8 + $0x1d0] sm:$0xff] %v453_v58  ;;  %456 = vst [vmem:[%s1578_s8 + $0x1d8] sm:$0xff] %v455_v59  ;;  %v457_v60 = vld [vmem:[%s1573_s7 + $0x3c0] sm:$0xff]  ;;  %v459_v61 = vld [vmem:[%s1573_s7 + $0x3d0] sm:$0xff] }
  0x35   : > { %v461_v62 = vld [vmem:[%s1573_s7 + $0x3e0] sm:$0xff]  ;;  %458 = vst [vmem:[%s1578_s8 + $0x1e0] sm:$0xff] %v457_v60  ;;  %460 = vst [vmem:[%s1578_s8 + $0x1e8] sm:$0xff] %v459_v61  ;;  %v463_v63 = vld [vmem:[%s1573_s7 + $0x3f0] sm:$0xff] }
  0x36   : > { %462 = vst [vmem:[%s1578_s8 + $0x1f0] sm:$0xff] %v461_v62  ;;  %464 = vst [vmem:[%s1578_s8 + $0x1f8] sm:$0xff] %v463_v63 }
  0x37 PF: > { %p1199_p7 = scmp.ge.s32.totalorder %s1490_s18, 1  ;;  %p477_p8 = scmp.lt.s32.totalorder %s1490_s18, 19 }
  0x39   : > { %p478_p9 = pnand %p1199_p7, %p477_p8 }
  0x3a   : > { %s484_s9 = sand.u32 (!%p478_p9), 1, %s1466_s12   ;;  %s1201_s10 = sshll.u32 (!%p478_p9), %s1474_s14, 2 }
  0x3b   : > { %481 = sbr.rel (%p478_p9) target bundleno = 351 (0x15f), region = 66  ;;  %s1200_s11 = sshll.u32 (!%p478_p9), %s484_s9, 9 }
  0x3c   : > { %p527_p10 = scmp.lt.s32.totalorder (!%p478_p9), %s1201_s10, 35  ;;  %s1203_s21 = sshll.u32 (!%p478_p9), %s1478_s15, 1 }
  0x3d   : > { %p537_p11 = scmp.lt.s32.totalorder (!%p478_p9), %s1203_s21, 3  ;;  %s1727_s5 = scalar_lea.vmem (!%p478_p9), [#allocation3], %s1200_s11 }
  0x3e   : > { %p1206_p12 = scmp.ne.s32.totalorder (!%p478_p9), %s1474_s14, 0 }
  0x40   : > { %s1842_s10 = smov (!%p527_p10, %s1201_s10), 35  ;;  %s1844_s21 = smov (!%p537_p11, %s1203_s21), 3 }
  0x41   : > { %s1202_s22 = sshll.u32 %s1842_s10, 2  ;;  %s539_s12 = scalar_lea.vmem %s1827_s2, %s1844_s21 }
  0x42   : > { %s1713_s26 = scalar_lea.vmem %s1825_s0, %s1202_s22  ;;  %s1205_s29 = sshll.u32 %s1844_s21, 3 }
  0x43   : > { %s1725_s15 = scalar_lea.vmem %s1828_s3, %s1205_s29  ;;  %554 = sbr.rel (%p1206_p12) target bundleno = 74 (0x4a), region = 74 }
  0x48   : > { %v1492_v0 = vmov 0.0  }
  0x49   : > { %555 = vst [vmem:[#allocation2] sm:$0xff] %v1492_v0  ;;  %556 = vst [vmem:[#allocation2 + $0x8] sm:$0xff] %v1492_v0 }
  0x4a PF: > { %v1336_v1 = vld [vmem:[%s1727_s5 + $0x74] ss:$8 sps:$4 sm:$0xff]   ;;  %v1340_v3 = vld [vmem:[%s1727_s5 + $0x70] ss:$8 sps:$4 sm:$0xff]   ;;  %v1342_v5 = vld [vmem:[%s1727_s5 + $0x64] ss:$8 sps:$4 sm:$0xff]  }
  0x4b   : > { %v1338_v2 = vld [vmem:[%s1727_s5 + $0x174] ss:$8 sps:$4 sm:$0xff]   ;;  %959 = vmatprep.subr.bf16.mxu0 %v1336_v1  ;;  %v1341_v4 = vld [vmem:[%s1727_s5 + $0x170] ss:$8 sps:$4 sm:$0xff]   ;;  %v1344_v6 = vld [vmem:[%s1727_s5 + $0x164] ss:$8 sps:$4 sm:$0xff]  }
  0x4c   : > { %1000 = vmatprep.subr.bf16.mxu1 %v1338_v2  ;;  %960 = vmatpush1.bf16.msra.mxu0 %v1340_v3  ;;  %v1346_v7 = vld [vmem:[%s1727_s5 + $0x60] ss:$8 sps:$4 sm:$0xff]   ;;  %v1348_v9 = vld [vmem:[%s1727_s5 + $0x54] ss:$8 sps:$4 sm:$0xff]   ;;  %v1352_v11 = vld [vmem:[%s1727_s5 + $0x50] ss:$8 sps:$4 sm:$0xff]  }
  0x4d   : > { %1001 = vmatpush1.bf16.msra.mxu1 %v1341_v4  ;;  %961 = vmatprep.subr.bf16.mxu0 %v1342_v5  ;;  %v1347_v8 = vld [vmem:[%s1727_s5 + $0x160] ss:$8 sps:$4 sm:$0xff]   ;;  %v1350_v10 = vld [vmem:[%s1727_s5 + $0x154] ss:$8 sps:$4 sm:$0xff]   ;;  %v1353_v12 = vld [vmem:[%s1727_s5 + $0x150] ss:$8 sps:$4 sm:$0xff]  }
  0x4e   : > { %1002 = vmatprep.subr.bf16.mxu1 %v1344_v6  ;;  %v1354_v13 = vld [vmem:[%s1727_s5 + $0x44] ss:$8 sps:$4 sm:$0xff]   ;;  %v1358_v15 = vld [vmem:[%s1727_s5 + $0x40] ss:$8 sps:$4 sm:$0xff]   ;;  %v1360_v17 = vld [vmem:[%s1727_s5 + $0x34] ss:$8 sps:$4 sm:$0xff]  }
  0x4f   : > { %v1356_v14 = vld [vmem:[%s1727_s5 + $0x144] ss:$8 sps:$4 sm:$0xff]   ;;  %v1359_v16 = vld [vmem:[%s1727_s5 + $0x140] ss:$8 sps:$4 sm:$0xff]   ;;  %v1362_v18 = vld [vmem:[%s1727_s5 + $0x134] ss:$8 sps:$4 sm:$0xff]  }
  0x50   : > { %962 = vmatpush1.bf16.msra.mxu0 %v1346_v7  ;;  %v1364_v19 = vld [vmem:[%s1727_s5 + $0x30] ss:$8 sps:$4 sm:$0xff]   ;;  %v1366_v21 = vld [vmem:[%s1727_s5 + $0x24] ss:$8 sps:$4 sm:$0xff]   ;;  %v1370_v23 = vld [vmem:[%s1727_s5 + $0x20] ss:$8 sps:$4 sm:$0xff]  }
  0x51   : > { %1003 = vmatpush1.bf16.msra.mxu1 %v1347_v8  ;;  %963 = vmatprep.subr.bf16.mxu0 %v1348_v9  ;;  %v1365_v20 = vld [vmem:[%s1727_s5 + $0x130] ss:$8 sps:$4 sm:$0xff]   ;;  %v1368_v22 = vld [vmem:[%s1727_s5 + $0x124] ss:$8 sps:$4 sm:$0xff]   ;;  %v1371_v24 = vld [vmem:[%s1727_s5 + $0x120] ss:$8 sps:$4 sm:$0xff]  }
  0x52   : > { %1004 = vmatprep.subr.bf16.mxu1 %v1350_v10  ;;  %v1372_v25 = vld [vmem:[%s1727_s5 + $0x14] ss:$8 sps:$4 sm:$0xff]   ;;  %v1376_v27 = vld [vmem:[%s1727_s5 + $0x10] ss:$8 sps:$4 sm:$0xff]   ;;  %v1378_v29 = vld [vmem:[%s1727_s5 + $0x4] ss:$8 sps:$4 sm:$0xff]  }
  0x53   : > { %v1374_v26 = vld [vmem:[%s1727_s5 + $0x114] ss:$8 sps:$4 sm:$0xff]   ;;  %v1377_v28 = vld [vmem:[%s1727_s5 + $0x110] ss:$8 sps:$4 sm:$0xff]   ;;  %v1380_v30 = vld [vmem:[%s1727_s5 + $0x104] ss:$8 sps:$4 sm:$0xff]  }
  0x54   : > { %964 = vmatpush1.bf16.msra.mxu0 %v1352_v11  ;;  %v1382_v31 = vld [vmem:[%s1727_s5] ss:$8 sps:$4 sm:$0xff]   ;;  %v1384_v33 = vld [vmem:[%s1727_s5 + $0xf4] ss:$8 sps:$4 sm:$0xff]   ;;  %v1388_v35 = vld [vmem:[%s1727_s5 + $0xf0] ss:$8 sps:$4 sm:$0xff]  }
  0x55   : > { %1005 = vmatpush1.bf16.msra.mxu1 %v1353_v12  ;;  %965 = vmatprep.subr.bf16.mxu0 %v1354_v13  ;;  %v1383_v32 = vld [vmem:[%s1727_s5 + $0x100] ss:$8 sps:$4 sm:$0xff]   ;;  %v1386_v34 = vld [vmem:[%s1727_s5 + $0x1f4] ss:$8 sps:$4 sm:$0xff]   ;;  %v1389_v36 = vld [vmem:[%s1727_s5 + $0x1f0] ss:$8 sps:$4 sm:$0xff]  }
  0x56   : > { %1006 = vmatprep.subr.bf16.mxu1 %v1356_v14  ;;  %v1390_v37 = vld [vmem:[%s1727_s5 + $0xe4] ss:$8 sps:$4 sm:$0xff]   ;;  %v1394_v39 = vld [vmem:[%s1727_s5 + $0xe0] ss:$8 sps:$4 sm:$0xff]   ;;  %v1396_v41 = vld [vmem:[%s1727_s5 + $0xd4] ss:$8 sps:$4 sm:$0xff]  }
  0x57   : > { %v1392_v38 = vld [vmem:[%s1727_s5 + $0x1e4] ss:$8 sps:$4 sm:$0xff]   ;;  %v1395_v40 = vld [vmem:[%s1727_s5 + $0x1e0] ss:$8 sps:$4 sm:$0xff]   ;;  %v1398_v42 = vld [vmem:[%s1727_s5 + $0x1d4] ss:$8 sps:$4 sm:$0xff]  }
  0x58   : > { %966 = vmatpush1.bf16.msra.mxu0 %v1358_v15  ;;  %v1400_v43 = vld [vmem:[%s1727_s5 + $0xd0] ss:$8 sps:$4 sm:$0xff]   ;;  %v1402_v45 = vld [vmem:[%s1727_s5 + $0xc4] ss:$8 sps:$4 sm:$0xff]   ;;  %v1406_v50 = vld [vmem:[%s1727_s5 + $0xc0] ss:$8 sps:$4 sm:$0xff]  }
  0x59   : > { %1007 = vmatpush1.bf16.msra.mxu1 %v1359_v16  ;;  %967 = vmatprep.subr.bf16.mxu0 %v1360_v17  ;;  %v1401_v44 = vld [vmem:[%s1727_s5 + $0x1d0] ss:$8 sps:$4 sm:$0xff]   ;;  %v1404_v46 = vld [vmem:[%s1727_s5 + $0x1c4] ss:$8 sps:$4 sm:$0xff]   ;;  %v1407_v51 = vld [vmem:[%s1727_s5 + $0x1c0] ss:$8 sps:$4 sm:$0xff]  }
  0x5a   : > { %1008 = vmatprep.subr.bf16.mxu1 %v1362_v18  ;;  %v559_v47 = vld [vmem:[%s1713_s26] sm:$0xff]  ;;  %v560_v49 = vld [vmem:[%s1713_s26 + $0x8] sm:$0xff]  ;;  %v1414_v57 = vld [vmem:[%s1727_s5 + $0xa4] ss:$8 sps:$4 sm:$0xff]   ;;  %p1275_p13 = scmp.ne.s32.totalorder %s1474_s14, 8 }
  0x5b   : > { %v1208_v48 = vcombine.high %v559_v47, %v559_v47  ;;  %v1210_v52 = vcombine.high %v560_v49, %v560_v49  ;;  %v1408_v53 = vld [vmem:[%s1727_s5 + $0xb4] ss:$8 sps:$4 sm:$0xff]   ;;  %v1412_v55 = vld [vmem:[%s1727_s5 + $0xb0] ss:$8 sps:$4 sm:$0xff]   ;;  %v1416_v58 = vld [vmem:[%s1727_s5 + $0x1a4] ss:$8 sps:$4 sm:$0xff]   ;;  %v1207_v5 = vcombine.low %v559_v47, %v559_v47  ;;  %v1209_v6 = vcombine.low %v560_v49, %v560_v49 }
  0x5c   : > { %968 = vmatpush1.bf16.msra.mxu0 %v1364_v19  ;;  %v1410_v54 = vld [vmem:[%s1727_s5 + $0x1b4] ss:$8 sps:$4 sm:$0xff]   ;;  %v1413_v56 = vld [vmem:[%s1727_s5 + $0x1b0] ss:$8 sps:$4 sm:$0xff]   ;;  %v1418_v59 = vld [vmem:[%s1727_s5 + $0xa0] ss:$8 sps:$4 sm:$0xff]  }
  0x5d   : > { %1009 = vmatpush1.bf16.msra.mxu1 %v1365_v20  ;;  %969 = vmatprep.subr.bf16.mxu0 %v1366_v21  ;;  %v1419_v60 = vld [vmem:[%s1727_s5 + $0x1a0] ss:$8 sps:$4 sm:$0xff]   ;;  %v1420_v61 = vld [vmem:[%s1727_s5 + $0x94] ss:$8 sps:$4 sm:$0xff]   ;;  %v1424_v63 = vld [vmem:[%s1727_s5 + $0x90] ss:$8 sps:$4 sm:$0xff]  }
  0x5e   : > { %1010 = vmatprep.subr.bf16.mxu1 %v1368_v22  ;;  %991 = vmatprep.mubr.bf16.mxu0 %v1208_v48  ;;  %v1422_v62 = vld [vmem:[%s1727_s5 + $0x194] ss:$8 sps:$4 sm:$0xff]   ;;  %v1425_v0 = vld [vmem:[%s1727_s5 + $0x190] ss:$8 sps:$4 sm:$0xff]   ;;  %v1426_v1 = vld [vmem:[%s1727_s5 + $0x84] ss:$8 sps:$4 sm:$0xff]  }
  0x5f   : > { %1032 = vmatprep.mubr.bf16.mxu1 %v1210_v52  ;;  %v1428_v2 = vld [vmem:[%s1727_s5 + $0x184] ss:$8 sps:$4 sm:$0xff]   ;;  %v1430_v3 = vld [vmem:[%s1727_s5 + $0x80] ss:$8 sps:$4 sm:$0xff]   ;;  %v557_v8 = vld [vmem:[#allocation2] sm:$0xff] }
  0x60   : > { %970 = vmatpush1.bf16.msra.mxu0 %v1370_v23  ;;  %v1431_v4 = vld [vmem:[%s1727_s5 + $0x180] ss:$8 sps:$4 sm:$0xff]   ;;  %v558_v12 = vld [vmem:[#allocation2 + $0x8] sm:$0xff] }
  0x61   : > { %1011 = vmatpush1.bf16.msra.mxu1 %v1371_v24  ;;  %971 = vmatprep.subr.bf16.mxu0 %v1372_v25 }
  0x62   : > { %1012 = vmatprep.subr.bf16.mxu1 %v1374_v26 }
  0x64   : > { %972 = vmatpush1.bf16.msra.mxu0 %v1376_v27 }
  0x65   : > { %1013 = vmatpush1.bf16.msra.mxu1 %v1377_v28  ;;  %973 = vmatprep.subr.bf16.mxu0 %v1378_v29 }
  0x66   : > { %1014 = vmatprep.subr.bf16.mxu1 %v1380_v30 }
  0x68   : > { %974 = vmatpush1.bf16.msra.mxu0 %v1382_v31 }
  0x69   : > { %1015 = vmatpush1.bf16.msra.mxu1 %v1383_v32  ;;  %975 = vmatprep.subr.bf16.mxu0 %v1384_v33 }
  0x6a   : > { %1016 = vmatprep.subr.bf16.mxu1 %v1386_v34 }
  0x6c   : > { %976 = vmatpush2.bf16.msra.mxu0 %v1388_v35 }
  0x6d   : > { %1017 = vmatpush2.bf16.msra.mxu1 %v1389_v36  ;;  %977 = vmatprep.subr.bf16.mxu0 %v1390_v37 }
  0x6e   : > { %1018 = vmatprep.subr.bf16.mxu1 %v1392_v38 }
  0x70   : > { %978 = vmatpush2.bf16.msra.mxu0 %v1394_v39 }
  0x71   : > { %1019 = vmatpush2.bf16.msra.mxu1 %v1395_v40  ;;  %979 = vmatprep.subr.bf16.mxu0 %v1396_v41 }
  0x72   : > { %1020 = vmatprep.subr.bf16.mxu1 %v1398_v42 }
  0x74   : > { %980 = vmatpush2.bf16.msra.mxu0 %v1400_v43 }
  0x75   : > { %1021 = vmatpush2.bf16.msra.mxu1 %v1401_v44  ;;  %981 = vmatprep.subr.bf16.mxu0 %v1402_v45 }
  0x76   : > { %1022 = vmatprep.subr.bf16.mxu1 %v1404_v46 }
  0x78   : > { %982 = vmatpush2.bf16.msra.mxu0 %v1406_v50 }
  0x79   : > { %1023 = vmatpush2.bf16.msra.mxu1 %v1407_v51  ;;  %983 = vmatprep.subr.bf16.mxu0 %v1408_v53 }
  0x7a   : > { %1024 = vmatprep.subr.bf16.mxu1 %v1410_v54 }
  0x7c   : > { %984 = vmatpush2.bf16.msra.mxu0 %v1412_v55 }
  0x7d   : > { %1025 = vmatpush2.bf16.msra.mxu1 %v1413_v56  ;;  %985 = vmatprep.subr.bf16.mxu0 %v1414_v57 }
  0x7e   : > { %1026 = vmatprep.subr.bf16.mxu1 %v1416_v58 }
  0x80   : > { %986 = vmatpush2.bf16.msra.mxu0 %v1418_v59 }
  0x81   : > { %1027 = vmatpush2.bf16.msra.mxu1 %v1419_v60  ;;  %987 = vmatprep.subr.bf16.mxu0 %v1420_v61 }
  0x82   : > { %1028 = vmatprep.subr.bf16.mxu1 %v1422_v62 }
  0x84   : > { %988 = vmatpush2.bf16.msra.mxu0 %v1424_v63 }
  0x85   : > { %1029 = vmatpush2.bf16.msra.mxu1 %v1425_v0  ;;  %989 = vmatprep.subr.bf16.mxu0 %v1426_v1 }
  0x86   : > { %1030 = vmatprep.subr.bf16.mxu1 %v1428_v2 }
  0x88   : > { %990 = vmatpush2.bf16.msra.mxu0 %v1430_v3 }
  0x89   : > { %1031 = vmatpush2.bf16.msra.mxu1 %v1431_v4 }
  0x8b   : > { %992 = vmatmul.mubr.bf16.vlgmr.msra.gmra.mxu0 %v1207_v5 }
  0x8c   : > { %1033 = vmatmul.mubr.bf16.vlgmr.msra.gmra.mxu1 %v1209_v6 }
 0x14b   : > { %v993_v7 = vpop.f32.mrf.mxu0 }
 0x14c   : > { %v1034_v9 = vpop.f32.mrf.mxu1 }
 0x14d   : > { %v1035_v10 = vadd.f32 %v1034_v9, %v993_v7  ;;  %v995_v11 = vpop.f32.mrf.mxu0 }
 0x14e   : > { %v1036_v13 = vpop.f32.mrf.mxu1 }
 0x14f   : > { %v1041_v14 = vadd.f32 %v1035_v10, %v557_v8  ;;  %v1037_v15 = vadd.f32 %v1036_v13, %v995_v11  ;;  %v997_v16 = vpop.f32.mrf.mxu0  ;;  %1048 = sbr.rel (%p1275_p13) target bundleno = 351 (0x15f), region = 78 }
 0x150   : > { %v1038_v17 = vpop.f32.mrf.mxu1 }
 0x151   : > { %1043 = vst [vmem:[#allocation2] sm:$0xff] %v1041_v14  ;;  %v1042_v18 = vadd.f32 %v1037_v15, %v558_v12  ;;  %v998_v19 = vpop.f32.mrf.mxu0 }
 0x152   : > { %v1039_v20 = vpop.f32.mrf.mxu1 }
 0x153   : > { %1044 = vst [vmem:[#allocation2 + $0x8] sm:$0xff] %v1042_v18 }
 0x154   : > { %v1053_v21 = vlaneseq  ;;  %v1051_v23 = vld [vmem:[%s539_s12] sm:$0x3] }
 0x156   : > { %v1054_v22 = vshrl.u32 %v1053_v21, 7 }
 0x158   : > { %v1055_v24 = vsub.s32 0, %v1054_v22  ;;  %v1059_v25 = vsub.s32 1, %v1054_v22  ;;  %v1049_v26 = vld [vmem:[#allocation2] sm:$0xff] }
 0x15a   : > { %v1050_v27 = vld [vmem:[#allocation2 + $0x8] sm:$0xff]  ;;  %v1056_v28 = vrot.slane %v1051_v23, %v1055_v24  ;;  %v1060_v29 = vrot.slane %v1051_v23, %v1059_v25 }
 0x15c   : > { %v1063_v30 = vadd.f32 %v1056_v28, %v1049_v26  ;;  %v1064_v31 = vadd.f32 %v1060_v29, %v1050_v27 }
 0x15e   : > { %1065 = vst [vmem:[%s1725_s15] sm:$0xff] %v1063_v30  ;;  %1066 = vst [vmem:[%s1725_s15 + $0x8] sm:$0xff] %v1064_v31 }
 0x15f PF: > { %s13_s18 = sadd.s32 1, %s1490_s18   ;;  %s1829_s12 = smov %s1470_s13 }
 0x160   : > { %p10_p0 = scmp.ge.s32.totalorder %s13_s18, 20   ;;  %s1830_s13 = smov %s1564_s25 }
 0x161   : > { %s1831_s14 = smov %s1482_s16  ;;  %s1832_s15 = smov %s1486_s17 }
 0x162   : > { %s1833_s16 = smov %s1836_s19  ;;  %s1834_s17 = smov %s1840_s20 }
 0x163   :  { %12 = sbr.rel (!%p10_p0) target bundleno = 4 (0x4), region = 119 }

// kernel: discriminator_forward.45
= control target key start
LH: loop header
LB: loop body
LE: loop exit
PB: predicated region body
PF: predicated region fallthrough
CT: control target
= control target key end

     0   :  { %vm1606_vm8 = vcmask 1024   ;;  %s3773_s1 = inlined_call_operand.vmem [shape: f32[512,1024], index: 1, kind: input, shape index: {}]   ;;  %s3774_s0 = inlined_call_operand.vmem [shape: f32[2,512], index: 0, kind: input, shape index: {}]   ;;  %s3775_s2 = inlined_call_operand.vmem [shape: f32[1,1024], index: 2, kind: input, shape index: {}]   ;;  %s3776_s3 = inlined_call_operand.vmem [shape: f32[1024,1], index: 3, kind: input, shape index: {}]   ;;  %s3777_s4 = inlined_call_operand.<no memory space> [shape: f32[1,1], index: 4, kind: input, shape index: {}]   ;;  %s3778_s5 = inlined_call_operand.vmem [shape: f32[2,1], index: 5, kind: output, shape index: {}]  }
   0x1   :  { %v144_v0 = vld [vmem:[%s3773_s1 + $0x3c8] sm:$0xff]  ;;  %v143_v2 = vld [vmem:[%s3773_s1 + $0x3c0] sm:$0xff] }
   0x2   :  { %v400_v1 = vld [vmem:[%s3773_s1 + $0xbc8] sm:$0xff]  ;;  %599 = vmatprep.subr.mxu0 %v144_v0  ;;  %v399_v3 = vld [vmem:[%s3773_s1 + $0xbc0] sm:$0xff] }
   0x3   :  { %670 = vmatprep.subr.mxu1 %v400_v1  ;;  %v136_v4 = vld [vmem:[%s3773_s1 + $0x388] sm:$0xff]  ;;  %600 = vmatpush1.msra.mxu0 %v143_v2  ;;  %v135_v6 = vld [vmem:[%s3773_s1 + $0x380] sm:$0xff] }
   0x4   :  { %v392_v5 = vld [vmem:[%s3773_s1 + $0xb88] sm:$0xff]  ;;  %671 = vmatpush1.msra.mxu1 %v399_v3  ;;  %v391_v7 = vld [vmem:[%s3773_s1 + $0xb80] sm:$0xff]  ;;  %601 = vmatprep.subr.mxu0 %v136_v4 }
   0x5   :  { %v128_v8 = vld [vmem:[%s3773_s1 + $0x348] sm:$0xff]  ;;  %672 = vmatprep.subr.mxu1 %v392_v5  ;;  %v127_v10 = vld [vmem:[%s3773_s1 + $0x340] sm:$0xff]  ;;  %602 = vmatpush1.msra.mxu0 %v135_v6 }
   0x6   :  { %v384_v9 = vld [vmem:[%s3773_s1 + $0xb48] sm:$0xff]  ;;  %v383_v11 = vld [vmem:[%s3773_s1 + $0xb40] sm:$0xff]  ;;  %673 = vmatpush1.msra.mxu1 %v391_v7  ;;  %603 = vmatprep.subr.mxu0 %v128_v8 }
   0x7   :  { %v120_v12 = vld [vmem:[%s3773_s1 + $0x308] sm:$0xff]  ;;  %674 = vmatprep.subr.mxu1 %v384_v9  ;;  %v119_v14 = vld [vmem:[%s3773_s1 + $0x300] sm:$0xff]  ;;  %604 = vmatpush1.msra.mxu0 %v127_v10 }
   0x8   :  { %v376_v13 = vld [vmem:[%s3773_s1 + $0xb08] sm:$0xff]  ;;  %v375_v15 = vld [vmem:[%s3773_s1 + $0xb00] sm:$0xff]  ;;  %675 = vmatpush1.msra.mxu1 %v383_v11  ;;  %605 = vmatprep.subr.mxu0 %v120_v12 }
   0x9   :  { %v112_v16 = vld [vmem:[%s3773_s1 + $0x2c8] sm:$0xff]  ;;  %676 = vmatprep.subr.mxu1 %v376_v13  ;;  %v111_v18 = vld [vmem:[%s3773_s1 + $0x2c0] sm:$0xff]  ;;  %606 = vmatpush1.msra.mxu0 %v119_v14 }
   0xa   :  { %v368_v17 = vld [vmem:[%s3773_s1 + $0xac8] sm:$0xff]  ;;  %v367_v19 = vld [vmem:[%s3773_s1 + $0xac0] sm:$0xff]  ;;  %677 = vmatpush1.msra.mxu1 %v375_v15  ;;  %607 = vmatprep.subr.mxu0 %v112_v16 }
   0xb   :  { %v104_v20 = vld [vmem:[%s3773_s1 + $0x288] sm:$0xff]  ;;  %678 = vmatprep.subr.mxu1 %v368_v17  ;;  %v103_v22 = vld [vmem:[%s3773_s1 + $0x280] sm:$0xff]  ;;  %608 = vmatpush1.msra.mxu0 %v111_v18 }
   0xc   :  { %v360_v21 = vld [vmem:[%s3773_s1 + $0xa88] sm:$0xff]  ;;  %v359_v23 = vld [vmem:[%s3773_s1 + $0xa80] sm:$0xff]  ;;  %679 = vmatpush1.msra.mxu1 %v367_v19  ;;  %609 = vmatprep.subr.mxu0 %v104_v20 }
   0xd   :  { %v96_v24 = vld [vmem:[%s3773_s1 + $0x248] sm:$0xff]  ;;  %680 = vmatprep.subr.mxu1 %v360_v21  ;;  %v95_v26 = vld [vmem:[%s3773_s1 + $0x240] sm:$0xff]  ;;  %610 = vmatpush1.msra.mxu0 %v103_v22 }
   0xe   :  { %v352_v25 = vld [vmem:[%s3773_s1 + $0xa48] sm:$0xff]  ;;  %v351_v27 = vld [vmem:[%s3773_s1 + $0xa40] sm:$0xff]  ;;  %681 = vmatpush1.msra.mxu1 %v359_v23  ;;  %611 = vmatprep.subr.mxu0 %v96_v24 }
   0xf   :  { %v88_v28 = vld [vmem:[%s3773_s1 + $0x208] sm:$0xff]  ;;  %682 = vmatprep.subr.mxu1 %v352_v25  ;;  %v87_v30 = vld [vmem:[%s3773_s1 + $0x200] sm:$0xff]  ;;  %612 = vmatpush1.msra.mxu0 %v95_v26 }
  0x10   :  { %v344_v29 = vld [vmem:[%s3773_s1 + $0xa08] sm:$0xff]  ;;  %v343_v31 = vld [vmem:[%s3773_s1 + $0xa00] sm:$0xff]  ;;  %683 = vmatpush1.msra.mxu1 %v351_v27  ;;  %613 = vmatprep.subr.mxu0 %v88_v28 }
  0x11   :  { %v80_v32 = vld [vmem:[%s3773_s1 + $0x1c8] sm:$0xff]  ;;  %684 = vmatprep.subr.mxu1 %v344_v29  ;;  %v79_v34 = vld [vmem:[%s3773_s1 + $0x1c0] sm:$0xff]  ;;  %614 = vmatpush1.msra.mxu0 %v87_v30  ;;  %v537_v30 = vlaneseq }
  0x12   :  { %v336_v33 = vld [vmem:[%s3773_s1 + $0x9c8] sm:$0xff]  ;;  %v335_v35 = vld [vmem:[%s3773_s1 + $0x9c0] sm:$0xff]  ;;  %685 = vmatpush1.msra.mxu1 %v343_v31  ;;  %615 = vmatprep.subr.mxu0 %v80_v32  ;;  %v1755_v31 = vmov 1983009808  }
  0x13   :  { %v72_v36 = vld [vmem:[%s3773_s1 + $0x188] sm:$0xff]  ;;  %686 = vmatprep.subr.mxu1 %v336_v33  ;;  %v71_v38 = vld [vmem:[%s3773_s1 + $0x180] sm:$0xff]  ;;  %616 = vmatpush1.msra.mxu0 %v79_v34  ;;  %v580_v32 = vunpack.c.l.s4 %v1755_v31  ;;  %v369_v31 = vld [vmem:[%s3773_s1 + $0xad0] sm:$0xff] }
  0x14   :  { %v328_v37 = vld [vmem:[%s3773_s1 + $0x988] sm:$0xff]  ;;  %v327_v39 = vld [vmem:[%s3773_s1 + $0x980] sm:$0xff]  ;;  %687 = vmatpush1.msra.mxu1 %v335_v35  ;;  %617 = vmatprep.subr.mxu0 %v72_v36 }
  0x15   :  { %v64_v40 = vld [vmem:[%s3773_s1 + $0x148] sm:$0xff]  ;;  %688 = vmatprep.subr.mxu1 %v328_v37  ;;  %v63_v42 = vld [vmem:[%s3773_s1 + $0x140] sm:$0xff]  ;;  %618 = vmatpush1.msra.mxu0 %v71_v38 }
  0x16   :  { %v320_v41 = vld [vmem:[%s3773_s1 + $0x948] sm:$0xff]  ;;  %v319_v43 = vld [vmem:[%s3773_s1 + $0x940] sm:$0xff]  ;;  %689 = vmatpush1.msra.mxu1 %v327_v39  ;;  %619 = vmatprep.subr.mxu0 %v64_v40 }
  0x17   :  { %v56_v44 = vld [vmem:[%s3773_s1 + $0x108] sm:$0xff]  ;;  %690 = vmatprep.subr.mxu1 %v320_v41  ;;  %v55_v46 = vld [vmem:[%s3773_s1 + $0x100] sm:$0xff]  ;;  %620 = vmatpush1.msra.mxu0 %v63_v42  ;;  %v2092_v41 = vshrl.u32 %v537_v30, 7  ;;  %v581_v42 = vunpack.c.0.s8 %v580_v32  ;;  %v113_v30 = vld [vmem:[%s3773_s1 + $0x2d0] sm:$0xff] }
  0x18   :  { %v312_v45 = vld [vmem:[%s3773_s1 + $0x908] sm:$0xff]  ;;  %v311_v47 = vld [vmem:[%s3773_s1 + $0x900] sm:$0xff]  ;;  %691 = vmatpush1.msra.mxu1 %v319_v43  ;;  %621 = vmatprep.subr.mxu0 %v56_v44  ;;  %v106_v32 = vld [vmem:[%s3773_s1 + $0x298] sm:$0xff] }
  0x19   :  { %v48_v48 = vld [vmem:[%s3773_s1 + $0xc8] sm:$0xff]  ;;  %692 = vmatprep.subr.mxu1 %v312_v45  ;;  %v47_v50 = vld [vmem:[%s3773_s1 + $0xc0] sm:$0xff]  ;;  %622 = vmatpush1.msra.mxu0 %v55_v46 }
  0x1a   :  { %v304_v49 = vld [vmem:[%s3773_s1 + $0x8c8] sm:$0xff]  ;;  %v303_v51 = vld [vmem:[%s3773_s1 + $0x8c0] sm:$0xff]  ;;  %693 = vmatpush1.msra.mxu1 %v311_v47  ;;  %623 = vmatprep.subr.mxu0 %v48_v48 }
  0x1b   :  { %v40_v52 = vld [vmem:[%s3773_s1 + $0x88] sm:$0xff]  ;;  %694 = vmatprep.subr.mxu1 %v304_v49  ;;  %v39_v54 = vld [vmem:[%s3773_s1 + $0x80] sm:$0xff]  ;;  %624 = vmatpush1.msra.mxu0 %v47_v50 }
  0x1c   :  { %v296_v53 = vld [vmem:[%s3773_s1 + $0x888] sm:$0xff]  ;;  %v295_v55 = vld [vmem:[%s3773_s1 + $0x880] sm:$0xff]  ;;  %695 = vmatpush1.msra.mxu1 %v303_v51  ;;  %625 = vmatprep.subr.mxu0 %v40_v52  ;;  %v584_v52 = vsub.s32 %v581_v42, %v2092_v41  ;;  %v346_v42 = vld [vmem:[%s3773_s1 + $0xa18] sm:$0xff] }
  0x1d   :  { %v32_v56 = vld [vmem:[%s3773_s1 + $0x48] sm:$0xff]  ;;  %696 = vmatprep.subr.mxu1 %v296_v53  ;;  %v31_v58 = vld [vmem:[%s3773_s1 + $0x40] sm:$0xff]  ;;  %626 = vmatpush1.msra.mxu0 %v39_v54 }
  0x1e   :  { %v288_v57 = vld [vmem:[%s3773_s1 + $0x848] sm:$0xff]  ;;  %v287_v59 = vld [vmem:[%s3773_s1 + $0x840] sm:$0xff]  ;;  %697 = vmatpush1.msra.mxu1 %v295_v55  ;;  %627 = vmatprep.subr.mxu0 %v32_v56 }
  0x1f   :  { %v24_v60 = vld [vmem:[%s3773_s1 + $0x8] sm:$0xff]  ;;  %698 = vmatprep.subr.mxu1 %v288_v57  ;;  %v23_v62 = vld [vmem:[%s3773_s1] sm:$0xff]  ;;  %628 = vmatpush1.msra.mxu0 %v31_v58 }
  0x20   :  { %v280_v61 = vld [vmem:[%s3773_s1 + $0x808] sm:$0xff]  ;;  %v279_v63 = vld [vmem:[%s3773_s1 + $0x800] sm:$0xff]  ;;  %699 = vmatpush1.msra.mxu1 %v287_v59  ;;  %629 = vmatprep.subr.mxu0 %v24_v60 }
  0x21   :  { %v272_v0 = vld [vmem:[%s3773_s1 + $0x7c8] sm:$0xff]  ;;  %700 = vmatprep.subr.mxu1 %v280_v61  ;;  %v271_v2 = vld [vmem:[%s3773_s1 + $0x7c0] sm:$0xff]  ;;  %630 = vmatpush1.msra.mxu0 %v23_v62 }
  0x22   :  { %v528_v1 = vld [vmem:[%s3773_s1 + $0xfc8] sm:$0xff]  ;;  %v527_v3 = vld [vmem:[%s3773_s1 + $0xfc0] sm:$0xff]  ;;  %701 = vmatpush1.msra.mxu1 %v279_v63  ;;  %631 = vmatprep.subr.mxu0 %v272_v0 }
  0x23   :  { %v264_v4 = vld [vmem:[%s3773_s1 + $0x788] sm:$0xff]  ;;  %702 = vmatprep.subr.mxu1 %v528_v1  ;;  %v263_v6 = vld [vmem:[%s3773_s1 + $0x780] sm:$0xff]  ;;  %632 = vmatpush2.msra.mxu0 %v271_v2 }
  0x24   :  { %v520_v5 = vld [vmem:[%s3773_s1 + $0xf88] sm:$0xff]  ;;  %v519_v7 = vld [vmem:[%s3773_s1 + $0xf80] sm:$0xff]  ;;  %703 = vmatpush2.msra.mxu1 %v527_v3  ;;  %633 = vmatprep.subr.mxu0 %v264_v4 }
  0x25   :  { %v256_v8 = vld [vmem:[%s3773_s1 + $0x748] sm:$0xff]  ;;  %704 = vmatprep.subr.mxu1 %v520_v5  ;;  %v255_v10 = vld [vmem:[%s3773_s1 + $0x740] sm:$0xff]  ;;  %634 = vmatpush2.msra.mxu0 %v263_v6 }
  0x26   :  { %v512_v9 = vld [vmem:[%s3773_s1 + $0xf48] sm:$0xff]  ;;  %v511_v11 = vld [vmem:[%s3773_s1 + $0xf40] sm:$0xff]  ;;  %705 = vmatpush2.msra.mxu1 %v519_v7  ;;  %635 = vmatprep.subr.mxu0 %v256_v8 }
  0x27   :  { %v248_v12 = vld [vmem:[%s3773_s1 + $0x708] sm:$0xff]  ;;  %706 = vmatprep.subr.mxu1 %v512_v9  ;;  %v247_v14 = vld [vmem:[%s3773_s1 + $0x700] sm:$0xff]  ;;  %636 = vmatpush2.msra.mxu0 %v255_v10 }
  0x28   :  { %v504_v13 = vld [vmem:[%s3773_s1 + $0xf08] sm:$0xff]  ;;  %v503_v15 = vld [vmem:[%s3773_s1 + $0xf00] sm:$0xff]  ;;  %707 = vmatpush2.msra.mxu1 %v511_v11  ;;  %637 = vmatprep.subr.mxu0 %v248_v12  ;;  %v146_v12 = vld [vmem:[%s3773_s1 + $0x3d8] sm:$0xff] }
  0x29   :  { %v240_v16 = vld [vmem:[%s3773_s1 + $0x6c8] sm:$0xff]  ;;  %708 = vmatprep.subr.mxu1 %v504_v13  ;;  %v239_v18 = vld [vmem:[%s3773_s1 + $0x6c0] sm:$0xff]  ;;  %638 = vmatpush2.msra.mxu0 %v247_v14  ;;  %v402_v13 = vld [vmem:[%s3773_s1 + $0xbd8] sm:$0xff] }
  0x2a   :  { %v496_v17 = vld [vmem:[%s3773_s1 + $0xec8] sm:$0xff]  ;;  %v495_v19 = vld [vmem:[%s3773_s1 + $0xec0] sm:$0xff]  ;;  %709 = vmatpush2.msra.mxu1 %v503_v15  ;;  %639 = vmatprep.subr.mxu0 %v240_v16  ;;  %v145_v14 = vld [vmem:[%s3773_s1 + $0x3d0] sm:$0xff] }
  0x2b   :  { %v232_v20 = vld [vmem:[%s3773_s1 + $0x688] sm:$0xff]  ;;  %710 = vmatprep.subr.mxu1 %v496_v17  ;;  %v231_v22 = vld [vmem:[%s3773_s1 + $0x680] sm:$0xff]  ;;  %640 = vmatpush2.msra.mxu0 %v239_v18  ;;  %v401_v15 = vld [vmem:[%s3773_s1 + $0xbd0] sm:$0xff] }
  0x2c   :  { %v488_v21 = vld [vmem:[%s3773_s1 + $0xe88] sm:$0xff]  ;;  %v487_v23 = vld [vmem:[%s3773_s1 + $0xe80] sm:$0xff]  ;;  %711 = vmatpush2.msra.mxu1 %v495_v19  ;;  %641 = vmatprep.subr.mxu0 %v232_v20  ;;  %v138_v16 = vld [vmem:[%s3773_s1 + $0x398] sm:$0xff] }
  0x2d   :  { %v224_v24 = vld [vmem:[%s3773_s1 + $0x648] sm:$0xff]  ;;  %712 = vmatprep.subr.mxu1 %v488_v21  ;;  %v223_v26 = vld [vmem:[%s3773_s1 + $0x640] sm:$0xff]  ;;  %642 = vmatpush2.msra.mxu0 %v231_v22  ;;  %v394_v17 = vld [vmem:[%s3773_s1 + $0xb98] sm:$0xff] }
  0x2e   :  { %v480_v25 = vld [vmem:[%s3773_s1 + $0xe48] sm:$0xff]  ;;  %v479_v27 = vld [vmem:[%s3773_s1 + $0xe40] sm:$0xff]  ;;  %713 = vmatpush2.msra.mxu1 %v487_v23  ;;  %643 = vmatprep.subr.mxu0 %v224_v24  ;;  %v137_v18 = vld [vmem:[%s3773_s1 + $0x390] sm:$0xff] }
  0x2f   :  { %v216_v28 = vld [vmem:[%s3773_s1 + $0x608] sm:$0xff]  ;;  %714 = vmatprep.subr.mxu1 %v480_v25  ;;  %v215_v33 = vld [vmem:[%s3773_s1 + $0x600] sm:$0xff]  ;;  %644 = vmatpush2.msra.mxu0 %v223_v26  ;;  %v393_v19 = vld [vmem:[%s3773_s1 + $0xb90] sm:$0xff] }
  0x30   :  { %v472_v29 = vld [vmem:[%s3773_s1 + $0xe08] sm:$0xff]  ;;  %v471_v34 = vld [vmem:[%s3773_s1 + $0xe00] sm:$0xff]  ;;  %715 = vmatpush2.msra.mxu1 %v479_v27  ;;  %645 = vmatprep.subr.mxu0 %v216_v28  ;;  %v130_v20 = vld [vmem:[%s3773_s1 + $0x358] sm:$0xff] }
  0x31   :  { %v208_v35 = vld [vmem:[%s3773_s1 + $0x5c8] sm:$0xff]  ;;  %716 = vmatprep.subr.mxu1 %v472_v29  ;;  %v207_v37 = vld [vmem:[%s3773_s1 + $0x5c0] sm:$0xff]  ;;  %646 = vmatpush2.msra.mxu0 %v215_v33  ;;  %v386_v21 = vld [vmem:[%s3773_s1 + $0xb58] sm:$0xff] }
  0x32   :  { %v464_v36 = vld [vmem:[%s3773_s1 + $0xdc8] sm:$0xff]  ;;  %v463_v38 = vld [vmem:[%s3773_s1 + $0xdc0] sm:$0xff]  ;;  %717 = vmatpush2.msra.mxu1 %v471_v34  ;;  %647 = vmatprep.subr.mxu0 %v208_v35  ;;  %v129_v22 = vld [vmem:[%s3773_s1 + $0x350] sm:$0xff] }
  0x33   :  { %v200_v39 = vld [vmem:[%s3773_s1 + $0x588] sm:$0xff]  ;;  %718 = vmatprep.subr.mxu1 %v464_v36  ;;  %v199_v43 = vld [vmem:[%s3773_s1 + $0x580] sm:$0xff]  ;;  %648 = vmatpush2.msra.mxu0 %v207_v37  ;;  %v385_v23 = vld [vmem:[%s3773_s1 + $0xb50] sm:$0xff] }
  0x34   :  { %v456_v40 = vld [vmem:[%s3773_s1 + $0xd88] sm:$0xff]  ;;  %v455_v44 = vld [vmem:[%s3773_s1 + $0xd80] sm:$0xff]  ;;  %719 = vmatpush2.msra.mxu1 %v463_v38  ;;  %649 = vmatprep.subr.mxu0 %v200_v39  ;;  %v122_v24 = vld [vmem:[%s3773_s1 + $0x318] sm:$0xff] }
  0x35   :  { %v192_v45 = vld [vmem:[%s3773_s1 + $0x548] sm:$0xff]  ;;  %720 = vmatprep.subr.mxu1 %v456_v40  ;;  %v191_v47 = vld [vmem:[%s3773_s1 + $0x540] sm:$0xff]  ;;  %650 = vmatpush2.msra.mxu0 %v199_v43  ;;  %v378_v25 = vld [vmem:[%s3773_s1 + $0xb18] sm:$0xff] }
  0x36   :  { %v448_v46 = vld [vmem:[%s3773_s1 + $0xd48] sm:$0xff]  ;;  %v447_v48 = vld [vmem:[%s3773_s1 + $0xd40] sm:$0xff]  ;;  %721 = vmatpush2.msra.mxu1 %v455_v44  ;;  %651 = vmatprep.subr.mxu0 %v192_v45  ;;  %v121_v26 = vld [vmem:[%s3773_s1 + $0x310] sm:$0xff] }
  0x37   :  { %v22_v49 = vld [vmem:[%s3774_s0] sm:$0xff]  ;;  %v184_v50 = vld [vmem:[%s3773_s1 + $0x508] sm:$0xff]  ;;  %722 = vmatprep.subr.mxu1 %v448_v46  ;;  %652 = vmatpush2.msra.mxu0 %v191_v47  ;;  %v377_v27 = vld [vmem:[%s3773_s1 + $0xb10] sm:$0xff] }
  0x38   :  { %v440_v51 = vld [vmem:[%s3773_s1 + $0xd08] sm:$0xff]  ;;  %v183_v53 = vld [vmem:[%s3773_s1 + $0x500] sm:$0xff]  ;;  %723 = vmatpush2.msra.mxu1 %v447_v48  ;;  %v578_v57 = vcombine.high %v22_v49, %v22_v49  ;;  %653 = vmatprep.subr.mxu0 %v184_v50  ;;  %v2146_v62 = vrot.slane %v22_v49, %v584_v52  ;;  %v114_v28 = vld [vmem:[%s3773_s1 + $0x2d8] sm:$0xff] }
  0x39   :  { %v439_v54 = vld [vmem:[%s3773_s1 + $0xd00] sm:$0xff]  ;;  %v176_v55 = vld [vmem:[%s3773_s1 + $0x4c8] sm:$0xff]  ;;  %724 = vmatprep.subr.mxu1 %v440_v51  ;;  %654 = vmatpush2.msra.mxu0 %v183_v53  ;;  %v370_v29 = vld [vmem:[%s3773_s1 + $0xad8] sm:$0xff] }
  0x3a   :  { %v432_v56 = vld [vmem:[%s3773_s1 + $0xcc8] sm:$0xff]  ;;  %v175_v58 = vld [vmem:[%s3773_s1 + $0x4c0] sm:$0xff]  ;;  %725 = vmatpush2.msra.mxu1 %v439_v54  ;;  %655 = vmatprep.subr.mxu0 %v176_v55  ;;  %v2160_v3 = vrot.slane %v578_v57, %v584_v52  ;;  %v2176_v8 = vcombine.high %v2146_v62, %v2146_v62  ;;  %v362_v33 = vld [vmem:[%s3773_s1 + $0xa98] sm:$0xff] }
  0x3b   :  { %v431_v59 = vld [vmem:[%s3773_s1 + $0xcc0] sm:$0xff]  ;;  %v168_v60 = vld [vmem:[%s3773_s1 + $0x488] sm:$0xff]  ;;  %726 = vmatprep.subr.mxu1 %v432_v56  ;;  %656 = vmatpush2.msra.mxu0 %v175_v58  ;;  %v105_v34 = vld [vmem:[%s3773_s1 + $0x290] sm:$0xff] }
  0x3c   :  { %v424_v61 = vld [vmem:[%s3773_s1 + $0xc88] sm:$0xff]  ;;  %v167_v63 = vld [vmem:[%s3773_s1 + $0x480] sm:$0xff]  ;;  %727 = vmatpush2.msra.mxu1 %v431_v59  ;;  %657 = vmatprep.subr.mxu0 %v168_v60  ;;  %v2186_v11 = vcombine.high %v2160_v3, %v2160_v3  ;;  %v361_v35 = vld [vmem:[%s3773_s1 + $0xa90] sm:$0xff] }
  0x3d   :  { %v423_v0 = vld [vmem:[%s3773_s1 + $0xc80] sm:$0xff]  ;;  %v160_v1 = vld [vmem:[%s3773_s1 + $0x448] sm:$0xff]  ;;  %728 = vmatprep.subr.mxu1 %v424_v61  ;;  %658 = vmatpush2.msra.mxu0 %v167_v63  ;;  %v98_v36 = vld [vmem:[%s3773_s1 + $0x258] sm:$0xff] }
  0x3e   :  { %v416_v2 = vld [vmem:[%s3773_s1 + $0xc48] sm:$0xff]  ;;  %v159_v4 = vld [vmem:[%s3773_s1 + $0x440] sm:$0xff]  ;;  %729 = vmatpush2.msra.mxu1 %v423_v0  ;;  %659 = vmatprep.subr.mxu0 %v160_v1  ;;  %v354_v37 = vld [vmem:[%s3773_s1 + $0xa58] sm:$0xff] }
  0x3f   :  { %v415_v5 = vld [vmem:[%s3773_s1 + $0xc40] sm:$0xff]  ;;  %v152_v6 = vld [vmem:[%s3773_s1 + $0x408] sm:$0xff]  ;;  %730 = vmatprep.subr.mxu1 %v416_v2  ;;  %660 = vmatpush2.msra.mxu0 %v159_v4  ;;  %v97_v38 = vld [vmem:[%s3773_s1 + $0x250] sm:$0xff] }
  0x40   :  { %v408_v7 = vld [vmem:[%s3773_s1 + $0xc08] sm:$0xff]  ;;  %v151_v9 = vld [vmem:[%s3773_s1 + $0x400] sm:$0xff]  ;;  %731 = vmatpush2.msra.mxu1 %v415_v5  ;;  %661 = vmatprep.subr.mxu0 %v152_v6  ;;  %v353_v39 = vld [vmem:[%s3773_s1 + $0xa50] sm:$0xff] }
  0x41   :  { %v407_v10 = vld [vmem:[%s3773_s1 + $0xc00] sm:$0xff]  ;;  %732 = vmatprep.subr.mxu1 %v408_v7  ;;  %662 = vmatpush2.msra.mxu0 %v151_v9  ;;  %v90_v40 = vld [vmem:[%s3773_s1 + $0x218] sm:$0xff]  ;;  %v89_v43 = vld [vmem:[%s3773_s1 + $0x210] sm:$0xff] }
  0x42   :  { %663 = vmatprep.mubr.f32.mxu0 %v2176_v8  ;;  %733 = vmatpush2.msra.mxu1 %v407_v10  ;;  %v345_v44 = vld [vmem:[%s3773_s1 + $0xa10] sm:$0xff]  ;;  %v82_v45 = vld [vmem:[%s3773_s1 + $0x1d8] sm:$0xff] }
  0x43   :  { %664 = vmatmul.mubr.f32.vlgmr.msra.gmra.mxu0 %v2146_v62  ;;  %734 = vmatprep.mubr.f32.mxu1 %v2186_v11  ;;  %v338_v46 = vld [vmem:[%s3773_s1 + $0x9d8] sm:$0xff]  ;;  %v81_v47 = vld [vmem:[%s3773_s1 + $0x1d0] sm:$0xff] }
  0x44   :  { %741 = vmatprep.subr.mxu0 %v146_v12  ;;  %812 = vmatprep.subr.mxu1 %v402_v13  ;;  %v337_v48 = vld [vmem:[%s3773_s1 + $0x9d0] sm:$0xff]  ;;  %v74_v49 = vld [vmem:[%s3773_s1 + $0x198] sm:$0xff] }
  0x45   :  { %735 = vmatmul.mubr.f32.vlgmr.msra.gmra.mxu1 %v2160_v3  ;;  %742 = vmatpush1.msra.mxu0 %v145_v14  ;;  %v330_v50 = vld [vmem:[%s3773_s1 + $0x998] sm:$0xff]  ;;  %v73_v51 = vld [vmem:[%s3773_s1 + $0x190] sm:$0xff] }
  0x46   :  { %813 = vmatpush1.msra.mxu1 %v401_v15  ;;  %743 = vmatprep.subr.mxu0 %v138_v16  ;;  %v329_v52 = vld [vmem:[%s3773_s1 + $0x990] sm:$0xff]  ;;  %v66_v53 = vld [vmem:[%s3773_s1 + $0x158] sm:$0xff] }
  0x47   :  { %814 = vmatprep.subr.mxu1 %v394_v17  ;;  %744 = vmatpush1.msra.mxu0 %v137_v18  ;;  %v322_v54 = vld [vmem:[%s3773_s1 + $0x958] sm:$0xff]  ;;  %v65_v55 = vld [vmem:[%s3773_s1 + $0x150] sm:$0xff] }
  0x48   :  { %815 = vmatpush1.msra.mxu1 %v393_v19  ;;  %745 = vmatprep.subr.mxu0 %v130_v20  ;;  %v321_v56 = vld [vmem:[%s3773_s1 + $0x950] sm:$0xff]  ;;  %v58_v57 = vld [vmem:[%s3773_s1 + $0x118] sm:$0xff] }
  0x49   :  { %816 = vmatprep.subr.mxu1 %v386_v21  ;;  %746 = vmatpush1.msra.mxu0 %v129_v22  ;;  %v314_v58 = vld [vmem:[%s3773_s1 + $0x918] sm:$0xff]  ;;  %v57_v59 = vld [vmem:[%s3773_s1 + $0x110] sm:$0xff] }
  0x4a   :  { %817 = vmatpush1.msra.mxu1 %v385_v23  ;;  %747 = vmatprep.subr.mxu0 %v122_v24  ;;  %v313_v60 = vld [vmem:[%s3773_s1 + $0x910] sm:$0xff]  ;;  %v50_v61 = vld [vmem:[%s3773_s1 + $0xd8] sm:$0xff] }
  0x4b   :  { %818 = vmatprep.subr.mxu1 %v378_v25  ;;  %748 = vmatpush1.msra.mxu0 %v121_v26  ;;  %v306_v63 = vld [vmem:[%s3773_s1 + $0x8d8] sm:$0xff]  ;;  %v49_v0 = vld [vmem:[%s3773_s1 + $0xd0] sm:$0xff] }
  0x4c   :  { %819 = vmatpush1.msra.mxu1 %v377_v27  ;;  %749 = vmatprep.subr.mxu0 %v114_v28  ;;  %v305_v1 = vld [vmem:[%s3773_s1 + $0x8d0] sm:$0xff]  ;;  %v42_v2 = vld [vmem:[%s3773_s1 + $0x98] sm:$0xff] }
  0x4d   :  { %820 = vmatprep.subr.mxu1 %v370_v29  ;;  %750 = vmatpush1.msra.mxu0 %v113_v30  ;;  %v298_v4 = vld [vmem:[%s3773_s1 + $0x898] sm:$0xff]  ;;  %v41_v5 = vld [vmem:[%s3773_s1 + $0x90] sm:$0xff] }
  0x4e   :  { %821 = vmatpush1.msra.mxu1 %v369_v31  ;;  %751 = vmatprep.subr.mxu0 %v106_v32  ;;  %v297_v6 = vld [vmem:[%s3773_s1 + $0x890] sm:$0xff]  ;;  %v34_v7 = vld [vmem:[%s3773_s1 + $0x58] sm:$0xff] }
  0x4f   :  { %822 = vmatprep.subr.mxu1 %v362_v33  ;;  %752 = vmatpush1.msra.mxu0 %v105_v34  ;;  %v290_v9 = vld [vmem:[%s3773_s1 + $0x858] sm:$0xff]  ;;  %v33_v10 = vld [vmem:[%s3773_s1 + $0x50] sm:$0xff] }
  0x50   :  { %823 = vmatpush1.msra.mxu1 %v361_v35  ;;  %753 = vmatprep.subr.mxu0 %v98_v36  ;;  %v289_v12 = vld [vmem:[%s3773_s1 + $0x850] sm:$0xff]  ;;  %v26_v13 = vld [vmem:[%s3773_s1 + $0x18] sm:$0xff] }
  0x51   :  { %824 = vmatprep.subr.mxu1 %v354_v37  ;;  %754 = vmatpush1.msra.mxu0 %v97_v38  ;;  %v282_v14 = vld [vmem:[%s3773_s1 + $0x818] sm:$0xff]  ;;  %v25_v15 = vld [vmem:[%s3773_s1 + $0x10] sm:$0xff] }
  0x52   :  { %825 = vmatpush1.msra.mxu1 %v353_v39  ;;  %755 = vmatprep.subr.mxu0 %v90_v40  ;;  %v281_v16 = vld [vmem:[%s3773_s1 + $0x810] sm:$0xff]  ;;  %v274_v17 = vld [vmem:[%s3773_s1 + $0x7d8] sm:$0xff] }
  0x53   :  { %826 = vmatprep.subr.mxu1 %v346_v42  ;;  %756 = vmatpush1.msra.mxu0 %v89_v43  ;;  %v530_v18 = vld [vmem:[%s3773_s1 + $0xfd8] sm:$0xff]  ;;  %v273_v19 = vld [vmem:[%s3773_s1 + $0x7d0] sm:$0xff] }
  0x54   :  { %827 = vmatpush1.msra.mxu1 %v345_v44  ;;  %757 = vmatprep.subr.mxu0 %v82_v45  ;;  %v529_v20 = vld [vmem:[%s3773_s1 + $0xfd0] sm:$0xff]  ;;  %v266_v21 = vld [vmem:[%s3773_s1 + $0x798] sm:$0xff] }
  0x55   :  { %828 = vmatprep.subr.mxu1 %v338_v46  ;;  %758 = vmatpush1.msra.mxu0 %v81_v47  ;;  %v522_v22 = vld [vmem:[%s3773_s1 + $0xf98] sm:$0xff]  ;;  %v265_v23 = vld [vmem:[%s3773_s1 + $0x790] sm:$0xff] }
  0x56   :  { %829 = vmatpush1.msra.mxu1 %v337_v48  ;;  %759 = vmatprep.subr.mxu0 %v74_v49  ;;  %v521_v24 = vld [vmem:[%s3773_s1 + $0xf90] sm:$0xff]  ;;  %v258_v25 = vld [vmem:[%s3773_s1 + $0x758] sm:$0xff] }
  0x57   :  { %830 = vmatprep.subr.mxu1 %v330_v50  ;;  %760 = vmatpush1.msra.mxu0 %v73_v51  ;;  %v514_v26 = vld [vmem:[%s3773_s1 + $0xf58] sm:$0xff]  ;;  %v257_v27 = vld [vmem:[%s3773_s1 + $0x750] sm:$0xff] }
  0x58   :  { %831 = vmatpush1.msra.mxu1 %v329_v52  ;;  %761 = vmatprep.subr.mxu0 %v66_v53  ;;  %v513_v28 = vld [vmem:[%s3773_s1 + $0xf50] sm:$0xff]  ;;  %v250_v29 = vld [vmem:[%s3773_s1 + $0x718] sm:$0xff] }
  0x59   :  { %832 = vmatprep.subr.mxu1 %v322_v54  ;;  %762 = vmatpush1.msra.mxu0 %v65_v55  ;;  %v506_v30 = vld [vmem:[%s3773_s1 + $0xf18] sm:$0xff]  ;;  %v249_v31 = vld [vmem:[%s3773_s1 + $0x710] sm:$0xff] }
  0x5a   :  { %833 = vmatpush1.msra.mxu1 %v321_v56  ;;  %763 = vmatprep.subr.mxu0 %v58_v57  ;;  %v505_v32 = vld [vmem:[%s3773_s1 + $0xf10] sm:$0xff]  ;;  %v242_v33 = vld [vmem:[%s3773_s1 + $0x6d8] sm:$0xff] }
  0x5b   :  { %834 = vmatprep.subr.mxu1 %v314_v58  ;;  %764 = vmatpush1.msra.mxu0 %v57_v59  ;;  %v498_v34 = vld [vmem:[%s3773_s1 + $0xed8] sm:$0xff]  ;;  %v241_v35 = vld [vmem:[%s3773_s1 + $0x6d0] sm:$0xff] }
  0x5c   :  { %835 = vmatpush1.msra.mxu1 %v313_v60  ;;  %765 = vmatprep.subr.mxu0 %v50_v61  ;;  %v497_v36 = vld [vmem:[%s3773_s1 + $0xed0] sm:$0xff]  ;;  %v234_v37 = vld [vmem:[%s3773_s1 + $0x698] sm:$0xff] }
  0x5d   :  { %836 = vmatprep.subr.mxu1 %v306_v63  ;;  %766 = vmatpush1.msra.mxu0 %v49_v0  ;;  %v490_v38 = vld [vmem:[%s3773_s1 + $0xe98] sm:$0xff]  ;;  %v233_v39 = vld [vmem:[%s3773_s1 + $0x690] sm:$0xff] }
  0x5e   :  { %837 = vmatpush1.msra.mxu1 %v305_v1  ;;  %767 = vmatprep.subr.mxu0 %v42_v2  ;;  %v489_v40 = vld [vmem:[%s3773_s1 + $0xe90] sm:$0xff]  ;;  %v226_v42 = vld [vmem:[%s3773_s1 + $0x658] sm:$0xff] }
  0x5f   :  { %838 = vmatprep.subr.mxu1 %v298_v4  ;;  %768 = vmatpush1.msra.mxu0 %v41_v5  ;;  %v482_v43 = vld [vmem:[%s3773_s1 + $0xe58] sm:$0xff]  ;;  %v225_v44 = vld [vmem:[%s3773_s1 + $0x650] sm:$0xff] }
  0x60   :  { %839 = vmatpush1.msra.mxu1 %v297_v6  ;;  %769 = vmatprep.subr.mxu0 %v34_v7  ;;  %v481_v45 = vld [vmem:[%s3773_s1 + $0xe50] sm:$0xff]  ;;  %v218_v46 = vld [vmem:[%s3773_s1 + $0x618] sm:$0xff] }
  0x61   :  { %840 = vmatprep.subr.mxu1 %v290_v9  ;;  %770 = vmatpush1.msra.mxu0 %v33_v10  ;;  %v474_v47 = vld [vmem:[%s3773_s1 + $0xe18] sm:$0xff]  ;;  %v217_v48 = vld [vmem:[%s3773_s1 + $0x610] sm:$0xff] }
  0x62   :  { %841 = vmatpush1.msra.mxu1 %v289_v12  ;;  %771 = vmatprep.subr.mxu0 %v26_v13  ;;  %v473_v49 = vld [vmem:[%s3773_s1 + $0xe10] sm:$0xff]  ;;  %v210_v50 = vld [vmem:[%s3773_s1 + $0x5d8] sm:$0xff] }
  0x63   :  { %842 = vmatprep.subr.mxu1 %v282_v14  ;;  %772 = vmatpush1.msra.mxu0 %v25_v15  ;;  %v466_v51 = vld [vmem:[%s3773_s1 + $0xdd8] sm:$0xff]  ;;  %v209_v52 = vld [vmem:[%s3773_s1 + $0x5d0] sm:$0xff] }
  0x64   :  { %843 = vmatpush1.msra.mxu1 %v281_v16  ;;  %773 = vmatprep.subr.mxu0 %v274_v17  ;;  %v465_v53 = vld [vmem:[%s3773_s1 + $0xdd0] sm:$0xff]  ;;  %v202_v54 = vld [vmem:[%s3773_s1 + $0x598] sm:$0xff] }
  0x65   :  { %844 = vmatprep.subr.mxu1 %v530_v18  ;;  %774 = vmatpush2.msra.mxu0 %v273_v19  ;;  %v458_v55 = vld [vmem:[%s3773_s1 + $0xd98] sm:$0xff]  ;;  %v201_v56 = vld [vmem:[%s3773_s1 + $0x590] sm:$0xff] }
  0x66   :  { %845 = vmatpush2.msra.mxu1 %v529_v20  ;;  %775 = vmatprep.subr.mxu0 %v266_v21  ;;  %v457_v57 = vld [vmem:[%s3773_s1 + $0xd90] sm:$0xff]  ;;  %v194_v58 = vld [vmem:[%s3773_s1 + $0x558] sm:$0xff] }
  0x67   :  { %846 = vmatprep.subr.mxu1 %v522_v22  ;;  %776 = vmatpush2.msra.mxu0 %v265_v23  ;;  %v450_v59 = vld [vmem:[%s3773_s1 + $0xd58] sm:$0xff]  ;;  %v193_v60 = vld [vmem:[%s3773_s1 + $0x550] sm:$0xff]  ;;  %v148_v22 = vld [vmem:[%s3773_s1 + $0x3e8] sm:$0xff] }
  0x68   :  { %847 = vmatpush2.msra.mxu1 %v521_v24  ;;  %777 = vmatprep.subr.mxu0 %v258_v25  ;;  %v449_v61 = vld [vmem:[%s3773_s1 + $0xd50] sm:$0xff]  ;;  %v186_v63 = vld [vmem:[%s3773_s1 + $0x518] sm:$0xff]  ;;  %v404_v23 = vld [vmem:[%s3773_s1 + $0xbe8] sm:$0xff] }
  0x69   :  { %848 = vmatprep.subr.mxu1 %v514_v26  ;;  %778 = vmatpush2.msra.mxu0 %v257_v27  ;;  %v442_v0 = vld [vmem:[%s3773_s1 + $0xd18] sm:$0xff]  ;;  %v185_v1 = vld [vmem:[%s3773_s1 + $0x510] sm:$0xff]  ;;  %v147_v24 = vld [vmem:[%s3773_s1 + $0x3e0] sm:$0xff] }
  0x6a   :  { %849 = vmatpush2.msra.mxu1 %v513_v28  ;;  %779 = vmatprep.subr.mxu0 %v250_v29  ;;  %v441_v2 = vld [vmem:[%s3773_s1 + $0xd10] sm:$0xff]  ;;  %v178_v4 = vld [vmem:[%s3773_s1 + $0x4d8] sm:$0xff]  ;;  %v403_v25 = vld [vmem:[%s3773_s1 + $0xbe0] sm:$0xff] }
  0x6b   :  { %850 = vmatprep.subr.mxu1 %v506_v30  ;;  %780 = vmatpush2.msra.mxu0 %v249_v31  ;;  %v434_v5 = vld [vmem:[%s3773_s1 + $0xcd8] sm:$0xff]  ;;  %v177_v6 = vld [vmem:[%s3773_s1 + $0x4d0] sm:$0xff]  ;;  %v140_v26 = vld [vmem:[%s3773_s1 + $0x3a8] sm:$0xff] }
  0x6c   :  { %851 = vmatpush2.msra.mxu1 %v505_v32  ;;  %781 = vmatprep.subr.mxu0 %v242_v33  ;;  %v433_v7 = vld [vmem:[%s3773_s1 + $0xcd0] sm:$0xff]  ;;  %v170_v9 = vld [vmem:[%s3773_s1 + $0x498] sm:$0xff]  ;;  %v396_v27 = vld [vmem:[%s3773_s1 + $0xba8] sm:$0xff] }
  0x6d   :  { %852 = vmatprep.subr.mxu1 %v498_v34  ;;  %782 = vmatpush2.msra.mxu0 %v241_v35  ;;  %v426_v10 = vld [vmem:[%s3773_s1 + $0xc98] sm:$0xff]  ;;  %v169_v12 = vld [vmem:[%s3773_s1 + $0x490] sm:$0xff]  ;;  %v139_v28 = vld [vmem:[%s3773_s1 + $0x3a0] sm:$0xff] }
  0x6e   :  { %853 = vmatpush2.msra.mxu1 %v497_v36  ;;  %783 = vmatprep.subr.mxu0 %v234_v37  ;;  %v425_v13 = vld [vmem:[%s3773_s1 + $0xc90] sm:$0xff]  ;;  %v162_v14 = vld [vmem:[%s3773_s1 + $0x458] sm:$0xff]  ;;  %v395_v29 = vld [vmem:[%s3773_s1 + $0xba0] sm:$0xff] }
  0x6f   :  { %854 = vmatprep.subr.mxu1 %v490_v38  ;;  %784 = vmatpush2.msra.mxu0 %v233_v39  ;;  %v418_v15 = vld [vmem:[%s3773_s1 + $0xc58] sm:$0xff]  ;;  %v161_v16 = vld [vmem:[%s3773_s1 + $0x450] sm:$0xff]  ;;  %v132_v30 = vld [vmem:[%s3773_s1 + $0x368] sm:$0xff] }
  0x70   :  { %855 = vmatpush2.msra.mxu1 %v489_v40  ;;  %785 = vmatprep.subr.mxu0 %v226_v42  ;;  %v417_v17 = vld [vmem:[%s3773_s1 + $0xc50] sm:$0xff]  ;;  %v154_v18 = vld [vmem:[%s3773_s1 + $0x418] sm:$0xff]  ;;  %v388_v31 = vld [vmem:[%s3773_s1 + $0xb68] sm:$0xff] }
  0x71   :  { %856 = vmatprep.subr.mxu1 %v482_v43  ;;  %786 = vmatpush2.msra.mxu0 %v225_v44  ;;  %v410_v19 = vld [vmem:[%s3773_s1 + $0xc18] sm:$0xff]  ;;  %v153_v20 = vld [vmem:[%s3773_s1 + $0x410] sm:$0xff]  ;;  %v131_v32 = vld [vmem:[%s3773_s1 + $0x360] sm:$0xff] }
  0x72   :  { %857 = vmatpush2.msra.mxu1 %v481_v45  ;;  %787 = vmatprep.subr.mxu0 %v218_v46  ;;  %v409_v21 = vld [vmem:[%s3773_s1 + $0xc10] sm:$0xff]  ;;  %v387_v33 = vld [vmem:[%s3773_s1 + $0xb60] sm:$0xff]  ;;  %v124_v34 = vld [vmem:[%s3773_s1 + $0x328] sm:$0xff] }
  0x73   :  { %858 = vmatprep.subr.mxu1 %v474_v47  ;;  %788 = vmatpush2.msra.mxu0 %v217_v48  ;;  %v380_v35 = vld [vmem:[%s3773_s1 + $0xb28] sm:$0xff]  ;;  %v123_v36 = vld [vmem:[%s3773_s1 + $0x320] sm:$0xff] }
  0x74   :  { %859 = vmatpush2.msra.mxu1 %v473_v49  ;;  %789 = vmatprep.subr.mxu0 %v210_v50  ;;  %v379_v37 = vld [vmem:[%s3773_s1 + $0xb20] sm:$0xff]  ;;  %v116_v38 = vld [vmem:[%s3773_s1 + $0x2e8] sm:$0xff] }
  0x75   :  { %860 = vmatprep.subr.mxu1 %v466_v51  ;;  %790 = vmatpush2.msra.mxu0 %v209_v52  ;;  %v372_v39 = vld [vmem:[%s3773_s1 + $0xae8] sm:$0xff]  ;;  %v115_v40 = vld [vmem:[%s3773_s1 + $0x2e0] sm:$0xff] }
  0x76   :  { %861 = vmatpush2.msra.mxu1 %v465_v53  ;;  %791 = vmatprep.subr.mxu0 %v202_v54  ;;  %v371_v42 = vld [vmem:[%s3773_s1 + $0xae0] sm:$0xff]  ;;  %v108_v43 = vld [vmem:[%s3773_s1 + $0x2a8] sm:$0xff] }
  0x77   :  { %862 = vmatprep.subr.mxu1 %v458_v55  ;;  %792 = vmatpush2.msra.mxu0 %v201_v56  ;;  %v364_v44 = vld [vmem:[%s3773_s1 + $0xaa8] sm:$0xff]  ;;  %v107_v45 = vld [vmem:[%s3773_s1 + $0x2a0] sm:$0xff] }
  0x78   :  { %863 = vmatpush2.msra.mxu1 %v457_v57  ;;  %793 = vmatprep.subr.mxu0 %v194_v58  ;;  %v363_v46 = vld [vmem:[%s3773_s1 + $0xaa0] sm:$0xff]  ;;  %v100_v47 = vld [vmem:[%s3773_s1 + $0x268] sm:$0xff] }
  0x79   :  { %864 = vmatprep.subr.mxu1 %v450_v59  ;;  %794 = vmatpush2.msra.mxu0 %v193_v60  ;;  %v356_v48 = vld [vmem:[%s3773_s1 + $0xa68] sm:$0xff]  ;;  %v99_v49 = vld [vmem:[%s3773_s1 + $0x260] sm:$0xff] }
  0x7a   :  { %865 = vmatpush2.msra.mxu1 %v449_v61  ;;  %795 = vmatprep.subr.mxu0 %v186_v63  ;;  %v355_v50 = vld [vmem:[%s3773_s1 + $0xa60] sm:$0xff]  ;;  %v92_v51 = vld [vmem:[%s3773_s1 + $0x228] sm:$0xff] }
  0x7b   :  { %866 = vmatprep.subr.mxu1 %v442_v0  ;;  %796 = vmatpush2.msra.mxu0 %v185_v1  ;;  %v348_v52 = vld [vmem:[%s3773_s1 + $0xa28] sm:$0xff]  ;;  %v91_v53 = vld [vmem:[%s3773_s1 + $0x220] sm:$0xff] }
  0x7c   :  { %867 = vmatpush2.msra.mxu1 %v441_v2  ;;  %797 = vmatprep.subr.mxu0 %v178_v4  ;;  %v347_v54 = vld [vmem:[%s3773_s1 + $0xa20] sm:$0xff]  ;;  %v84_v55 = vld [vmem:[%s3773_s1 + $0x1e8] sm:$0xff] }
  0x7d   :  { %868 = vmatprep.subr.mxu1 %v434_v5  ;;  %798 = vmatpush2.msra.mxu0 %v177_v6  ;;  %v340_v56 = vld [vmem:[%s3773_s1 + $0x9e8] sm:$0xff]  ;;  %v83_v57 = vld [vmem:[%s3773_s1 + $0x1e0] sm:$0xff] }
  0x7e   :  { %869 = vmatpush2.msra.mxu1 %v433_v7  ;;  %799 = vmatprep.subr.mxu0 %v170_v9  ;;  %v339_v58 = vld [vmem:[%s3773_s1 + $0x9e0] sm:$0xff]  ;;  %v76_v59 = vld [vmem:[%s3773_s1 + $0x1a8] sm:$0xff] }
  0x7f   :  { %870 = vmatprep.subr.mxu1 %v426_v10  ;;  %800 = vmatpush2.msra.mxu0 %v169_v12  ;;  %v332_v60 = vld [vmem:[%s3773_s1 + $0x9a8] sm:$0xff]  ;;  %v75_v61 = vld [vmem:[%s3773_s1 + $0x1a0] sm:$0xff] }
  0x80   :  { %871 = vmatpush2.msra.mxu1 %v425_v13  ;;  %801 = vmatprep.subr.mxu0 %v162_v14  ;;  %v331_v63 = vld [vmem:[%s3773_s1 + $0x9a0] sm:$0xff]  ;;  %v68_v0 = vld [vmem:[%s3773_s1 + $0x168] sm:$0xff] }
  0x81   :  { %872 = vmatprep.subr.mxu1 %v418_v15  ;;  %802 = vmatpush2.msra.mxu0 %v161_v16  ;;  %v324_v1 = vld [vmem:[%s3773_s1 + $0x968] sm:$0xff]  ;;  %v67_v2 = vld [vmem:[%s3773_s1 + $0x160] sm:$0xff] }
  0x82   :  { %873 = vmatpush2.msra.mxu1 %v417_v17  ;;  %803 = vmatprep.subr.mxu0 %v154_v18  ;;  %v323_v4 = vld [vmem:[%s3773_s1 + $0x960] sm:$0xff]  ;;  %v60_v5 = vld [vmem:[%s3773_s1 + $0x128] sm:$0xff] }
  0x83   :  { %874 = vmatprep.subr.mxu1 %v410_v19  ;;  %804 = vmatpush2.msra.mxu0 %v153_v20  ;;  %v316_v6 = vld [vmem:[%s3773_s1 + $0x928] sm:$0xff]  ;;  %v59_v7 = vld [vmem:[%s3773_s1 + $0x120] sm:$0xff] }
  0x84   :  { %805 = vmatprep.mubr.f32.mxu0 %v2176_v8  ;;  %875 = vmatpush2.msra.mxu1 %v409_v21  ;;  %v315_v9 = vld [vmem:[%s3773_s1 + $0x920] sm:$0xff]  ;;  %v52_v10 = vld [vmem:[%s3773_s1 + $0xe8] sm:$0xff] }
  0x85   :  { %806 = vmatmul.mubr.f32.vlgmr.msra.gmra.mxu0 %v2146_v62  ;;  %876 = vmatprep.mubr.f32.mxu1 %v2186_v11  ;;  %v308_v12 = vld [vmem:[%s3773_s1 + $0x8e8] sm:$0xff]  ;;  %v51_v13 = vld [vmem:[%s3773_s1 + $0xe0] sm:$0xff] }
  0x86   :  { %883 = vmatprep.subr.mxu0 %v148_v22  ;;  %954 = vmatprep.subr.mxu1 %v404_v23  ;;  %v307_v14 = vld [vmem:[%s3773_s1 + $0x8e0] sm:$0xff]  ;;  %v44_v15 = vld [vmem:[%s3773_s1 + $0xa8] sm:$0xff] }
  0x87   :  { %877 = vmatmul.mubr.f32.vlgmr.msra.gmra.mxu1 %v2160_v3  ;;  %884 = vmatpush1.msra.mxu0 %v147_v24  ;;  %v300_v16 = vld [vmem:[%s3773_s1 + $0x8a8] sm:$0xff]  ;;  %v43_v17 = vld [vmem:[%s3773_s1 + $0xa0] sm:$0xff] }
  0x88   :  { %955 = vmatpush1.msra.mxu1 %v403_v25  ;;  %885 = vmatprep.subr.mxu0 %v140_v26  ;;  %v299_v18 = vld [vmem:[%s3773_s1 + $0x8a0] sm:$0xff]  ;;  %v36_v19 = vld [vmem:[%s3773_s1 + $0x68] sm:$0xff] }
  0x89   :  { %956 = vmatprep.subr.mxu1 %v396_v27  ;;  %886 = vmatpush1.msra.mxu0 %v139_v28  ;;  %v292_v20 = vld [vmem:[%s3773_s1 + $0x868] sm:$0xff]  ;;  %v35_v21 = vld [vmem:[%s3773_s1 + $0x60] sm:$0xff] }
  0x8a   :  { %957 = vmatpush1.msra.mxu1 %v395_v29  ;;  %887 = vmatprep.subr.mxu0 %v132_v30  ;;  %v291_v22 = vld [vmem:[%s3773_s1 + $0x860] sm:$0xff]  ;;  %v28_v23 = vld [vmem:[%s3773_s1 + $0x28] sm:$0xff] }
  0x8b   :  { %958 = vmatprep.subr.mxu1 %v388_v31  ;;  %888 = vmatpush1.msra.mxu0 %v131_v32  ;;  %v284_v24 = vld [vmem:[%s3773_s1 + $0x828] sm:$0xff]  ;;  %v27_v25 = vld [vmem:[%s3773_s1 + $0x20] sm:$0xff] }
  0x8c   :  { %959 = vmatpush1.msra.mxu1 %v387_v33  ;;  %889 = vmatprep.subr.mxu0 %v124_v34  ;;  %v283_v26 = vld [vmem:[%s3773_s1 + $0x820] sm:$0xff]  ;;  %v276_v27 = vld [vmem:[%s3773_s1 + $0x7e8] sm:$0xff] }
  0x8d   :  { %960 = vmatprep.subr.mxu1 %v380_v35  ;;  %890 = vmatpush1.msra.mxu0 %v123_v36  ;;  %v532_v28 = vld [vmem:[%s3773_s1 + $0xfe8] sm:$0xff]  ;;  %v275_v29 = vld [vmem:[%s3773_s1 + $0x7e0] sm:$0xff] }
  0x8e   :  { %961 = vmatpush1.msra.mxu1 %v379_v37  ;;  %891 = vmatprep.subr.mxu0 %v116_v38  ;;  %v531_v30 = vld [vmem:[%s3773_s1 + $0xfe0] sm:$0xff]  ;;  %v268_v31 = vld [vmem:[%s3773_s1 + $0x7a8] sm:$0xff] }
  0x8f   :  { %962 = vmatprep.subr.mxu1 %v372_v39  ;;  %892 = vmatpush1.msra.mxu0 %v115_v40  ;;  %v524_v32 = vld [vmem:[%s3773_s1 + $0xfa8] sm:$0xff]  ;;  %v267_v33 = vld [vmem:[%s3773_s1 + $0x7a0] sm:$0xff] }
  0x90   :  { %963 = vmatpush1.msra.mxu1 %v371_v42  ;;  %893 = vmatprep.subr.mxu0 %v108_v43  ;;  %v523_v34 = vld [vmem:[%s3773_s1 + $0xfa0] sm:$0xff]  ;;  %v260_v35 = vld [vmem:[%s3773_s1 + $0x768] sm:$0xff] }
  0x91   :  { %964 = vmatprep.subr.mxu1 %v364_v44  ;;  %894 = vmatpush1.msra.mxu0 %v107_v45  ;;  %v516_v36 = vld [vmem:[%s3773_s1 + $0xf68] sm:$0xff]  ;;  %v259_v37 = vld [vmem:[%s3773_s1 + $0x760] sm:$0xff] }
  0x92   :  { %965 = vmatpush1.msra.mxu1 %v363_v46  ;;  %895 = vmatprep.subr.mxu0 %v100_v47  ;;  %v515_v38 = vld [vmem:[%s3773_s1 + $0xf60] sm:$0xff]  ;;  %v252_v39 = vld [vmem:[%s3773_s1 + $0x728] sm:$0xff] }
  0x93   :  { %966 = vmatprep.subr.mxu1 %v356_v48  ;;  %896 = vmatpush1.msra.mxu0 %v99_v49  ;;  %v508_v40 = vld [vmem:[%s3773_s1 + $0xf28] sm:$0xff]  ;;  %v251_v42 = vld [vmem:[%s3773_s1 + $0x720] sm:$0xff] }
  0x94   :  { %967 = vmatpush1.msra.mxu1 %v355_v50  ;;  %897 = vmatprep.subr.mxu0 %v92_v51  ;;  %v507_v43 = vld [vmem:[%s3773_s1 + $0xf20] sm:$0xff]  ;;  %v244_v44 = vld [vmem:[%s3773_s1 + $0x6e8] sm:$0xff] }
  0x95   :  { %968 = vmatprep.subr.mxu1 %v348_v52  ;;  %898 = vmatpush1.msra.mxu0 %v91_v53  ;;  %v500_v45 = vld [vmem:[%s3773_s1 + $0xee8] sm:$0xff]  ;;  %v243_v46 = vld [vmem:[%s3773_s1 + $0x6e0] sm:$0xff] }
  0x96   :  { %969 = vmatpush1.msra.mxu1 %v347_v54  ;;  %899 = vmatprep.subr.mxu0 %v84_v55  ;;  %v499_v47 = vld [vmem:[%s3773_s1 + $0xee0] sm:$0xff]  ;;  %v236_v48 = vld [vmem:[%s3773_s1 + $0x6a8] sm:$0xff] }
  0x97   :  { %970 = vmatprep.subr.mxu1 %v340_v56  ;;  %900 = vmatpush1.msra.mxu0 %v83_v57  ;;  %v492_v49 = vld [vmem:[%s3773_s1 + $0xea8] sm:$0xff]  ;;  %v235_v50 = vld [vmem:[%s3773_s1 + $0x6a0] sm:$0xff] }
  0x98   :  { %971 = vmatpush1.msra.mxu1 %v339_v58  ;;  %901 = vmatprep.subr.mxu0 %v76_v59  ;;  %v491_v51 = vld [vmem:[%s3773_s1 + $0xea0] sm:$0xff]  ;;  %v228_v52 = vld [vmem:[%s3773_s1 + $0x668] sm:$0xff] }
  0x99   :  { %972 = vmatprep.subr.mxu1 %v332_v60  ;;  %902 = vmatpush1.msra.mxu0 %v75_v61  ;;  %v484_v53 = vld [vmem:[%s3773_s1 + $0xe68] sm:$0xff]  ;;  %v227_v54 = vld [vmem:[%s3773_s1 + $0x660] sm:$0xff] }
  0x9a   :  { %973 = vmatpush1.msra.mxu1 %v331_v63  ;;  %903 = vmatprep.subr.mxu0 %v68_v0  ;;  %v483_v55 = vld [vmem:[%s3773_s1 + $0xe60] sm:$0xff]  ;;  %v220_v56 = vld [vmem:[%s3773_s1 + $0x628] sm:$0xff] }
  0x9b   :  { %974 = vmatprep.subr.mxu1 %v324_v1  ;;  %904 = vmatpush1.msra.mxu0 %v67_v2  ;;  %v476_v57 = vld [vmem:[%s3773_s1 + $0xe28] sm:$0xff]  ;;  %v219_v58 = vld [vmem:[%s3773_s1 + $0x620] sm:$0xff] }
  0x9c   :  { %975 = vmatpush1.msra.mxu1 %v323_v4  ;;  %905 = vmatprep.subr.mxu0 %v60_v5  ;;  %v475_v59 = vld [vmem:[%s3773_s1 + $0xe20] sm:$0xff]  ;;  %v212_v60 = vld [vmem:[%s3773_s1 + $0x5e8] sm:$0xff] }
  0x9d   :  { %976 = vmatprep.subr.mxu1 %v316_v6  ;;  %906 = vmatpush1.msra.mxu0 %v59_v7  ;;  %v468_v61 = vld [vmem:[%s3773_s1 + $0xde8] sm:$0xff]  ;;  %v211_v63 = vld [vmem:[%s3773_s1 + $0x5e0] sm:$0xff] }
  0x9e   :  { %977 = vmatpush1.msra.mxu1 %v315_v9  ;;  %907 = vmatprep.subr.mxu0 %v52_v10  ;;  %v467_v0 = vld [vmem:[%s3773_s1 + $0xde0] sm:$0xff]  ;;  %v204_v1 = vld [vmem:[%s3773_s1 + $0x5a8] sm:$0xff] }
  0x9f   :  { %978 = vmatprep.subr.mxu1 %v308_v12  ;;  %908 = vmatpush1.msra.mxu0 %v51_v13  ;;  %v460_v2 = vld [vmem:[%s3773_s1 + $0xda8] sm:$0xff]  ;;  %v203_v4 = vld [vmem:[%s3773_s1 + $0x5a0] sm:$0xff] }
  0xa0   :  { %979 = vmatpush1.msra.mxu1 %v307_v14  ;;  %909 = vmatprep.subr.mxu0 %v44_v15  ;;  %v459_v5 = vld [vmem:[%s3773_s1 + $0xda0] sm:$0xff]  ;;  %v196_v6 = vld [vmem:[%s3773_s1 + $0x568] sm:$0xff] }
  0xa1   :  { %980 = vmatprep.subr.mxu1 %v300_v16  ;;  %910 = vmatpush1.msra.mxu0 %v43_v17  ;;  %v452_v7 = vld [vmem:[%s3773_s1 + $0xd68] sm:$0xff]  ;;  %v195_v9 = vld [vmem:[%s3773_s1 + $0x560] sm:$0xff] }
  0xa2   :  { %981 = vmatpush1.msra.mxu1 %v299_v18  ;;  %911 = vmatprep.subr.mxu0 %v36_v19  ;;  %v451_v10 = vld [vmem:[%s3773_s1 + $0xd60] sm:$0xff]  ;;  %v188_v12 = vld [vmem:[%s3773_s1 + $0x528] sm:$0xff] }
  0xa3   :  { %982 = vmatprep.subr.mxu1 %v292_v20  ;;  %912 = vmatpush1.msra.mxu0 %v35_v21  ;;  %v444_v13 = vld [vmem:[%s3773_s1 + $0xd28] sm:$0xff]  ;;  %v187_v14 = vld [vmem:[%s3773_s1 + $0x520] sm:$0xff] }
  0xa4   :  { %983 = vmatpush1.msra.mxu1 %v291_v22  ;;  %913 = vmatprep.subr.mxu0 %v28_v23  ;;  %v443_v15 = vld [vmem:[%s3773_s1 + $0xd20] sm:$0xff]  ;;  %v180_v16 = vld [vmem:[%s3773_s1 + $0x4e8] sm:$0xff] }
  0xa5   :  { %984 = vmatprep.subr.mxu1 %v284_v24  ;;  %914 = vmatpush1.msra.mxu0 %v27_v25  ;;  %v436_v17 = vld [vmem:[%s3773_s1 + $0xce8] sm:$0xff]  ;;  %v179_v18 = vld [vmem:[%s3773_s1 + $0x4e0] sm:$0xff] }
  0xa6   :  { %985 = vmatpush1.msra.mxu1 %v283_v26  ;;  %915 = vmatprep.subr.mxu0 %v276_v27  ;;  %v435_v19 = vld [vmem:[%s3773_s1 + $0xce0] sm:$0xff]  ;;  %v172_v20 = vld [vmem:[%s3773_s1 + $0x4a8] sm:$0xff] }
  0xa7   :  { %986 = vmatprep.subr.mxu1 %v532_v28  ;;  %916 = vmatpush2.msra.mxu0 %v275_v29  ;;  %v428_v21 = vld [vmem:[%s3773_s1 + $0xca8] sm:$0xff]  ;;  %v171_v22 = vld [vmem:[%s3773_s1 + $0x4a0] sm:$0xff] }
  0xa8   :  { %987 = vmatpush2.msra.mxu1 %v531_v30  ;;  %917 = vmatprep.subr.mxu0 %v268_v31  ;;  %v427_v23 = vld [vmem:[%s3773_s1 + $0xca0] sm:$0xff]  ;;  %v164_v24 = vld [vmem:[%s3773_s1 + $0x468] sm:$0xff] }
  0xa9   :  { %988 = vmatprep.subr.mxu1 %v524_v32  ;;  %918 = vmatpush2.msra.mxu0 %v267_v33  ;;  %v420_v25 = vld [vmem:[%s3773_s1 + $0xc68] sm:$0xff]  ;;  %v163_v26 = vld [vmem:[%s3773_s1 + $0x460] sm:$0xff]  ;;  %v150_v32 = vld [vmem:[%s3773_s1 + $0x3f8] sm:$0xff] }
  0xaa   :  { %989 = vmatpush2.msra.mxu1 %v523_v34  ;;  %919 = vmatprep.subr.mxu0 %v260_v35  ;;  %v419_v27 = vld [vmem:[%s3773_s1 + $0xc60] sm:$0xff]  ;;  %v156_v28 = vld [vmem:[%s3773_s1 + $0x428] sm:$0xff]  ;;  %v406_v33 = vld [vmem:[%s3773_s1 + $0xbf8] sm:$0xff] }
  0xab   :  { %990 = vmatprep.subr.mxu1 %v516_v36  ;;  %920 = vmatpush2.msra.mxu0 %v259_v37  ;;  %v412_v29 = vld [vmem:[%s3773_s1 + $0xc28] sm:$0xff]  ;;  %v155_v30 = vld [vmem:[%s3773_s1 + $0x420] sm:$0xff]  ;;  %v149_v34 = vld [vmem:[%s3773_s1 + $0x3f0] sm:$0xff] }
  0xac   :  { %991 = vmatpush2.msra.mxu1 %v515_v38  ;;  %921 = vmatprep.subr.mxu0 %v252_v39  ;;  %v411_v31 = vld [vmem:[%s3773_s1 + $0xc20] sm:$0xff]  ;;  %v405_v35 = vld [vmem:[%s3773_s1 + $0xbf0] sm:$0xff]  ;;  %v142_v36 = vld [vmem:[%s3773_s1 + $0x3b8] sm:$0xff] }
  0xad   :  { %992 = vmatprep.subr.mxu1 %v508_v40  ;;  %922 = vmatpush2.msra.mxu0 %v251_v42  ;;  %v398_v37 = vld [vmem:[%s3773_s1 + $0xbb8] sm:$0xff]  ;;  %v141_v38 = vld [vmem:[%s3773_s1 + $0x3b0] sm:$0xff] }
  0xae   :  { %993 = vmatpush2.msra.mxu1 %v507_v43  ;;  %923 = vmatprep.subr.mxu0 %v244_v44  ;;  %v397_v39 = vld [vmem:[%s3773_s1 + $0xbb0] sm:$0xff]  ;;  %v134_v40 = vld [vmem:[%s3773_s1 + $0x378] sm:$0xff] }
  0xaf   :  { %994 = vmatprep.subr.mxu1 %v500_v45  ;;  %924 = vmatpush2.msra.mxu0 %v243_v46  ;;  %v390_v42 = vld [vmem:[%s3773_s1 + $0xb78] sm:$0xff]  ;;  %v133_v43 = vld [vmem:[%s3773_s1 + $0x370] sm:$0xff] }
  0xb0   :  { %995 = vmatpush2.msra.mxu1 %v499_v47  ;;  %925 = vmatprep.subr.mxu0 %v236_v48  ;;  %v389_v44 = vld [vmem:[%s3773_s1 + $0xb70] sm:$0xff]  ;;  %v126_v45 = vld [vmem:[%s3773_s1 + $0x338] sm:$0xff] }
  0xb1   :  { %996 = vmatprep.subr.mxu1 %v492_v49  ;;  %926 = vmatpush2.msra.mxu0 %v235_v50  ;;  %v382_v46 = vld [vmem:[%s3773_s1 + $0xb38] sm:$0xff]  ;;  %v125_v47 = vld [vmem:[%s3773_s1 + $0x330] sm:$0xff] }
  0xb2   :  { %997 = vmatpush2.msra.mxu1 %v491_v51  ;;  %927 = vmatprep.subr.mxu0 %v228_v52  ;;  %v381_v48 = vld [vmem:[%s3773_s1 + $0xb30] sm:$0xff]  ;;  %v118_v49 = vld [vmem:[%s3773_s1 + $0x2f8] sm:$0xff] }
  0xb3   :  { %998 = vmatprep.subr.mxu1 %v484_v53  ;;  %928 = vmatpush2.msra.mxu0 %v227_v54  ;;  %v374_v50 = vld [vmem:[%s3773_s1 + $0xaf8] sm:$0xff]  ;;  %v117_v51 = vld [vmem:[%s3773_s1 + $0x2f0] sm:$0xff] }
  0xb4   :  { %999 = vmatpush2.msra.mxu1 %v483_v55  ;;  %929 = vmatprep.subr.mxu0 %v220_v56  ;;  %v373_v52 = vld [vmem:[%s3773_s1 + $0xaf0] sm:$0xff]  ;;  %v110_v53 = vld [vmem:[%s3773_s1 + $0x2b8] sm:$0xff] }
  0xb5   :  { %1000 = vmatprep.subr.mxu1 %v476_v57  ;;  %930 = vmatpush2.msra.mxu0 %v219_v58  ;;  %v366_v54 = vld [vmem:[%s3773_s1 + $0xab8] sm:$0xff]  ;;  %v109_v55 = vld [vmem:[%s3773_s1 + $0x2b0] sm:$0xff] }
  0xb6   :  { %1001 = vmatpush2.msra.mxu1 %v475_v59  ;;  %931 = vmatprep.subr.mxu0 %v212_v60  ;;  %v365_v56 = vld [vmem:[%s3773_s1 + $0xab0] sm:$0xff]  ;;  %v102_v57 = vld [vmem:[%s3773_s1 + $0x278] sm:$0xff] }
  0xb7   :  { %1002 = vmatprep.subr.mxu1 %v468_v61  ;;  %932 = vmatpush2.msra.mxu0 %v211_v63  ;;  %v358_v58 = vld [vmem:[%s3773_s1 + $0xa78] sm:$0xff]  ;;  %v101_v59 = vld [vmem:[%s3773_s1 + $0x270] sm:$0xff] }
  0xb8   :  { %1003 = vmatpush2.msra.mxu1 %v467_v0  ;;  %933 = vmatprep.subr.mxu0 %v204_v1  ;;  %v357_v60 = vld [vmem:[%s3773_s1 + $0xa70] sm:$0xff]  ;;  %v94_v61 = vld [vmem:[%s3773_s1 + $0x238] sm:$0xff] }
  0xb9   :  { %1004 = vmatprep.subr.mxu1 %v460_v2  ;;  %934 = vmatpush2.msra.mxu0 %v203_v4  ;;  %v350_v63 = vld [vmem:[%s3773_s1 + $0xa38] sm:$0xff]  ;;  %v93_v0 = vld [vmem:[%s3773_s1 + $0x230] sm:$0xff] }
  0xba   :  { %1005 = vmatpush2.msra.mxu1 %v459_v5  ;;  %935 = vmatprep.subr.mxu0 %v196_v6  ;;  %v349_v1 = vld [vmem:[%s3773_s1 + $0xa30] sm:$0xff]  ;;  %v86_v2 = vld [vmem:[%s3773_s1 + $0x1f8] sm:$0xff] }
  0xbb   :  { %1006 = vmatprep.subr.mxu1 %v452_v7  ;;  %936 = vmatpush2.msra.mxu0 %v195_v9  ;;  %v342_v4 = vld [vmem:[%s3773_s1 + $0x9f8] sm:$0xff]  ;;  %v85_v5 = vld [vmem:[%s3773_s1 + $0x1f0] sm:$0xff] }
  0xbc   :  { %1007 = vmatpush2.msra.mxu1 %v451_v10  ;;  %937 = vmatprep.subr.mxu0 %v188_v12  ;;  %v341_v6 = vld [vmem:[%s3773_s1 + $0x9f0] sm:$0xff]  ;;  %v78_v7 = vld [vmem:[%s3773_s1 + $0x1b8] sm:$0xff] }
  0xbd   :  { %1008 = vmatprep.subr.mxu1 %v444_v13  ;;  %938 = vmatpush2.msra.mxu0 %v187_v14  ;;  %v334_v9 = vld [vmem:[%s3773_s1 + $0x9b8] sm:$0xff]  ;;  %v77_v10 = vld [vmem:[%s3773_s1 + $0x1b0] sm:$0xff] }
  0xbe   :  { %1009 = vmatpush2.msra.mxu1 %v443_v15  ;;  %939 = vmatprep.subr.mxu0 %v180_v16  ;;  %v333_v12 = vld [vmem:[%s3773_s1 + $0x9b0] sm:$0xff]  ;;  %v70_v13 = vld [vmem:[%s3773_s1 + $0x178] sm:$0xff] }
  0xbf   :  { %1010 = vmatprep.subr.mxu1 %v436_v17  ;;  %940 = vmatpush2.msra.mxu0 %v179_v18  ;;  %v326_v14 = vld [vmem:[%s3773_s1 + $0x978] sm:$0xff]  ;;  %v69_v15 = vld [vmem:[%s3773_s1 + $0x170] sm:$0xff] }
  0xc0   :  { %1011 = vmatpush2.msra.mxu1 %v435_v19  ;;  %941 = vmatprep.subr.mxu0 %v172_v20  ;;  %v325_v16 = vld [vmem:[%s3773_s1 + $0x970] sm:$0xff]  ;;  %v62_v17 = vld [vmem:[%s3773_s1 + $0x138] sm:$0xff] }
  0xc1   :  { %1012 = vmatprep.subr.mxu1 %v428_v21  ;;  %942 = vmatpush2.msra.mxu0 %v171_v22  ;;  %v318_v18 = vld [vmem:[%s3773_s1 + $0x938] sm:$0xff]  ;;  %v61_v19 = vld [vmem:[%s3773_s1 + $0x130] sm:$0xff] }
  0xc2   :  { %1013 = vmatpush2.msra.mxu1 %v427_v23  ;;  %943 = vmatprep.subr.mxu0 %v164_v24  ;;  %v317_v20 = vld [vmem:[%s3773_s1 + $0x930] sm:$0xff]  ;;  %v54_v21 = vld [vmem:[%s3773_s1 + $0xf8] sm:$0xff] }
  0xc3   :  { %1014 = vmatprep.subr.mxu1 %v420_v25  ;;  %944 = vmatpush2.msra.mxu0 %v163_v26  ;;  %v310_v22 = vld [vmem:[%s3773_s1 + $0x8f8] sm:$0xff]  ;;  %v53_v23 = vld [vmem:[%s3773_s1 + $0xf0] sm:$0xff] }
  0xc4   :  { %1015 = vmatpush2.msra.mxu1 %v419_v27  ;;  %945 = vmatprep.subr.mxu0 %v156_v28  ;;  %v309_v24 = vld [vmem:[%s3773_s1 + $0x8f0] sm:$0xff]  ;;  %v46_v25 = vld [vmem:[%s3773_s1 + $0xb8] sm:$0xff] }
  0xc5   :  { %1016 = vmatprep.subr.mxu1 %v412_v29  ;;  %946 = vmatpush2.msra.mxu0 %v155_v30  ;;  %v302_v26 = vld [vmem:[%s3773_s1 + $0x8b8] sm:$0xff]  ;;  %v45_v27 = vld [vmem:[%s3773_s1 + $0xb0] sm:$0xff] }
  0xc6   :  { %947 = vmatprep.mubr.f32.mxu0 %v2176_v8  ;;  %1017 = vmatpush2.msra.mxu1 %v411_v31  ;;  %v301_v28 = vld [vmem:[%s3773_s1 + $0x8b0] sm:$0xff]  ;;  %v38_v29 = vld [vmem:[%s3773_s1 + $0x78] sm:$0xff] }
  0xc7   :  { %948 = vmatmul.mubr.f32.vlgmr.msra.gmra.mxu0 %v2146_v62  ;;  %1018 = vmatprep.mubr.f32.mxu1 %v2186_v11  ;;  %v294_v30 = vld [vmem:[%s3773_s1 + $0x878] sm:$0xff]  ;;  %v37_v31 = vld [vmem:[%s3773_s1 + $0x70] sm:$0xff] }
  0xc8   :  { %1025 = vmatprep.subr.mxu0 %v150_v32  ;;  %1096 = vmatprep.subr.mxu1 %v406_v33  ;;  %v293_v32 = vld [vmem:[%s3773_s1 + $0x870] sm:$0xff]  ;;  %v30_v33 = vld [vmem:[%s3773_s1 + $0x38] sm:$0xff] }
  0xc9   :  { %1019 = vmatmul.mubr.f32.vlgmr.msra.gmra.mxu1 %v2160_v3  ;;  %1026 = vmatpush1.msra.mxu0 %v149_v34  ;;  %v286_v34 = vld [vmem:[%s3773_s1 + $0x838] sm:$0xff] }
  0xca   :  { %1097 = vmatpush1.msra.mxu1 %v405_v35  ;;  %1027 = vmatprep.subr.mxu0 %v142_v36  ;;  %v29_v35 = vld [vmem:[%s3773_s1 + $0x30] sm:$0xff] }
  0xcb   :  { %1098 = vmatprep.subr.mxu1 %v398_v37  ;;  %1028 = vmatpush1.msra.mxu0 %v141_v38  ;;  %v285_v36 = vld [vmem:[%s3773_s1 + $0x830] sm:$0xff]  ;;  %v278_v37 = vld [vmem:[%s3773_s1 + $0x7f8] sm:$0xff] }
  0xcc   :  { %1099 = vmatpush1.msra.mxu1 %v397_v39  ;;  %1029 = vmatprep.subr.mxu0 %v134_v40  ;;  %v534_v38 = vld [vmem:[%s3773_s1 + $0xff8] sm:$0xff]  ;;  %v277_v39 = vld [vmem:[%s3773_s1 + $0x7f0] sm:$0xff] }
  0xcd   :  { %1100 = vmatprep.subr.mxu1 %v390_v42  ;;  %1030 = vmatpush1.msra.mxu0 %v133_v43  ;;  %v533_v40 = vld [vmem:[%s3773_s1 + $0xff0] sm:$0xff]  ;;  %v270_v42 = vld [vmem:[%s3773_s1 + $0x7b8] sm:$0xff] }
  0xce   :  { %1101 = vmatpush1.msra.mxu1 %v389_v44  ;;  %1031 = vmatprep.subr.mxu0 %v126_v45  ;;  %v526_v43 = vld [vmem:[%s3773_s1 + $0xfb8] sm:$0xff]  ;;  %v269_v44 = vld [vmem:[%s3773_s1 + $0x7b0] sm:$0xff] }
  0xcf   :  { %1102 = vmatprep.subr.mxu1 %v382_v46  ;;  %1032 = vmatpush1.msra.mxu0 %v125_v47  ;;  %v525_v45 = vld [vmem:[%s3773_s1 + $0xfb0] sm:$0xff]  ;;  %v262_v46 = vld [vmem:[%s3773_s1 + $0x778] sm:$0xff] }
  0xd0   :  { %1103 = vmatpush1.msra.mxu1 %v381_v48  ;;  %1033 = vmatprep.subr.mxu0 %v118_v49  ;;  %v518_v47 = vld [vmem:[%s3773_s1 + $0xf78] sm:$0xff]  ;;  %v261_v48 = vld [vmem:[%s3773_s1 + $0x770] sm:$0xff] }
  0xd1   :  { %1104 = vmatprep.subr.mxu1 %v374_v50  ;;  %1034 = vmatpush1.msra.mxu0 %v117_v51  ;;  %v517_v49 = vld [vmem:[%s3773_s1 + $0xf70] sm:$0xff]  ;;  %v254_v50 = vld [vmem:[%s3773_s1 + $0x738] sm:$0xff] }
  0xd2   :  { %1105 = vmatpush1.msra.mxu1 %v373_v52  ;;  %1035 = vmatprep.subr.mxu0 %v110_v53  ;;  %v510_v51 = vld [vmem:[%s3773_s1 + $0xf38] sm:$0xff]  ;;  %v253_v52 = vld [vmem:[%s3773_s1 + $0x730] sm:$0xff] }
  0xd3   :  { %1106 = vmatprep.subr.mxu1 %v366_v54  ;;  %1036 = vmatpush1.msra.mxu0 %v109_v55  ;;  %v509_v53 = vld [vmem:[%s3773_s1 + $0xf30] sm:$0xff]  ;;  %v246_v54 = vld [vmem:[%s3773_s1 + $0x6f8] sm:$0xff] }
  0xd4   :  { %1107 = vmatpush1.msra.mxu1 %v365_v56  ;;  %1037 = vmatprep.subr.mxu0 %v102_v57  ;;  %v502_v55 = vld [vmem:[%s3773_s1 + $0xef8] sm:$0xff]  ;;  %v245_v56 = vld [vmem:[%s3773_s1 + $0x6f0] sm:$0xff] }
  0xd5   :  { %1108 = vmatprep.subr.mxu1 %v358_v58  ;;  %1038 = vmatpush1.msra.mxu0 %v101_v59  ;;  %v501_v57 = vld [vmem:[%s3773_s1 + $0xef0] sm:$0xff]  ;;  %v238_v58 = vld [vmem:[%s3773_s1 + $0x6b8] sm:$0xff] }
  0xd6   :  { %1109 = vmatpush1.msra.mxu1 %v357_v60  ;;  %1039 = vmatprep.subr.mxu0 %v94_v61  ;;  %v494_v59 = vld [vmem:[%s3773_s1 + $0xeb8] sm:$0xff]  ;;  %v237_v60 = vld [vmem:[%s3773_s1 + $0x6b0] sm:$0xff] }
  0xd7   :  { %1110 = vmatprep.subr.mxu1 %v350_v63  ;;  %1040 = vmatpush1.msra.mxu0 %v93_v0  ;;  %v493_v61 = vld [vmem:[%s3773_s1 + $0xeb0] sm:$0xff]  ;;  %v230_v63 = vld [vmem:[%s3773_s1 + $0x678] sm:$0xff] }
  0xd8   :  { %1111 = vmatpush1.msra.mxu1 %v349_v1  ;;  %1041 = vmatprep.subr.mxu0 %v86_v2  ;;  %v486_v0 = vld [vmem:[%s3773_s1 + $0xe78] sm:$0xff]  ;;  %v229_v1 = vld [vmem:[%s3773_s1 + $0x670] sm:$0xff] }
  0xd9   :  { %1112 = vmatprep.subr.mxu1 %v342_v4  ;;  %1042 = vmatpush1.msra.mxu0 %v85_v5  ;;  %v485_v2 = vld [vmem:[%s3773_s1 + $0xe70] sm:$0xff]  ;;  %v222_v4 = vld [vmem:[%s3773_s1 + $0x638] sm:$0xff] }
  0xda   :  { %1113 = vmatpush1.msra.mxu1 %v341_v6  ;;  %1043 = vmatprep.subr.mxu0 %v78_v7  ;;  %v478_v5 = vld [vmem:[%s3773_s1 + $0xe38] sm:$0xff]  ;;  %v221_v6 = vld [vmem:[%s3773_s1 + $0x630] sm:$0xff] }
  0xdb   :  { %1114 = vmatprep.subr.mxu1 %v334_v9  ;;  %1044 = vmatpush1.msra.mxu0 %v77_v10  ;;  %v477_v7 = vld [vmem:[%s3773_s1 + $0xe30] sm:$0xff]  ;;  %v214_v9 = vld [vmem:[%s3773_s1 + $0x5f8] sm:$0xff] }
  0xdc   :  { %1115 = vmatpush1.msra.mxu1 %v333_v12  ;;  %1045 = vmatprep.subr.mxu0 %v70_v13  ;;  %v470_v10 = vld [vmem:[%s3773_s1 + $0xdf8] sm:$0xff]  ;;  %v213_v12 = vld [vmem:[%s3773_s1 + $0x5f0] sm:$0xff] }
  0xdd   :  { %1116 = vmatprep.subr.mxu1 %v326_v14  ;;  %1046 = vmatpush1.msra.mxu0 %v69_v15  ;;  %v469_v13 = vld [vmem:[%s3773_s1 + $0xdf0] sm:$0xff]  ;;  %v206_v14 = vld [vmem:[%s3773_s1 + $0x5b8] sm:$0xff] }
  0xde   :  { %1117 = vmatpush1.msra.mxu1 %v325_v16  ;;  %1047 = vmatprep.subr.mxu0 %v62_v17  ;;  %v462_v15 = vld [vmem:[%s3773_s1 + $0xdb8] sm:$0xff]  ;;  %v205_v16 = vld [vmem:[%s3773_s1 + $0x5b0] sm:$0xff] }
  0xdf   :  { %1118 = vmatprep.subr.mxu1 %v318_v18  ;;  %1048 = vmatpush1.msra.mxu0 %v61_v19  ;;  %v461_v17 = vld [vmem:[%s3773_s1 + $0xdb0] sm:$0xff]  ;;  %v198_v18 = vld [vmem:[%s3773_s1 + $0x578] sm:$0xff] }
  0xe0   :  { %1119 = vmatpush1.msra.mxu1 %v317_v20  ;;  %1049 = vmatprep.subr.mxu0 %v54_v21  ;;  %v454_v19 = vld [vmem:[%s3773_s1 + $0xd78] sm:$0xff]  ;;  %v197_v20 = vld [vmem:[%s3773_s1 + $0x570] sm:$0xff] }
  0xe1   :  { %1120 = vmatprep.subr.mxu1 %v310_v22  ;;  %1050 = vmatpush1.msra.mxu0 %v53_v23  ;;  %v453_v21 = vld [vmem:[%s3773_s1 + $0xd70] sm:$0xff]  ;;  %v190_v22 = vld [vmem:[%s3773_s1 + $0x538] sm:$0xff] }
  0xe2   :  { %1121 = vmatpush1.msra.mxu1 %v309_v24  ;;  %1051 = vmatprep.subr.mxu0 %v46_v25  ;;  %v446_v23 = vld [vmem:[%s3773_s1 + $0xd38] sm:$0xff]  ;;  %v189_v24 = vld [vmem:[%s3773_s1 + $0x530] sm:$0xff] }
  0xe3   :  { %1122 = vmatprep.subr.mxu1 %v302_v26  ;;  %1052 = vmatpush1.msra.mxu0 %v45_v27  ;;  %v445_v25 = vld [vmem:[%s3773_s1 + $0xd30] sm:$0xff]  ;;  %v182_v26 = vld [vmem:[%s3773_s1 + $0x4f8] sm:$0xff] }
  0xe4   :  { %1123 = vmatpush1.msra.mxu1 %v301_v28  ;;  %1053 = vmatprep.subr.mxu0 %v38_v29  ;;  %v438_v27 = vld [vmem:[%s3773_s1 + $0xcf8] sm:$0xff]  ;;  %v543_v28 = vsub.s32 1, %v2092_v41  ;;  %v181_v29 = vld [vmem:[%s3773_s1 + $0x4f0] sm:$0xff] }
  0xe5   :  { %1124 = vmatprep.subr.mxu1 %v294_v30  ;;  %1054 = vmatpush1.msra.mxu0 %v37_v31  ;;  %v437_v30 = vld [vmem:[%s3773_s1 + $0xcf0] sm:$0xff]  ;;  %v174_v31 = vld [vmem:[%s3773_s1 + $0x4b8] sm:$0xff] }
  0xe6   :  { %1125 = vmatpush1.msra.mxu1 %v293_v32  ;;  %1055 = vmatprep.subr.mxu0 %v30_v33  ;;  %v430_v32 = vld [vmem:[%s3773_s1 + $0xcb8] sm:$0xff]  ;;  %v173_v33 = vld [vmem:[%s3773_s1 + $0x4b0] sm:$0xff] }
  0xe7   :  { %1126 = vmatprep.subr.mxu1 %v286_v34  ;;  %1056 = vmatpush1.msra.mxu0 %v29_v35  ;;  %v429_v34 = vld [vmem:[%s3773_s1 + $0xcb0] sm:$0xff]  ;;  %v3332_v35 = vld [vmem:[%s3775_s2] sm:$0xff] }
  0xe8   :  { %1127 = vmatpush1.msra.mxu1 %v285_v36  ;;  %1057 = vmatprep.subr.mxu0 %v278_v37  ;;  %v166_v36 = vld [vmem:[%s3773_s1 + $0x478] sm:$0xff] }
  0xe9   :  { %1128 = vmatprep.subr.mxu1 %v534_v38  ;;  %1058 = vmatpush2.msra.mxu0 %v277_v39  ;;  %v422_v37 = vld [vmem:[%s3773_s1 + $0xc78] sm:$0xff]  ;;  %v544_v38 = vrot.slane %v3332_v35, %v543_v28  ;;  %v165_v39 = vld [vmem:[%s3773_s1 + $0x470] sm:$0xff] }
  0xea   :  { %1129 = vmatpush2.msra.mxu1 %v533_v40  ;;  %1059 = vmatprep.subr.mxu0 %v270_v42  ;;  %v421_v40 = vld [vmem:[%s3773_s1 + $0xc70] sm:$0xff]  ;;  %v1230_v28 = vld [vmem:[%s3776_s3 + $0x138] sm:$0xff] }
  0xeb   :  { %1130 = vmatprep.subr.mxu1 %v526_v43  ;;  %1060 = vmatpush2.msra.mxu0 %v269_v44  ;;  %v158_v43 = vld [vmem:[%s3773_s1 + $0x438] sm:$0xff] }
  0xec   :  { %1131 = vmatpush2.msra.mxu1 %v525_v45  ;;  %1061 = vmatprep.subr.mxu0 %v262_v46  ;;  %v414_v44 = vld [vmem:[%s3773_s1 + $0xc38] sm:$0xff]  ;;  %v157_v45 = vld [vmem:[%s3773_s1 + $0x430] sm:$0xff] }
  0xed   :  { %1132 = vmatprep.subr.mxu1 %v518_v47  ;;  %1062 = vmatpush2.msra.mxu0 %v261_v48  ;;  %v413_v48 = vld [vmem:[%s3773_s1 + $0xc30] sm:$0xff] }
  0xee   :  { %1133 = vmatpush2.msra.mxu1 %v517_v49  ;;  %1063 = vmatprep.subr.mxu0 %v254_v50 }
  0xef   :  { %1134 = vmatprep.subr.mxu1 %v510_v51  ;;  %1064 = vmatpush2.msra.mxu0 %v253_v52  ;;  %v1222_v51 = vld [vmem:[%s3776_s3 + $0xf8] sm:$0xff] }
  0xf0   :  { %1135 = vmatpush2.msra.mxu1 %v509_v53  ;;  %1065 = vmatprep.subr.mxu0 %v246_v54  ;;  %v1254_v53 = vld [vmem:[%s3776_s3 + $0x1f8] sm:$0xff] }
  0xf1   :  { %1136 = vmatprep.subr.mxu1 %v502_v55  ;;  %1066 = vmatpush2.msra.mxu0 %v245_v56  ;;  %v1206_v54 = vld [vmem:[%s3776_s3 + $0x78] sm:$0xff]  ;;  %v1221_v55 = vld [vmem:[%s3776_s3 + $0xf0] sm:$0xff] }
  0xf2   :  { %1137 = vmatpush2.msra.mxu1 %v501_v57  ;;  %1067 = vmatprep.subr.mxu0 %v238_v58  ;;  %v1253_v57 = vld [vmem:[%s3776_s3 + $0x1f0] sm:$0xff] }
  0xf3   :  { %1138 = vmatprep.subr.mxu1 %v494_v59  ;;  %1068 = vmatpush2.msra.mxu0 %v237_v60  ;;  %v1237_v58 = vld [vmem:[%s3776_s3 + $0x170] sm:$0xff]  ;;  %v1204_v59 = vld [vmem:[%s3776_s3 + $0x68] sm:$0xff] }
  0xf4   :  { %1139 = vmatpush2.msra.mxu1 %v493_v61  ;;  %1069 = vmatprep.subr.mxu0 %v230_v63  ;;  %v1252_v60 = vld [vmem:[%s3776_s3 + $0x1e8] sm:$0xff]  ;;  %v1219_v61 = vld [vmem:[%s3776_s3 + $0xe0] sm:$0xff] }
  0xf5   :  { %1140 = vmatprep.subr.mxu1 %v486_v0  ;;  %1070 = vmatpush2.msra.mxu0 %v229_v1  ;;  %v1236_v63 = vld [vmem:[%s3776_s3 + $0x168] sm:$0xff]  ;;  %v1203_v0 = vld [vmem:[%s3776_s3 + $0x60] sm:$0xff] }
  0xf6   :  { %1141 = vmatpush2.msra.mxu1 %v485_v2  ;;  %1071 = vmatprep.subr.mxu0 %v222_v4  ;;  %v1251_v1 = vld [vmem:[%s3776_s3 + $0x1e0] sm:$0xff]  ;;  %v1218_v2 = vld [vmem:[%s3776_s3 + $0xd8] sm:$0xff] }
  0xf7   :  { %1142 = vmatprep.subr.mxu1 %v478_v5  ;;  %1072 = vmatpush2.msra.mxu0 %v221_v6  ;;  %v1235_v4 = vld [vmem:[%s3776_s3 + $0x160] sm:$0xff]  ;;  %v1202_v5 = vld [vmem:[%s3776_s3 + $0x58] sm:$0xff] }
  0xf8   :  { %1143 = vmatpush2.msra.mxu1 %v477_v7  ;;  %1073 = vmatprep.subr.mxu0 %v214_v9  ;;  %v1250_v6 = vld [vmem:[%s3776_s3 + $0x1d8] sm:$0xff]  ;;  %v1217_v7 = vld [vmem:[%s3776_s3 + $0xd0] sm:$0xff] }
  0xf9   :  { %1144 = vmatprep.subr.mxu1 %v470_v10  ;;  %1074 = vmatpush2.msra.mxu0 %v213_v12  ;;  %v1234_v9 = vld [vmem:[%s3776_s3 + $0x158] sm:$0xff]  ;;  %v1201_v10 = vld [vmem:[%s3776_s3 + $0x50] sm:$0xff] }
  0xfa   :  { %1145 = vmatpush2.msra.mxu1 %v469_v13  ;;  %1075 = vmatprep.subr.mxu0 %v206_v14  ;;  %v1249_v12 = vld [vmem:[%s3776_s3 + $0x1d0] sm:$0xff]  ;;  %v1216_v13 = vld [vmem:[%s3776_s3 + $0xc8] sm:$0xff] }
  0xfb   :  { %1146 = vmatprep.subr.mxu1 %v462_v15  ;;  %1076 = vmatpush2.msra.mxu0 %v205_v16  ;;  %v1233_v14 = vld [vmem:[%s3776_s3 + $0x150] sm:$0xff]  ;;  %v1200_v15 = vld [vmem:[%s3776_s3 + $0x48] sm:$0xff] }
  0xfc   :  { %1147 = vmatpush2.msra.mxu1 %v461_v17  ;;  %1077 = vmatprep.subr.mxu0 %v198_v18  ;;  %v1248_v16 = vld [vmem:[%s3776_s3 + $0x1c8] sm:$0xff]  ;;  %v539_v17 = vsub.s32 0, %v2092_v41  ;;  %v1215_v18 = vld [vmem:[%s3776_s3 + $0xc0] sm:$0xff] }
  0xfd   :  { %1148 = vmatprep.subr.mxu1 %v454_v19  ;;  %1078 = vmatpush2.msra.mxu0 %v197_v20  ;;  %v1232_v19 = vld [vmem:[%s3776_s3 + $0x148] sm:$0xff]  ;;  %v1199_v20 = vld [vmem:[%s3776_s3 + $0x40] sm:$0xff] }
  0xfe   :  { %1149 = vmatpush2.msra.mxu1 %v453_v21  ;;  %1079 = vmatprep.subr.mxu0 %v190_v22  ;;  %v1247_v21 = vld [vmem:[%s3776_s3 + $0x1c0] sm:$0xff]  ;;  %v1214_v22 = vld [vmem:[%s3776_s3 + $0xb8] sm:$0xff] }
  0xff   :  { %1150 = vmatprep.subr.mxu1 %v446_v23  ;;  %1080 = vmatpush2.msra.mxu0 %v189_v24  ;;  %v1231_v23 = vld [vmem:[%s3776_s3 + $0x140] sm:$0xff]  ;;  %v1198_v24 = vld [vmem:[%s3776_s3 + $0x38] sm:$0xff] }
 0x100   :  { %1151 = vmatpush2.msra.mxu1 %v445_v25  ;;  %1081 = vmatprep.subr.mxu0 %v182_v26  ;;  %v1246_v25 = vld [vmem:[%s3776_s3 + $0x1b8] sm:$0xff]  ;;  %v540_v26 = vrot.slane %v3332_v35, %v539_v17  ;;  %v1277_v17 = vld [vmem:[%s3776_s3 + $0x2b0] sm:$0xff] }
 0x101   :  { %1152 = vmatprep.subr.mxu1 %v438_v27  ;;  %1082 = vmatpush2.msra.mxu0 %v181_v29  ;;  %v1213_v27 = vld [vmem:[%s3776_s3 + $0xb0] sm:$0xff] }
 0x102   :  { %1153 = vmatpush2.msra.mxu1 %v437_v30  ;;  %1083 = vmatprep.subr.mxu0 %v174_v31  ;;  %v1197_v29 = vld [vmem:[%s3776_s3 + $0x30] sm:$0xff]  ;;  %v1212_v31 = vld [vmem:[%s3776_s3 + $0xa8] sm:$0xff] }
 0x103   :  { %1154 = vmatprep.subr.mxu1 %v430_v32  ;;  %v3347_v42 = vpop.f32.mrf.mxu0  ;;  %1084 = vmatpush2.msra.mxu0 %v173_v33  ;;  %v1245_v30 = vld [vmem:[%s3776_s3 + $0x1b0] sm:$0xff]  ;;  %v1196_v33 = vld [vmem:[%s3776_s3 + $0x28] sm:$0xff] }
 0x104   :  { %1155 = vmatpush2.msra.mxu1 %v429_v34  ;;  %1085 = vmatprep.subr.mxu0 %v166_v36  ;;  %v1229_v32 = vld [vmem:[%s3776_s3 + $0x130] sm:$0xff]  ;;  %v1244_v34 = vld [vmem:[%s3776_s3 + $0x1a8] sm:$0xff]  ;;  %v666_v36 = vadd.f32 %v3347_v42, %v540_v26  ;;  %v1210_v42 = vld [vmem:[%s3776_s3 + $0x98] sm:$0xff] }
 0x105   :  { %1156 = vmatprep.subr.mxu1 %v422_v37  ;;  %v3358_v46 = vpop.f32.mrf.mxu1  ;;  %v667_v47 = vpop.f32.mrf.mxu0  ;;  %1086 = vmatpush2.msra.mxu0 %v165_v39  ;;  %v1211_v37 = vld [vmem:[%s3776_s3 + $0xa0] sm:$0xff] }
 0x106   :  { %1157 = vmatpush2.msra.mxu1 %v421_v40  ;;  %v668_v49 = vadd.f32 %v667_v47, %v544_v38  ;;  %1087 = vmatprep.subr.mxu0 %v158_v43  ;;  %v1228_v38 = vld [vmem:[%s3776_s3 + $0x128] sm:$0xff]  ;;  %v1195_v39 = vld [vmem:[%s3776_s3 + $0x20] sm:$0xff]  ;;  %v737_v47 = vadd.f32 %v3358_v46, %v666_v36  ;;  %v1241_v46 = vld [vmem:[%s3776_s3 + $0x190] sm:$0xff] }
 0x107   :  { %1158 = vmatprep.subr.mxu1 %v414_v44  ;;  %v738_v50 = vpop.f32.mrf.mxu1  ;;  %1088 = vmatpush2.msra.mxu0 %v157_v45  ;;  %v1243_v40 = vld [vmem:[%s3776_s3 + $0x1a0] sm:$0xff]  ;;  %v1194_v44 = vld [vmem:[%s3776_s3 + $0x18] sm:$0xff] }
 0x108   :  { %1089 = vmatprep.mubr.f32.mxu0 %v2176_v8  ;;  %v739_v52 = vadd.f32 %v738_v50, %v668_v49  ;;  %1159 = vmatpush2.msra.mxu1 %v413_v48  ;;  %v1238_v8 = vld [vmem:[%s3776_s3 + $0x178] sm:$0xff]  ;;  %v1227_v43 = vld [vmem:[%s3776_s3 + $0x120] sm:$0xff]  ;;  %v1209_v48 = vld [vmem:[%s3776_s3 + $0x90] sm:$0xff]  ;;  %vm1167_vm1 = vcmp.gt.f32.partialorder %v737_v47, 0.0 }
 0x109   :  { %1160 = vmatprep.mubr.f32.mxu1 %v2186_v11  ;;  %1090 = vmatmul.mubr.f32.vlgmr.msra.gmra.mxu0 %v2146_v62  ;;  %v1205_v11 = vld [vmem:[%s3776_s3 + $0x70] sm:$0xff]  ;;  %v1220_v62 = vld [vmem:[%s3776_s3 + $0xe8] sm:$0xff]  ;;  %v1242_v45 = vld [vmem:[%s3776_s3 + $0x198] sm:$0xff] }
 0x10a   :  { %1161 = vmatmul.mubr.f32.vlgmr.msra.gmra.mxu1 %v2160_v3  ;;  %v1176_v56 = vmul.f32 0.2, %v739_v52  ;;  %vm1168_vm0 = vcmp.gt.f32.partialorder %v739_v52, 0.0  ;;  %1613 = vmatprep.subr.mxu0 %v1222_v51  ;;  %v1226_v49 = vld [vmem:[%s3776_s3 + $0x118] sm:$0xff]  ;;  %v1193_v50 = vld [vmem:[%s3776_s3 + $0x10] sm:$0xff]  ;;  %v1208_v51 = vld [vmem:[%s3776_s3 + $0x88] sm:$0xff] }
 0x10b   :  { %1648 = vmatprep.subr.mxu1 %v1254_v53  ;;  %1614 = vmatpush3.msra.mxu0 %v1206_v54  ;;  %v1192_v53 = vld [vmem:[%s3776_s3 + $0x8] sm:$0xff] }
 0x10c   :  { %v1184_v3 = vsel %vm1168_vm0, %v739_v52, %v1176_v56  ;;  %1649 = vmatpush3.msra.mxu1 %v1238_v8  ;;  %1615 = vmatprep.subr.mxu0 %v1221_v55  ;;  %v1225_v52 = vld [vmem:[%s3776_s3 + $0x110] sm:$0xff]  ;;  %v1240_v54 = vld [vmem:[%s3776_s3 + $0x188] sm:$0xff]  ;;  %v1175_v8 = vmul.f32 0.2, %v737_v47  ;;  %v1207_v55 = vld [vmem:[%s3776_s3 + $0x80] sm:$0xff] }
 0x10d   :  { %1390 = vmatprep.mubr.f32.mxu0 %v1184_v3  ;;  %1616 = vmatpush3.msra.mxu0 %v1205_v11  ;;  %v1224_v56 = vld [vmem:[%s3776_s3 + $0x108] sm:$0xff]  ;;  %v1191_v11 = vld [vmem:[%s3776_s3] sm:$0xff]  ;;  %v1286_v3 = vld [vmem:[%s3776_s3 + $0x2f8] sm:$0xff] }
 0x10e   :  { %1650 = vmatprep.subr.mxu1 %v1253_v57  ;;  %1617 = vmatprep.subr.mxu0 %v1220_v62  ;;  %v1239_v57 = vld [vmem:[%s3776_s3 + $0x180] sm:$0xff] }
 0x10f   :  { %1651 = vmatpush3.msra.mxu1 %v1237_v58  ;;  %1618 = vmatpush3.msra.mxu0 %v1204_v59  ;;  %v1223_v62 = vld [vmem:[%s3776_s3 + $0x100] sm:$0xff]  ;;  %v1318_v58 = vld [vmem:[%s3776_s3 + $0x3f8] sm:$0xff]  ;;  %v1183_v59 = vsel %vm1167_vm1, %v737_v47, %v1175_v8 }
 0x110   :  { %1652 = vmatprep.subr.mxu1 %v1252_v60  ;;  %1619 = vmatprep.subr.mxu0 %v1219_v61  ;;  %v1270_v60 = vld [vmem:[%s3776_s3 + $0x278] sm:$0xff]  ;;  %v1285_v61 = vld [vmem:[%s3776_s3 + $0x2f0] sm:$0xff]  ;;  %v1299_v8 = vld [vmem:[%s3776_s3 + $0x360] sm:$0xff] }
 0x111   :  { %1653 = vmatpush3.msra.mxu1 %v1236_v63  ;;  %1620 = vmatpush3.msra.mxu0 %v1203_v0  ;;  %v1269_v63 = vld [vmem:[%s3776_s3 + $0x270] sm:$0xff]  ;;  %v1284_v0 = vld [vmem:[%s3776_s3 + $0x2e8] sm:$0xff] }
 0x112   :  { %1654 = vmatprep.subr.mxu1 %v1251_v1  ;;  %1621 = vmatprep.subr.mxu0 %v1218_v2  ;;  %v1268_v1 = vld [vmem:[%s3776_s3 + $0x268] sm:$0xff]  ;;  %v1283_v2 = vld [vmem:[%s3776_s3 + $0x2e0] sm:$0xff] }
 0x113   :  { %1655 = vmatpush3.msra.mxu1 %v1235_v4  ;;  %1622 = vmatpush3.msra.mxu0 %v1202_v5  ;;  %v1267_v4 = vld [vmem:[%s3776_s3 + $0x260] sm:$0xff]  ;;  %v1282_v5 = vld [vmem:[%s3776_s3 + $0x2d8] sm:$0xff] }
 0x114   :  { %1656 = vmatprep.subr.mxu1 %v1250_v6  ;;  %1623 = vmatprep.subr.mxu0 %v1217_v7  ;;  %v1266_v6 = vld [vmem:[%s3776_s3 + $0x258] sm:$0xff]  ;;  %v1281_v7 = vld [vmem:[%s3776_s3 + $0x2d0] sm:$0xff] }
 0x115   :  { %1657 = vmatpush3.msra.mxu1 %v1234_v9  ;;  %1624 = vmatpush3.msra.mxu0 %v1201_v10  ;;  %v1265_v9 = vld [vmem:[%s3776_s3 + $0x250] sm:$0xff]  ;;  %v1280_v10 = vld [vmem:[%s3776_s3 + $0x2c8] sm:$0xff] }
 0x116   :  { %1658 = vmatprep.subr.mxu1 %v1249_v12  ;;  %1625 = vmatprep.subr.mxu0 %v1216_v13  ;;  %v1264_v12 = vld [vmem:[%s3776_s3 + $0x248] sm:$0xff]  ;;  %v1279_v13 = vld [vmem:[%s3776_s3 + $0x2c0] sm:$0xff] }
 0x117   :  { %1659 = vmatpush3.msra.mxu1 %v1233_v14  ;;  %1626 = vmatpush3.msra.mxu0 %v1200_v15  ;;  %v1263_v14 = vld [vmem:[%s3776_s3 + $0x240] sm:$0xff]  ;;  %v1278_v15 = vld [vmem:[%s3776_s3 + $0x2b8] sm:$0xff] }
 0x118   :  { %1660 = vmatprep.subr.mxu1 %v1248_v16  ;;  %1627 = vmatprep.subr.mxu0 %v1215_v18  ;;  %v1262_v16 = vld [vmem:[%s3776_s3 + $0x238] sm:$0xff]  ;;  %v1261_v18 = vld [vmem:[%s3776_s3 + $0x230] sm:$0xff] }
 0x119   :  { %1661 = vmatpush3.msra.mxu1 %v1232_v19  ;;  %1628 = vmatpush3.msra.mxu0 %v1199_v20  ;;  %v1276_v19 = vld [vmem:[%s3776_s3 + $0x2a8] sm:$0xff]  ;;  %v547_v20 = vsub.s32 2, %v2092_v41 }
 0x11a   :  { %1662 = vmatprep.subr.mxu1 %v1247_v21  ;;  %1629 = vmatprep.subr.mxu0 %v1214_v22  ;;  %v1260_v21 = vld [vmem:[%s3776_s3 + $0x228] sm:$0xff]  ;;  %v1275_v22 = vld [vmem:[%s3776_s3 + $0x2a0] sm:$0xff] }
 0x11b   :  { %1663 = vmatpush3.msra.mxu1 %v1231_v23  ;;  %1630 = vmatpush3.msra.mxu0 %v1198_v24  ;;  %v551_v23 = vsub.s32 3, %v2092_v41  ;;  %v1259_v24 = vld [vmem:[%s3776_s3 + $0x220] sm:$0xff]  ;;  %v548_v26 = vrot.slane %v3332_v35, %v547_v20 }
 0x11c   :  { %1664 = vmatprep.subr.mxu1 %v1246_v25  ;;  %1631 = vmatprep.subr.mxu0 %v1213_v27  ;;  %v1274_v25 = vld [vmem:[%s3776_s3 + $0x298] sm:$0xff] }
 0x11d   :  { %1665 = vmatpush3.msra.mxu1 %v1230_v28  ;;  %1632 = vmatpush3.msra.mxu0 %v1197_v29  ;;  %v1258_v27 = vld [vmem:[%s3776_s3 + $0x218] sm:$0xff]  ;;  %v1273_v28 = vld [vmem:[%s3776_s3 + $0x290] sm:$0xff]  ;;  %v552_v29 = vrot.slane %v3332_v35, %v551_v23 }
 0x11e   :  { %1666 = vmatprep.subr.mxu1 %v1245_v30  ;;  %1633 = vmatprep.subr.mxu0 %v1212_v31  ;;  %v1257_v30 = vld [vmem:[%s3776_s3 + $0x210] sm:$0xff] }
 0x11f   :  { %1667 = vmatpush3.msra.mxu1 %v1229_v32  ;;  %1634 = vmatpush3.msra.mxu0 %v1196_v33  ;;  %v1272_v32 = vld [vmem:[%s3776_s3 + $0x288] sm:$0xff] }
 0x120   :  { %1668 = vmatprep.subr.mxu1 %v1244_v34  ;;  %1635 = vmatprep.subr.mxu0 %v1211_v37  ;;  %v1256_v34 = vld [vmem:[%s3776_s3 + $0x208] sm:$0xff] }
 0x121   :  { %1669 = vmatpush3.msra.mxu1 %v1228_v38  ;;  %1636 = vmatpush3.msra.mxu0 %v1195_v39  ;;  %v1271_v38 = vld [vmem:[%s3776_s3 + $0x280] sm:$0xff] }
 0x122   :  { %1670 = vmatprep.subr.mxu1 %v1243_v40  ;;  %1637 = vmatprep.subr.mxu0 %v1210_v42  ;;  %v1255_v42 = vld [vmem:[%s3776_s3 + $0x200] sm:$0xff] }
 0x123   :  { %1671 = vmatpush3.msra.mxu1 %v1227_v43  ;;  %1638 = vmatpush3.msra.mxu0 %v1194_v44 }
 0x124   :  { %1672 = vmatprep.subr.mxu1 %v1242_v45  ;;  %1639 = vmatprep.subr.mxu0 %v1209_v48 }
 0x125   :  { %1673 = vmatpush3.msra.mxu1 %v1226_v49  ;;  %1640 = vmatpush3.msra.mxu0 %v1193_v50  ;;  %v1302_v49 = vld [vmem:[%s3776_s3 + $0x378] sm:$0xff] }
 0x126   :  { %1674 = vmatprep.subr.mxu1 %v1241_v46  ;;  %1641 = vmatprep.subr.mxu0 %v1208_v51  ;;  %v1317_v46 = vld [vmem:[%s3776_s3 + $0x3f0] sm:$0xff] }
 0x127   :  { %1675 = vmatpush3.msra.mxu1 %v1225_v52  ;;  %1642 = vmatpush3.msra.mxu0 %v1192_v53  ;;  %v1301_v51 = vld [vmem:[%s3776_s3 + $0x370] sm:$0xff]  ;;  %v1316_v52 = vld [vmem:[%s3776_s3 + $0x3e8] sm:$0xff] }
 0x128   :  { %1676 = vmatprep.subr.mxu1 %v1240_v54  ;;  %1643 = vmatprep.subr.mxu0 %v1207_v55  ;;  %v1300_v53 = vld [vmem:[%s3776_s3 + $0x368] sm:$0xff]  ;;  %v1315_v54 = vld [vmem:[%s3776_s3 + $0x3e0] sm:$0xff]  ;;  %v1314_v55 = vld [vmem:[%s3776_s3 + $0x3d8] sm:$0xff] }
 0x129   :  { %1677 = vmatpush3.msra.mxu1 %v1224_v56  ;;  %1644 = vmatpush3.msra.mxu0 %v1191_v11  ;;  %v1298_v56 = vld [vmem:[%s3776_s3 + $0x358] sm:$0xff]  ;;  %v1313_v11 = vld [vmem:[%s3776_s3 + $0x3d0] sm:$0xff] }
 0x12a   :  { %1678 = vmatprep.subr.mxu1 %v1239_v57  ;;  %1391 = vmatmul.mubr.f32.vlgmr.msra.gmra.mxu0 %v1183_v59  ;;  %v1297_v57 = vld [vmem:[%s3776_s3 + $0x350] sm:$0xff]  ;;  %v1295_v59 = vld [vmem:[%s3776_s3 + $0x340] sm:$0xff] }
 0x12b   :  { %1679 = vmatpush3.msra.mxu1 %v1223_v62  ;;  %1683 = vmatprep.subr.mxu0 %v1286_v3  ;;  %v1312_v62 = vld [vmem:[%s3776_s3 + $0x3c8] sm:$0xff] }
 0x12c   :  { %1718 = vmatprep.subr.mxu1 %v1318_v58  ;;  %1684 = vmatpush3.msra.mxu0 %v1270_v60  ;;  %v1296_v3 = vld [vmem:[%s3776_s3 + $0x348] sm:$0xff]  ;;  %v1311_v58 = vld [vmem:[%s3776_s3 + $0x3c0] sm:$0xff]  ;;  %v1310_v60 = vld [vmem:[%s3776_s3 + $0x3b8] sm:$0xff] }
 0x12d   :  { %1685 = vmatprep.subr.mxu0 %v1285_v61  ;;  %v1294_v61 = vld [vmem:[%s3776_s3 + $0x338] sm:$0xff] }
 0x12e   :  { %1686 = vmatpush3.msra.mxu0 %v1269_v63  ;;  %v1309_v63 = vld [vmem:[%s3776_s3 + $0x3b0] sm:$0xff] }
 0x12f   :  { %1687 = vmatprep.subr.mxu0 %v1284_v0  ;;  %v1293_v0 = vld [vmem:[%s3776_s3 + $0x330] sm:$0xff] }
 0x130   :  { %1688 = vmatpush3.msra.mxu0 %v1268_v1  ;;  %v1308_v1 = vld [vmem:[%s3776_s3 + $0x3a8] sm:$0xff] }
 0x131   :  { %1689 = vmatprep.subr.mxu0 %v1283_v2  ;;  %v1292_v2 = vld [vmem:[%s3776_s3 + $0x328] sm:$0xff] }
 0x132   :  { %1690 = vmatpush3.msra.mxu0 %v1267_v4  ;;  %v1307_v4 = vld [vmem:[%s3776_s3 + $0x3a0] sm:$0xff] }
 0x133   :  { %1691 = vmatprep.subr.mxu0 %v1282_v5  ;;  %v1291_v5 = vld [vmem:[%s3776_s3 + $0x320] sm:$0xff] }
 0x134   :  { %1692 = vmatpush3.msra.mxu0 %v1266_v6  ;;  %v1306_v6 = vld [vmem:[%s3776_s3 + $0x398] sm:$0xff] }
 0x135   :  { %1693 = vmatprep.subr.mxu0 %v1281_v7  ;;  %v1290_v7 = vld [vmem:[%s3776_s3 + $0x318] sm:$0xff] }
 0x136   :  { %1694 = vmatpush3.msra.mxu0 %v1265_v9  ;;  %v1305_v9 = vld [vmem:[%s3776_s3 + $0x390] sm:$0xff] }
 0x137   :  { %1695 = vmatprep.subr.mxu0 %v1280_v10  ;;  %v10_v10 = vstv %s3777_s4 }
 0x138   :  { %1696 = vmatpush3.msra.mxu0 %v1264_v12  ;;  %v1289_v12 = vld [vmem:[%s3776_s3 + $0x310] sm:$0xff]  ;;  %11 = vst [vmem:[#allocation2] sm:$0x1] %v10_v10 }
 0x139   :  { %1697 = vmatprep.subr.mxu0 %v1279_v13  ;;  %v1304_v13 = vld [vmem:[%s3776_s3 + $0x388] sm:$0xff] }
 0x13a   :  { %1698 = vmatpush3.msra.mxu0 %v1263_v14  ;;  %v1288_v14 = vld [vmem:[%s3776_s3 + $0x308] sm:$0xff] }
 0x13b   :  { %1699 = vmatprep.subr.mxu0 %v1278_v15  ;;  %v1303_v15 = vld [vmem:[%s3776_s3 + $0x380] sm:$0xff] }
 0x13c   :  { %1700 = vmatpush3.msra.mxu0 %v1262_v16  ;;  %v1287_v16 = vld [vmem:[%s3776_s3 + $0x300] sm:$0xff] }
 0x13d   :  { %1701 = vmatprep.subr.mxu0 %v1277_v17  ;;  %v555_v17 = vsub.s32 4, %v2092_v41 }
 0x13e   :  { %1702 = vmatpush3.msra.mxu0 %v1261_v18  ;;  %v559_v18 = vsub.s32 5, %v2092_v41 }
 0x13f   :  { %1703 = vmatprep.subr.mxu0 %v1276_v19  ;;  %v556_v19 = vrot.slane %v3332_v35, %v555_v17 }
 0x140   :  { %1704 = vmatpush3.msra.mxu0 %v1260_v21  ;;  %v560_v20 = vrot.slane %v3332_v35, %v559_v18 }
 0x141   :  { %1705 = vmatprep.subr.mxu0 %v1275_v22 }
 0x142   :  { %1706 = vmatpush3.msra.mxu0 %v1259_v24 }
 0x143   :  { %1707 = vmatprep.subr.mxu0 %v1274_v25 }
 0x144   :  { %1708 = vmatpush3.msra.mxu0 %v1258_v27 }
 0x145   :  { %v807_v31 = vpop.f32.mrf.mxu0  ;;  %1709 = vmatprep.subr.mxu0 %v1273_v28 }
 0x146   :  { %v808_v33 = vadd.f32 %v807_v31, %v548_v26  ;;  %1710 = vmatpush3.msra.mxu0 %v1257_v30 }
 0x147   :  { %v878_v36 = vpop.f32.mrf.mxu1  ;;  %v809_v37 = vpop.f32.mrf.mxu0  ;;  %1711 = vmatprep.subr.mxu0 %v1272_v32 }
 0x148   :  { %v879_v39 = vadd.f32 %v878_v36, %v808_v33  ;;  %v810_v40 = vadd.f32 %v809_v37, %v552_v29  ;;  %1712 = vmatpush3.msra.mxu0 %v1256_v34  ;;  %v563_v33 = vsub.s32 6, %v2092_v41  ;;  %v567_v34 = vsub.s32 7, %v2092_v41 }
 0x149   :  { %v880_v43 = vpop.f32.mrf.mxu1  ;;  %1713 = vmatprep.subr.mxu0 %v1271_v38 }
 0x14a   :  { %v881_v44 = vadd.f32 %v880_v43, %v810_v40  ;;  %v1177_v45 = vmul.f32 0.2, %v879_v39  ;;  %1714 = vmatpush3.msra.mxu0 %v1255_v42  ;;  %vm1169_vm2 = vcmp.gt.f32.partialorder %v879_v39, 0.0  ;;  %v564_v36 = vrot.slane %v3332_v35, %v563_v33 }
 0x14b   :  { %v568_v37 = vrot.slane %v3332_v35, %v567_v34 }
 0x14c   :  { %v1178_v47 = vmul.f32 0.2, %v881_v44  ;;  %vm1170_vm3 = vcmp.gt.f32.partialorder %v881_v44, 0.0  ;;  %v1185_v50 = vsel %vm1169_vm2, %v879_v39, %v1177_v45 }
 0x14e   :  { %v1186_v48 = vsel %vm1170_vm3, %v881_v44, %v1178_v47 }
 0x14f   :  { %1460 = vmatprep.mubr.f32.mxu1 %v1186_v48 }
 0x150   :  { %1461 = vmatmul.mubr.f32.vlgmr.msra.gmra.mxu1 %v1185_v50 }
 0x151   :  { %1719 = vmatpush3.msra.mxu1 %v1302_v49 }
 0x152   :  { %1720 = vmatprep.subr.mxu1 %v1317_v46 }
 0x153   :  { %1721 = vmatpush3.msra.mxu1 %v1301_v51 }
 0x154   :  { %1722 = vmatprep.subr.mxu1 %v1316_v52 }
 0x155   :  { %1723 = vmatpush3.msra.mxu1 %v1300_v53 }
 0x156   :  { %1724 = vmatprep.subr.mxu1 %v1315_v54 }
 0x157   :  { %1725 = vmatpush3.msra.mxu1 %v1299_v8  ;;  %v1612_v8 = vld [vmem:[#allocation2] ss:$0 sm:$0xff] }
 0x158   :  { %1726 = vmatprep.subr.mxu1 %v1314_v55 }
 0x159   :  { %1727 = vmatpush3.msra.mxu1 %v1298_v56 }
 0x15a   :  { %1728 = vmatprep.subr.mxu1 %v1313_v11 }
 0x15b   :  { %1729 = vmatpush3.msra.mxu1 %v1297_v57 }
 0x15c   :  { %1730 = vmatprep.subr.mxu1 %v1312_v62 }
 0x15d   :  { %1731 = vmatpush3.msra.mxu1 %v1296_v3 }
 0x15e   :  { %1732 = vmatprep.subr.mxu1 %v1311_v58 }
 0x15f   :  { %1733 = vmatpush3.msra.mxu1 %v1295_v59 }
 0x160   :  { %1734 = vmatprep.subr.mxu1 %v1310_v60 }
 0x161   :  { %1735 = vmatpush3.msra.mxu1 %v1294_v61 }
 0x162   :  { %1736 = vmatprep.subr.mxu1 %v1309_v63 }
 0x163   :  { %1737 = vmatpush3.msra.mxu1 %v1293_v0 }
 0x164   :  { %1738 = vmatprep.subr.mxu1 %v1308_v1 }
 0x165   :  { %1739 = vmatpush3.msra.mxu1 %v1292_v2 }
 0x166   :  { %1740 = vmatprep.subr.mxu1 %v1307_v4 }
 0x167   :  { %1741 = vmatpush3.msra.mxu1 %v1291_v5 }
 0x168   :  { %1742 = vmatprep.subr.mxu1 %v1306_v6 }
 0x169   :  { %1743 = vmatpush3.msra.mxu1 %v1290_v7 }
 0x16a   :  { %1744 = vmatprep.subr.mxu1 %v1305_v9 }
 0x16b   :  { %1745 = vmatpush3.msra.mxu1 %v1289_v12 }
 0x16c   :  { %1746 = vmatprep.subr.mxu1 %v1304_v13 }
 0x16d   :  { %1747 = vmatpush3.msra.mxu1 %v1288_v14 }
 0x16e   :  { %1748 = vmatprep.subr.mxu1 %v1303_v15 }
 0x16f   :  { %1749 = vmatpush3.msra.mxu1 %v1287_v16 }
 0x187   :  { %v949_v21 = vpop.f32.mrf.mxu0 }
 0x188   :  { %v950_v22 = vadd.f32 %v949_v21, %v556_v19 }
 0x189   :  { %v1020_v23 = vpop.f32.mrf.mxu1  ;;  %v951_v24 = vpop.f32.mrf.mxu0 }
 0x18a   :  { %v1021_v25 = vadd.f32 %v1020_v23, %v950_v22  ;;  %v952_v26 = vadd.f32 %v951_v24, %v560_v20 }
 0x18b   :  { %v1022_v27 = vpop.f32.mrf.mxu1 }
 0x18c   :  { %v1023_v28 = vadd.f32 %v1022_v27, %v952_v26  ;;  %v1179_v29 = vmul.f32 0.2, %v1021_v25  ;;  %vm1171_vm4 = vcmp.gt.f32.partialorder %v1021_v25, 0.0 }
 0x18e   :  { %v1180_v30 = vmul.f32 0.2, %v1023_v28  ;;  %vm1172_vm5 = vcmp.gt.f32.partialorder %v1023_v28, 0.0  ;;  %v1187_v32 = vsel %vm1171_vm4, %v1021_v25, %v1179_v29 }
 0x190   :  { %v1188_v31 = vsel %vm1172_vm5, %v1023_v28, %v1180_v30 }
 0x191   :  { %1530 = vmatprep.mubr.f32.mxu0 %v1188_v31 }
 0x192   :  { %1531 = vmatmul.mubr.f32.vlgmr.msra.gmra.mxu0 %v1187_v32 }
 0x1c9   :  { %v1091_v38 = vpop.f32.mrf.mxu0 }
 0x1ca   :  { %v1162_v39 = vpop.f32.mrf.mxu1  ;;  %v1092_v40 = vadd.f32 %v1091_v38, %v564_v36 }
 0x1cb   :  { %v1093_v42 = vpop.f32.mrf.mxu0 }
 0x1cc   :  { %v1163_v43 = vadd.f32 %v1162_v39, %v1092_v40  ;;  %v1094_v44 = vadd.f32 %v1093_v42, %v568_v37  ;;  %v1164_v45 = vpop.f32.mrf.mxu1 }
 0x1ce   :  { %v1165_v47 = vadd.f32 %v1164_v45, %v1094_v44  ;;  %v1181_v48 = vmul.f32 0.2, %v1163_v43  ;;  %vm1173_vm6 = vcmp.gt.f32.partialorder %v1163_v43, 0.0 }
 0x1d0   :  { %v1182_v49 = vmul.f32 0.2, %v1165_v47  ;;  %vm1174_vm7 = vcmp.gt.f32.partialorder %v1165_v47, 0.0  ;;  %v1189_v46 = vsel %vm1173_vm6, %v1163_v43, %v1181_v48 }
 0x1d2   :  { %v1190_v50 = vsel %vm1174_vm7, %v1165_v47, %v1182_v49 }
 0x1d3   :  { %1600 = vmatprep.mubr.f32.mxu1 %v1190_v50 }
 0x1d4   :  { %1601 = vmatmul.mubr.f32.vlgmr.msra.gmra.mxu1 %v1189_v46 }
 0x1ea   :  { %v1645_v41 = vpop.f32.mrf.mxu0 }
 0x1ec   :  { %v1646_v51 = vpop.f32.mrf.mxu0 }
 0x1ed   :  { %v1647_v54 = vadd.f32 %v1646_v51, %v1645_v41 }
 0x1ef   :  { %v1393_v11 = vadd.f32 %v1647_v54, %v1612_v8 }
 0x210   :  { %v1680_v52 = vpop.f32.mrf.mxu1 }
 0x212   :  { %v1681_v53 = vpop.f32.mrf.mxu1 }
 0x213   :  { %v1682_v56 = vadd.f32 %v1681_v53, %v1680_v52 }
 0x215   :  { %v1463_v3 = vadd.f32 %v1682_v56, %v1393_v11 }
 0x252   :  { %v1715_v35 = vpop.f32.mrf.mxu0 }
 0x254   :  { %v1716_v55 = vpop.f32.mrf.mxu0 }
 0x255   :  { %v1717_v57 = vadd.f32 %v1716_v55, %v1715_v35 }
 0x257   :  { %v1533_v59 = vadd.f32 %v1717_v57, %v1463_v3 }
 0x294   :  { %v1750_v62 = vpop.f32.mrf.mxu1 }
 0x296   :  { %v1751_v58 = vpop.f32.mrf.mxu1 }
 0x297   :  { %v1752_v60 = vadd.f32 %v1751_v58, %v1750_v62 }
 0x299   :  { %v1603_v61 = vadd.f32 %v1752_v60, %v1533_v59 }
 0x29b   :  { %1607 = vst.msk [vmem:[%s3778_s5] sm:$0x3] %vm1606_vm8, %v1603_v61 }

</bundles_post_ra>
